<compile_context>
chip_gen: v6e
topology: v6e:2x2x1
jax: 0.10.0
libtpu: 0.0.40
codegen_flags: <defaults>
</compile_context>

<pallas_src>
import functools

import jax
import jax.numpy as jnp
from jax import lax
from jax.experimental import pallas as pl
from jax.experimental.pallas import tpu as pltpu

_VMEM_LIMIT = 32 * 1024 * 1024  # explicit scoped-VMEM budget (fits v5e/v6e/v7x)


def _round_up(x, m):
    return ((x + m - 1) // m) * m


# ----------------------------------------------------------------------------
# Tiled matmul + bias (+ ReLU) kernel  (classifier layers)
# ----------------------------------------------------------------------------
def _matmul_bias_act_kernel(a_ref, b_ref, bias_ref, o_ref, acc_ref, *, apply_relu):
    """Grid (M/tm, N/tn, K/tk), K innermost.  acc_ref: (tm, tn) f32 scratch."""
    @pl.when(pl.program_id(2) == 0)
    def _init():
        acc_ref[...] = jnp.zeros_like(acc_ref)

    acc_ref[...] += jnp.dot(a_ref[...], b_ref[...],
                            preferred_element_type=jnp.float32)

    @pl.when(pl.program_id(2) == pl.num_programs(2) - 1)
    def _finalize():
        out = acc_ref[...] + bias_ref[...]           # bias block resident across K
        if apply_relu:
            out = jnp.maximum(out, 0.0)
        o_ref[...] = out.astype(o_ref.dtype)


def linear_bias_act(a, w_io, bias, *, relu, tm=256, tn=256, tk=512):
    """o = relu?(a @ w_io + bias) via a K-accumulating tiled Pallas matmul.

    a: (M, K) f32;  w_io: (K, N) f32 (PyTorch weight pre-transposed);  bias: (N,)
    """
    M, K = a.shape
    K2, N = w_io.shape
    assert K == K2
    # (8,128)-aligned tiles, clamped to the (padded) problem size.
    tm = min(tm, _round_up(M, 8))
    tn = min(tn, _round_up(N, 128))
    tk = min(tk, _round_up(K, 128))
    Mp, Np, Kp = _round_up(M, tm), _round_up(N, tn), _round_up(K, tk)
    a_p = jnp.pad(a, ((0, Mp - M), (0, Kp - K)))
    w_p = jnp.pad(w_io, ((0, Kp - K), (0, Np - N)))
    b_p = jnp.pad(bias.reshape(1, N), ((0, 0), (0, Np - N)))

    out = pl.pallas_call(
        functools.partial(_matmul_bias_act_kernel, apply_relu=relu),
        out_shape=jax.ShapeDtypeStruct((Mp, Np), jnp.float32),
        grid_spec=pltpu.PrefetchScalarGridSpec(
            num_scalar_prefetch=0,
            grid=(Mp // tm, Np // tn, Kp // tk),
            in_specs=[
                pl.BlockSpec((tm, tk), lambda i, j, k: (i, k)),
                pl.BlockSpec((tk, tn), lambda i, j, k: (k, j)),
                pl.BlockSpec((1, tn), lambda i, j, k: (0, j)),   # resident over i, k
            ],
            out_specs=pl.BlockSpec((tm, tn), lambda i, j, k: (i, j)),
            scratch_shapes=[pltpu.VMEM((tm, tn), jnp.float32)],
        ),
        compiler_params=pltpu.CompilerParams(
            dimension_semantics=("parallel", "parallel", "arbitrary"),
            vmem_limit_bytes=_VMEM_LIMIT,
        ),
    )(a_p, w_p, b_p)
    return out[:M, :N]


# ----------------------------------------------------------------------------
# Fused 3x3 conv + bias + ReLU kernel (no HBM im2col)
# ----------------------------------------------------------------------------
def _conv3x3_bias_relu_kernel(xp_ref, w_ref, b_ref, o_ref, *, H, W):
    """One padded image per grid step.

    xp_ref: (1, H+2, W+2, Cin) padded NHWC tile (DMA'd once per image)
    w_ref : (9, Cin, Cout)     tap-major weights, resident across the grid
    b_ref : (1, Cout)          resident across the grid
    o_ref : (1, H*W, Cout)

    The nine 3x3 taps are accumulated as 9 small MXU dots straight off the
    VMEM tile -- no 9x-inflated patch matrix ever touches HBM.
    """
    cin = xp_ref.shape[-1]
    cout = o_ref.shape[-1]
    acc = jnp.zeros((H * W, cout), jnp.float32)
    for kh in range(3):
        for kw in range(3):
            # static shifted slice of the VMEM tile; (H, W, Cin) -> (H*W, Cin)
            tap = xp_ref[0, kh:kh + H, kw:kw + W, :].reshape(H * W, cin)
            acc = acc + jnp.dot(tap, w_ref[kh * 3 + kw],
                                preferred_element_type=jnp.float32)
    acc = jnp.maximum(acc + b_ref[...], 0.0)          # fused bias + ReLU epilogue
    o_ref[0] = acc.astype(o_ref.dtype)


def conv3x3_relu(x_nhwc, w9, b):
    """Conv2d(3x3, padding=1) + bias + ReLU.  x: (N,H,W,Cin), w9: (9,Cin,Cout)."""
    N, H, W, Cin = x_nhwc.shape
    Cout = w9.shape[-1]
    xp = jnp.pad(x_nhwc, ((0, 0), (1, 1), (1, 1), (0, 0)))   # glue: ~1x traffic
    out = pl.pallas_call(
        functools.partial(_conv3x3_bias_relu_kernel, H=H, W=W),
        out_shape=jax.ShapeDtypeStruct((N, H * W, Cout), jnp.float32),
        grid_spec=pltpu.PrefetchScalarGridSpec(
            num_scalar_prefetch=0,
            grid=(N,),
            in_specs=[
                pl.BlockSpec((1, H + 2, W + 2, Cin), lambda n: (n, 0, 0, 0)),
                pl.BlockSpec((9, Cin, Cout), lambda n: (0, 0, 0)),   # resident
                pl.BlockSpec((1, Cout), lambda n: (0, 0)),           # resident
            ],
            out_specs=pl.BlockSpec((1, H * W, Cout), lambda n: (n, 0, 0)),
        ),
        compiler_params=pltpu.CompilerParams(
            dimension_semantics=("parallel",),   # batch axis -> megacore / v7x 2 TCs
            vmem_limit_bytes=_VMEM_LIMIT,
        ),
    )(xp, w9, b.reshape(1, Cout))
    return out.reshape(N, H, W, Cout)


# ----------------------------------------------------------------------------
# 2x2 max-pool kernel (no 4x tap stack in HBM)
# ----------------------------------------------------------------------------
def _maxpool2x2_kernel(x_ref, o_ref):
    """x_ref: (Ho, 2, Wo, 2, C) for one image; o_ref: (Ho, Wo, C)."""
    o_ref[...] = jnp.maximum(
        jnp.maximum(x_ref[:, 0, :, 0, :], x_ref[:, 0, :, 1, :]),
        jnp.maximum(x_ref[:, 1, :, 0, :], x_ref[:, 1, :, 1, :]),
    )


def maxpool2x2(x_nhwc):
    """2x2 max pool, stride 2 (floor semantics), NHWC."""
    N, H, W, C = x_nhwc.shape
    Ho, Wo = H // 2, W // 2
    # glue: metadata-only regrouping of the pooling windows
    xr = x_nhwc[:, :2 * Ho, :2 * Wo, :].reshape(N * Ho, 2, Wo, 2, C)
    out = pl.pallas_call(
        _maxpool2x2_kernel,
        out_shape=jax.ShapeDtypeStruct((N * Ho, Wo, C), x_nhwc.dtype),
        grid_spec=pltpu.PrefetchScalarGridSpec(
            num_scalar_prefetch=0,
            grid=(N,),
            in_specs=[pl.BlockSpec((Ho, 2, Wo, 2, C),
                                   lambda n: (n, 0, 0, 0, 0))],
            out_specs=pl.BlockSpec((Ho, Wo, C), lambda n: (n, 0, 0)),
        ),
        compiler_params=pltpu.CompilerParams(
            dimension_semantics=("parallel",),
            vmem_limit_bytes=_VMEM_LIMIT,
        ),
    )(xr)
    return out.reshape(N, Ho, Wo, C)


# ----------------------------------------------------------------------------
# Parameters: PyTorch-layout init + one-time conversion to kernel layouts
# ----------------------------------------------------------------------------
def init_params_torch(key, in_size, out_classes, filters, pool_every, hidden_dims):
    """Random params in PyTorch layouts: conv (Cout,Cin,3,3), linear (out,in)."""
    in_channels, in_h, in_w = in_size
    params = {"conv": [], "hidden": []}
    prev_c, h, w = in_channels, in_h, in_w
    for i, c in enumerate(filters):
        key, k1, k2 = jax.random.split(key, 3)
        params["conv"].append((
            0.1 * jax.random.normal(k1, (c, prev_c, 3, 3), jnp.float32),
            0.1 * jax.random.normal(k2, (c,), jnp.float32),
        ))
        prev_c = c
        if (i + 1) % pool_every == 0:
            h, w = h // 2, w // 2
    classifier_in = prev_c * h * w
    prev = classifier_in
    for feats in hidden_dims:
        key, k1, k2 = jax.random.split(key, 3)
        params["hidden"].append((
            0.1 * jax.random.normal(k1, (feats, prev), jnp.float32),
            0.1 * jax.random.normal(k2, (feats,), jnp.float32),
        ))
        prev = feats
    key, k1, k2 = jax.random.split(key, 3)
    params["out"] = (
        0.1 * jax.random.normal(k1, (out_classes, prev), jnp.float32),
        0.1 * jax.random.normal(k2, (out_classes,), jnp.float32),
    )
    return params, classifier_in


def prepare_kernel_params(params_torch):
    """One-time layout conversion (no per-forward transposes):
       conv (Cout,Cin,3,3) -> tap-major (9,Cin,Cout); linear (out,in) -> (in,out)."""
    kp = {"conv": [], "hidden": []}
    for w, b in params_torch["conv"]:
        cout, cin = w.shape[0], w.shape[1]
        w9 = jnp.transpose(w, (2, 3, 1, 0)).reshape(9, cin, cout)
        kp["conv"].append((w9, b))
    for w, b in params_torch["hidden"]:
        kp["hidden"].append((w.T, b))
    w, b = params_torch["out"]
    kp["out"] = (w.T, b)
    return kp


# ----------------------------------------------------------------------------
# Forward pass
# ----------------------------------------------------------------------------
def conv_classifier_forward(x_nchw, kparams, pool_every, classifier_in):
    N = x_nchw.shape[0]
    x = jnp.transpose(x_nchw, (0, 2, 3, 1))               # NCHW -> NHWC (glue)
    for i, (w9, b) in enumerate(kparams["conv"]):
        x = conv3x3_relu(x, w9, b)
        if (i + 1) % pool_every == 0:
            x = maxpool2x2(x)
    # flatten in NCHW order to match PyTorch's `.view(N, C*H*W)`
    feats = jnp.transpose(x, (0, 3, 1, 2)).reshape(N, classifier_in)
    h = feats
    for (w_io, b) in kparams["hidden"]:
        h = linear_bias_act(h, w_io, b, relu=True)
    w_io, b = kparams["out"]
    return linear_bias_act(h, w_io, b, relu=False)


# ----------------------------------------------------------------------------
# Pure-JAX reference (PyTorch semantics, PyTorch-layout params)
# ----------------------------------------------------------------------------
def reference_forward(x_nchw, tparams, pool_every, classifier_in):
    x = x_nchw
    for i, (w, b) in enumerate(tparams["conv"]):
        x = lax.conv_general_dilated(
            x, w, window_strides=(1, 1), padding=((1, 1), (1, 1)),
            dimension_numbers=("NCHW", "OIHW", "NCHW"))
        x = jnp.maximum(x + b[None, :, None, None], 0.0)
        if (i + 1) % pool_every == 0:
            x = lax.reduce_window(x, -jnp.inf, lax.max,
                                  (1, 1, 2, 2), (1, 1, 2, 2), "VALID")
    h = x.reshape(x.shape[0], classifier_in)
    for (w, b) in tparams["hidden"]:
        h = jnp.maximum(h @ w.T + b, 0.0)
    w, b = tparams["out"]
    return h @ w.T + b


# ----------------------------------------------------------------------------
if __name__ == "__main__":
    # Small config: in_size=(4,16,16), filters=[8,8], pool_every=2, hidden=[32]
    in_size = (4, 16, 16)
    out_classes = 10
    filters = [8, 8]
    pool_every = 2
    hidden_dims = [32]
    batch = 2

    key = jax.random.PRNGKey(0)
    key, pkey, xkey = jax.random.split(key, 3)
    tparams, classifier_in = init_params_torch(pkey, in_size, out_classes,
                                               filters, pool_every, hidden_dims)
    kparams = prepare_kernel_params(tparams)
    x = jax.random.normal(xkey, (batch,) + in_size, jnp.float32)

    fwd = jax.jit(functools.partial(conv_classifier_forward,
                                    pool_every=pool_every,
                                    classifier_in=classifier_in))
    out = jax.block_until_ready(fwd(x, kparams))
    assert out.shape == (batch, out_classes)

    ref = jax.block_until_ready(
        reference_forward(x, tparams, pool_every, classifier_in))
    assert jnp.allclose(out, ref, rtol=1e-3, atol=1e-3), "mismatch vs reference"

    print("KERNEL_OK")
</pallas_src>

<mosaic_0001>
module attributes {stable_mosaic.version = 11 : i64} {
  func.func @_conv3x3_bias_relu_kernel(%arg0: i32, %arg1: memref<1x18x18x4xf32, #tpu.memory_space<vmem>>, %arg2: memref<9x4x8xf32, #tpu.memory_space<vmem>>, %arg3: memref<1x8xf32, #tpu.memory_space<vmem>>, %arg4: memref<1x256x8xf32, #tpu.memory_space<vmem>>) attributes {dimension_semantics = [#tpu.dimension_semantics<parallel>], iteration_bounds = array<i64: 2>, scalar_prefetch = 0 : i64, scratch_operands = 0 : i64, tpu.core_type = #tpu.core_type<tc>, window_params = [{transform_indices = @transform_0, window_bounds = array<i64: 1, 18, 18, 4>}, {pipeline_mode = #tpu.pipeline_mode<synchronous>, transform_indices = @transform_1, window_bounds = array<i64: 9, 4, 8>}, {pipeline_mode = #tpu.pipeline_mode<synchronous>, transform_indices = @transform_2, window_bounds = array<i64: 1, 8>}, {transform_indices = @transform_3, window_bounds = array<i64: 1, 256, 8>}]} {
    %cst = arith.constant 0.000000e+00 : f32
    %0 = vector.broadcast %cst : f32 to vector<256x8xf32>
    %c0 = arith.constant 0 : index
    %c0_0 = arith.constant 0 : index
    %c0_1 = arith.constant 0 : index
    %c0_2 = arith.constant 0 : index
    %1 = vector.load %arg1[%c0, %c0_0, %c0_1, %c0_2] : memref<1x18x18x4xf32, #tpu.memory_space<vmem>>, vector<1x16x16x4xf32>
    %2 = vector.shape_cast %1 : vector<1x16x16x4xf32> to vector<16x16x4xf32>
    %3 = vector.shape_cast %2 : vector<16x16x4xf32> to vector<256x4xf32>
    %c0_3 = arith.constant 0 : index
    %c0_4 = arith.constant 0 : index
    %c0_5 = arith.constant 0 : index
    %4 = vector.load %arg2[%c0_3, %c0_4, %c0_5] : memref<9x4x8xf32, #tpu.memory_space<vmem>>, vector<1x4x8xf32>
    %5 = vector.shape_cast %4 : vector<1x4x8xf32> to vector<4x8xf32>
    %cst_6 = arith.constant dense<0.000000e+00> : vector<256x8xf32>
    %6 = tpu.matmul %3, %5, %cst_6 {dimension_numbers = #tpu.dot_dimension_numbers<[1], [0], [0], [1], [0, 0, 1, 1], [], []>} : vector<256x4xf32>, vector<4x8xf32>, vector<256x8xf32> -> vector<256x8xf32>
    %7 = arith.addf %0, %6 : vector<256x8xf32>
    %c0_7 = arith.constant 0 : index
    %c0_8 = arith.constant 0 : index
    %c1 = arith.constant 1 : index
    %c0_9 = arith.constant 0 : index
    %8 = vector.load %arg1[%c0_7, %c0_8, %c1, %c0_9] : memref<1x18x18x4xf32, #tpu.memory_space<vmem>>, vector<1x16x16x4xf32>
    %9 = vector.shape_cast %8 : vector<1x16x16x4xf32> to vector<16x16x4xf32>
    %10 = vector.shape_cast %9 : vector<16x16x4xf32> to vector<256x4xf32>
    %c1_10 = arith.constant 1 : index
    %c0_11 = arith.constant 0 : index
    %c0_12 = arith.constant 0 : index
    %11 = vector.load %arg2[%c1_10, %c0_11, %c0_12] : memref<9x4x8xf32, #tpu.memory_space<vmem>>, vector<1x4x8xf32>
    %12 = vector.shape_cast %11 : vector<1x4x8xf32> to vector<4x8xf32>
    %cst_13 = arith.constant dense<0.000000e+00> : vector<256x8xf32>
    %13 = tpu.matmul %10, %12, %cst_13 {dimension_numbers = #tpu.dot_dimension_numbers<[1], [0], [0], [1], [0, 0, 1, 1], [], []>} : vector<256x4xf32>, vector<4x8xf32>, vector<256x8xf32> -> vector<256x8xf32>
    %14 = arith.addf %7, %13 : vector<256x8xf32>
    %c0_14 = arith.constant 0 : index
    %c0_15 = arith.constant 0 : index
    %c2 = arith.constant 2 : index
    %c0_16 = arith.constant 0 : index
    %15 = vector.load %arg1[%c0_14, %c0_15, %c2, %c0_16] : memref<1x18x18x4xf32, #tpu.memory_space<vmem>>, vector<1x16x16x4xf32>
    %16 = vector.shape_cast %15 : vector<1x16x16x4xf32> to vector<16x16x4xf32>
    %17 = vector.shape_cast %16 : vector<16x16x4xf32> to vector<256x4xf32>
    %c2_17 = arith.constant 2 : index
    %c0_18 = arith.constant 0 : index
    %c0_19 = arith.constant 0 : index
    %18 = vector.load %arg2[%c2_17, %c0_18, %c0_19] : memref<9x4x8xf32, #tpu.memory_space<vmem>>, vector<1x4x8xf32>
    %19 = vector.shape_cast %18 : vector<1x4x8xf32> to vector<4x8xf32>
    %cst_20 = arith.constant dense<0.000000e+00> : vector<256x8xf32>
    %20 = tpu.matmul %17, %19, %cst_20 {dimension_numbers = #tpu.dot_dimension_numbers<[1], [0], [0], [1], [0, 0, 1, 1], [], []>} : vector<256x4xf32>, vector<4x8xf32>, vector<256x8xf32> -> vector<256x8xf32>
    %21 = arith.addf %14, %20 : vector<256x8xf32>
    %c0_21 = arith.constant 0 : index
    %c1_22 = arith.constant 1 : index
    %c0_23 = arith.constant 0 : index
    %c0_24 = arith.constant 0 : index
    %22 = vector.load %arg1[%c0_21, %c1_22, %c0_23, %c0_24] : memref<1x18x18x4xf32, #tpu.memory_space<vmem>>, vector<1x16x16x4xf32>
    %23 = vector.shape_cast %22 : vector<1x16x16x4xf32> to vector<16x16x4xf32>
    %24 = vector.shape_cast %23 : vector<16x16x4xf32> to vector<256x4xf32>
    %c3 = arith.constant 3 : index
    %c0_25 = arith.constant 0 : index
    %c0_26 = arith.constant 0 : index
    %25 = vector.load %arg2[%c3, %c0_25, %c0_26] : memref<9x4x8xf32, #tpu.memory_space<vmem>>, vector<1x4x8xf32>
    %26 = vector.shape_cast %25 : vector<1x4x8xf32> to vector<4x8xf32>
    %cst_27 = arith.constant dense<0.000000e+00> : vector<256x8xf32>
    %27 = tpu.matmul %24, %26, %cst_27 {dimension_numbers = #tpu.dot_dimension_numbers<[1], [0], [0], [1], [0, 0, 1, 1], [], []>} : vector<256x4xf32>, vector<4x8xf32>, vector<256x8xf32> -> vector<256x8xf32>
    %28 = arith.addf %21, %27 : vector<256x8xf32>
    %c0_28 = arith.constant 0 : index
    %c1_29 = arith.constant 1 : index
    %c1_30 = arith.constant 1 : index
    %c0_31 = arith.constant 0 : index
    %29 = vector.load %arg1[%c0_28, %c1_29, %c1_30, %c0_31] : memref<1x18x18x4xf32, #tpu.memory_space<vmem>>, vector<1x16x16x4xf32>
    %30 = vector.shape_cast %29 : vector<1x16x16x4xf32> to vector<16x16x4xf32>
    %31 = vector.shape_cast %30 : vector<16x16x4xf32> to vector<256x4xf32>
    %c4 = arith.constant 4 : index
    %c0_32 = arith.constant 0 : index
    %c0_33 = arith.constant 0 : index
    %32 = vector.load %arg2[%c4, %c0_32, %c0_33] : memref<9x4x8xf32, #tpu.memory_space<vmem>>, vector<1x4x8xf32>
    %33 = vector.shape_cast %32 : vector<1x4x8xf32> to vector<4x8xf32>
    %cst_34 = arith.constant dense<0.000000e+00> : vector<256x8xf32>
    %34 = tpu.matmul %31, %33, %cst_34 {dimension_numbers = #tpu.dot_dimension_numbers<[1], [0], [0], [1], [0, 0, 1, 1], [], []>} : vector<256x4xf32>, vector<4x8xf32>, vector<256x8xf32> -> vector<256x8xf32>
    %35 = arith.addf %28, %34 : vector<256x8xf32>
    %c0_35 = arith.constant 0 : index
    %c1_36 = arith.constant 1 : index
    %c2_37 = arith.constant 2 : index
    %c0_38 = arith.constant 0 : index
    %36 = vector.load %arg1[%c0_35, %c1_36, %c2_37, %c0_38] : memref<1x18x18x4xf32, #tpu.memory_space<vmem>>, vector<1x16x16x4xf32>
    %37 = vector.shape_cast %36 : vector<1x16x16x4xf32> to vector<16x16x4xf32>
    %38 = vector.shape_cast %37 : vector<16x16x4xf32> to vector<256x4xf32>
    %c5 = arith.constant 5 : index
    %c0_39 = arith.constant 0 : index
    %c0_40 = arith.constant 0 : index
    %39 = vector.load %arg2[%c5, %c0_39, %c0_40] : memref<9x4x8xf32, #tpu.memory_space<vmem>>, vector<1x4x8xf32>
    %40 = vector.shape_cast %39 : vector<1x4x8xf32> to vector<4x8xf32>
    %cst_41 = arith.constant dense<0.000000e+00> : vector<256x8xf32>
    %41 = tpu.matmul %38, %40, %cst_41 {dimension_numbers = #tpu.dot_dimension_numbers<[1], [0], [0], [1], [0, 0, 1, 1], [], []>} : vector<256x4xf32>, vector<4x8xf32>, vector<256x8xf32> -> vector<256x8xf32>
    %42 = arith.addf %35, %41 : vector<256x8xf32>
    %c0_42 = arith.constant 0 : index
    %c2_43 = arith.constant 2 : index
    %c0_44 = arith.constant 0 : index
    %c0_45 = arith.constant 0 : index
    %43 = vector.load %arg1[%c0_42, %c2_43, %c0_44, %c0_45] : memref<1x18x18x4xf32, #tpu.memory_space<vmem>>, vector<1x16x16x4xf32>
    %44 = vector.shape_cast %43 : vector<1x16x16x4xf32> to vector<16x16x4xf32>
    %45 = vector.shape_cast %44 : vector<16x16x4xf32> to vector<256x4xf32>
    %c6 = arith.constant 6 : index
    %c0_46 = arith.constant 0 : index
    %c0_47 = arith.constant 0 : index
    %46 = vector.load %arg2[%c6, %c0_46, %c0_47] : memref<9x4x8xf32, #tpu.memory_space<vmem>>, vector<1x4x8xf32>
    %47 = vector.shape_cast %46 : vector<1x4x8xf32> to vector<4x8xf32>
    %cst_48 = arith.constant dense<0.000000e+00> : vector<256x8xf32>
    %48 = tpu.matmul %45, %47, %cst_48 {dimension_numbers = #tpu.dot_dimension_numbers<[1], [0], [0], [1], [0, 0, 1, 1], [], []>} : vector<256x4xf32>, vector<4x8xf32>, vector<256x8xf32> -> vector<256x8xf32>
    %49 = arith.addf %42, %48 : vector<256x8xf32>
    %c0_49 = arith.constant 0 : index
    %c2_50 = arith.constant 2 : index
    %c1_51 = arith.constant 1 : index
    %c0_52 = arith.constant 0 : index
    %50 = vector.load %arg1[%c0_49, %c2_50, %c1_51, %c0_52] : memref<1x18x18x4xf32, #tpu.memory_space<vmem>>, vector<1x16x16x4xf32>
    %51 = vector.shape_cast %50 : vector<1x16x16x4xf32> to vector<16x16x4xf32>
    %52 = vector.shape_cast %51 : vector<16x16x4xf32> to vector<256x4xf32>
    %c7 = arith.constant 7 : index
    %c0_53 = arith.constant 0 : index
    %c0_54 = arith.constant 0 : index
    %53 = vector.load %arg2[%c7, %c0_53, %c0_54] : memref<9x4x8xf32, #tpu.memory_space<vmem>>, vector<1x4x8xf32>
    %54 = vector.shape_cast %53 : vector<1x4x8xf32> to vector<4x8xf32>
    %cst_55 = arith.constant dense<0.000000e+00> : vector<256x8xf32>
    %55 = tpu.matmul %52, %54, %cst_55 {dimension_numbers = #tpu.dot_dimension_numbers<[1], [0], [0], [1], [0, 0, 1, 1], [], []>} : vector<256x4xf32>, vector<4x8xf32>, vector<256x8xf32> -> vector<256x8xf32>
    %56 = arith.addf %49, %55 : vector<256x8xf32>
    %c0_56 = arith.constant 0 : index
    %c2_57 = arith.constant 2 : index
    %c2_58 = arith.constant 2 : index
    %c0_59 = arith.constant 0 : index
    %57 = vector.load %arg1[%c0_56, %c2_57, %c2_58, %c0_59] : memref<1x18x18x4xf32, #tpu.memory_space<vmem>>, vector<1x16x16x4xf32>
    %58 = vector.shape_cast %57 : vector<1x16x16x4xf32> to vector<16x16x4xf32>
    %59 = vector.shape_cast %58 : vector<16x16x4xf32> to vector<256x4xf32>
    %c8 = arith.constant 8 : index
    %c0_60 = arith.constant 0 : index
    %c0_61 = arith.constant 0 : index
    %60 = vector.load %arg2[%c8, %c0_60, %c0_61] : memref<9x4x8xf32, #tpu.memory_space<vmem>>, vector<1x4x8xf32>
    %61 = vector.shape_cast %60 : vector<1x4x8xf32> to vector<4x8xf32>
    %cst_62 = arith.constant dense<0.000000e+00> : vector<256x8xf32>
    %62 = tpu.matmul %59, %61, %cst_62 {dimension_numbers = #tpu.dot_dimension_numbers<[1], [0], [0], [1], [0, 0, 1, 1], [], []>} : vector<256x4xf32>, vector<4x8xf32>, vector<256x8xf32> -> vector<256x8xf32>
    %63 = arith.addf %56, %62 : vector<256x8xf32>
    %c0_63 = arith.constant 0 : index
    %c0_64 = arith.constant 0 : index
    %64 = vector.load %arg3[%c0_63, %c0_64] : memref<1x8xf32, #tpu.memory_space<vmem>>, vector<1x8xf32>
    %65 = vector.broadcast %64 : vector<1x8xf32> to vector<256x8xf32>
    %66 = arith.addf %63, %65 : vector<256x8xf32>
    %cst_65 = arith.constant 0.000000e+00 : f32
    %67 = vector.broadcast %cst_65 : f32 to vector<256x8xf32>
    %68 = arith.maximumf %66, %67 : vector<256x8xf32>
    %c0_66 = arith.constant 0 : index
    %c0_67 = arith.constant 0 : index
    %c0_68 = arith.constant 0 : index
    %69 = vector.load %arg4[%c0_66, %c0_67, %c0_68] : memref<1x256x8xf32, #tpu.memory_space<vmem>>, vector<1x256x8xf32>
    %70 = vector.shape_cast %69 : vector<1x256x8xf32> to vector<256x8xf32>
    %71 = vector.shape_cast %68 : vector<256x8xf32> to vector<1x256x8xf32>
    tpu.vector_store %arg4[%c0_66, %c0_67, %c0_68], %71 {strides = array<i32>} : memref<1x256x8xf32, #tpu.memory_space<vmem>>, vector<1x256x8xf32>,
    return
  }
  func.func @transform_0(%arg0: i32) -> (i32, i32, i32, i32) {
    %c0_i32 = arith.constant 0 : i32
    %c0_i32_0 = arith.constant 0 : i32
    %c0_i32_1 = arith.constant 0 : i32
    %c0_i32_2 = arith.constant 0 : i32
    return %arg0, %c0_i32, %c0_i32_0, %c0_i32_1 : i32, i32, i32, i32
  }
  func.func @transform_1(%arg0: i32) -> (i32, i32, i32) {
    %c0_i32 = arith.constant 0 : i32
    %c0_i32_0 = arith.constant 0 : i32
    %c0_i32_1 = arith.constant 0 : i32
    %c0_i32_2 = arith.constant 0 : i32
    return %c0_i32, %c0_i32_0, %c0_i32_1 : i32, i32, i32
  }
  func.func @transform_2(%arg0: i32) -> (i32, i32) {
    %c0_i32 = arith.constant 0 : i32
    %c0_i32_0 = arith.constant 0 : i32
    %c0_i32_1 = arith.constant 0 : i32
    return %c0_i32, %c0_i32_0 : i32, i32
  }
  func.func @transform_3(%arg0: i32) -> (i32, i32, i32) {
    %c0_i32 = arith.constant 0 : i32
    %c0_i32_0 = arith.constant 0 : i32
    %c0_i32_1 = arith.constant 0 : i32
    return %arg0, %c0_i32, %c0_i32_0 : i32, i32, i32
  }
}

module attributes {stable_mosaic.version = 11 : i64} {
  func.func @_conv3x3_bias_relu_kernel(%arg0: i32, %arg1: memref<1x18x18x8xf32, #tpu.memory_space<vmem>>, %arg2: memref<9x8x8xf32, #tpu.memory_space<vmem>>, %arg3: memref<1x8xf32, #tpu.memory_space<vmem>>, %arg4: memref<1x256x8xf32, #tpu.memory_space<vmem>>) attributes {dimension_semantics = [#tpu.dimension_semantics<parallel>], iteration_bounds = array<i64: 2>, scalar_prefetch = 0 : i64, scratch_operands = 0 : i64, tpu.core_type = #tpu.core_type<tc>, window_params = [{transform_indices = @transform_0, window_bounds = array<i64: 1, 18, 18, 8>}, {pipeline_mode = #tpu.pipeline_mode<synchronous>, transform_indices = @transform_1, window_bounds = array<i64: 9, 8, 8>}, {pipeline_mode = #tpu.pipeline_mode<synchronous>, transform_indices = @transform_2, window_bounds = array<i64: 1, 8>}, {transform_indices = @transform_3, window_bounds = array<i64: 1, 256, 8>}]} {
    %cst = arith.constant 0.000000e+00 : f32
    %0 = vector.broadcast %cst : f32 to vector<256x8xf32>
    %c0 = arith.constant 0 : index
    %c0_0 = arith.constant 0 : index
    %c0_1 = arith.constant 0 : index
    %c0_2 = arith.constant 0 : index
    %1 = vector.load %arg1[%c0, %c0_0, %c0_1, %c0_2] : memref<1x18x18x8xf32, #tpu.memory_space<vmem>>, vector<1x16x16x8xf32>
    %2 = vector.shape_cast %1 : vector<1x16x16x8xf32> to vector<16x16x8xf32>
    %3 = vector.shape_cast %2 : vector<16x16x8xf32> to vector<256x8xf32>
    %c0_3 = arith.constant 0 : index
    %c0_4 = arith.constant 0 : index
    %c0_5 = arith.constant 0 : index
    %4 = vector.load %arg2[%c0_3, %c0_4, %c0_5] : memref<9x8x8xf32, #tpu.memory_space<vmem>>, vector<1x8x8xf32>
    %5 = vector.shape_cast %4 : vector<1x8x8xf32> to vector<8x8xf32>
    %cst_6 = arith.constant dense<0.000000e+00> : vector<256x8xf32>
    %6 = tpu.matmul %3, %5, %cst_6 {dimension_numbers = #tpu.dot_dimension_numbers<[1], [0], [0], [1], [0, 0, 1, 1], [], []>} : vector<256x8xf32>, vector<8x8xf32>, vector<256x8xf32> -> vector<256x8xf32>
    %7 = arith.addf %0, %6 : vector<256x8xf32>
    %c0_7 = arith.constant 0 : index
    %c0_8 = arith.constant 0 : index
    %c1 = arith.constant 1 : index
    %c0_9 = arith.constant 0 : index
    %8 = vector.load %arg1[%c0_7, %c0_8, %c1, %c0_9] : memref<1x18x18x8xf32, #tpu.memory_space<vmem>>, vector<1x16x16x8xf32>
    %9 = vector.shape_cast %8 : vector<1x16x16x8xf32> to vector<16x16x8xf32>
    %10 = vector.shape_cast %9 : vector<16x16x8xf32> to vector<256x8xf32>
    %c1_10 = arith.constant 1 : index
    %c0_11 = arith.constant 0 : index
    %c0_12 = arith.constant 0 : index
    %11 = vector.load %arg2[%c1_10, %c0_11, %c0_12] : memref<9x8x8xf32, #tpu.memory_space<vmem>>, vector<1x8x8xf32>
    %12 = vector.shape_cast %11 : vector<1x8x8xf32> to vector<8x8xf32>
    %cst_13 = arith.constant dense<0.000000e+00> : vector<256x8xf32>
    %13 = tpu.matmul %10, %12, %cst_13 {dimension_numbers = #tpu.dot_dimension_numbers<[1], [0], [0], [1], [0, 0, 1, 1], [], []>} : vector<256x8xf32>, vector<8x8xf32>, vector<256x8xf32> -> vector<256x8xf32>
    %14 = arith.addf %7, %13 : vector<256x8xf32>
    %c0_14 = arith.constant 0 : index
    %c0_15 = arith.constant 0 : index
    %c2 = arith.constant 2 : index
    %c0_16 = arith.constant 0 : index
    %15 = vector.load %arg1[%c0_14, %c0_15, %c2, %c0_16] : memref<1x18x18x8xf32, #tpu.memory_space<vmem>>, vector<1x16x16x8xf32>
    %16 = vector.shape_cast %15 : vector<1x16x16x8xf32> to vector<16x16x8xf32>
    %17 = vector.shape_cast %16 : vector<16x16x8xf32> to vector<256x8xf32>
    %c2_17 = arith.constant 2 : index
    %c0_18 = arith.constant 0 : index
    %c0_19 = arith.constant 0 : index
    %18 = vector.load %arg2[%c2_17, %c0_18, %c0_19] : memref<9x8x8xf32, #tpu.memory_space<vmem>>, vector<1x8x8xf32>
    %19 = vector.shape_cast %18 : vector<1x8x8xf32> to vector<8x8xf32>
    %cst_20 = arith.constant dense<0.000000e+00> : vector<256x8xf32>
    %20 = tpu.matmul %17, %19, %cst_20 {dimension_numbers = #tpu.dot_dimension_numbers<[1], [0], [0], [1], [0, 0, 1, 1], [], []>} : vector<256x8xf32>, vector<8x8xf32>, vector<256x8xf32> -> vector<256x8xf32>
    %21 = arith.addf %14, %20 : vector<256x8xf32>
    %c0_21 = arith.constant 0 : index
    %c1_22 = arith.constant 1 : index
    %c0_23 = arith.constant 0 : index
    %c0_24 = arith.constant 0 : index
    %22 = vector.load %arg1[%c0_21, %c1_22, %c0_23, %c0_24] : memref<1x18x18x8xf32, #tpu.memory_space<vmem>>, vector<1x16x16x8xf32>
    %23 = vector.shape_cast %22 : vector<1x16x16x8xf32> to vector<16x16x8xf32>
    %24 = vector.shape_cast %23 : vector<16x16x8xf32> to vector<256x8xf32>
    %c3 = arith.constant 3 : index
    %c0_25 = arith.constant 0 : index
    %c0_26 = arith.constant 0 : index
    %25 = vector.load %arg2[%c3, %c0_25, %c0_26] : memref<9x8x8xf32, #tpu.memory_space<vmem>>, vector<1x8x8xf32>
    %26 = vector.shape_cast %25 : vector<1x8x8xf32> to vector<8x8xf32>
    %cst_27 = arith.constant dense<0.000000e+00> : vector<256x8xf32>
    %27 = tpu.matmul %24, %26, %cst_27 {dimension_numbers = #tpu.dot_dimension_numbers<[1], [0], [0], [1], [0, 0, 1, 1], [], []>} : vector<256x8xf32>, vector<8x8xf32>, vector<256x8xf32> -> vector<256x8xf32>
    %28 = arith.addf %21, %27 : vector<256x8xf32>
    %c0_28 = arith.constant 0 : index
    %c1_29 = arith.constant 1 : index
    %c1_30 = arith.constant 1 : index
    %c0_31 = arith.constant 0 : index
    %29 = vector.load %arg1[%c0_28, %c1_29, %c1_30, %c0_31] : memref<1x18x18x8xf32, #tpu.memory_space<vmem>>, vector<1x16x16x8xf32>
    %30 = vector.shape_cast %29 : vector<1x16x16x8xf32> to vector<16x16x8xf32>
    %31 = vector.shape_cast %30 : vector<16x16x8xf32> to vector<256x8xf32>
    %c4 = arith.constant 4 : index
    %c0_32 = arith.constant 0 : index
    %c0_33 = arith.constant 0 : index
    %32 = vector.load %arg2[%c4, %c0_32, %c0_33] : memref<9x8x8xf32, #tpu.memory_space<vmem>>, vector<1x8x8xf32>
    %33 = vector.shape_cast %32 : vector<1x8x8xf32> to vector<8x8xf32>
    %cst_34 = arith.constant dense<0.000000e+00> : vector<256x8xf32>
    %34 = tpu.matmul %31, %33, %cst_34 {dimension_numbers = #tpu.dot_dimension_numbers<[1], [0], [0], [1], [0, 0, 1, 1], [], []>} : vector<256x8xf32>, vector<8x8xf32>, vector<256x8xf32> -> vector<256x8xf32>
    %35 = arith.addf %28, %34 : vector<256x8xf32>
    %c0_35 = arith.constant 0 : index
    %c1_36 = arith.constant 1 : index
    %c2_37 = arith.constant 2 : index
    %c0_38 = arith.constant 0 : index
    %36 = vector.load %arg1[%c0_35, %c1_36, %c2_37, %c0_38] : memref<1x18x18x8xf32, #tpu.memory_space<vmem>>, vector<1x16x16x8xf32>
    %37 = vector.shape_cast %36 : vector<1x16x16x8xf32> to vector<16x16x8xf32>
    %38 = vector.shape_cast %37 : vector<16x16x8xf32> to vector<256x8xf32>
    %c5 = arith.constant 5 : index
    %c0_39 = arith.constant 0 : index
    %c0_40 = arith.constant 0 : index
    %39 = vector.load %arg2[%c5, %c0_39, %c0_40] : memref<9x8x8xf32, #tpu.memory_space<vmem>>, vector<1x8x8xf32>
    %40 = vector.shape_cast %39 : vector<1x8x8xf32> to vector<8x8xf32>
    %cst_41 = arith.constant dense<0.000000e+00> : vector<256x8xf32>
    %41 = tpu.matmul %38, %40, %cst_41 {dimension_numbers = #tpu.dot_dimension_numbers<[1], [0], [0], [1], [0, 0, 1, 1], [], []>} : vector<256x8xf32>, vector<8x8xf32>, vector<256x8xf32> -> vector<256x8xf32>
    %42 = arith.addf %35, %41 : vector<256x8xf32>
    %c0_42 = arith.constant 0 : index
    %c2_43 = arith.constant 2 : index
    %c0_44 = arith.constant 0 : index
    %c0_45 = arith.constant 0 : index
    %43 = vector.load %arg1[%c0_42, %c2_43, %c0_44, %c0_45] : memref<1x18x18x8xf32, #tpu.memory_space<vmem>>, vector<1x16x16x8xf32>
    %44 = vector.shape_cast %43 : vector<1x16x16x8xf32> to vector<16x16x8xf32>
    %45 = vector.shape_cast %44 : vector<16x16x8xf32> to vector<256x8xf32>
    %c6 = arith.constant 6 : index
    %c0_46 = arith.constant 0 : index
    %c0_47 = arith.constant 0 : index
    %46 = vector.load %arg2[%c6, %c0_46, %c0_47] : memref<9x8x8xf32, #tpu.memory_space<vmem>>, vector<1x8x8xf32>
    %47 = vector.shape_cast %46 : vector<1x8x8xf32> to vector<8x8xf32>
    %cst_48 = arith.constant dense<0.000000e+00> : vector<256x8xf32>
    %48 = tpu.matmul %45, %47, %cst_48 {dimension_numbers = #tpu.dot_dimension_numbers<[1], [0], [0], [1], [0, 0, 1, 1], [], []>} : vector<256x8xf32>, vector<8x8xf32>, vector<256x8xf32> -> vector<256x8xf32>
    %49 = arith.addf %42, %48 : vector<256x8xf32>
    %c0_49 = arith.constant 0 : index
    %c2_50 = arith.constant 2 : index
    %c1_51 = arith.constant 1 : index
    %c0_52 = arith.constant 0 : index
    %50 = vector.load %arg1[%c0_49, %c2_50, %c1_51, %c0_52] : memref<1x18x18x8xf32, #tpu.memory_space<vmem>>, vector<1x16x16x8xf32>
    %51 = vector.shape_cast %50 : vector<1x16x16x8xf32> to vector<16x16x8xf32>
    %52 = vector.shape_cast %51 : vector<16x16x8xf32> to vector<256x8xf32>
    %c7 = arith.constant 7 : index
    %c0_53 = arith.constant 0 : index
    %c0_54 = arith.constant 0 : index
    %53 = vector.load %arg2[%c7, %c0_53, %c0_54] : memref<9x8x8xf32, #tpu.memory_space<vmem>>, vector<1x8x8xf32>
    %54 = vector.shape_cast %53 : vector<1x8x8xf32> to vector<8x8xf32>
    %cst_55 = arith.constant dense<0.000000e+00> : vector<256x8xf32>
    %55 = tpu.matmul %52, %54, %cst_55 {dimension_numbers = #tpu.dot_dimension_numbers<[1], [0], [0], [1], [0, 0, 1, 1], [], []>} : vector<256x8xf32>, vector<8x8xf32>, vector<256x8xf32> -> vector<256x8xf32>
    %56 = arith.addf %49, %55 : vector<256x8xf32>
    %c0_56 = arith.constant 0 : index
    %c2_57 = arith.constant 2 : index
    %c2_58 = arith.constant 2 : index
    %c0_59 = arith.constant 0 : index
    %57 = vector.load %arg1[%c0_56, %c2_57, %c2_58, %c0_59] : memref<1x18x18x8xf32, #tpu.memory_space<vmem>>, vector<1x16x16x8xf32>
    %58 = vector.shape_cast %57 : vector<1x16x16x8xf32> to vector<16x16x8xf32>
    %59 = vector.shape_cast %58 : vector<16x16x8xf32> to vector<256x8xf32>
    %c8 = arith.constant 8 : index
    %c0_60 = arith.constant 0 : index
    %c0_61 = arith.constant 0 : index
    %60 = vector.load %arg2[%c8, %c0_60, %c0_61] : memref<9x8x8xf32, #tpu.memory_space<vmem>>, vector<1x8x8xf32>
    %61 = vector.shape_cast %60 : vector<1x8x8xf32> to vector<8x8xf32>
    %cst_62 = arith.constant dense<0.000000e+00> : vector<256x8xf32>
    %62 = tpu.matmul %59, %61, %cst_62 {dimension_numbers = #tpu.dot_dimension_numbers<[1], [0], [0], [1], [0, 0, 1, 1], [], []>} : vector<256x8xf32>, vector<8x8xf32>, vector<256x8xf32> -> vector<256x8xf32>
    %63 = arith.addf %56, %62 : vector<256x8xf32>
    %c0_63 = arith.constant 0 : index
    %c0_64 = arith.constant 0 : index
    %64 = vector.load %arg3[%c0_63, %c0_64] : memref<1x8xf32, #tpu.memory_space<vmem>>, vector<1x8xf32>
    %65 = vector.broadcast %64 : vector<1x8xf32> to vector<256x8xf32>
    %66 = arith.addf %63, %65 : vector<256x8xf32>
    %cst_65 = arith.constant 0.000000e+00 : f32
    %67 = vector.broadcast %cst_65 : f32 to vector<256x8xf32>
    %68 = arith.maximumf %66, %67 : vector<256x8xf32>
    %c0_66 = arith.constant 0 : index
    %c0_67 = arith.constant 0 : index
    %c0_68 = arith.constant 0 : index
    %69 = vector.load %arg4[%c0_66, %c0_67, %c0_68] : memref<1x256x8xf32, #tpu.memory_space<vmem>>, vector<1x256x8xf32>
    %70 = vector.shape_cast %69 : vector<1x256x8xf32> to vector<256x8xf32>
    %71 = vector.shape_cast %68 : vector<256x8xf32> to vector<1x256x8xf32>
    tpu.vector_store %arg4[%c0_66, %c0_67, %c0_68], %71 {strides = array<i32>} : memref<1x256x8xf32, #tpu.memory_space<vmem>>, vector<1x256x8xf32>,
    return
  }
  func.func @transform_0(%arg0: i32) -> (i32, i32, i32, i32) {
    %c0_i32 = arith.constant 0 : i32
    %c0_i32_0 = arith.constant 0 : i32
    %c0_i32_1 = arith.constant 0 : i32
    %c0_i32_2 = arith.constant 0 : i32
    return %arg0, %c0_i32, %c0_i32_0, %c0_i32_1 : i32, i32, i32, i32
  }
  func.func @transform_1(%arg0: i32) -> (i32, i32, i32) {
    %c0_i32 = arith.constant 0 : i32
    %c0_i32_0 = arith.constant 0 : i32
    %c0_i32_1 = arith.constant 0 : i32
    %c0_i32_2 = arith.constant 0 : i32
    return %c0_i32, %c0_i32_0, %c0_i32_1 : i32, i32, i32
  }
  func.func @transform_2(%arg0: i32) -> (i32, i32) {
    %c0_i32 = arith.constant 0 : i32
    %c0_i32_0 = arith.constant 0 : i32
    %c0_i32_1 = arith.constant 0 : i32
    return %c0_i32, %c0_i32_0 : i32, i32
  }
  func.func @transform_3(%arg0: i32) -> (i32, i32, i32) {
    %c0_i32 = arith.constant 0 : i32
    %c0_i32_0 = arith.constant 0 : i32
    %c0_i32_1 = arith.constant 0 : i32
    return %arg0, %c0_i32, %c0_i32_0 : i32, i32, i32
  }
}

module attributes {stable_mosaic.version = 11 : i64} {
  func.func @_maxpool2x2_kernel(%arg0: i32, %arg1: memref<8x2x8x2x8xf32, #tpu.memory_space<vmem>>, %arg2: memref<8x8x8xf32, #tpu.memory_space<vmem>>) attributes {dimension_semantics = [#tpu.dimension_semantics<parallel>], iteration_bounds = array<i64: 2>, scalar_prefetch = 0 : i64, scratch_operands = 0 : i64, tpu.core_type = #tpu.core_type<tc>, window_params = [{transform_indices = @transform_0, window_bounds = array<i64: 8, 2, 8, 2, 8>}, {transform_indices = @transform_1, window_bounds = array<i64: 8, 8, 8>}]} {
    %c0 = arith.constant 0 : index
    %c0_0 = arith.constant 0 : index
    %c0_1 = arith.constant 0 : index
    %c0_2 = arith.constant 0 : index
    %c0_3 = arith.constant 0 : index
    %0 = vector.load %arg1[%c0, %c0_0, %c0_1, %c0_2, %c0_3] : memref<8x2x8x2x8xf32, #tpu.memory_space<vmem>>, vector<8x1x8x1x8xf32>
    %1 = vector.shape_cast %0 : vector<8x1x8x1x8xf32> to vector<8x8x8xf32>
    %c0_4 = arith.constant 0 : index
    %c0_5 = arith.constant 0 : index
    %c0_6 = arith.constant 0 : index
    %c1 = arith.constant 1 : index
    %c0_7 = arith.constant 0 : index
    %2 = vector.load %arg1[%c0_4, %c0_5, %c0_6, %c1, %c0_7] : memref<8x2x8x2x8xf32, #tpu.memory_space<vmem>>, vector<8x1x8x1x8xf32>
    %3 = vector.shape_cast %2 : vector<8x1x8x1x8xf32> to vector<8x8x8xf32>
    %4 = arith.maximumf %1, %3 : vector<8x8x8xf32>
    %c0_8 = arith.constant 0 : index
    %c1_9 = arith.constant 1 : index
    %c0_10 = arith.constant 0 : index
    %c0_11 = arith.constant 0 : index
    %c0_12 = arith.constant 0 : index
    %5 = vector.load %arg1[%c0_8, %c1_9, %c0_10, %c0_11, %c0_12] : memref<8x2x8x2x8xf32, #tpu.memory_space<vmem>>, vector<8x1x8x1x8xf32>
    %6 = vector.shape_cast %5 : vector<8x1x8x1x8xf32> to vector<8x8x8xf32>
    %c0_13 = arith.constant 0 : index
    %c1_14 = arith.constant 1 : index
    %c0_15 = arith.constant 0 : index
    %c1_16 = arith.constant 1 : index
    %c0_17 = arith.constant 0 : index
    %7 = vector.load %arg1[%c0_13, %c1_14, %c0_15, %c1_16, %c0_17] : memref<8x2x8x2x8xf32, #tpu.memory_space<vmem>>, vector<8x1x8x1x8xf32>
    %8 = vector.shape_cast %7 : vector<8x1x8x1x8xf32> to vector<8x8x8xf32>
    %9 = arith.maximumf %6, %8 : vector<8x8x8xf32>
    %10 = arith.maximumf %4, %9 : vector<8x8x8xf32>
    %c0_18 = arith.constant 0 : index
    %c0_19 = arith.constant 0 : index
    %c0_20 = arith.constant 0 : index
    %11 = vector.load %arg2[%c0_18, %c0_19, %c0_20] : memref<8x8x8xf32, #tpu.memory_space<vmem>>, vector<8x8x8xf32>
    tpu.vector_store %arg2[%c0_18, %c0_19, %c0_20], %10 {strides = array<i32>} : memref<8x8x8xf32, #tpu.memory_space<vmem>>, vector<8x8x8xf32>,
    return
  }
  func.func @transform_0(%arg0: i32) -> (i32, i32, i32, i32, i32) {
    %c0_i32 = arith.constant 0 : i32
    %c0_i32_0 = arith.constant 0 : i32
    %c0_i32_1 = arith.constant 0 : i32
    %c0_i32_2 = arith.constant 0 : i32
    %c0_i32_3 = arith.constant 0 : i32
    return %arg0, %c0_i32, %c0_i32_0, %c0_i32_1, %c0_i32_2 : i32, i32, i32, i32, i32
  }
  func.func @transform_1(%arg0: i32) -> (i32, i32, i32) {
    %c0_i32 = arith.constant 0 : i32
    %c0_i32_0 = arith.constant 0 : i32
    %c0_i32_1 = arith.constant 0 : i32
    return %arg0, %c0_i32, %c0_i32_0 : i32, i32, i32
  }
}

module attributes {stable_mosaic.version = 11 : i64} {
  func.func @_matmul_bias_act_kernel(%arg0: i32, %arg1: i32, %arg2: i32, %arg3: memref<8x512xf32, #tpu.memory_space<vmem>>, %arg4: memref<512x128xf32, #tpu.memory_space<vmem>>, %arg5: memref<1x128xf32, #tpu.memory_space<vmem>>, %arg6: memref<8x128xf32, #tpu.memory_space<vmem>>, %arg7: memref<8x128xf32, #tpu.memory_space<vmem>>) attributes {dimension_semantics = [#tpu.dimension_semantics<parallel>, #tpu.dimension_semantics<parallel>, #tpu.dimension_semantics<arbitrary>], iteration_bounds = array<i64: 1, 1, 1>, scalar_prefetch = 0 : i64, scratch_operands = 1 : i64, tpu.core_type = #tpu.core_type<tc>, window_params = [{transform_indices = @transform_0, window_bounds = array<i64: 8, 512>}, {transform_indices = @transform_1, window_bounds = array<i64: 512, 128>}, {transform_indices = @transform_2, window_bounds = array<i64: 1, 128>}, {transform_indices = @transform_3, window_bounds = array<i64: 8, 128>}]} {
    %c0_i32 = arith.constant 0 : i32
    %0 = arith.cmpi eq, %arg2, %c0_i32 : i32
    %1 = arith.extui %0 : i1 to i32
    %c0_i32_0 = arith.constant 0 : i32
    %2 = arith.cmpi ne, %1, %c0_i32_0 : i32
    scf.if %2 {
      %cst_10 = arith.constant 0.000000e+00 : f32
      %12 = vector.broadcast %cst_10 : f32 to vector<8x128xf32>
      %c0_11 = arith.constant 0 : index
      %c0_12 = arith.constant 0 : index
      %13 = vector.load %arg7[%c0_11, %c0_12] : memref<8x128xf32, #tpu.memory_space<vmem>>, vector<8x128xf32>
      tpu.vector_store %arg7[%c0_11, %c0_12], %12 {strides = array<i32>} : memref<8x128xf32, #tpu.memory_space<vmem>>, vector<8x128xf32>,
    } else {
    }
    %c0 = arith.constant 0 : index
    %c0_1 = arith.constant 0 : index
    %3 = vector.load %arg7[%c0, %c0_1] : memref<8x128xf32, #tpu.memory_space<vmem>>, vector<8x128xf32>
    %c0_2 = arith.constant 0 : index
    %c0_3 = arith.constant 0 : index
    %4 = vector.load %arg3[%c0_2, %c0_3] : memref<8x512xf32, #tpu.memory_space<vmem>>, vector<8x512xf32>
    %c0_4 = arith.constant 0 : index
    %c0_5 = arith.constant 0 : index
    %5 = vector.load %arg4[%c0_4, %c0_5] : memref<512x128xf32, #tpu.memory_space<vmem>>, vector<512x128xf32>
    %cst = arith.constant dense<0.000000e+00> : vector<8x128xf32>
    %6 = tpu.matmul %4, %5, %cst {dimension_numbers = #tpu.dot_dimension_numbers<[1], [0], [0], [1], [0, 0, 1, 1], [], []>} : vector<8x512xf32>, vector<512x128xf32>, vector<8x128xf32> -> vector<8x128xf32>
    %7 = arith.addf %3, %6 : vector<8x128xf32>
    %c0_6 = arith.constant 0 : index
    %c0_7 = arith.constant 0 : index
    %8 = vector.load %arg7[%c0_6, %c0_7] : memref<8x128xf32, #tpu.memory_space<vmem>>, vector<8x128xf32>
    tpu.vector_store %arg7[%c0_6, %c0_7], %7 {strides = array<i32>} : memref<8x128xf32, #tpu.memory_space<vmem>>, vector<8x128xf32>,
    %c0_i32_8 = arith.constant 0 : i32
    %9 = arith.cmpi eq, %arg2, %c0_i32_8 : i32
    %10 = arith.extui %9 : i1 to i32
    %c0_i32_9 = arith.constant 0 : i32
    %11 = arith.cmpi ne, %10, %c0_i32_9 : i32
    scf.if %11 {
      %c0_10 = arith.constant 0 : index
      %c0_11 = arith.constant 0 : index
      %12 = vector.load %arg7[%c0_10, %c0_11] : memref<8x128xf32, #tpu.memory_space<vmem>>, vector<8x128xf32>
      %c0_12 = arith.constant 0 : index
      %c0_13 = arith.constant 0 : index
      %13 = vector.load %arg5[%c0_12, %c0_13] : memref<1x128xf32, #tpu.memory_space<vmem>>, vector<1x128xf32>
      %14 = vector.broadcast %13 : vector<1x128xf32> to vector<8x128xf32>
      %15 = arith.addf %12, %14 : vector<8x128xf32>
      %cst_14 = arith.constant 0.000000e+00 : f32
      %16 = vector.broadcast %cst_14 : f32 to vector<8x128xf32>
      %17 = arith.maximumf %15, %16 : vector<8x128xf32>
      %c0_15 = arith.constant 0 : index
      %c0_16 = arith.constant 0 : index
      %18 = vector.load %arg6[%c0_15, %c0_16] : memref<8x128xf32, #tpu.memory_space<vmem>>, vector<8x128xf32>
      tpu.vector_store %arg6[%c0_15, %c0_16], %17 {strides = array<i32>} : memref<8x128xf32, #tpu.memory_space<vmem>>, vector<8x128xf32>,
    } else {
    }
    return
  }
  func.func @transform_0(%arg0: i32, %arg1: i32, %arg2: i32) -> (i32, i32) {
    %c0_i32 = arith.constant 0 : i32
    return %arg0, %arg2 : i32, i32
  }
  func.func @transform_1(%arg0: i32, %arg1: i32, %arg2: i32) -> (i32, i32) {
    %c0_i32 = arith.constant 0 : i32
    return %arg2, %arg1 : i32, i32
  }
  func.func @transform_2(%arg0: i32, %arg1: i32, %arg2: i32) -> (i32, i32) {
    %c0_i32 = arith.constant 0 : i32
    %c0_i32_0 = arith.constant 0 : i32
    return %c0_i32, %arg1 : i32, i32
  }
  func.func @transform_3(%arg0: i32, %arg1: i32, %arg2: i32) -> (i32, i32) {
    %c0_i32 = arith.constant 0 : i32
    return %arg0, %arg1 : i32, i32
  }
}

module attributes {stable_mosaic.version = 11 : i64} {
  func.func @_matmul_bias_act_kernel(%arg0: i32, %arg1: i32, %arg2: i32, %arg3: memref<8x128xf32, #tpu.memory_space<vmem>>, %arg4: memref<128x128xf32, #tpu.memory_space<vmem>>, %arg5: memref<1x128xf32, #tpu.memory_space<vmem>>, %arg6: memref<8x128xf32, #tpu.memory_space<vmem>>, %arg7: memref<8x128xf32, #tpu.memory_space<vmem>>) attributes {dimension_semantics = [#tpu.dimension_semantics<parallel>, #tpu.dimension_semantics<parallel>, #tpu.dimension_semantics<arbitrary>], iteration_bounds = array<i64: 1, 1, 1>, scalar_prefetch = 0 : i64, scratch_operands = 1 : i64, tpu.core_type = #tpu.core_type<tc>, window_params = [{transform_indices = @transform_0, window_bounds = array<i64: 8, 128>}, {transform_indices = @transform_1, window_bounds = array<i64: 128, 128>}, {transform_indices = @transform_2, window_bounds = array<i64: 1, 128>}, {transform_indices = @transform_3, window_bounds = array<i64: 8, 128>}]} {
    %c0_i32 = arith.constant 0 : i32
    %0 = arith.cmpi eq, %arg2, %c0_i32 : i32
    %1 = arith.extui %0 : i1 to i32
    %c0_i32_0 = arith.constant 0 : i32
    %2 = arith.cmpi ne, %1, %c0_i32_0 : i32
    scf.if %2 {
      %cst_10 = arith.constant 0.000000e+00 : f32
      %12 = vector.broadcast %cst_10 : f32 to vector<8x128xf32>
      %c0_11 = arith.constant 0 : index
      %c0_12 = arith.constant 0 : index
      %13 = vector.load %arg7[%c0_11, %c0_12] : memref<8x128xf32, #tpu.memory_space<vmem>>, vector<8x128xf32>
      tpu.vector_store %arg7[%c0_11, %c0_12], %12 {strides = array<i32>} : memref<8x128xf32, #tpu.memory_space<vmem>>, vector<8x128xf32>,
    } else {
    }
    %c0 = arith.constant 0 : index
    %c0_1 = arith.constant 0 : index
    %3 = vector.load %arg7[%c0, %c0_1] : memref<8x128xf32, #tpu.memory_space<vmem>>, vector<8x128xf32>
    %c0_2 = arith.constant 0 : index
    %c0_3 = arith.constant 0 : index
    %4 = vector.load %arg3[%c0_2, %c0_3] : memref<8x128xf32, #tpu.memory_space<vmem>>, vector<8x128xf32>
    %c0_4 = arith.constant 0 : index
    %c0_5 = arith.constant 0 : index
    %5 = vector.load %arg4[%c0_4, %c0_5] : memref<128x128xf32, #tpu.memory_space<vmem>>, vector<128x128xf32>
    %cst = arith.constant dense<0.000000e+00> : vector<8x128xf32>
    %6 = tpu.matmul %4, %5, %cst {dimension_numbers = #tpu.dot_dimension_numbers<[1], [0], [0], [1], [0, 0, 1, 1], [], []>} : vector<8x128xf32>, vector<128x128xf32>, vector<8x128xf32> -> vector<8x128xf32>
    %7 = arith.addf %3, %6 : vector<8x128xf32>
    %c0_6 = arith.constant 0 : index
    %c0_7 = arith.constant 0 : index
    %8 = vector.load %arg7[%c0_6, %c0_7] : memref<8x128xf32, #tpu.memory_space<vmem>>, vector<8x128xf32>
    tpu.vector_store %arg7[%c0_6, %c0_7], %7 {strides = array<i32>} : memref<8x128xf32, #tpu.memory_space<vmem>>, vector<8x128xf32>,
    %c0_i32_8 = arith.constant 0 : i32
    %9 = arith.cmpi eq, %arg2, %c0_i32_8 : i32
    %10 = arith.extui %9 : i1 to i32
    %c0_i32_9 = arith.constant 0 : i32
    %11 = arith.cmpi ne, %10, %c0_i32_9 : i32
    scf.if %11 {
      %c0_10 = arith.constant 0 : index
      %c0_11 = arith.constant 0 : index
      %12 = vector.load %arg7[%c0_10, %c0_11] : memref<8x128xf32, #tpu.memory_space<vmem>>, vector<8x128xf32>
      %c0_12 = arith.constant 0 : index
      %c0_13 = arith.constant 0 : index
      %13 = vector.load %arg5[%c0_12, %c0_13] : memref<1x128xf32, #tpu.memory_space<vmem>>, vector<1x128xf32>
      %14 = vector.broadcast %13 : vector<1x128xf32> to vector<8x128xf32>
      %15 = arith.addf %12, %14 : vector<8x128xf32>
      %c0_14 = arith.constant 0 : index
      %c0_15 = arith.constant 0 : index
      %16 = vector.load %arg6[%c0_14, %c0_15] : memref<8x128xf32, #tpu.memory_space<vmem>>, vector<8x128xf32>
      tpu.vector_store %arg6[%c0_14, %c0_15], %15 {strides = array<i32>} : memref<8x128xf32, #tpu.memory_space<vmem>>, vector<8x128xf32>,
    } else {
    }
    return
  }
  func.func @transform_0(%arg0: i32, %arg1: i32, %arg2: i32) -> (i32, i32) {
    %c0_i32 = arith.constant 0 : i32
    return %arg0, %arg2 : i32, i32
  }
  func.func @transform_1(%arg0: i32, %arg1: i32, %arg2: i32) -> (i32, i32) {
    %c0_i32 = arith.constant 0 : i32
    return %arg2, %arg1 : i32, i32
  }
  func.func @transform_2(%arg0: i32, %arg1: i32, %arg2: i32) -> (i32, i32) {
    %c0_i32 = arith.constant 0 : i32
    %c0_i32_0 = arith.constant 0 : i32
    return %c0_i32, %arg1 : i32, i32
  }
  func.func @transform_3(%arg0: i32, %arg1: i32, %arg2: i32) -> (i32, i32) {
    %c0_i32 = arith.constant 0 : i32
    return %arg0, %arg1 : i32, i32
  }
}

</mosaic_0001>

<bundles_post_ra>
// kernel: conv_classifier_forward.7
= control target key start
LH: loop header
LB: loop body
LE: loop exit
PB: predicated region body
PF: predicated region fallthrough
CT: control target
= control target key end

     0   :  { %s995_s6 = smov 0   ;;  %s2602_s0 = inlined_call_operand.vmem [shape: f32[16,2,8,2,8], index: 0, kind: input, shape index: {}]   ;;  %s2603_s1 = inlined_call_operand.vmem [shape: f32[16,8,8], index: 1, kind: output, shape index: {}]  }
   0x1 LB: > { %s828_s7 = sadd.s32 4294967295, %s983_s6   ;;  %p832_p0 = scmp.ge.s32.totalorder %s983_s6, 1  ;;  %s983_s6 = sphi %s995_s6, %s11_s6  }
   0x2   : > { %p89_p1 = scmp.lt.s32.totalorder %s983_s6, 3 }
   0x4   : > { %p90_p2 = pnand %p832_p0, %p89_p1 }
   0x6   : > { %93 = sbr.rel (%p90_p2) target bundleno = 226 (0xe2), region = 24 }
   0xb   : > { %s833_s8 = sshll.u32 %s828_s7, 3  ;;  %vm637_vm0 = vcmask 1041409   ;;  %vm640_vm1 = vcmask 1042434   ;;  %vm643_vm2 = vcmask 1043459   ;;  %vm646_vm3 = vcmask 1044484  }
   0xc   : > { %p111_p3 = scmp.lt.s32.totalorder %s833_s8, 15  ;;  %vm649_vm4 = vcmask 1045509   ;;  %vm652_vm5 = vcmask 1046534   ;;  %vm655_vm6 = vcmask 1047559   ;;  %vm763_vm7 = vcmask 64512  }
   0xe   : > { %s3233_s8 = smov (!%p111_p3, %s833_s8), 15 }
   0xf   : > { %s968_s9 = sshll.u32 %s3233_s8, 5  ;;  %s837_s13 = sshll.u32 %s3233_s8, 3 }
  0x10   : > { %s1009_s12 = scalar_lea.vmem %s2602_s0, %s968_s9  ;;  %s121_s16 = scalar_lea.vmem %s2603_s1, %s837_s13 }
  0x11   : > { %v1012_v0 = vld [vmem:[%s1009_s12] sm:$0x1]  ;;  %v1015_v1 = vld [vmem:[%s1009_s12 + $0x2] sm:$0x1]  ;;  %v1018_v2 = vld [vmem:[%s1009_s12 + $0x1] sm:$0x1] }
  0x12   : > { %v1021_v3 = vld [vmem:[%s1009_s12 + $0x3] sm:$0x1]  ;;  %v1024_v4 = vld [vmem:[%s1009_s12 + $0x4] sm:$0x1]  ;;  %v1027_v5 = vld [vmem:[%s1009_s12 + $0x6] sm:$0x1] }
  0x13   : > { %v1030_v6 = vld [vmem:[%s1009_s12 + $0x8] sm:$0x1]  ;;  %v1033_v7 = vld [vmem:[%s1009_s12 + $0xa] sm:$0x1]  ;;  %v1036_v8 = vld [vmem:[%s1009_s12 + $0x5] sm:$0x1] }
  0x14   : > { %2761 = vst [vmem:[#allocation2_spill] sm:$0xff] %v1030_v6  ;;  %2762 = vst [vmem:[#allocation3_spill] sm:$0xff] %v1033_v7  ;;  %v1039_v9 = vld [vmem:[%s1009_s12 + $0x7] sm:$0x1]  ;;  %v1042_v10 = vld [vmem:[%s1009_s12 + $0x9] sm:$0x1] }
  0x15   : > { %2763 = vst [vmem:[#allocation4_spill] sm:$0xff] %v1042_v10  ;;  %v1045_v11 = vld [vmem:[%s1009_s12 + $0xb] sm:$0x1]  ;;  %v1048_v12 = vld [vmem:[%s1009_s12 + $0xc] sm:$0x1] }
  0x16   : > { %2764 = vst [vmem:[#allocation5_spill] sm:$0xff] %v1045_v11  ;;  %2765 = vst [vmem:[#allocation6_spill] sm:$0xff] %v1048_v12  ;;  %v1051_v13 = vld [vmem:[%s1009_s12 + $0xe] sm:$0x1]  ;;  %v1054_v14 = vld [vmem:[%s1009_s12 + $0x20] sm:$0x1] }
  0x17   : > { %2766 = vst [vmem:[#allocation7_spill] sm:$0xff] %v1051_v13  ;;  %2767 = vst [vmem:[#allocation8_spill] sm:$0xff] %v1054_v14  ;;  %v1057_v15 = vld [vmem:[%s1009_s12 + $0x22] sm:$0x1]  ;;  %v1060_v16 = vld [vmem:[%s1009_s12 + $0xd] sm:$0x1] }
  0x18   : > { %2768 = vst [vmem:[#allocation9_spill] sm:$0xff] %v1057_v15  ;;  %2769 = vst [vmem:[#allocation10_spill] sm:$0xff] %v1060_v16  ;;  %v1063_v17 = vld [vmem:[%s1009_s12 + $0xf] sm:$0x1]  ;;  %v1066_v18 = vld [vmem:[%s1009_s12 + $0x21] sm:$0x1] }
  0x19   : > { %2770 = vst [vmem:[#allocation11_spill] sm:$0xff] %v1063_v17  ;;  %2771 = vst [vmem:[#allocation12_spill] sm:$0xff] %v1066_v18  ;;  %v1069_v19 = vld [vmem:[%s1009_s12 + $0x23] sm:$0x1]  ;;  %v1072_v20 = vld [vmem:[%s1009_s12 + $0x24] sm:$0x1] }
  0x1a   : > { %2772 = vst [vmem:[#allocation13_spill] sm:$0xff] %v1069_v19  ;;  %2773 = vst [vmem:[#allocation14_spill] sm:$0xff] %v1072_v20  ;;  %v1075_v21 = vld [vmem:[%s1009_s12 + $0x26] sm:$0x1]  ;;  %v1078_v22 = vld [vmem:[%s1009_s12 + $0x28] sm:$0x1] }
  0x1b   : > { %2774 = vst [vmem:[#allocation15_spill] sm:$0xff] %v1075_v21  ;;  %2775 = vst [vmem:[#allocation16_spill] sm:$0xff] %v1078_v22  ;;  %v1081_v23 = vld [vmem:[%s1009_s12 + $0x2a] sm:$0x1]  ;;  %v1084_v24 = vld [vmem:[%s1009_s12 + $0x25] sm:$0x1] }
  0x1c   : > { %2776 = vst [vmem:[#allocation17_spill] sm:$0xff] %v1081_v23  ;;  %2777 = vst [vmem:[#allocation18_spill] sm:$0xff] %v1084_v24  ;;  %v1087_v25 = vld [vmem:[%s1009_s12 + $0x27] sm:$0x1]  ;;  %v1090_v26 = vld [vmem:[%s1009_s12 + $0x29] sm:$0x1] }
  0x1d   : > { %2778 = vst [vmem:[#allocation19_spill] sm:$0xff] %v1087_v25  ;;  %2779 = vst [vmem:[#allocation20_spill] sm:$0xff] %v1090_v26  ;;  %v1093_v27 = vld [vmem:[%s1009_s12 + $0x2b] sm:$0x1]  ;;  %v1096_v28 = vld [vmem:[%s1009_s12 + $0x2c] sm:$0x1] }
  0x1e   : > { %2780 = vst [vmem:[#allocation21_spill] sm:$0xff] %v1093_v27  ;;  %2781 = vst [vmem:[#allocation22_spill] sm:$0xff] %v1096_v28  ;;  %v1099_v29 = vld [vmem:[%s1009_s12 + $0x2e] sm:$0x1]  ;;  %v1102_v30 = vld [vmem:[%s1009_s12 + $0x40] sm:$0x1] }
  0x1f   : > { %2782 = vst [vmem:[#allocation23_spill] sm:$0xff] %v1099_v29  ;;  %2783 = vst [vmem:[#allocation24_spill] sm:$0xff] %v1102_v30  ;;  %v1105_v31 = vld [vmem:[%s1009_s12 + $0x42] sm:$0x1]  ;;  %v1108_v32 = vld [vmem:[%s1009_s12 + $0x2d] sm:$0x1] }
  0x20   : > { %2784 = vst [vmem:[#allocation25_spill] sm:$0xff] %v1105_v31  ;;  %2785 = vst [vmem:[#allocation26_spill] sm:$0xff] %v1108_v32  ;;  %v1111_v33 = vld [vmem:[%s1009_s12 + $0x2f] sm:$0x1]  ;;  %v1114_v34 = vld [vmem:[%s1009_s12 + $0x41] sm:$0x1] }
  0x21   : > { %2786 = vst [vmem:[#allocation27_spill] sm:$0xff] %v1111_v33  ;;  %2787 = vst [vmem:[#allocation28_spill] sm:$0xff] %v1114_v34  ;;  %v1117_v35 = vld [vmem:[%s1009_s12 + $0x43] sm:$0x1]  ;;  %v1120_v36 = vld [vmem:[%s1009_s12 + $0x44] sm:$0x1] }
  0x22   : > { %2788 = vst [vmem:[#allocation29_spill] sm:$0xff] %v1117_v35  ;;  %2789 = vst [vmem:[#allocation30_spill] sm:$0xff] %v1120_v36  ;;  %v1123_v37 = vld [vmem:[%s1009_s12 + $0x46] sm:$0x1]  ;;  %v1126_v38 = vld [vmem:[%s1009_s12 + $0x48] sm:$0x1] }
  0x23   : > { %2790 = vst [vmem:[#allocation31_spill] sm:$0xff] %v1123_v37  ;;  %2791 = vst [vmem:[#allocation32_spill] sm:$0xff] %v1126_v38  ;;  %v1129_v39 = vld [vmem:[%s1009_s12 + $0x4a] sm:$0x1]  ;;  %v1132_v40 = vld [vmem:[%s1009_s12 + $0x45] sm:$0x1] }
  0x24   : > { %2792 = vst [vmem:[#allocation33_spill] sm:$0xff] %v1129_v39  ;;  %2793 = vst [vmem:[#allocation34_spill] sm:$0xff] %v1132_v40  ;;  %v1135_v41 = vld [vmem:[%s1009_s12 + $0x47] sm:$0x1]  ;;  %v1138_v42 = vld [vmem:[%s1009_s12 + $0x49] sm:$0x1] }
  0x25   : > { %2794 = vst [vmem:[#allocation35_spill] sm:$0xff] %v1135_v41  ;;  %2795 = vst [vmem:[#allocation36_spill] sm:$0xff] %v1138_v42  ;;  %v1141_v43 = vld [vmem:[%s1009_s12 + $0x4b] sm:$0x1]  ;;  %v1148_v46 = vld [vmem:[%s1009_s12 + $0x4c] sm:$0x1] }
  0x26   : > { %2796 = vst [vmem:[#allocation37_spill] sm:$0xff] %v1141_v43  ;;  %2797 = vst [vmem:[#allocation38_spill] sm:$0xff] %v1148_v46  ;;  %v1151_v47 = vld [vmem:[%s1009_s12 + $0x4e] sm:$0x1]  ;;  %v1154_v48 = vld [vmem:[%s1009_s12 + $0x60] sm:$0x1] }
  0x27   : > { %2798 = vst [vmem:[#allocation39_spill] sm:$0xff] %v1151_v47  ;;  %2799 = vst [vmem:[#allocation40_spill] sm:$0xff] %v1154_v48  ;;  %v1157_v49 = vld [vmem:[%s1009_s12 + $0x62] sm:$0x1]  ;;  %v1160_v50 = vld [vmem:[%s1009_s12 + $0x4d] sm:$0x1] }
  0x28   : > { %2800 = vst [vmem:[#allocation41_spill] sm:$0xff] %v1157_v49  ;;  %2801 = vst [vmem:[#allocation42_spill] sm:$0xff] %v1160_v50  ;;  %v1163_v51 = vld [vmem:[%s1009_s12 + $0x4f] sm:$0x1]  ;;  %v1166_v52 = vld [vmem:[%s1009_s12 + $0x61] sm:$0x1] }
  0x29   : > { %2802 = vst [vmem:[#allocation43_spill] sm:$0xff] %v1163_v51  ;;  %2803 = vst [vmem:[#allocation44_spill] sm:$0xff] %v1166_v52  ;;  %v1169_v53 = vld [vmem:[%s1009_s12 + $0x63] sm:$0x1]  ;;  %v1180_v58 = vld [vmem:[%s1009_s12 + $0x64] sm:$0x1] }
  0x2a   : > { %2804 = vst [vmem:[#allocation45_spill] sm:$0xff] %v1169_v53  ;;  %2805 = vst [vmem:[#allocation46_spill] sm:$0xff] %v1180_v58  ;;  %v1183_v59 = vld [vmem:[%s1009_s12 + $0x66] sm:$0x1]  ;;  %v1186_v60 = vld [vmem:[%s1009_s12 + $0x68] sm:$0x1] }
  0x2b   : > { %2806 = vst [vmem:[#allocation47_spill] sm:$0xff] %v1183_v59  ;;  %2807 = vst [vmem:[#allocation48_spill] sm:$0xff] %v1186_v60  ;;  %v1189_v61 = vld [vmem:[%s1009_s12 + $0x6a] sm:$0x1]  ;;  %v1192_v62 = vld [vmem:[%s1009_s12 + $0x65] sm:$0x1] }
  0x2c   : > { %2808 = vst [vmem:[#allocation49_spill] sm:$0xff] %v1189_v61  ;;  %2809 = vst [vmem:[#allocation50_spill] sm:$0xff] %v1192_v62  ;;  %v1195_v63 = vld [vmem:[%s1009_s12 + $0x67] sm:$0x1]  ;;  %v1198_v56 = vld [vmem:[%s1009_s12 + $0x69] sm:$0x1] }
  0x2d   : > { %2810 = vst [vmem:[#allocation51_spill] sm:$0xff] %v1195_v63  ;;  %2811 = vst [vmem:[#allocation52_spill] sm:$0xff] %v1198_v56  ;;  %v1201_v57 = vld [vmem:[%s1009_s12 + $0x6b] sm:$0x1]  ;;  %v1212_v11 = vld [vmem:[%s1009_s12 + $0x6c] sm:$0x1] }
  0x2e   : > { %2812 = vst [vmem:[#allocation53_spill] sm:$0xff] %v1201_v57  ;;  %2813 = vst [vmem:[#allocation54_spill] sm:$0xff] %v1212_v11  ;;  %v1215_v7 = vld [vmem:[%s1009_s12 + $0x6e] sm:$0x1]  ;;  %v1218_v55 = vld [vmem:[%s1009_s12 + $0x80] sm:$0x1] }
  0x2f   : > { %2814 = vst [vmem:[#allocation55_spill] sm:$0xff] %v1215_v7  ;;  %2815 = vst [vmem:[#allocation56_spill] sm:$0xff] %v1218_v55  ;;  %v1221_v16 = vld [vmem:[%s1009_s12 + $0x82] sm:$0x1]  ;;  %v1224_v54 = vld [vmem:[%s1009_s12 + $0x6d] sm:$0x1] }
  0x30   : > { %2816 = vst [vmem:[#allocation57_spill] sm:$0xff] %v1221_v16  ;;  %2817 = vst [vmem:[#allocation58_spill] sm:$0xff] %v1224_v54  ;;  %v1227_v45 = vld [vmem:[%s1009_s12 + $0x6f] sm:$0x1]  ;;  %v1230_v18 = vld [vmem:[%s1009_s12 + $0x81] sm:$0x1] }
  0x31   : > { %2818 = vst [vmem:[#allocation59_spill] sm:$0xff] %v1227_v45  ;;  %2819 = vst [vmem:[#allocation60_spill] sm:$0xff] %v1230_v18  ;;  %v1233_v44 = vld [vmem:[%s1009_s12 + $0x83] sm:$0x1]  ;;  %v1244_v13 = vld [vmem:[%s1009_s12 + $0x84] sm:$0x1] }
  0x32   : > { %2820 = vst [vmem:[#allocation61_spill] sm:$0xff] %v1233_v44  ;;  %2821 = vst [vmem:[#allocation62_spill] sm:$0xff] %v1244_v13  ;;  %v1247_v12 = vld [vmem:[%s1009_s12 + $0x86] sm:$0x1]  ;;  %v1250_v19 = vld [vmem:[%s1009_s12 + $0x88] sm:$0x1] }
  0x33   : > { %2822 = vst [vmem:[#allocation63_spill] sm:$0xff] %v1247_v12  ;;  %2823 = vst [vmem:[#allocation64_spill] sm:$0xff] %v1250_v19  ;;  %v1253_v24 = vld [vmem:[%s1009_s12 + $0x8a] sm:$0x1]  ;;  %v1256_v15 = vld [vmem:[%s1009_s12 + $0x85] sm:$0x1] }
  0x34   : > { %2824 = vst [vmem:[#allocation65_spill] sm:$0xff] %v1253_v24  ;;  %2825 = vst [vmem:[#allocation66_spill] sm:$0xff] %v1256_v15  ;;  %v1259_v14 = vld [vmem:[%s1009_s12 + $0x87] sm:$0x1]  ;;  %v1262_v26 = vld [vmem:[%s1009_s12 + $0x89] sm:$0x1] }
  0x35   : > { %2826 = vst [vmem:[#allocation67_spill] sm:$0xff] %v1259_v14  ;;  %2827 = vst [vmem:[#allocation68_spill] sm:$0xff] %v1262_v26  ;;  %v1265_v17 = vld [vmem:[%s1009_s12 + $0x8b] sm:$0x1]  ;;  %v1276_v21 = vld [vmem:[%s1009_s12 + $0x8c] sm:$0x1] }
  0x36   : > { %2828 = vst [vmem:[#allocation69_spill] sm:$0xff] %v1265_v17  ;;  %2829 = vst [vmem:[#allocation70_spill] sm:$0xff] %v1276_v21  ;;  %v1279_v20 = vld [vmem:[%s1009_s12 + $0x8e] sm:$0x1]  ;;  %v1282_v27 = vld [vmem:[%s1009_s12 + $0xa0] sm:$0x1] }
  0x37   : > { %2830 = vst [vmem:[#allocation71_spill] sm:$0xff] %v1279_v20  ;;  %2831 = vst [vmem:[#allocation72_spill] sm:$0xff] %v1282_v27  ;;  %v1285_v32 = vld [vmem:[%s1009_s12 + $0xa2] sm:$0x1]  ;;  %v1288_v23 = vld [vmem:[%s1009_s12 + $0x8d] sm:$0x1] }
  0x38   : > { %2832 = vst [vmem:[#allocation73_spill] sm:$0xff] %v1285_v32  ;;  %2833 = vst [vmem:[#allocation74_spill] sm:$0xff] %v1288_v23  ;;  %v1291_v22 = vld [vmem:[%s1009_s12 + $0x8f] sm:$0x1]  ;;  %v1294_v34 = vld [vmem:[%s1009_s12 + $0xa1] sm:$0x1] }
  0x39   : > { %2834 = vst [vmem:[#allocation75_spill] sm:$0xff] %v1291_v22  ;;  %2835 = vst [vmem:[#allocation76_spill] sm:$0xff] %v1294_v34  ;;  %v1297_v25 = vld [vmem:[%s1009_s12 + $0xa3] sm:$0x1]  ;;  %v1308_v29 = vld [vmem:[%s1009_s12 + $0xa4] sm:$0x1] }
  0x3a   : > { %2836 = vst [vmem:[#allocation77_spill] sm:$0xff] %v1297_v25  ;;  %2837 = vst [vmem:[#allocation78_spill] sm:$0xff] %v1308_v29  ;;  %v1311_v28 = vld [vmem:[%s1009_s12 + $0xa6] sm:$0x1]  ;;  %v1314_v35 = vld [vmem:[%s1009_s12 + $0xa8] sm:$0x1] }
  0x3b   : > { %2838 = vst [vmem:[#allocation79_spill] sm:$0xff] %v1311_v28  ;;  %2839 = vst [vmem:[#allocation80_spill] sm:$0xff] %v1314_v35  ;;  %v1317_v40 = vld [vmem:[%s1009_s12 + $0xaa] sm:$0x1]  ;;  %v1320_v31 = vld [vmem:[%s1009_s12 + $0xa5] sm:$0x1] }
  0x3c   : > { %2840 = vst [vmem:[#allocation81_spill] sm:$0xff] %v1317_v40  ;;  %2841 = vst [vmem:[#allocation82_spill] sm:$0xff] %v1320_v31  ;;  %v1323_v30 = vld [vmem:[%s1009_s12 + $0xa7] sm:$0x1]  ;;  %v1326_v42 = vld [vmem:[%s1009_s12 + $0xa9] sm:$0x1] }
  0x3d   : > { %2842 = vst [vmem:[#allocation83_spill] sm:$0xff] %v1323_v30  ;;  %2843 = vst [vmem:[#allocation84_spill] sm:$0xff] %v1326_v42  ;;  %v1329_v33 = vld [vmem:[%s1009_s12 + $0xab] sm:$0x1]  ;;  %v1340_v37 = vld [vmem:[%s1009_s12 + $0xac] sm:$0x1] }
  0x3e   : > { %2844 = vst [vmem:[#allocation85_spill] sm:$0xff] %v1329_v33  ;;  %2845 = vst [vmem:[#allocation86_spill] sm:$0xff] %v1340_v37  ;;  %v1343_v36 = vld [vmem:[%s1009_s12 + $0xae] sm:$0x1]  ;;  %v1346_v43 = vld [vmem:[%s1009_s12 + $0xc0] sm:$0x1] }
  0x3f   : > { %2846 = vst [vmem:[#allocation87_spill] sm:$0xff] %v1343_v36  ;;  %2847 = vst [vmem:[#allocation88_spill] sm:$0xff] %v1346_v43  ;;  %v1349_v50 = vld [vmem:[%s1009_s12 + $0xc2] sm:$0x1]  ;;  %v1352_v39 = vld [vmem:[%s1009_s12 + $0xad] sm:$0x1] }
  0x40   : > { %2848 = vst [vmem:[#allocation89_spill] sm:$0xff] %v1349_v50  ;;  %2849 = vst [vmem:[#allocation90_spill] sm:$0xff] %v1352_v39  ;;  %v1355_v38 = vld [vmem:[%s1009_s12 + $0xaf] sm:$0x1]  ;;  %v1358_v52 = vld [vmem:[%s1009_s12 + $0xc1] sm:$0x1] }
  0x41   : > { %2850 = vst [vmem:[#allocation91_spill] sm:$0xff] %v1355_v38  ;;  %2851 = vst [vmem:[#allocation92_spill] sm:$0xff] %v1358_v52  ;;  %v1361_v41 = vld [vmem:[%s1009_s12 + $0xc3] sm:$0x1]  ;;  %v1372_v47 = vld [vmem:[%s1009_s12 + $0xc4] sm:$0x1] }
  0x42   : > { %2852 = vst [vmem:[#allocation93_spill] sm:$0xff] %v1361_v41  ;;  %2853 = vst [vmem:[#allocation94_spill] sm:$0xff] %v1372_v47  ;;  %v1375_v46 = vld [vmem:[%s1009_s12 + $0xc6] sm:$0x1]  ;;  %v1378_v53 = vld [vmem:[%s1009_s12 + $0xc8] sm:$0x1] }
  0x43   : > { %2854 = vst [vmem:[#allocation95_spill] sm:$0xff] %v1375_v46  ;;  %2855 = vst [vmem:[#allocation96_spill] sm:$0xff] %v1378_v53  ;;  %v1381_v62 = vld [vmem:[%s1009_s12 + $0xca] sm:$0x1]  ;;  %v1384_v49 = vld [vmem:[%s1009_s12 + $0xc5] sm:$0x1] }
  0x44   : > { %2856 = vst [vmem:[#allocation97_spill] sm:$0xff] %v1381_v62  ;;  %2857 = vst [vmem:[#allocation98_spill] sm:$0xff] %v1384_v49  ;;  %v1387_v48 = vld [vmem:[%s1009_s12 + $0xc7] sm:$0x1]  ;;  %v1390_v56 = vld [vmem:[%s1009_s12 + $0xc9] sm:$0x1] }
  0x45   : > { %2858 = vst [vmem:[#allocation99_spill] sm:$0xff] %v1387_v48  ;;  %2859 = vst [vmem:[#allocation100_spill] sm:$0xff] %v1390_v56  ;;  %v1393_v51 = vld [vmem:[%s1009_s12 + $0xcb] sm:$0x1]  ;;  %v1404_v59 = vld [vmem:[%s1009_s12 + $0xcc] sm:$0x1] }
  0x46   : > { %2860 = vst [vmem:[#allocation101_spill] sm:$0xff] %v1393_v51  ;;  %2861 = vst [vmem:[#allocation102_spill] sm:$0xff] %v1404_v59  ;;  %v1407_v58 = vld [vmem:[%s1009_s12 + $0xce] sm:$0x1]  ;;  %v1410_v57 = vld [vmem:[%s1009_s12 + $0xe0] sm:$0x1] }
  0x47   : > { %2862 = vst [vmem:[#allocation103_spill] sm:$0xff] %v1407_v58  ;;  %2863 = vst [vmem:[#allocation104_spill] sm:$0xff] %v1410_v57  ;;  %v1413_v54 = vld [vmem:[%s1009_s12 + $0xe2] sm:$0x1]  ;;  %v1416_v61 = vld [vmem:[%s1009_s12 + $0xcd] sm:$0x1] }
  0x48   : > { %2864 = vst [vmem:[#allocation105_spill] sm:$0xff] %v1413_v54  ;;  %2865 = vst [vmem:[#allocation106_spill] sm:$0xff] %v1416_v61  ;;  %v1419_v60 = vld [vmem:[%s1009_s12 + $0xcf] sm:$0x1]  ;;  %v1422_v18 = vld [vmem:[%s1009_s12 + $0xe1] sm:$0x1] }
  0x49   : > { %2866 = vst [vmem:[#allocation107_spill] sm:$0xff] %v1419_v60  ;;  %2867 = vst [vmem:[#allocation108_spill] sm:$0xff] %v1422_v18  ;;  %v1425_v63 = vld [vmem:[%s1009_s12 + $0xe3] sm:$0x1]  ;;  %v1436_v7 = vld [vmem:[%s1009_s12 + $0xe4] sm:$0x1] }
  0x4a   : > { %2868 = vst [vmem:[#allocation109_spill] sm:$0xff] %v1425_v63  ;;  %2869 = vst [vmem:[#allocation110_spill] sm:$0xff] %v1436_v7  ;;  %v1439_v11 = vld [vmem:[%s1009_s12 + $0xe6] sm:$0x1]  ;;  %v1442_v10 = vld [vmem:[%s1009_s12 + $0xe8] sm:$0x1] }
  0x4b   : > { %2870 = vst [vmem:[#allocation111_spill] sm:$0xff] %v1439_v11  ;;  %2871 = vst [vmem:[#allocation112_spill] sm:$0xff] %v1442_v10  ;;  %v1445_v6 = vld [vmem:[%s1009_s12 + $0xea] sm:$0x1]  ;;  %v1448_v44 = vld [vmem:[%s1009_s12 + $0xe5] sm:$0x1] }
  0x4c   : > { %2872 = vst [vmem:[#allocation113_spill] sm:$0xff] %v1445_v6  ;;  %2873 = vst [vmem:[#allocation114_spill] sm:$0xff] %v1448_v44  ;;  %v1451_v16 = vld [vmem:[%s1009_s12 + $0xe7] sm:$0x1]  ;;  %v1454_v55 = vld [vmem:[%s1009_s12 + $0xe9] sm:$0x1] }
  0x4d   : > { %2874 = vst [vmem:[#allocation115_spill] sm:$0xff] %v1451_v16  ;;  %2875 = vst [vmem:[#allocation116_spill] sm:$0xff] %v1454_v55  ;;  %v1457_v45 = vld [vmem:[%s1009_s12 + $0xeb] sm:$0x1]  ;;  %v1468_v14 = vld [vmem:[%s1009_s12 + $0xec] sm:$0x1] }
  0x4e   : > { %2876 = vst [vmem:[#allocation117_spill] sm:$0xff] %v1457_v45  ;;  %2877 = vst [vmem:[#allocation118_spill] sm:$0xff] %v1468_v14  ;;  %v1471_v12 = vld [vmem:[%s1009_s12 + $0xed] sm:$0x1]  ;;  %v1482_v19 = vld [vmem:[%s1009_s12 + $0x10] sm:$0x1] }
  0x4f   : > { %2878 = vst [vmem:[#allocation119_spill] sm:$0xff] %v1471_v12  ;;  %v1485_v25 = vld [vmem:[%s1009_s12 + $0x12] sm:$0x1]  ;;  %v1488_v32 = vld [vmem:[%s1009_s12 + $0x14] sm:$0x1] }
  0x50   : > { %v1491_v34 = vld [vmem:[%s1009_s12 + $0xee] sm:$0x1]  ;;  %v1494_v15 = vld [vmem:[%s1009_s12 + $0xef] sm:$0x1]  ;;  %v1505_v40 = vld [vmem:[%s1009_s12 + $0x16] sm:$0x1] }
  0x51   : > { %2879 = vst [vmem:[#allocation120_spill] sm:$0xff] %v1491_v34  ;;  %2880 = vst [vmem:[#allocation121_spill] sm:$0xff] %v1494_v15  ;;  %v1508_v42 = vld [vmem:[%s1009_s12 + $0x18] sm:$0x1]  ;;  %v1511_v35 = vld [vmem:[%s1009_s12 + $0x1a] sm:$0x1] }
  0x52   : > { %v1522_v41 = vld [vmem:[%s1009_s12 + $0x1c] sm:$0x1]  ;;  %v1525_v50 = vld [vmem:[%s1009_s12 + $0x1e] sm:$0x1]  ;;  %v1528_v52 = vld [vmem:[%s1009_s12 + $0x30] sm:$0x1] }
  0x53   : > { %v1539_v51 = vld [vmem:[%s1009_s12 + $0x32] sm:$0x1]  ;;  %v1542_v62 = vld [vmem:[%s1009_s12 + $0x34] sm:$0x1]  ;;  %v1545_v56 = vld [vmem:[%s1009_s12 + $0x36] sm:$0x1] }
  0x54   : > { %v1556_v63 = vld [vmem:[%s1009_s12 + $0x38] sm:$0x1]  ;;  %v1559_v54 = vld [vmem:[%s1009_s12 + $0x3a] sm:$0x1]  ;;  %v1562_v18 = vld [vmem:[%s1009_s12 + $0x3c] sm:$0x1] }
  0x55   : > { %v902_v57 = vld [vmem:[%s1009_s12 + $0x11] sm:$0x1]  ;;  %v903_v26 = vld [vmem:[%s1009_s12 + $0x13] sm:$0x1]  ;;  %v904_v44 = vld [vmem:[%s1009_s12 + $0x15] sm:$0x1] }
  0x56   : > { %v1570_v33 = vld [vmem:[%s1009_s12 + $0x3e] sm:$0x1]  ;;  %v1573_v24 = vld [vmem:[%s1009_s12 + $0x50] sm:$0x1]  ;;  %v1576_v45 = vld [vmem:[%s1009_s12 + $0x52] sm:$0x1]  ;;  %v444_v16 = vmax.f32 %v1482_v19, %v902_v57  ;;  %v445_v17 = vmax.f32 %v1485_v25, %v903_v26  ;;  %v446_v12 = vmax.f32 %v1488_v32, %v904_v44 }
  0x57   : > { %v905_v6 = vld [vmem:[%s1009_s12 + $0x17] sm:$0x1]  ;;  %v1580_v55 = vld [vmem:[%s1009_s12 + $0x19] sm:$0x1]  ;;  %v1583_v10 = vld [vmem:[%s1009_s12 + $0x1b] sm:$0x1] }
  0x58   : > { %v1591_v11 = vld [vmem:[%s1009_s12 + $0x54] sm:$0x1]  ;;  %v1594_v7 = vld [vmem:[%s1009_s12 + $0x56] sm:$0x1]  ;;  %v1597_v60 = vld [vmem:[%s1009_s12 + $0x58] sm:$0x1]  ;;  %v447_v26 = vmax.f32 %v1505_v40, %v905_v6  ;;  %v448_v32 = vmax.f32 %v1508_v42, %v1580_v55  ;;  %v449_v44 = vmax.f32 %v1511_v35, %v1583_v10  ;;  %v2883_v42 = vmax.f32 %v1012_v0, %v1018_v2 }
  0x59   : > { %v1600_v58 = vld [vmem:[%s1009_s12 + $0x1d] sm:$0x1]  ;;  %v1603_v19 = vld [vmem:[%s1009_s12 + $0x1f] sm:$0x1]  ;;  %v1606_v25 = vld [vmem:[%s1009_s12 + $0x31] sm:$0x1] }
  0x5a   : > { %v1614_v57 = vld [vmem:[%s1009_s12 + $0x5a] sm:$0x1]  ;;  %v1617_v14 = vld [vmem:[%s1009_s12 + $0x5c] sm:$0x1]  ;;  %v1620_v15 = vld [vmem:[%s1009_s12 + $0x5e] sm:$0x1]  ;;  %v1640_v55 = vmax.f32 %v2883_v42, %v444_v16  ;;  %v2886_v42 = vmax.f32 %v1015_v1, %v1021_v3 }
  0x5b   : > { %2881 = vst [vmem:[#allocation122_spill] sm:$0xff] %v1617_v14  ;;  %2882 = vst [vmem:[#allocation123_spill] sm:$0xff] %v1620_v15  ;;  %v1623_v34 = vld [vmem:[%s1009_s12 + $0x33] sm:$0x1]  ;;  %v1626_v61 = vld [vmem:[%s1009_s12 + $0x35] sm:$0x1] }
  0x5c   : > { %v1629_v6 = vld [vmem:[%s1009_s12 + $0x37] sm:$0x1]  ;;  %2884 = vst [vmem:[#allocation124_spill] sm:$0xff] %v1640_v55  ;;  %v1643_v59 = vld [vmem:[%s1009_s12 + $0x70] sm:$0x1]  ;;  %v1669_v35 = vmax.f32 %v2886_v42, %v445_v17  ;;  %v2889_v42 = vmax.f32 %v1024_v4, %v1036_v8 }
  0x5d   : > { %v1646_v53 = vld [vmem:[%s1009_s12 + $0x72] sm:$0x1]  ;;  %v1649_v40 = vld [vmem:[%s1009_s12 + $0x74] sm:$0x1]  ;;  %v1652_v48 = vld [vmem:[%s1009_s12 + $0x39] sm:$0x1] }
  0x5e   : > { %2885 = vst [vmem:[#allocation125_spill] sm:$0xff] %v1649_v40  ;;  %v1655_v10 = vld [vmem:[%s1009_s12 + $0x3b] sm:$0x1]  ;;  %v1658_v46 = vld [vmem:[%s1009_s12 + $0x3d] sm:$0x1]  ;;  %2887 = vst [vmem:[#allocation126_spill] sm:$0xff] %v1669_v35  ;;  %v1698_v16 = vmax.f32 %v2889_v42, %v446_v12  ;;  %v2892_v42 = vmax.f32 %v1027_v5, %v1039_v9 }
  0x5f   : > { %v1672_v55 = vld [vmem:[%s1009_s12 + $0x76] sm:$0x1]  ;;  %v1675_v49 = vld [vmem:[%s1009_s12 + $0x78] sm:$0x1]  ;;  %v1678_v0 = vld [vmem:[%s1009_s12 + $0x7a] sm:$0x1] }
  0x60   : > { %2888 = vst [vmem:[#allocation127_spill] sm:$0xff] %v1678_v0  ;;  %v1681_v47 = vld [vmem:[%s1009_s12 + $0x3f] sm:$0x1]  ;;  %v1684_v2 = vld [vmem:[%s1009_s12 + $0x51] sm:$0x1]  ;;  %2890 = vst [vmem:[#allocation128_spill] sm:$0xff] %v1698_v16  ;;  %v1727_v17 = vmax.f32 %v2892_v42, %v447_v26 }
  0x61   : > { %v1687_v43 = vld [vmem:[%s1009_s12 + $0x53] sm:$0x1]  ;;  %v1701_v35 = vld [vmem:[%s1009_s12 + $0x7c] sm:$0x1]  ;;  %v1704_v38 = vld [vmem:[%s1009_s12 + $0x7e] sm:$0x1] }
  0x62   : > { %v1707_v1 = vld [vmem:[%s1009_s12 + $0x90] sm:$0x1]  ;;  %v1710_v36 = vld [vmem:[%s1009_s12 + $0x55] sm:$0x1]  ;;  %v1713_v3 = vld [vmem:[%s1009_s12 + $0x57] sm:$0x1] }
  0x63   : > { %2891 = vst [vmem:[#allocation129_spill] sm:$0xff] %v1707_v1  ;;  %v1716_v39 = vld [vmem:[%s1009_s12 + $0x59] sm:$0x1]  ;;  %2893 = vst [vmem:[#allocation130_spill] sm:$0xff] %v1727_v17  ;;  %v1730_v16 = vld [vmem:[%s1009_s12 + $0x92] sm:$0x1] }
  0x64   : > { %v1733_v37 = vld [vmem:[%s1009_s12 + $0x94] sm:$0x1]  ;;  %v1736_v4 = vld [vmem:[%s1009_s12 + $0x96] sm:$0x1]  ;;  %v1739_v30 = vld [vmem:[%s1009_s12 + $0x5b] sm:$0x1] }
  0x65   : > { %2894 = vst [vmem:[#allocation131_spill] sm:$0xff] %v1736_v4  ;;  %2895 = vst [vmem:[#allocation132_spill] sm:$0xff] %v1739_v30  ;;  %v1742_v8 = vld [vmem:[%s1009_s12 + $0x5d] sm:$0x1]  ;;  %v1745_v28 = vld [vmem:[%s1009_s12 + $0x5f] sm:$0x1] }
  0x66   : > { %2896 = vst [vmem:[#allocation133_spill] sm:$0xff] %v1742_v8  ;;  %2897 = vst [vmem:[#allocation134_spill] sm:$0xff] %v1745_v28  ;;  %v2898_v42 = vld [vmem:[#allocation2_spill] sm:$0xff]  ;;  %v2899_v12 = vld [vmem:[#allocation4_spill] sm:$0xff] }
  0x67   : > { %v2900_v17 = vmax.f32 %v2898_v42, %v2899_v12  ;;  %v1759_v29 = vld [vmem:[%s1009_s12 + $0x98] sm:$0x1]  ;;  %v1762_v27 = vld [vmem:[%s1009_s12 + $0x9a] sm:$0x1]  ;;  %v1765_v5 = vld [vmem:[%s1009_s12 + $0x9c] sm:$0x1] }
  0x68   : > { %2902 = vst [vmem:[#allocation4_spill] sm:$0xff] %v1765_v5  ;;  %v1768_v22 = vld [vmem:[%s1009_s12 + $0x71] sm:$0x1]  ;;  %v1771_v9 = vld [vmem:[%s1009_s12 + $0x73] sm:$0x1]  ;;  %v2906_v42 = vld [vmem:[#allocation3_spill] sm:$0xff] }
  0x69   : > { %v1756_v31 = vmax.f32 %v2900_v17, %v448_v32  ;;  %2903 = vst [vmem:[#allocation135_spill] sm:$0xff] %v1768_v22  ;;  %2904 = vst [vmem:[#allocation136_spill] sm:$0xff] %v1771_v9  ;;  %v1774_v20 = vld [vmem:[%s1009_s12 + $0x75] sm:$0x1]  ;;  %v2907_v26 = vld [vmem:[#allocation5_spill] sm:$0xff] }
  0x6a   : > { %2905 = vst [vmem:[#allocation137_spill] sm:$0xff] %v1774_v20  ;;  %v1788_v21 = vld [vmem:[%s1009_s12 + $0x9e] sm:$0x1]  ;;  %v1791_v13 = vld [vmem:[%s1009_s12 + $0xb0] sm:$0x1]  ;;  %v2916_v17 = vld [vmem:[#allocation6_spill] sm:$0xff] }
  0x6b   : > { %2901 = vst [vmem:[#allocation2_spill] sm:$0xff] %v1756_v31  ;;  %v2908_v31 = vmax.f32 %v2906_v42, %v2907_v26  ;;  %2910 = vst [vmem:[#allocation5_spill] sm:$0xff] %v1791_v13  ;;  %v1794_v12 = vld [vmem:[%s1009_s12 + $0xb2] sm:$0x1]  ;;  %v1797_v30 = vld [vmem:[%s1009_s12 + $0x77] sm:$0x1]  ;;  %v2915_v42 = vmax.f32 %v1522_v41, %v1600_v58  ;;  %v2925_v58 = vmax.f32 %v1525_v50, %v1603_v19 }
  0x6c   : > { %2911 = vst [vmem:[#allocation138_spill] sm:$0xff] %v1794_v12  ;;  %2912 = vst [vmem:[#allocation139_spill] sm:$0xff] %v1797_v30  ;;  %v1800_v32 = vld [vmem:[%s1009_s12 + $0x79] sm:$0x1]  ;;  %v1803_v8 = vld [vmem:[%s1009_s12 + $0x7b] sm:$0x1] }
  0x6d   : > { %v1785_v23 = vmax.f32 %v2908_v31, %v449_v44  ;;  %2913 = vst [vmem:[#allocation140_spill] sm:$0xff] %v1800_v32  ;;  %2914 = vst [vmem:[#allocation141_spill] sm:$0xff] %v1803_v8  ;;  %v1820_v14 = vld [vmem:[%s1009_s12 + $0xb4] sm:$0x1]  ;;  %v1823_v26 = vld [vmem:[%s1009_s12 + $0xb6] sm:$0x1] }
  0x6e   : > { %v1826_v22 = vld [vmem:[%s1009_s12 + $0xb8] sm:$0x1]  ;;  %v1829_v31 = vld [vmem:[%s1009_s12 + $0x7d] sm:$0x1]  ;;  %v1832_v9 = vld [vmem:[%s1009_s12 + $0x7f] sm:$0x1] }
  0x6f   : > { %2909 = vst [vmem:[#allocation3_spill] sm:$0xff] %v1785_v23  ;;  %v2917_v23 = vld [vmem:[#allocation10_spill] sm:$0xff]  ;;  %2921 = vst [vmem:[#allocation142_spill] sm:$0xff] %v1826_v22  ;;  %v1835_v44 = vld [vmem:[%s1009_s12 + $0x91] sm:$0x1] }
  0x70   : > { %v2918_v28 = vmax.f32 %v2916_v17, %v2917_v23  ;;  %2920 = vst [vmem:[#allocation10_spill] sm:$0xff] %v1823_v26  ;;  %2922 = vst [vmem:[#allocation143_spill] sm:$0xff] %v1829_v31  ;;  %v2926_v17 = vld [vmem:[#allocation7_spill] sm:$0xff]  ;;  %v1852_v40 = vld [vmem:[%s1009_s12 + $0xba] sm:$0x1] }
  0x71   : > { %2923 = vst [vmem:[#allocation144_spill] sm:$0xff] %v1832_v9  ;;  %2924 = vst [vmem:[#allocation145_spill] sm:$0xff] %v1835_v44  ;;  %v1855_v23 = vld [vmem:[%s1009_s12 + $0xbc] sm:$0x1]  ;;  %v1858_v30 = vld [vmem:[%s1009_s12 + $0xbe] sm:$0x1] }
  0x72   : > { %v1817_v15 = vmax.f32 %v2918_v28, %v2915_v42  ;;  %v2927_v42 = vld [vmem:[#allocation11_spill] sm:$0xff]  ;;  %v1861_v28 = vld [vmem:[%s1009_s12 + $0x93] sm:$0x1]  ;;  %v1864_v32 = vld [vmem:[%s1009_s12 + $0x95] sm:$0x1] }
  0x73   : > { %2930 = vst [vmem:[#allocation11_spill] sm:$0xff] %v1861_v28  ;;  %2931 = vst [vmem:[#allocation146_spill] sm:$0xff] %v1864_v32  ;;  %v1867_v41 = vld [vmem:[%s1009_s12 + $0x97] sm:$0x1]  ;;  %v1884_v0 = vld [vmem:[%s1009_s12 + $0xd0] sm:$0x1] }
  0x74   : > { %2919 = vst [vmem:[#allocation6_spill] sm:$0xff] %v1817_v15  ;;  %v2928_v15 = vmax.f32 %v2926_v17, %v2927_v42  ;;  %2932 = vst [vmem:[#allocation147_spill] sm:$0xff] %v1867_v41  ;;  %v2934_v17 = vld [vmem:[#allocation8_spill] sm:$0xff]  ;;  %v1896_v9 = vld [vmem:[%s1009_s12 + $0x9b] sm:$0x1] }
  0x75   : > { %v2935_v42 = vld [vmem:[#allocation12_spill] sm:$0xff]  ;;  %2939 = vst [vmem:[#allocation148_spill] sm:$0xff] %v1896_v9  ;;  %v1899_v19 = vld [vmem:[%s1009_s12 + $0x9d] sm:$0x1]  ;;  %v1922_v28 = vld [vmem:[%s1009_s12 + $0xda] sm:$0x1] }
  0x76   : > { %v1849_v20 = vmax.f32 %v2928_v15, %v2925_v58  ;;  %v2933_v58 = vmax.f32 %v1528_v52, %v1606_v25  ;;  %v1887_v50 = vld [vmem:[%s1009_s12 + $0xd2] sm:$0x1]  ;;  %v1890_v31 = vld [vmem:[%s1009_s12 + $0xd4] sm:$0x1]  ;;  %v1893_v15 = vld [vmem:[%s1009_s12 + $0x99] sm:$0x1] }
  0x77   : > { %2938 = vst [vmem:[#allocation12_spill] sm:$0xff] %v1893_v15  ;;  %2940 = vst [vmem:[#allocation149_spill] sm:$0xff] %v1899_v19  ;;  %v1916_v1 = vld [vmem:[%s1009_s12 + $0xd6] sm:$0x1]  ;;  %v1919_v52 = vld [vmem:[%s1009_s12 + $0xd8] sm:$0x1] }
  0x78   : > { %2929 = vst [vmem:[#allocation7_spill] sm:$0xff] %v1849_v20  ;;  %v2936_v20 = vmax.f32 %v2934_v17, %v2935_v42  ;;  %v2942_v17 = vld [vmem:[#allocation9_spill] sm:$0xff]  ;;  %v1928_v32 = vld [vmem:[%s1009_s12 + $0xb1] sm:$0x1]  ;;  %v1931_v25 = vld [vmem:[%s1009_s12 + $0xb3] sm:$0x1] }
  0x79   : > { %v2943_v42 = vld [vmem:[#allocation13_spill] sm:$0xff]  ;;  %2947 = vst [vmem:[#allocation150_spill] sm:$0xff] %v1928_v32  ;;  %2948 = vst [vmem:[#allocation151_spill] sm:$0xff] %v1931_v25  ;;  %v1954_v15 = vld [vmem:[%s1009_s12 + $0xf0] sm:$0x1] }
  0x7a   : > { %v1881_v8 = vmax.f32 %v2936_v20, %v2933_v58  ;;  %v2941_v58 = vmax.f32 %v1539_v51, %v1623_v34  ;;  %v1925_v20 = vld [vmem:[%s1009_s12 + $0x9f] sm:$0x1]  ;;  %v1948_v4 = vld [vmem:[%s1009_s12 + $0xdc] sm:$0x1]  ;;  %v1951_v34 = vld [vmem:[%s1009_s12 + $0xde] sm:$0x1] }
  0x7b   : > { %2946 = vst [vmem:[#allocation13_spill] sm:$0xff] %v1925_v20  ;;  %v1957_v51 = vld [vmem:[%s1009_s12 + $0xb5] sm:$0x1]  ;;  %v1960_v9 = vld [vmem:[%s1009_s12 + $0xb7] sm:$0x1] }
  0x7c   : > { %2937 = vst [vmem:[#allocation8_spill] sm:$0xff] %v1881_v8  ;;  %v2944_v8 = vmax.f32 %v2942_v17, %v2943_v42  ;;  %v2950_v17 = vld [vmem:[#allocation14_spill] sm:$0xff]  ;;  %v1980_v5 = vld [vmem:[%s1009_s12 + $0xf2] sm:$0x1]  ;;  %v1986_v20 = vld [vmem:[%s1009_s12 + $0xf6] sm:$0x1] }
  0x7d   : > { %v2951_v42 = vld [vmem:[#allocation18_spill] sm:$0xff]  ;;  %v1992_v32 = vld [vmem:[%s1009_s12 + $0xbd] sm:$0x1]  ;;  %v2012_v12 = vld [vmem:[%s1009_s12 + $0xf8] sm:$0x1] }
  0x7e   : > { %v1913_v44 = vmax.f32 %v2944_v8, %v2941_v58  ;;  %v2949_v58 = vmax.f32 %v1542_v62, %v1626_v61  ;;  %2954 = vst [vmem:[#allocation18_spill] sm:$0xff] %v1960_v9  ;;  %v1963_v8 = vld [vmem:[%s1009_s12 + $0xb9] sm:$0x1]  ;;  %v1983_v61 = vld [vmem:[%s1009_s12 + $0xf4] sm:$0x1] }
  0x7f   : > { %2955 = vst [vmem:[#allocation152_spill] sm:$0xff] %v1963_v8  ;;  %v1989_v62 = vld [vmem:[%s1009_s12 + $0xbb] sm:$0x1]  ;;  %v2015_v13 = vld [vmem:[%s1009_s12 + $0xfa] sm:$0x1] }
  0x80   : > { %2945 = vst [vmem:[#allocation9_spill] sm:$0xff] %v1913_v44  ;;  %v2952_v44 = vmax.f32 %v2950_v17, %v2951_v42  ;;  %v2957_v17 = vld [vmem:[#allocation15_spill] sm:$0xff]  ;;  %v2024_v9 = vld [vmem:[%s1009_s12 + $0xd3] sm:$0x1]  ;;  %v2044_v22 = vld [vmem:[%s1009_s12 + $0xfe] sm:$0x1] }
  0x81   : > { %v2958_v42 = vld [vmem:[#allocation19_spill] sm:$0xff]  ;;  %v2047_v26 = vld [vmem:[%s1009_s12 + $0xd7] sm:$0x1] }
  0x82   : > { %v1945_v41 = vmax.f32 %v2952_v44, %v2949_v58  ;;  %v2956_v58 = vmax.f32 %v1545_v56, %v1629_v6  ;;  %v1995_v44 = vld [vmem:[%s1009_s12 + $0xbf] sm:$0x1]  ;;  %v2018_v56 = vld [vmem:[%s1009_s12 + $0xfc] sm:$0x1]  ;;  %v2021_v6 = vld [vmem:[%s1009_s12 + $0xd1] sm:$0x1] }
  0x83   : > { %2961 = vst [vmem:[#allocation19_spill] sm:$0xff] %v1995_v44  ;;  %v2070_v44 = vld [vmem:[%s1009_s12 + $0xdd] sm:$0x1] }
  0x84   : > { %2953 = vst [vmem:[#allocation14_spill] sm:$0xff] %v1945_v41  ;;  %v2959_v41 = vmax.f32 %v2957_v17, %v2958_v42  ;;  %v2963_v17 = vld [vmem:[#allocation16_spill] sm:$0xff] }
  0x85   : > { %v2964_v42 = vld [vmem:[#allocation20_spill] sm:$0xff] }
  0x86   : > { %v1977_v19 = vmax.f32 %v2959_v41, %v2956_v58  ;;  %v2962_v58 = vmax.f32 %v1556_v63, %v1652_v48  ;;  %2967 = vst [vmem:[#allocation20_spill] sm:$0xff] %v2021_v6  ;;  %v2027_v41 = vld [vmem:[%s1009_s12 + $0xd5] sm:$0x1]  ;;  %v2050_v48 = vld [vmem:[%s1009_s12 + $0xd9] sm:$0x1] }
  0x87   : > { %2968 = vst [vmem:[#allocation153_spill] sm:$0xff] %v2027_v41  ;;  %v2053_v63 = vld [vmem:[%s1009_s12 + $0xdb] sm:$0x1]  ;;  %v2076_v6 = vld [vmem:[%s1009_s12 + $0xf1] sm:$0x1] }
  0x88   : > { %2960 = vst [vmem:[#allocation15_spill] sm:$0xff] %v1977_v19  ;;  %v2965_v19 = vmax.f32 %v2963_v17, %v2964_v42  ;;  %v2970_v17 = vld [vmem:[#allocation17_spill] sm:$0xff]  ;;  %v2096_v41 = vld [vmem:[%s1009_s12 + $0xf5] sm:$0x1] }
  0x89   : > { %v2971_v42 = vld [vmem:[#allocation21_spill] sm:$0xff] }
  0x8a   : > { %v2009_v25 = vmax.f32 %v2965_v19, %v2962_v58  ;;  %v2969_v58 = vmax.f32 %v1559_v54, %v1655_v10  ;;  %v2073_v19 = vld [vmem:[%s1009_s12 + $0xdf] sm:$0x1]  ;;  %v495_v10 = vmax.f32 %v1916_v1, %v2047_v26  ;;  %v2099_v1 = vld [vmem:[%s1009_s12 + $0xf7] sm:$0x1]  ;;  %v498_v26 = vmax.f32 %v1948_v4, %v2070_v44 }
  0x8b   : > { %v2989_v44 = vld [vmem:[#allocation29_spill] sm:$0xff] }
  0x8c   : > { %2966 = vst [vmem:[#allocation16_spill] sm:$0xff] %v2009_v25  ;;  %v2972_v25 = vmax.f32 %v2970_v17, %v2971_v42  ;;  %v2976_v17 = vld [vmem:[#allocation26_spill] sm:$0xff] }
  0x8e   : > { %v2041_v8 = vmax.f32 %v2972_v25, %v2969_v58  ;;  %v2974_v25 = vmax.f32 %v1562_v18, %v1658_v46  ;;  %v2975_v58 = vld [vmem:[#allocation22_spill] sm:$0xff]  ;;  %v496_v18 = vmax.f32 %v1919_v52, %v2050_v48  ;;  %v497_v46 = vmax.f32 %v1922_v28, %v2053_v63  ;;  %v2984_v52 = vld [vmem:[#allocation24_spill] sm:$0xff] }
  0x8f   : > { %v2977_v42 = vmax.f32 %v2975_v58, %v2976_v17  ;;  %v2980_v58 = vld [vmem:[#allocation23_spill] sm:$0xff]  ;;  %v499_v28 = vmax.f32 %v1951_v34, %v2073_v19  ;;  %v2985_v48 = vld [vmem:[#allocation28_spill] sm:$0xff]  ;;  %v502_v34 = vmax.f32 %v1983_v61, %v2096_v41  ;;  %v2992_v61 = vld [vmem:[#allocation30_spill] sm:$0xff] }
  0x90   : > { %2973 = vst [vmem:[#allocation17_spill] sm:$0xff] %v2041_v8  ;;  %v2981_v17 = vld [vmem:[#allocation27_spill] sm:$0xff]  ;;  %v2986_v63 = vmax.f32 %v2984_v52, %v2985_v48 }
  0x91   : > { %v2067_v8 = vmax.f32 %v2977_v42, %v2974_v25  ;;  %v2979_v25 = vmax.f32 %v1570_v33, %v1681_v47  ;;  %v2982_v42 = vmax.f32 %v2980_v58, %v2981_v17  ;;  %v500_v33 = vmax.f32 %v1954_v15, %v2076_v6  ;;  %v962_v58 = vld [vmem:[%s1009_s12 + $0xf9] sm:$0x1]  ;;  %v963_v17 = vld [vmem:[%s1009_s12 + $0xfb] sm:$0x1] }
  0x92   : > { %v2983_v47 = vmax.f32 %v1573_v24, %v1684_v2  ;;  %v503_v15 = vmax.f32 %v1986_v20, %v2099_v1  ;;  %v2987_v24 = vmax.f32 %v1576_v45, %v1687_v43  ;;  %v2988_v2 = vld [vmem:[#allocation25_spill] sm:$0xff]  ;;  %v504_v52 = vmax.f32 %v2012_v12, %v962_v58  ;;  %v2993_v20 = vld [vmem:[#allocation34_spill] sm:$0xff] }
  0x93   : > { %2978 = vst [vmem:[#allocation21_spill] sm:$0xff] %v2067_v8  ;;  %v2090_v54 = vmax.f32 %v2982_v42, %v2979_v25  ;;  %v2093_v8 = vld [vmem:[%s1009_s12 + $0xf3] sm:$0x1]  ;;  %v964_v42 = vld [vmem:[%s1009_s12 + $0xfd] sm:$0x1]  ;;  %v2990_v6 = vmax.f32 %v2988_v2, %v2989_v44  ;;  %v505_v48 = vmax.f32 %v2015_v13, %v963_v17  ;;  %v2994_v41 = vmax.f32 %v2992_v61, %v2993_v20  ;;  %v3011_v61 = vld [vmem:[#allocation38_spill] sm:$0xff] }
  0x94   : > { %v2113_v25 = vmax.f32 %v2986_v63, %v2983_v47  ;;  %v501_v4 = vmax.f32 %v1980_v5, %v2093_v8  ;;  %v965_v47 = vld [vmem:[%s1009_s12 + $0xff] sm:$0x1]  ;;  %v506_v5 = vmax.f32 %v2018_v56, %v964_v42  ;;  %v2991_v8 = vmax.f32 %v1591_v11, %v1710_v36  ;;  %v2996_v63 = vld [vmem:[#allocation31_spill] sm:$0xff]  ;;  %v3000_v56 = vld [vmem:[#allocation32_spill] sm:$0xff] }
  0x95   : > { %v2130_v19 = vmax.f32 %v2990_v6, %v2987_v24  ;;  %v507_v43 = vmax.f32 %v2044_v22, %v965_v47  ;;  %v2995_v45 = vmax.f32 %v1594_v7, %v1713_v3  ;;  %v2997_v24 = vld [vmem:[#allocation35_spill] sm:$0xff]  ;;  %v2999_v13 = vmax.f32 %v1597_v60, %v1716_v39  ;;  %v3001_v11 = vld [vmem:[#allocation36_spill] sm:$0xff]  ;;  %v3005_v22 = vld [vmem:[#allocation33_spill] sm:$0xff] }
  0x96   : > { %v2142_v1 = vmax.f32 %v2994_v41, %v2991_v8  ;;  %v2998_v12 = vmax.f32 %v2996_v63, %v2997_v24  ;;  %v3002_v36 = vmax.f32 %v3000_v56, %v3001_v11  ;;  %v3003_v42 = vld [vmem:[#allocation132_spill] sm:$0xff]  ;;  %v3006_v44 = vld [vmem:[#allocation37_spill] sm:$0xff]  ;;  %v3008_v3 = vld [vmem:[#allocation122_spill] sm:$0xff] }
  0x97   : > { %v3004_v2 = vmax.f32 %v1614_v57, %v3003_v42  ;;  %v3007_v6 = vmax.f32 %v3005_v22, %v3006_v44  ;;  %v3009_v47 = vld [vmem:[#allocation133_spill] sm:$0xff]  ;;  %v3012_v20 = vld [vmem:[#allocation42_spill] sm:$0xff]  ;;  %v3014_v60 = vld [vmem:[#allocation123_spill] sm:$0xff] }
  0x98   : > { %v2151_v58 = vmax.f32 %v2998_v12, %v2995_v45  ;;  %v2159_v17 = vmax.f32 %v3002_v36, %v2999_v13  ;;  %v3010_v8 = vmax.f32 %v3008_v3, %v3009_v47  ;;  %v3013_v41 = vmax.f32 %v3011_v61, %v3012_v20  ;;  %v3015_v45 = vld [vmem:[#allocation134_spill] sm:$0xff]  ;;  %v3017_v24 = vld [vmem:[#allocation39_spill] sm:$0xff]  ;;  %v3022_v36 = vld [vmem:[#allocation40_spill] sm:$0xff] }
  0x99   : > { %v2167_v7 = vmax.f32 %v3007_v6, %v3004_v2  ;;  %v3016_v63 = vmax.f32 %v3014_v60, %v3015_v45  ;;  %v3018_v12 = vld [vmem:[#allocation43_spill] sm:$0xff]  ;;  %v3023_v42 = vld [vmem:[#allocation44_spill] sm:$0xff]  ;;  %v3027_v3 = vld [vmem:[#allocation41_spill] sm:$0xff] }
  0x9a   : > { %v2175_v39 = vmax.f32 %v3013_v41, %v3010_v8  ;;  %v3019_v13 = vmax.f32 %v3017_v24, %v3018_v12  ;;  %v3020_v56 = vld [vmem:[#allocation135_spill] sm:$0xff]  ;;  %v3024_v2 = vmax.f32 %v3022_v36, %v3023_v42  ;;  %v3025_v44 = vld [vmem:[#allocation136_spill] sm:$0xff]  ;;  %v3028_v47 = vld [vmem:[#allocation45_spill] sm:$0xff] }
  0x9b   : > { %v3021_v11 = vmax.f32 %v1643_v59, %v3020_v56  ;;  %v3026_v6 = vmax.f32 %v1646_v53, %v3025_v44  ;;  %v3029_v8 = vmax.f32 %v3027_v3, %v3028_v47  ;;  %v3030_v20 = vld [vmem:[#allocation125_spill] sm:$0xff]  ;;  %v3033_v45 = vld [vmem:[#allocation46_spill] sm:$0xff]  ;;  %v3036_v12 = vld [vmem:[#allocation139_spill] sm:$0xff] }
  0x9c   : > { %v2183_v57 = vmax.f32 %v3019_v13, %v3016_v63  ;;  %v3031_v41 = vld [vmem:[#allocation137_spill] sm:$0xff]  ;;  %v3034_v63 = vld [vmem:[#allocation50_spill] sm:$0xff]  ;;  %v3037_v13 = vmax.f32 %v1672_v55, %v3036_v12  ;;  %v3038_v56 = vld [vmem:[#allocation47_spill] sm:$0xff] }
  0x9d   : > { %v2191_v22 = vmax.f32 %v3024_v2, %v3021_v11  ;;  %v2199_v61 = vmax.f32 %v3029_v8, %v3026_v6  ;;  %v3032_v60 = vmax.f32 %v3030_v20, %v3031_v41  ;;  %v3035_v24 = vmax.f32 %v3033_v45, %v3034_v63  ;;  %v3039_v11 = vld [vmem:[#allocation51_spill] sm:$0xff]  ;;  %v3041_v42 = vld [vmem:[#allocation140_spill] sm:$0xff]  ;;  %v3047_v20 = vld [vmem:[#allocation141_spill] sm:$0xff] }
  0x9e   : > { %v3040_v36 = vmax.f32 %v3038_v56, %v3039_v11  ;;  %v3042_v2 = vmax.f32 %v1675_v49, %v3041_v42  ;;  %v3043_v44 = vld [vmem:[#allocation48_spill] sm:$0xff]  ;;  %v3046_v8 = vld [vmem:[#allocation127_spill] sm:$0xff]  ;;  %v3050_v45 = vld [vmem:[#allocation53_spill] sm:$0xff] }
  0x9f   : > { %v2207_v59 = vmax.f32 %v3035_v24, %v3032_v60  ;;  %v3044_v6 = vld [vmem:[#allocation52_spill] sm:$0xff]  ;;  %v3048_v41 = vmax.f32 %v3046_v8, %v3047_v20  ;;  %v3049_v60 = vld [vmem:[#allocation49_spill] sm:$0xff]  ;;  %v3052_v24 = vld [vmem:[#allocation143_spill] sm:$0xff] }
  0xa0   : > { %v2215_v53 = vmax.f32 %v3040_v36, %v3037_v13  ;;  %v3045_v3 = vmax.f32 %v3043_v44, %v3044_v6  ;;  %v3051_v63 = vmax.f32 %v3049_v60, %v3050_v45  ;;  %v3053_v12 = vmax.f32 %v1701_v35, %v3052_v24  ;;  %v3054_v13 = vld [vmem:[#allocation54_spill] sm:$0xff]  ;;  %v3057_v36 = vld [vmem:[#allocation144_spill] sm:$0xff]  ;;  %v3060_v44 = vld [vmem:[#allocation59_spill] sm:$0xff] }
  0xa1   : > { %v3055_v56 = vld [vmem:[#allocation58_spill] sm:$0xff]  ;;  %v3058_v42 = vmax.f32 %v1704_v38, %v3057_v36  ;;  %v3062_v8 = vld [vmem:[#allocation129_spill] sm:$0xff]  ;;  %v3065_v60 = vld [vmem:[#allocation56_spill] sm:$0xff] }
  0xa2   : > { %v2223_v47 = vmax.f32 %v3045_v3, %v3042_v2  ;;  %v2231_v55 = vmax.f32 %v3051_v63, %v3048_v41  ;;  %v3056_v49 = vmax.f32 %v3054_v13, %v3055_v56  ;;  %v3059_v2 = vld [vmem:[#allocation55_spill] sm:$0xff]  ;;  %v3063_v20 = vld [vmem:[#allocation145_spill] sm:$0xff]  ;;  %v3066_v45 = vld [vmem:[#allocation60_spill] sm:$0xff] }
  0xa3   : > { %v3061_v6 = vmax.f32 %v3059_v2, %v3060_v44  ;;  %v3064_v41 = vmax.f32 %v3062_v8, %v3063_v20  ;;  %v3067_v63 = vmax.f32 %v3065_v60, %v3066_v45  ;;  %v3069_v24 = vld [vmem:[#allocation11_spill] sm:$0xff]  ;;  %v3071_v13 = vld [vmem:[#allocation57_spill] sm:$0xff]  ;;  %v3074_v36 = vld [vmem:[#allocation146_spill] sm:$0xff] }
  0xa4   : > { %v2239_v11 = vmax.f32 %v3056_v49, %v3053_v12  ;;  %v3070_v12 = vmax.f32 %v1730_v16, %v3069_v24  ;;  %v3072_v56 = vld [vmem:[#allocation61_spill] sm:$0xff]  ;;  %v3076_v2 = vld [vmem:[#allocation62_spill] sm:$0xff]  ;;  %v3079_v20 = vld [vmem:[#allocation131_spill] sm:$0xff] }
  0xa5   : > { %v2247_v3 = vmax.f32 %v3061_v6, %v3058_v42  ;;  %v2255_v35 = vmax.f32 %v3067_v63, %v3064_v41  ;;  %v3073_v49 = vmax.f32 %v3071_v13, %v3072_v56  ;;  %v3075_v42 = vmax.f32 %v1733_v37, %v3074_v36  ;;  %v3077_v44 = vld [vmem:[#allocation66_spill] sm:$0xff]  ;;  %v3080_v41 = vld [vmem:[#allocation147_spill] sm:$0xff]  ;;  %v3087_v56 = vld [vmem:[#allocation64_spill] sm:$0xff] }
  0xa6   : > { %v3078_v6 = vmax.f32 %v3076_v2, %v3077_v44  ;;  %v3081_v60 = vmax.f32 %v3079_v20, %v3080_v41  ;;  %v3082_v45 = vld [vmem:[#allocation63_spill] sm:$0xff]  ;;  %v3091_v36 = vld [vmem:[#allocation148_spill] sm:$0xff]  ;;  %v3093_v2 = vld [vmem:[#allocation65_spill] sm:$0xff] }
  0xa7   : > { %3068 = vst [vmem:[#allocation22_spill] sm:$0xff] %v2255_v35  ;;  %v2263_v38 = vmax.f32 %v3073_v49, %v3070_v12  ;;  %v3083_v63 = vld [vmem:[#allocation67_spill] sm:$0xff]  ;;  %v3085_v12 = vld [vmem:[#allocation12_spill] sm:$0xff]  ;;  %v3094_v44 = vld [vmem:[#allocation69_spill] sm:$0xff] }
  0xa8   : > { %v2271_v8 = vmax.f32 %v3078_v6, %v3075_v42  ;;  %v3084_v16 = vmax.f32 %v3082_v45, %v3083_v63  ;;  %v3086_v13 = vmax.f32 %v1759_v29, %v3085_v12  ;;  %v3088_v49 = vld [vmem:[#allocation68_spill] sm:$0xff]  ;;  %v3092_v42 = vmax.f32 %v1762_v27, %v3091_v36  ;;  %v3100_v63 = vld [vmem:[#allocation70_spill] sm:$0xff] }
  0xa9   : > { %v3089_v35 = vmax.f32 %v3087_v56, %v3088_v49  ;;  %v3095_v6 = vmax.f32 %v3093_v2, %v3094_v44  ;;  %v3097_v41 = vld [vmem:[#allocation4_spill] sm:$0xff]  ;;  %v3106_v56 = vld [vmem:[#allocation71_spill] sm:$0xff]  ;;  %v3109_v2 = vld [vmem:[#allocation5_spill] sm:$0xff] }
  0xaa   : > { %v2279_v24 = vmax.f32 %v3084_v16, %v3081_v60  ;;  %v3098_v60 = vld [vmem:[#allocation149_spill] sm:$0xff]  ;;  %v3101_v16 = vld [vmem:[#allocation74_spill] sm:$0xff]  ;;  %v3107_v49 = vld [vmem:[#allocation75_spill] sm:$0xff] }
  0xab   : > { %v2287_v37 = vmax.f32 %v3089_v35, %v3086_v13  ;;  %v2295_v20 = vmax.f32 %v3095_v6, %v3092_v42  ;;  %v3099_v45 = vmax.f32 %v3097_v41, %v3098_v60  ;;  %v3102_v29 = vmax.f32 %v3100_v63, %v3101_v16  ;;  %v3104_v35 = vld [vmem:[#allocation13_spill] sm:$0xff]  ;;  %v3110_v42 = vld [vmem:[#allocation150_spill] sm:$0xff]  ;;  %v3112_v6 = vld [vmem:[#allocation72_spill] sm:$0xff] }
  0xac   : > { %v3105_v13 = vmax.f32 %v1788_v21, %v3104_v35  ;;  %v3108_v27 = vmax.f32 %v3106_v56, %v3107_v49  ;;  %v3111_v44 = vmax.f32 %v3109_v2, %v3110_v42  ;;  %v3116_v60 = vld [vmem:[#allocation138_spill] sm:$0xff]  ;;  %v3117_v63 = vld [vmem:[#allocation151_spill] sm:$0xff]  ;;  %v3119_v16 = vld [vmem:[#allocation73_spill] sm:$0xff]  ;;  %v3122_v35 = vmax.f32 %v1820_v14, %v1957_v51 }
  0xad   : > { %3090 = vst [vmem:[#allocation26_spill] sm:$0xff] %v2287_v37  ;;  %3096 = vst [vmem:[#allocation23_spill] sm:$0xff] %v2295_v20  ;;  %v2303_v12 = vmax.f32 %v3102_v29, %v3099_v45  ;;  %v3113_v20 = vld [vmem:[#allocation76_spill] sm:$0xff]  ;;  %v3118_v45 = vmax.f32 %v3116_v60, %v3117_v63  ;;  %v3120_v29 = vld [vmem:[#allocation77_spill] sm:$0xff]  ;;  %v3138_v51 = vmax.f32 %v1852_v40, %v1989_v62 }
  0xae   : > { %v2311_v36 = vmax.f32 %v3108_v27, %v3105_v13  ;;  %v3114_v37 = vmax.f32 %v3112_v6, %v3113_v20  ;;  %v3123_v13 = vld [vmem:[#allocation78_spill] sm:$0xff]  ;;  %v3129_v42 = vld [vmem:[#allocation79_spill] sm:$0xff] }
  0xaf   : > { %3103 = vst [vmem:[#allocation27_spill] sm:$0xff] %v2303_v12  ;;  %v3121_v12 = vmax.f32 %v3119_v16, %v3120_v29  ;;  %v3124_v56 = vld [vmem:[#allocation82_spill] sm:$0xff]  ;;  %v3135_v16 = vld [vmem:[#allocation80_spill] sm:$0xff] }
  0xb0   : > { %v2319_v41 = vmax.f32 %v3114_v37, %v3111_v44  ;;  %v3125_v49 = vmax.f32 %v3123_v13, %v3124_v56  ;;  %v3126_v20 = vld [vmem:[#allocation10_spill] sm:$0xff]  ;;  %v3130_v44 = vld [vmem:[#allocation83_spill] sm:$0xff]  ;;  %v3136_v29 = vld [vmem:[#allocation84_spill] sm:$0xff] }
  0xb1   : > { %v2327_v21 = vmax.f32 %v3121_v12, %v3118_v45  ;;  %v3127_v37 = vld [vmem:[#allocation18_spill] sm:$0xff]  ;;  %v3131_v6 = vmax.f32 %v3129_v42, %v3130_v44  ;;  %v3133_v12 = vld [vmem:[#allocation152_spill] sm:$0xff]  ;;  %v3140_v13 = vld [vmem:[#allocation85_spill] sm:$0xff] }
  0xb2   : > { %3115 = vst [vmem:[#allocation24_spill] sm:$0xff] %v2319_v41  ;;  %v2335_v27 = vmax.f32 %v3125_v49, %v3122_v35  ;;  %v3128_v2 = vmax.f32 %v3126_v20, %v3127_v37  ;;  %v3132_v63 = vld [vmem:[#allocation142_spill] sm:$0xff]  ;;  %v3137_v41 = vmax.f32 %v3135_v16, %v3136_v29  ;;  %v3139_v35 = vld [vmem:[#allocation81_spill] sm:$0xff]  ;;  %v3142_v20 = vmax.f32 %v1855_v23, %v1992_v32  ;;  %v3153_v29 = vld [vmem:[#allocation88_spill] sm:$0xff] }
  0xb3   : > { %v3134_v45 = vmax.f32 %v3132_v63, %v3133_v12  ;;  %v3141_v56 = vmax.f32 %v3139_v35, %v3140_v13  ;;  %v3143_v37 = vld [vmem:[#allocation86_spill] sm:$0xff]  ;;  %v3148_v63 = vld [vmem:[#allocation87_spill] sm:$0xff]  ;;  %v3156_v23 = vmax.f32 %v1887_v50, %v2024_v9  ;;  %v3157_v13 = vld [vmem:[#allocation89_spill] sm:$0xff] }
  0xb4   : > { %v2343_v60 = vmax.f32 %v3131_v6, %v3128_v2  ;;  %v3144_v2 = vld [vmem:[#allocation90_spill] sm:$0xff]  ;;  %v3149_v12 = vld [vmem:[#allocation91_spill] sm:$0xff]  ;;  %v3168_v9 = vld [vmem:[#allocation96_spill] sm:$0xff] }
  0xb5   : > { %v2351_v14 = vmax.f32 %v3137_v41, %v3134_v45  ;;  %v2359_v49 = vmax.f32 %v3141_v56, %v3138_v51  ;;  %v3145_v42 = vmax.f32 %v3143_v37, %v3144_v2  ;;  %v3146_v41 = vld [vmem:[#allocation19_spill] sm:$0xff]  ;;  %v3150_v40 = vmax.f32 %v3148_v63, %v3149_v12  ;;  %v3151_v45 = vld [vmem:[#allocation20_spill] sm:$0xff]  ;;  %v3158_v56 = vld [vmem:[#allocation93_spill] sm:$0xff] }
  0xb6   : > { %v3147_v6 = vmax.f32 %v1858_v30, %v3146_v41  ;;  %v3152_v16 = vmax.f32 %v1884_v0, %v3151_v45  ;;  %v3154_v51 = vld [vmem:[#allocation92_spill] sm:$0xff]  ;;  %v3160_v37 = vld [vmem:[#allocation153_spill] sm:$0xff]  ;;  %v3163_v41 = vld [vmem:[#allocation98_spill] sm:$0xff] }
  0xb7   : > { %v2367_v44 = vmax.f32 %v3145_v42, %v3142_v20  ;;  %v3155_v35 = vmax.f32 %v3153_v29, %v3154_v51  ;;  %v3159_v20 = vmax.f32 %v3157_v13, %v3158_v56  ;;  %v3161_v2 = vmax.f32 %v1890_v31, %v3160_v37  ;;  %v3162_v42 = vld [vmem:[#allocation94_spill] sm:$0xff]  ;;  %v3165_v63 = vld [vmem:[#allocation95_spill] sm:$0xff]  ;;  %v3169_v50 = vld [vmem:[#allocation100_spill] sm:$0xff] }
  0xb8   : > { %v2375_v62 = vmax.f32 %v3150_v40, %v3147_v6  ;;  %v3164_v0 = vmax.f32 %v3162_v42, %v3163_v41  ;;  %v3166_v12 = vld [vmem:[#allocation99_spill] sm:$0xff]  ;;  %v3171_v51 = vld [vmem:[#allocation97_spill] sm:$0xff]  ;;  %v3174_v31 = vld [vmem:[#allocation102_spill] sm:$0xff] }
  0xb9   : > { %v2383_v32 = vmax.f32 %v3155_v35, %v3152_v16  ;;  %v2391_v30 = vmax.f32 %v3159_v20, %v3156_v23  ;;  %v3167_v40 = vmax.f32 %v3165_v63, %v3166_v12  ;;  %v3170_v16 = vmax.f32 %v3168_v9, %v3169_v50  ;;  %v3172_v35 = vld [vmem:[#allocation101_spill] sm:$0xff]  ;;  %v3175_v56 = vld [vmem:[#allocation106_spill] sm:$0xff]  ;;  %v3178_v42 = vld [vmem:[#allocation107_spill] sm:$0xff] }
  0xba   : > { %v2399_v6 = vmax.f32 %v3164_v0, %v3161_v2  ;;  %v3173_v23 = vmax.f32 %v3171_v51, %v3172_v35  ;;  %v3176_v20 = vmax.f32 %v3174_v31, %v3175_v56  ;;  %v3177_v2 = vld [vmem:[#allocation103_spill] sm:$0xff]  ;;  %v3180_v0 = vld [vmem:[#allocation104_spill] sm:$0xff]  ;;  %v3184_v9 = vld [vmem:[#allocation109_spill] sm:$0xff] }
  0xbb   : > { %v2404_v45 = vmax.f32 %v3167_v40, %v495_v10  ;;  %v2409_v29 = vmax.f32 %v3170_v16, %v496_v18  ;;  %v3179_v10 = vmax.f32 %v3177_v2, %v3178_v42  ;;  %v3181_v63 = vld [vmem:[#allocation108_spill] sm:$0xff]  ;;  %v3183_v40 = vld [vmem:[#allocation105_spill] sm:$0xff]  ;;  %v3186_v16 = vld [vmem:[#allocation110_spill] sm:$0xff] }
  0xbc   : > { %v2414_v13 = vmax.f32 %v3173_v23, %v497_v46  ;;  %v2419_v37 = vmax.f32 %v3176_v20, %v498_v26  ;;  %v3182_v18 = vmax.f32 %v3180_v0, %v3181_v63  ;;  %v3185_v46 = vmax.f32 %v3183_v40, %v3184_v9  ;;  %v3187_v51 = vld [vmem:[#allocation114_spill] sm:$0xff]  ;;  %v3189_v23 = vld [vmem:[#allocation111_spill] sm:$0xff]  ;;  %v3192_v20 = vld [vmem:[#allocation112_spill] sm:$0xff] }
  0xbd   : > { %v2424_v41 = vmax.f32 %v3179_v10, %v499_v28  ;;  %v3188_v35 = vmax.f32 %v3186_v16, %v3187_v51  ;;  %v3190_v31 = vld [vmem:[#allocation115_spill] sm:$0xff]  ;;  %v3193_v2 = vld [vmem:[#allocation116_spill] sm:$0xff]  ;;  %v3196_v10 = vld [vmem:[#allocation113_spill] sm:$0xff] }
  0xbe   : > { %v2429_v12 = vmax.f32 %v3182_v18, %v500_v33  ;;  %v2434_v50 = vmax.f32 %v3185_v46, %v501_v4  ;;  %v3191_v56 = vmax.f32 %v3189_v23, %v3190_v31  ;;  %v3194_v42 = vmax.f32 %v3192_v20, %v3193_v2  ;;  %v3197_v0 = vld [vmem:[#allocation117_spill] sm:$0xff]  ;;  %v3200_v18 = vld [vmem:[#allocation118_spill] sm:$0xff]  ;;  %v3201_v40 = vld [vmem:[#allocation119_spill] sm:$0xff] }
  0xbf   : > { %v2439_v26 = vmax.f32 %v3188_v35, %v502_v34  ;;  %v3198_v63 = vmax.f32 %v3196_v10, %v3197_v0  ;;  %v3202_v9 = vmax.f32 %v3200_v18, %v3201_v40  ;;  %v3204_v46 = vld [vmem:[#allocation120_spill] sm:$0xff]  ;;  %v3205_v16 = vld [vmem:[#allocation121_spill] sm:$0xff]  ;;  %v3208_v35 = vld [vmem:[#allocation126_spill] sm:$0xff] }
  0xc0   : > { %v2444_v28 = vmax.f32 %v3191_v56, %v503_v15  ;;  %v2449_v33 = vmax.f32 %v3194_v42, %v504_v52  ;;  %v3206_v51 = vmax.f32 %v3204_v46, %v3205_v16  ;;  %v636_v23 = vrot.slane %v3208_v35, 7  ;;  %v3209_v31 = vld [vmem:[#allocation128_spill] sm:$0xff]  ;;  %v3210_v56 = vld [vmem:[#allocation130_spill] sm:$0xff]  ;;  %v3215_v40 = vld [vmem:[#allocation7_spill] sm:$0xff] }
  0xc1   : > { %v2454_v4 = vmax.f32 %v3198_v63, %v505_v48  ;;  %v2459_v34 = vmax.f32 %v3202_v9, %v506_v5  ;;  %v639_v52 = vrot.slane %v3209_v31, 6  ;;  %v642_v20 = vrot.slane %v3210_v56, 5  ;;  %v3211_v2 = vld [vmem:[#allocation2_spill] sm:$0xff]  ;;  %v3212_v48 = vld [vmem:[#allocation3_spill] sm:$0xff]  ;;  %v3214_v18 = vld [vmem:[#allocation124_spill] sm:$0xff] }
  0xc2   : > { %3195 = vst [vmem:[#allocation28_spill] sm:$0xff] %v2449_v33  ;;  %v2464_v15 = vmax.f32 %v3206_v51, %v507_v43  ;;  %v645_v42 = vrot.slane %v3211_v2, 4  ;;  %v648_v10 = vrot.slane %v3212_v48, 3  ;;  %v3213_v0 = vld [vmem:[#allocation6_spill] sm:$0xff]  ;;  %v638_v5 = vsel %vm637_vm0, %v636_v23, %v3214_v18  ;;  %v3216_v46 = vld [vmem:[#allocation9_spill] sm:$0xff]  ;;  %v3218_v31 = vld [vmem:[#allocation15_spill] sm:$0xff] }
  0xc3   : > { %3199 = vst [vmem:[#allocation25_spill] sm:$0xff] %v2454_v4  ;;  %3203 = vst [vmem:[#allocation29_spill] sm:$0xff] %v2459_v34  ;;  %v651_v63 = vrot.slane %v3213_v0, 2  ;;  %v654_v9 = vrot.slane %v3215_v40, 1  ;;  %v657_v43 = vrot.slane %v3216_v46, 7  ;;  %v3217_v16 = vld [vmem:[#allocation14_spill] sm:$0xff]  ;;  %v641_v35 = vsel %vm640_vm1, %v639_v52, %v638_v5 }
  0xc4   : > { %3207 = vst [vmem:[#allocation30_spill] sm:$0xff] %v2464_v15  ;;  %v659_v51 = vrot.slane %v3217_v16, 6  ;;  %v661_v15 = vrot.slane %v3218_v31, 5  ;;  %v3219_v56 = vld [vmem:[#allocation16_spill] sm:$0xff]  ;;  %v3220_v2 = vld [vmem:[#allocation17_spill] sm:$0xff]  ;;  %v644_v48 = vsel %vm643_vm2, %v642_v20, %v641_v35  ;;  %v669_v40 = vrot.slane %v2090_v54, 1 }
  0xc5   : > { %v663_v34 = vrot.slane %v3219_v56, 4  ;;  %v665_v4 = vrot.slane %v3220_v2, 3  ;;  %v3221_v0 = vld [vmem:[#allocation8_spill] sm:$0xff]  ;;  %v3222_v23 = vld [vmem:[#allocation21_spill] sm:$0xff]  ;;  %v647_v46 = vsel %vm646_vm3, %v645_v42, %v644_v48  ;;  %v671_v52 = vrot.slane %v2130_v19, 7 }
  0xc6   : > { %v658_v33 = vsel %vm637_vm0, %v657_v43, %v3221_v0  ;;  %v667_v18 = vrot.slane %v3222_v23, 2  ;;  %v673_v5 = vrot.slane %v2142_v1, 6  ;;  %v650_v31 = vsel %vm649_vm4, %v648_v10, %v647_v46 }
  0xc7   : > { %v660_v16 = vsel %vm640_vm1, %v659_v51, %v658_v33  ;;  %v675_v20 = vrot.slane %v2151_v58, 5  ;;  %v677_v43 = vrot.slane %v2159_v17, 4  ;;  %v653_v35 = vsel %vm652_vm5, %v651_v63, %v650_v31  ;;  %v3226_v31 = vld [vmem:[#allocation27_spill] sm:$0xff] }
  0xc8   : > { %v662_v56 = vsel %vm643_vm2, %v661_v15, %v660_v16  ;;  %v672_v42 = vsel %vm637_vm0, %v671_v52, %v2113_v25  ;;  %v679_v33 = vrot.slane %v2167_v7, 3  ;;  %v2500_v19 = vsel %vm655_vm6, %v654_v9, %v653_v35  ;;  %v3224_v16 = vld [vmem:[#allocation23_spill] sm:$0xff] }
  0xc9   : > { %v664_v54 = vsel %vm646_vm3, %v663_v34, %v662_v56  ;;  %v674_v15 = vsel %vm640_vm1, %v673_v5, %v672_v42  ;;  %v681_v58 = vrot.slane %v2175_v39, 2  ;;  %v683_v34 = vrot.slane %v2183_v57, 1  ;;  %764 = vst.msk [vmem:[%s121_s16] sm:$0xff] %vm763_vm7, %v2500_v19 }
  0xca   : > { %v666_v1 = vsel %vm649_vm4, %v665_v4, %v664_v54  ;;  %v676_v10 = vsel %vm643_vm2, %v675_v20, %v674_v15  ;;  %v685_v63 = vrot.slane %v2199_v61, 7  ;;  %v687_v9 = vrot.slane %v2207_v59, 6  ;;  %v3227_v15 = vld [vmem:[#allocation24_spill] sm:$0xff] }
  0xcb   : > { %v668_v17 = vsel %vm652_vm5, %v667_v18, %v666_v1  ;;  %v678_v7 = vsel %vm646_vm3, %v677_v43, %v676_v10  ;;  %v689_v4 = vrot.slane %v2215_v53, 5  ;;  %v691_v2 = vrot.slane %v2223_v47, 4 }
  0xcc   : > { %v2510_v25 = vsel %vm655_vm6, %v669_v40, %v668_v17  ;;  %v680_v51 = vsel %vm649_vm4, %v679_v33, %v678_v7  ;;  %v686_v39 = vsel %vm637_vm0, %v685_v63, %v2191_v22  ;;  %v693_v57 = vrot.slane %v2231_v55, 3  ;;  %v3223_v40 = vld [vmem:[#allocation26_spill] sm:$0xff] }
  0xcd   : > { %v682_v61 = vsel %vm652_vm5, %v681_v58, %v680_v51  ;;  %v688_v48 = vsel %vm640_vm1, %v687_v9, %v686_v39  ;;  %v695_v0 = vrot.slane %v2239_v11, 2  ;;  %v697_v23 = vrot.slane %v2247_v3, 1  ;;  %v3225_v3 = vld [vmem:[#allocation22_spill] sm:$0xff]  ;;  %765 = vst.msk [vmem:[%s121_s16 + $0x8] sm:$0xff] %vm763_vm7, %v2510_v25 }
  0xce   : > { %v2525_v59 = vsel %vm655_vm6, %v683_v34, %v682_v61  ;;  %v690_v53 = vsel %vm643_vm2, %v689_v4, %v688_v48  ;;  %v699_v18 = vrot.slane %v2263_v38, 7  ;;  %v701_v22 = vrot.slane %v2271_v8, 6 }
  0xcf   : > { %v692_v47 = vsel %vm646_vm3, %v691_v2, %v690_v53  ;;  %v703_v55 = vrot.slane %v2279_v24, 5  ;;  %v705_v46 = vrot.slane %v3223_v40, 4  ;;  %v707_v52 = vrot.slane %v3224_v16, 3  ;;  %766 = vst.msk [vmem:[%s121_s16 + $0x10] sm:$0xff] %vm763_vm7, %v2525_v59 }
  0xd0   : > { %v694_v11 = vsel %vm649_vm4, %v693_v57, %v692_v47  ;;  %v700_v5 = vsel %vm637_vm0, %v699_v18, %v3225_v3  ;;  %v709_v56 = vrot.slane %v3226_v31, 2  ;;  %v711_v20 = vrot.slane %v2311_v36, 1 }
  0xd1   : > { %v696_v38 = vsel %vm652_vm5, %v695_v0, %v694_v11  ;;  %v702_v8 = vsel %vm640_vm1, %v701_v22, %v700_v5  ;;  %v713_v43 = vrot.slane %v2327_v21, 7  ;;  %v715_v24 = vrot.slane %v2335_v27, 6 }
  0xd2   : > { %v698_v35 = vsel %vm655_vm6, %v697_v23, %v696_v38  ;;  %v704_v54 = vsel %vm643_vm2, %v703_v55, %v702_v8  ;;  %v717_v42 = vrot.slane %v2343_v60, 5  ;;  %v719_v33 = vrot.slane %v2351_v14, 4  ;;  %v3231_v55 = vld [vmem:[#allocation30_spill] sm:$0xff] }
  0xd3   : > { %v706_v1 = vsel %vm646_vm3, %v705_v46, %v704_v54  ;;  %v714_v36 = vsel %vm637_vm0, %v713_v43, %v3227_v15  ;;  %v721_v58 = vrot.slane %v2359_v49, 3  ;;  %v723_v21 = vrot.slane %v2367_v44, 2  ;;  %767 = vst.msk [vmem:[%s121_s16 + $0x18] sm:$0xff] %vm763_vm7, %v698_v35 }
  0xd4   : > { %v708_v27 = vsel %vm649_vm4, %v707_v52, %v706_v1  ;;  %v716_v17 = vsel %vm640_vm1, %v715_v24, %v714_v36  ;;  %v725_v10 = vrot.slane %v2375_v62, 1  ;;  %v727_v60 = vrot.slane %v2391_v30, 7 }
  0xd5   : > { %v710_v14 = vsel %vm652_vm5, %v709_v56, %v708_v27  ;;  %v718_v34 = vsel %vm643_vm2, %v717_v42, %v716_v17  ;;  %v729_v63 = vrot.slane %v2399_v6, 6  ;;  %v731_v7 = vrot.slane %v2404_v45, 5 }
  0xd6   : > { %v712_v49 = vsel %vm655_vm6, %v711_v20, %v710_v14  ;;  %v720_v44 = vsel %vm646_vm3, %v719_v33, %v718_v34  ;;  %v728_v9 = vsel %vm637_vm0, %v727_v60, %v2383_v32  ;;  %v733_v4 = vrot.slane %v2409_v29, 4 }
  0xd7   : > { %v722_v62 = vsel %vm649_vm4, %v721_v58, %v720_v44  ;;  %v730_v30 = vsel %vm640_vm1, %v729_v63, %v728_v9  ;;  %v735_v51 = vrot.slane %v2414_v13, 3  ;;  %v737_v6 = vrot.slane %v2419_v37, 2  ;;  %768 = vst.msk [vmem:[%s121_s16 + $0x20] sm:$0xff] %vm763_vm7, %v712_v49 }
  0xd8   : > { %v724_v45 = vsel %vm652_vm5, %v723_v21, %v722_v62  ;;  %v732_v39 = vsel %vm643_vm2, %v731_v7, %v730_v30  ;;  %v739_v2 = vrot.slane %v2424_v41, 1  ;;  %v741_v57 = vrot.slane %v2434_v50, 7  ;;  %v3228_v41 = vld [vmem:[#allocation28_spill] sm:$0xff]  ;;  %v3229_v50 = vld [vmem:[#allocation25_spill] sm:$0xff] }
  0xd9   : > { %v726_v32 = vsel %vm655_vm6, %v725_v10, %v724_v45  ;;  %v734_v29 = vsel %vm646_vm3, %v733_v4, %v732_v39  ;;  %v743_v61 = vrot.slane %v2439_v26, 6  ;;  %v745_v48 = vrot.slane %v2444_v28, 5  ;;  %v3230_v26 = vld [vmem:[#allocation29_spill] sm:$0xff] }
  0xda   : > { %v736_v13 = vsel %vm649_vm4, %v735_v51, %v734_v29  ;;  %v742_v37 = vsel %vm637_vm0, %v741_v57, %v2429_v12  ;;  %v747_v0 = vrot.slane %v3228_v41, 4  ;;  %v749_v23 = vrot.slane %v3229_v50, 3  ;;  %769 = vst.msk [vmem:[%s121_s16 + $0x28] sm:$0xff] %vm763_vm7, %v726_v32 }
  0xdb   : > { %v738_v53 = vsel %vm652_vm5, %v737_v6, %v736_v13  ;;  %v744_v18 = vsel %vm640_vm1, %v743_v61, %v742_v37  ;;  %v751_v22 = vrot.slane %v3230_v26, 2  ;;  %v753_v40 = vrot.slane %v3231_v55, 1 }
  0xdc   : > { %v740_v28 = vsel %vm655_vm6, %v739_v2, %v738_v53  ;;  %v746_v47 = vsel %vm643_vm2, %v745_v48, %v744_v18 }
  0xdd   : > { %v748_v46 = vsel %vm646_vm3, %v747_v0, %v746_v47  ;;  %770 = vst.msk [vmem:[%s121_s16 + $0x30] sm:$0xff] %vm763_vm7, %v740_v28 }
  0xde   : > { %v750_v12 = vsel %vm649_vm4, %v749_v23, %v748_v46 }
  0xdf   : > { %v752_v16 = vsel %vm652_vm5, %v751_v22, %v750_v12 }
  0xe0   : > { %v754_v52 = vsel %vm655_vm6, %v753_v40, %v752_v16 }
  0xe1   : > { %771 = vst.msk [vmem:[%s121_s16 + $0x38] sm:$0xff] %vm763_vm7, %v754_v52 }
  0xe2 PF: > { %s11_s6 = sadd.s32 1, %s983_s6  }
  0xe3   : > { %p8_p4 = scmp.ge.s32.totalorder %s11_s6, 4  }
  0xe5   :  { %10 = sbr.rel (!%p8_p4) target bundleno = 1 (0x1), region = 55 }

// kernel: conv_classifier_forward.8
= control target key start
LH: loop header
LB: loop body
LE: loop exit
PB: predicated region body
PF: predicated region fallthrough
CT: control target
= control target key end

     0   :  { %s549_s1 = inlined_call_operand.vmem [shape: f32[512,128], index: 1, kind: input, shape index: {}]   ;;  %s550_s0 = inlined_call_operand.vmem [shape: f32[8,512], index: 0, kind: input, shape index: {}]   ;;  %s551_s2 = inlined_call_operand.vmem [shape: f32[1,128], index: 2, kind: input, shape index: {}]   ;;  %s552_s3 = inlined_call_operand.vmem [shape: f32[8,128], index: 3, kind: output, shape index: {}]  }
   0x1   :  { %v55_v0 = vld [vmem:[%s549_s1 + $0xf8] sm:$0xff]  ;;  %v54_v4 = vld [vmem:[%s549_s1 + $0xf0] sm:$0xff]  ;;  %v53_v8 = vld [vmem:[%s549_s1 + $0xe8] sm:$0xff] }
   0x2   :  { %v87_v1 = vld [vmem:[%s549_s1 + $0x1f8] sm:$0xff]  ;;  %249 = vmatprep.subr.mxu0 %v55_v0  ;;  %v86_v5 = vld [vmem:[%s549_s1 + $0x1f0] sm:$0xff]  ;;  %v85_v9 = vld [vmem:[%s549_s1 + $0x1e8] sm:$0xff] }
   0x3   :  { %v39_v2 = vld [vmem:[%s549_s1 + $0x78] sm:$0xff]  ;;  %284 = vmatprep.subr.mxu1 %v87_v1  ;;  %v38_v6 = vld [vmem:[%s549_s1 + $0x70] sm:$0xff]  ;;  %v37_v10 = vld [vmem:[%s549_s1 + $0x68] sm:$0xff] }
   0x4   :  { %v71_v3 = vld [vmem:[%s549_s1 + $0x178] sm:$0xff]  ;;  %250 = vmatpush3.msra.mxu0 %v39_v2  ;;  %v70_v7 = vld [vmem:[%s549_s1 + $0x170] sm:$0xff]  ;;  %v69_v11 = vld [vmem:[%s549_s1 + $0x168] sm:$0xff] }
   0x5   :  { %285 = vmatpush3.msra.mxu1 %v71_v3  ;;  %251 = vmatprep.subr.mxu0 %v54_v4  ;;  %v52_v12 = vld [vmem:[%s549_s1 + $0xe0] sm:$0xff]  ;;  %v51_v16 = vld [vmem:[%s549_s1 + $0xd8] sm:$0xff]  ;;  %v50_v20 = vld [vmem:[%s549_s1 + $0xd0] sm:$0xff] }
   0x6   :  { %286 = vmatprep.subr.mxu1 %v86_v5  ;;  %252 = vmatpush3.msra.mxu0 %v38_v6  ;;  %v84_v13 = vld [vmem:[%s549_s1 + $0x1e0] sm:$0xff]  ;;  %v83_v17 = vld [vmem:[%s549_s1 + $0x1d8] sm:$0xff]  ;;  %v82_v21 = vld [vmem:[%s549_s1 + $0x1d0] sm:$0xff] }
   0x7   :  { %287 = vmatpush3.msra.mxu1 %v70_v7  ;;  %253 = vmatprep.subr.mxu0 %v53_v8  ;;  %v36_v14 = vld [vmem:[%s549_s1 + $0x60] sm:$0xff]  ;;  %v35_v18 = vld [vmem:[%s549_s1 + $0x58] sm:$0xff]  ;;  %v34_v22 = vld [vmem:[%s549_s1 + $0x50] sm:$0xff] }
   0x8   :  { %288 = vmatprep.subr.mxu1 %v85_v9  ;;  %v68_v15 = vld [vmem:[%s549_s1 + $0x160] sm:$0xff]  ;;  %254 = vmatpush3.msra.mxu0 %v37_v10  ;;  %v67_v19 = vld [vmem:[%s549_s1 + $0x158] sm:$0xff]  ;;  %v66_v23 = vld [vmem:[%s549_s1 + $0x150] sm:$0xff] }
   0x9   :  { %289 = vmatpush3.msra.mxu1 %v69_v11  ;;  %255 = vmatprep.subr.mxu0 %v52_v12  ;;  %v49_v24 = vld [vmem:[%s549_s1 + $0xc8] sm:$0xff]  ;;  %v48_v28 = vld [vmem:[%s549_s1 + $0xc0] sm:$0xff]  ;;  %v47_v32 = vld [vmem:[%s549_s1 + $0xb8] sm:$0xff] }
   0xa   :  { %290 = vmatprep.subr.mxu1 %v84_v13  ;;  %256 = vmatpush3.msra.mxu0 %v36_v14  ;;  %v81_v25 = vld [vmem:[%s549_s1 + $0x1c8] sm:$0xff]  ;;  %v80_v29 = vld [vmem:[%s549_s1 + $0x1c0] sm:$0xff]  ;;  %v79_v33 = vld [vmem:[%s549_s1 + $0x1b8] sm:$0xff] }
   0xb   :  { %291 = vmatpush3.msra.mxu1 %v68_v15  ;;  %257 = vmatprep.subr.mxu0 %v51_v16  ;;  %v33_v26 = vld [vmem:[%s549_s1 + $0x48] sm:$0xff]  ;;  %v32_v30 = vld [vmem:[%s549_s1 + $0x40] sm:$0xff]  ;;  %v31_v34 = vld [vmem:[%s549_s1 + $0x38] sm:$0xff] }
   0xc   :  { %292 = vmatprep.subr.mxu1 %v83_v17  ;;  %258 = vmatpush3.msra.mxu0 %v35_v18  ;;  %v65_v27 = vld [vmem:[%s549_s1 + $0x148] sm:$0xff]  ;;  %v64_v31 = vld [vmem:[%s549_s1 + $0x140] sm:$0xff]  ;;  %v63_v35 = vld [vmem:[%s549_s1 + $0x138] sm:$0xff] }
   0xd   :  { %293 = vmatpush3.msra.mxu1 %v67_v19  ;;  %259 = vmatprep.subr.mxu0 %v50_v20  ;;  %v46_v36 = vld [vmem:[%s549_s1 + $0xb0] sm:$0xff]  ;;  %v45_v40 = vld [vmem:[%s549_s1 + $0xa8] sm:$0xff]  ;;  %v44_v44 = vld [vmem:[%s549_s1 + $0xa0] sm:$0xff] }
   0xe   :  { %294 = vmatprep.subr.mxu1 %v82_v21  ;;  %260 = vmatpush3.msra.mxu0 %v34_v22  ;;  %v78_v37 = vld [vmem:[%s549_s1 + $0x1b0] sm:$0xff]  ;;  %v77_v41 = vld [vmem:[%s549_s1 + $0x1a8] sm:$0xff]  ;;  %v76_v45 = vld [vmem:[%s549_s1 + $0x1a0] sm:$0xff] }
   0xf   :  { %295 = vmatpush3.msra.mxu1 %v66_v23  ;;  %261 = vmatprep.subr.mxu0 %v49_v24  ;;  %v30_v38 = vld [vmem:[%s549_s1 + $0x30] sm:$0xff]  ;;  %v29_v42 = vld [vmem:[%s549_s1 + $0x28] sm:$0xff]  ;;  %v28_v46 = vld [vmem:[%s549_s1 + $0x20] sm:$0xff] }
  0x10   :  { %296 = vmatprep.subr.mxu1 %v81_v25  ;;  %262 = vmatpush3.msra.mxu0 %v33_v26  ;;  %v62_v39 = vld [vmem:[%s549_s1 + $0x130] sm:$0xff]  ;;  %v61_v43 = vld [vmem:[%s549_s1 + $0x128] sm:$0xff]  ;;  %v60_v47 = vld [vmem:[%s549_s1 + $0x120] sm:$0xff] }
  0x11   :  { %297 = vmatpush3.msra.mxu1 %v65_v27  ;;  %263 = vmatprep.subr.mxu0 %v48_v28  ;;  %v43_v48 = vld [vmem:[%s549_s1 + $0x98] sm:$0xff]  ;;  %v42_v52 = vld [vmem:[%s549_s1 + $0x90] sm:$0xff]  ;;  %v41_v56 = vld [vmem:[%s549_s1 + $0x88] sm:$0xff] }
  0x12   :  { %298 = vmatprep.subr.mxu1 %v80_v29  ;;  %264 = vmatpush3.msra.mxu0 %v32_v30  ;;  %v75_v49 = vld [vmem:[%s549_s1 + $0x198] sm:$0xff]  ;;  %v74_v53 = vld [vmem:[%s549_s1 + $0x190] sm:$0xff]  ;;  %v73_v57 = vld [vmem:[%s549_s1 + $0x188] sm:$0xff] }
  0x13   :  { %299 = vmatpush3.msra.mxu1 %v64_v31  ;;  %265 = vmatprep.subr.mxu0 %v47_v32  ;;  %v27_v50 = vld [vmem:[%s549_s1 + $0x18] sm:$0xff]  ;;  %v26_v54 = vld [vmem:[%s549_s1 + $0x10] sm:$0xff]  ;;  %v25_v58 = vld [vmem:[%s549_s1 + $0x8] sm:$0xff] }
  0x14   :  { %300 = vmatprep.subr.mxu1 %v79_v33  ;;  %266 = vmatpush3.msra.mxu0 %v31_v34  ;;  %v59_v51 = vld [vmem:[%s549_s1 + $0x118] sm:$0xff]  ;;  %v58_v55 = vld [vmem:[%s549_s1 + $0x110] sm:$0xff]  ;;  %v57_v59 = vld [vmem:[%s549_s1 + $0x108] sm:$0xff] }
  0x15   :  { %301 = vmatpush3.msra.mxu1 %v63_v35  ;;  %267 = vmatprep.subr.mxu0 %v46_v36  ;;  %v40_v60 = vld [vmem:[%s549_s1 + $0x80] sm:$0xff]  ;;  %v21_v63 = vld [vmem:[%s550_s0 + $0x8] sm:$0xff]  ;;  %v23_v1 = vld [vmem:[%s550_s0 + $0x18] sm:$0xff] }
  0x16   :  { %302 = vmatprep.subr.mxu1 %v78_v37  ;;  %268 = vmatpush3.msra.mxu0 %v30_v38  ;;  %v72_v61 = vld [vmem:[%s549_s1 + $0x180] sm:$0xff]  ;;  %v22_v3 = vld [vmem:[%s550_s0 + $0x10] sm:$0xff] }
  0x17   :  { %303 = vmatpush3.msra.mxu1 %v62_v39  ;;  %269 = vmatprep.subr.mxu0 %v45_v40  ;;  %v24_v62 = vld [vmem:[%s549_s1] sm:$0xff] }
  0x18   :  { %304 = vmatprep.subr.mxu1 %v77_v41  ;;  %270 = vmatpush3.msra.mxu0 %v29_v42  ;;  %v56_v0 = vld [vmem:[%s549_s1 + $0x100] sm:$0xff] }
  0x19   :  { %305 = vmatpush3.msra.mxu1 %v61_v43  ;;  %271 = vmatprep.subr.mxu0 %v44_v44  ;;  %v20_v2 = vld [vmem:[%s550_s0] sm:$0xff] }
  0x1a   :  { %306 = vmatprep.subr.mxu1 %v76_v45  ;;  %272 = vmatpush3.msra.mxu0 %v28_v46  ;;  %v248_v10 = vld [vmem:[%s551_s2] ss:$0 sm:$0xff] }
  0x1b   :  { %307 = vmatpush3.msra.mxu1 %v60_v47  ;;  %273 = vmatprep.subr.mxu0 %v43_v48 }
  0x1c   :  { %308 = vmatprep.subr.mxu1 %v75_v49  ;;  %274 = vmatpush3.msra.mxu0 %v27_v50 }
  0x1d   :  { %309 = vmatpush3.msra.mxu1 %v59_v51  ;;  %275 = vmatprep.subr.mxu0 %v42_v52 }
  0x1e   :  { %310 = vmatprep.subr.mxu1 %v74_v53  ;;  %276 = vmatpush3.msra.mxu0 %v26_v54 }
  0x1f   :  { %311 = vmatpush3.msra.mxu1 %v58_v55  ;;  %277 = vmatprep.subr.mxu0 %v41_v56 }
  0x20   :  { %312 = vmatprep.subr.mxu1 %v73_v57  ;;  %278 = vmatpush3.msra.mxu0 %v25_v58 }
  0x21   :  { %313 = vmatpush3.msra.mxu1 %v57_v59  ;;  %279 = vmatprep.subr.mxu0 %v40_v60 }
  0x22   :  { %314 = vmatprep.subr.mxu1 %v72_v61  ;;  %280 = vmatpush3.msra.mxu0 %v24_v62 }
  0x23   :  { %152 = vmatprep.mubr.f32.mxu0 %v21_v63  ;;  %315 = vmatpush3.msra.mxu1 %v56_v0 }
  0x24   :  { %222 = vmatprep.mubr.f32.mxu1 %v23_v1  ;;  %153 = vmatmul.mubr.f32.vlgmr.msra.gmra.mxu0 %v20_v2 }
  0x25   :  { %223 = vmatmul.mubr.f32.vlgmr.msra.gmra.mxu1 %v22_v3 }
  0xe4   :  { %v281_v4 = vpop.f32.mrf.mxu0 }
  0xe5   :  { %v316_v5 = vpop.f32.mrf.mxu1 }
  0xe6   :  { %v282_v6 = vpop.f32.mrf.mxu0 }
  0xe7   :  { %v317_v7 = vpop.f32.mrf.mxu1  ;;  %v283_v8 = vadd.f32 %v282_v6, %v281_v4 }
  0xe8   :  { %v318_v9 = vadd.f32 %v317_v7, %v316_v5 }
  0xea   :  { %v225_v11 = vadd.f32 %v318_v9, %v283_v8 }
  0xec   :  { %v241_v12 = vadd.f32 %v248_v10, %v225_v11 }
  0xee   :  { %v242_v13 = vmax.f32 %v241_v12, 0.0 }
  0xf0   :  { %243 = vst [vmem:[%s552_s3] sm:$0xff] %v242_v13 }

// kernel: conv_classifier_forward.5
= control target key start
LH: loop header
LB: loop body
LE: loop exit
PB: predicated region body
PF: predicated region fallthrough
CT: control target
= control target key end

     0   :  { %s5074_s12 = smov 0   ;;  %s6609_s0 = inlined_call_operand.vmem [shape: f32[2,18,18,4], index: 0, kind: input, shape index: {}]   ;;  %s6610_s1 = inlined_call_operand.vmem [shape: f32[9,4,8], index: 1, kind: input, shape index: {}]   ;;  %s6611_s2 = inlined_call_operand.vmem [shape: f32[1,8], index: 2, kind: input, shape index: {}]   ;;  %s6612_s3 = inlined_call_operand.vmem [shape: f32[2,256,8], index: 3, kind: output, shape index: {}]  }
   0x1 LB: > { %s3779_s13 = sadd.s32 4294967295, %s5052_s12   ;;  %p3783_p0 = scmp.ge.s32.totalorder %s5052_s12, 1  ;;  %s5052_s12 = sphi %s5074_s12, %s13_s12  }
   0x2   : > { %p137_p1 = scmp.lt.s32.totalorder %s5052_s12, 3 }
   0x4   : > { %p138_p2 = pnand %p3783_p0, %p137_p1 }
   0x6   : > { %141 = sbr.rel (%p138_p2) target bundleno = 508 (0x1fc), region = 32 }
   0xb   : > { %v3787_v0 = vld [vmem:[%s6610_s1 + $0x4] sm:$0xf]  ;;  %vm335_vm0 = vcmask 1043456   ;;  %p161_p3 = scmp.lt.s32.totalorder %s3779_s13, 1  ;;  %v203_v1 = vld [vmem:[%s6610_s1] sm:$0xf] }
   0xc   : > { %5035 = vmatprep.subr.msk.mxu1 %vm335_vm0, %v3787_v0  ;;  %4585 = vmatprep.subr.msk.mxu0 %vm335_vm0, %v3787_v0  ;;  %v3854_v2 = vld [vmem:[%s6610_s1 + $0x8] sm:$0xf]  ;;  %vm238_vm1 = vcmask 31744   ;;  %v5128_v9 = vld [vmem:[%s6610_s1 + $0xc] sm:$0xf]  ;;  %vm3691_vm2 = vcmask 64512  }
   0xd   : > { %5036 = vmatpush3.msk.msra.mxu1 %vm335_vm0, %v3787_v0  ;;  %4586 = vmatpush3.msk.msra.mxu0 %vm335_vm0, %v3787_v0  ;;  %s6842_s13 = smov (!%p161_p3, %s3779_s13), 1  ;;  %v5133_v10 = vld [vmem:[%s6610_s1 + $0x10] sm:$0xf]  ;;  %v5292_v43 = vld [vmem:[%s6610_s1 + $0x14] sm:$0xf] }
   0xe   : > { %4635 = vmatprep.subr.msk.mxu1 %vm335_vm0, %v203_v1  ;;  %4685 = vmatprep.subr.msk.mxu0 %vm335_vm0, %v3854_v2  ;;  %s5037_s20 = smul.u32 432, %s6842_s13  ;;  %v5297_v44 = vld [vmem:[%s6610_s1 + $0x18] sm:$0xf]  ;;  %s4287_s11 = sshll.u32 %s6842_s13, 8 }
   0xf   : > { %s6432_s15 = scalar_lea.vmem %s6612_s3, %s4287_s11 }
  0x10   : > { %s5103_s23 = scalar_lea.vmem %s6609_s0, %s5037_s20 }
  0x11   : > { %v204_v3 = vld [vmem:[%s5103_s23 + $0x1] sm:$0xff]  ;;  %v205_v5 = vld [vmem:[%s5103_s23 + $0x9] sm:$0xff]  ;;  %v5117_v7 = vld [vmem:[%s5103_s23 + $0x19] sm:$0xff] }
  0x12   : > { %v5107_v4 = vld [vmem:[%s5103_s23 + $0xc1] sm:$0xff]  ;;  %4587 = vmatprep.mubr.msk.f32.mxu0 %vm238_vm1, %v204_v3  ;;  %v5114_v6 = vld [vmem:[%s5103_s23 + $0xc9] sm:$0xff]  ;;  %v5120_v8 = vld [vmem:[%s5103_s23 + $0xd9] sm:$0xff] }
  0x13   : > { %4611 = vmatprep.mubr.msk.f32.mxu1 %vm238_vm1, %v5107_v4  ;;  %4588 = vmatmul.mubr.msk.f32.vlgmr.msra.gmra.mxu0 %vm238_vm1, %v205_v5  ;;  %v5138_v11 = vld [vmem:[%s5103_s23 + $0x21] sm:$0xff]  ;;  %v5148_v13 = vld [vmem:[%s5103_s23 + $0x31] sm:$0xff]  ;;  %v5166_v15 = vld [vmem:[%s5103_s23 + $0x39] sm:$0xff] }
  0x14   : > { %4612 = vmatmul.mubr.msk.f32.vlgmr.msra.gmra.mxu1 %vm238_vm1, %v5114_v6  ;;  %4686 = vmatpush3.msk.msra.mxu0 %vm335_vm0, %v3854_v2  ;;  %v5141_v12 = vld [vmem:[%s5103_s23 + $0xe1] sm:$0xff]  ;;  %v5151_v14 = vld [vmem:[%s5103_s23 + $0xf1] sm:$0xff]  ;;  %v5169_v16 = vld [vmem:[%s5103_s23 + $0xf9] sm:$0xff] }
  0x15   : > { %4636 = vmatpush3.msk.msra.mxu1 %vm335_vm0, %v203_v1  ;;  %4590 = vmatprep.mubr.msk.f32.mxu0 %vm238_vm1, %v5117_v7  ;;  %v5172_v17 = vld [vmem:[%s5103_s23 + $0x49] sm:$0xff]  ;;  %v5186_v19 = vld [vmem:[%s5103_s23 + $0x51] sm:$0xff]  ;;  %v5192_v21 = vld [vmem:[%s5103_s23 + $0x61] sm:$0xff] }
  0x16   : > { %4614 = vmatprep.mubr.msk.f32.mxu1 %vm238_vm1, %v5120_v8  ;;  %4735 = vmatprep.subr.msk.mxu1 %vm335_vm0, %v5128_v9  ;;  %v5175_v18 = vld [vmem:[%s5103_s23 + $0x109] sm:$0xff]  ;;  %v5189_v20 = vld [vmem:[%s5103_s23 + $0x111] sm:$0xff]  ;;  %v5195_v22 = vld [vmem:[%s5103_s23 + $0x121] sm:$0xff] }
  0x17   : > { %4785 = vmatprep.subr.msk.mxu0 %vm335_vm0, %v5133_v10  ;;  %4591 = vmatmul.mubr.msk.f32.gmra.mxu0 %vm238_vm1, %v5138_v11  ;;  %v5206_v23 = vld [vmem:[%s5103_s23 + $0x69] sm:$0xff]  ;;  %v5212_v25 = vld [vmem:[%s5103_s23 + $0x79] sm:$0xff]  ;;  %v5226_v27 = vld [vmem:[%s5103_s23 + $0x81] sm:$0xff] }
  0x18   : > { %4615 = vmatmul.mubr.msk.f32.gmra.mxu1 %vm238_vm1, %v5141_v12  ;;  %4593 = vmatprep.mubr.msk.f32.mxu0 %vm238_vm1, %v5148_v13  ;;  %v5209_v24 = vld [vmem:[%s5103_s23 + $0x129] sm:$0xff]  ;;  %v5215_v26 = vld [vmem:[%s5103_s23 + $0x139] sm:$0xff]  ;;  %v5229_v28 = vld [vmem:[%s5103_s23 + $0x141] sm:$0xff] }
  0x19   : > { %4617 = vmatprep.mubr.msk.f32.mxu1 %vm238_vm1, %v5151_v14  ;;  %v5232_v29 = vld [vmem:[%s5103_s23 + $0x91] sm:$0xff]  ;;  %v5246_v31 = vld [vmem:[%s5103_s23 + $0x99] sm:$0xff]  ;;  %v5252_v33 = vld [vmem:[%s5103_s23 + $0xa9] sm:$0xff] }
  0x1a   : > { %v5235_v30 = vld [vmem:[%s5103_s23 + $0x151] sm:$0xff]  ;;  %v5249_v32 = vld [vmem:[%s5103_s23 + $0x159] sm:$0xff]  ;;  %v5255_v34 = vld [vmem:[%s5103_s23 + $0x169] sm:$0xff] }
  0x1b   : > { %4594 = vmatmul.mubr.msk.f32.gmra.mxu0 %vm238_vm1, %v5166_v15  ;;  %v5266_v35 = vld [vmem:[%s5103_s23 + $0xb1] sm:$0xff]  ;;  %v171_v37 = vld [vmem:[%s5103_s23] sm:$0xff]  ;;  %v172_v39 = vld [vmem:[%s5103_s23 + $0x8] sm:$0xff] }
  0x1c   : > { %4618 = vmatmul.mubr.msk.f32.gmra.mxu1 %vm238_vm1, %v5169_v16  ;;  %4596 = vmatprep.mubr.msk.f32.mxu0 %vm238_vm1, %v5172_v17  ;;  %v5269_v36 = vld [vmem:[%s5103_s23 + $0x171] sm:$0xff]  ;;  %v888_v38 = vld [vmem:[%s5103_s23 + $0x2] sm:$0xff]  ;;  %v5285_v42 = vld [vmem:[%s5103_s23 + $0x1a] sm:$0xff] }
  0x1d   : > { %4620 = vmatprep.mubr.msk.f32.mxu1 %vm238_vm1, %v5175_v18  ;;  %6673 = vst [vmem:[#allocation2_spill] sm:$0xff] %v5269_v36  ;;  %v889_v40 = vld [vmem:[%s5103_s23 + $0xa] sm:$0xff]  ;;  %v5282_v41 = vld [vmem:[%s5103_s23 + $0x18] sm:$0xff]  ;;  %6674 = vst [vmem:[#allocation3_spill] sm:$0xff] %v5285_v42 }
  0x1e   : > { %v5304_v45 = vld [vmem:[%s5103_s23 + $0x20] sm:$0xff]  ;;  %v5314_v47 = vld [vmem:[%s5103_s23 + $0x30] sm:$0xff]  ;;  %v5332_v49 = vld [vmem:[%s5103_s23 + $0x38] sm:$0xff] }
  0x1f   : > { %4597 = vmatmul.mubr.msk.f32.gmra.mxu0 %vm238_vm1, %v5186_v19  ;;  %v5307_v46 = vld [vmem:[%s5103_s23 + $0x22] sm:$0xff]  ;;  %v5317_v48 = vld [vmem:[%s5103_s23 + $0x32] sm:$0xff]  ;;  %v5335_v50 = vld [vmem:[%s5103_s23 + $0x3a] sm:$0xff] }
  0x20   : > { %4621 = vmatmul.mubr.msk.f32.gmra.mxu1 %vm238_vm1, %v5189_v20  ;;  %4599 = vmatprep.mubr.msk.f32.mxu0 %vm238_vm1, %v5192_v21  ;;  %6675 = vst [vmem:[#allocation4_spill] sm:$0xff] %v5307_v46  ;;  %6676 = vst [vmem:[#allocation5_spill] sm:$0xff] %v5317_v48  ;;  %v5338_v51 = vld [vmem:[%s5103_s23 + $0x48] sm:$0xff]  ;;  %v5352_v53 = vld [vmem:[%s5103_s23 + $0x50] sm:$0xff] }
  0x21   : > { %4623 = vmatprep.mubr.msk.f32.mxu1 %vm238_vm1, %v5195_v22  ;;  %6677 = vst [vmem:[#allocation6_spill] sm:$0xff] %v5335_v50  ;;  %v5341_v52 = vld [vmem:[%s5103_s23 + $0x4a] sm:$0xff]  ;;  %v5355_v54 = vld [vmem:[%s5103_s23 + $0x52] sm:$0xff]  ;;  %v5358_v55 = vld [vmem:[%s5103_s23 + $0x60] sm:$0xff] }
  0x22   : > { %6678 = vst [vmem:[#allocation7_spill] sm:$0xff] %v5341_v52  ;;  %6679 = vst [vmem:[#allocation8_spill] sm:$0xff] %v5355_v54  ;;  %v5361_v56 = vld [vmem:[%s5103_s23 + $0x62] sm:$0xff]  ;;  %v5375_v58 = vld [vmem:[%s5103_s23 + $0x6a] sm:$0xff] }
  0x23   : > { %4600 = vmatmul.mubr.msk.f32.gmra.mxu0 %vm238_vm1, %v5206_v23  ;;  %6680 = vst [vmem:[#allocation9_spill] sm:$0xff] %v5361_v56  ;;  %v5372_v57 = vld [vmem:[%s5103_s23 + $0x68] sm:$0xff]  ;;  %6681 = vst [vmem:[#allocation10_spill] sm:$0xff] %v5375_v58  ;;  %v5378_v59 = vld [vmem:[%s5103_s23 + $0x78] sm:$0xff] }
  0x24   : > { %4624 = vmatmul.mubr.msk.f32.gmra.mxu1 %vm238_vm1, %v5209_v24  ;;  %4602 = vmatprep.mubr.msk.f32.mxu0 %vm238_vm1, %v5212_v25  ;;  %v5381_v60 = vld [vmem:[%s5103_s23 + $0x7a] sm:$0xff]  ;;  %v5395_v62 = vld [vmem:[%s5103_s23 + $0x82] sm:$0xff]  ;;  %v5398_v63 = vld [vmem:[%s5103_s23 + $0x90] sm:$0xff] }
  0x25   : > { %4626 = vmatprep.mubr.msk.f32.mxu1 %vm238_vm1, %v5215_v26  ;;  %6682 = vst [vmem:[#allocation11_spill] sm:$0xff] %v5381_v60  ;;  %v5392_v61 = vld [vmem:[%s5103_s23 + $0x80] sm:$0xff]  ;;  %6683 = vst [vmem:[#allocation12_spill] sm:$0xff] %v5395_v62  ;;  %v5401_v0 = vld [vmem:[%s5103_s23 + $0x92] sm:$0xff] }
  0x26   : > { %6684 = vst [vmem:[#allocation13_spill] sm:$0xff] %v5401_v0  ;;  %v5412_v1 = vld [vmem:[%s5103_s23 + $0x98] sm:$0xff]  ;;  %v5418_v3 = vld [vmem:[%s5103_s23 + $0xa8] sm:$0xff] }
  0x27   : > { %4603 = vmatmul.mubr.msk.f32.gmra.mxu0 %vm238_vm1, %v5226_v27  ;;  %v5415_v2 = vld [vmem:[%s5103_s23 + $0x9a] sm:$0xff]  ;;  %v5421_v5 = vld [vmem:[%s5103_s23 + $0xaa] sm:$0xff] }
  0x28   : > { %4627 = vmatmul.mubr.msk.f32.gmra.mxu1 %vm238_vm1, %v5229_v28  ;;  %4605 = vmatprep.mubr.msk.f32.mxu0 %vm238_vm1, %v5232_v29  ;;  %6685 = vst [vmem:[#allocation14_spill] sm:$0xff] %v5415_v2  ;;  %6686 = vst [vmem:[#allocation15_spill] sm:$0xff] %v5421_v5 }
  0x29   : > { %4629 = vmatprep.mubr.msk.f32.mxu1 %vm238_vm1, %v5235_v30 }
  0x2b   : > { %4606 = vmatmul.mubr.msk.f32.gmra.mxu0 %vm238_vm1, %v5246_v31 }
  0x2c   : > { %4630 = vmatmul.mubr.msk.f32.gmra.mxu1 %vm238_vm1, %v5249_v32  ;;  %4608 = vmatprep.mubr.msk.f32.mxu0 %vm238_vm1, %v5252_v33 }
  0x2d   : > { %4632 = vmatprep.mubr.msk.f32.mxu1 %vm238_vm1, %v5255_v34 }
  0x2f   : > { %4609 = vmatmul.mubr.msk.f32.gmra.mxu0 %vm238_vm1, %v5266_v35 }
  0x30   : > { %4633 = vmatmul.mubr.msk.f32.gmra.mxu1 %vm238_vm1, %v5269_v36  ;;  %4687 = vmatprep.mubr.msk.f32.mxu0 %vm238_vm1, %v888_v38  ;;  %v5441_v38 = vld [vmem:[%s5103_s23 + $0xc2] sm:$0xff]  ;;  %v5581_v36 = vld [vmem:[%s5103_s23 + $0x16a] sm:$0xff] }
  0x31   : > { %4637 = vmatprep.mubr.msk.f32.mxu1 %vm238_vm1, %v171_v37  ;;  %v5438_v37 = vld [vmem:[%s5103_s23 + $0xc0] sm:$0xff]  ;;  %6688 = vst [vmem:[#allocation17_spill] sm:$0xff] %v5441_v38  ;;  %6702 = vst [vmem:[#allocation31_spill] sm:$0xff] %v5581_v36 }
  0x33   : > { %4688 = vmatmul.mubr.msk.f32.vlgmr.msra.gmra.mxu0 %vm238_vm1, %v889_v40  ;;  %v5455_v40 = vld [vmem:[%s5103_s23 + $0xca] sm:$0xff] }
  0x34   : > { %4638 = vmatmul.mubr.msk.f32.vlgmr.msra.gmra.mxu1 %vm238_vm1, %v172_v39  ;;  %4786 = vmatpush3.msk.msra.mxu0 %vm335_vm0, %v5133_v10  ;;  %v5435_v10 = vld [vmem:[%s5103_s23 + $0xb2] sm:$0xff]  ;;  %v5452_v39 = vld [vmem:[%s5103_s23 + $0xc8] sm:$0xff]  ;;  %6689 = vst [vmem:[#allocation18_spill] sm:$0xff] %v5455_v40 }
  0x35   : > { %4736 = vmatpush3.msk.msra.mxu1 %vm335_vm0, %v5128_v9  ;;  %4640 = vmatprep.mubr.msk.f32.mxu1 %vm238_vm1, %v5282_v41  ;;  %v5432_v9 = vld [vmem:[%s5103_s23 + $0xb0] sm:$0xff]  ;;  %6687 = vst [vmem:[#allocation16_spill] sm:$0xff] %v5435_v10 }
  0x36   : > { %4690 = vmatprep.mubr.msk.f32.mxu0 %vm238_vm1, %v5285_v42  ;;  %4835 = vmatprep.subr.msk.mxu1 %vm335_vm0, %v5292_v43  ;;  %v5578_v42 = vld [vmem:[%s5103_s23 + $0x168] sm:$0xff] }
  0x37   : > { %4885 = vmatprep.subr.msk.mxu0 %vm335_vm0, %v5297_v44  ;;  %4691 = vmatmul.mubr.msk.f32.gmra.mxu0 %vm238_vm1, %v5307_v46  ;;  %v5561_v46 = vld [vmem:[%s5103_s23 + $0x152] sm:$0xff] }
  0x38   : > { %4641 = vmatmul.mubr.msk.f32.gmra.mxu1 %vm238_vm1, %v5304_v45  ;;  %4693 = vmatprep.mubr.msk.f32.mxu0 %vm238_vm1, %v5317_v48  ;;  %v5558_v48 = vld [vmem:[%s5103_s23 + $0x150] sm:$0xff]  ;;  %6700 = vst [vmem:[#allocation29_spill] sm:$0xff] %v5561_v46 }
  0x39   : > { %4643 = vmatprep.mubr.msk.f32.mxu1 %vm238_vm1, %v5314_v47 }
  0x3b   : > { %4694 = vmatmul.mubr.msk.f32.gmra.mxu0 %vm238_vm1, %v5335_v50  ;;  %v5541_v50 = vld [vmem:[%s5103_s23 + $0x13a] sm:$0xff] }
  0x3c   : > { %4644 = vmatmul.mubr.msk.f32.gmra.mxu1 %vm238_vm1, %v5332_v49  ;;  %4696 = vmatprep.mubr.msk.f32.mxu0 %vm238_vm1, %v5341_v52  ;;  %v5538_v52 = vld [vmem:[%s5103_s23 + $0x138] sm:$0xff]  ;;  %6698 = vst [vmem:[#allocation27_spill] sm:$0xff] %v5541_v50 }
  0x3d   : > { %4646 = vmatprep.mubr.msk.f32.mxu1 %vm238_vm1, %v5338_v51 }
  0x3f   : > { %4697 = vmatmul.mubr.msk.f32.gmra.mxu0 %vm238_vm1, %v5355_v54  ;;  %v5521_v54 = vld [vmem:[%s5103_s23 + $0x122] sm:$0xff] }
  0x40   : > { %4647 = vmatmul.mubr.msk.f32.gmra.mxu1 %vm238_vm1, %v5352_v53  ;;  %4699 = vmatprep.mubr.msk.f32.mxu0 %vm238_vm1, %v5361_v56  ;;  %v5518_v56 = vld [vmem:[%s5103_s23 + $0x120] sm:$0xff]  ;;  %6696 = vst [vmem:[#allocation25_spill] sm:$0xff] %v5521_v54 }
  0x41   : > { %4649 = vmatprep.mubr.msk.f32.mxu1 %vm238_vm1, %v5358_v55 }
  0x43   : > { %4700 = vmatmul.mubr.msk.f32.gmra.mxu0 %vm238_vm1, %v5375_v58  ;;  %v5501_v58 = vld [vmem:[%s5103_s23 + $0x10a] sm:$0xff] }
  0x44   : > { %4650 = vmatmul.mubr.msk.f32.gmra.mxu1 %vm238_vm1, %v5372_v57  ;;  %4702 = vmatprep.mubr.msk.f32.mxu0 %vm238_vm1, %v5381_v60  ;;  %v5498_v60 = vld [vmem:[%s5103_s23 + $0x108] sm:$0xff]  ;;  %6694 = vst [vmem:[#allocation23_spill] sm:$0xff] %v5501_v58 }
  0x45   : > { %4652 = vmatprep.mubr.msk.f32.mxu1 %vm238_vm1, %v5378_v59 }
  0x47   : > { %4703 = vmatmul.mubr.msk.f32.gmra.mxu0 %vm238_vm1, %v5395_v62  ;;  %v5481_v62 = vld [vmem:[%s5103_s23 + $0xf2] sm:$0xff] }
  0x48   : > { %4653 = vmatmul.mubr.msk.f32.gmra.mxu1 %vm238_vm1, %v5392_v61  ;;  %4705 = vmatprep.mubr.msk.f32.mxu0 %vm238_vm1, %v5401_v0  ;;  %v5478_v0 = vld [vmem:[%s5103_s23 + $0xf0] sm:$0xff]  ;;  %6692 = vst [vmem:[#allocation21_spill] sm:$0xff] %v5481_v62 }
  0x49   : > { %4655 = vmatprep.mubr.msk.f32.mxu1 %vm238_vm1, %v5398_v63 }
  0x4b   : > { %4706 = vmatmul.mubr.msk.f32.gmra.mxu0 %vm238_vm1, %v5415_v2  ;;  %v5461_v2 = vld [vmem:[%s5103_s23 + $0xda] sm:$0xff] }
  0x4c   : > { %4656 = vmatmul.mubr.msk.f32.gmra.mxu1 %vm238_vm1, %v5412_v1  ;;  %4708 = vmatprep.mubr.msk.f32.mxu0 %vm238_vm1, %v5421_v5  ;;  %v5458_v5 = vld [vmem:[%s5103_s23 + $0xd8] sm:$0xff]  ;;  %6690 = vst [vmem:[#allocation19_spill] sm:$0xff] %v5461_v2 }
  0x4d   : > { %4658 = vmatprep.mubr.msk.f32.mxu1 %vm238_vm1, %v5418_v3 }
  0x4f   : > { %4709 = vmatmul.mubr.msk.f32.gmra.mxu0 %vm238_vm1, %v5435_v10  ;;  %v5475_v10 = vld [vmem:[%s5103_s23 + $0xe2] sm:$0xff] }
  0x50   : > { %4659 = vmatmul.mubr.msk.f32.gmra.mxu1 %vm238_vm1, %v5432_v9  ;;  %4711 = vmatprep.mubr.msk.f32.mxu0 %vm238_vm1, %v5441_v38  ;;  %v5472_v38 = vld [vmem:[%s5103_s23 + $0xe0] sm:$0xff]  ;;  %6691 = vst [vmem:[#allocation20_spill] sm:$0xff] %v5475_v10 }
  0x51   : > { %4661 = vmatprep.mubr.msk.f32.mxu1 %vm238_vm1, %v5438_v37 }
  0x53   : > { %4712 = vmatmul.mubr.msk.f32.gmra.mxu0 %vm238_vm1, %v5455_v40  ;;  %v5495_v40 = vld [vmem:[%s5103_s23 + $0xfa] sm:$0xff] }
  0x54   : > { %4662 = vmatmul.mubr.msk.f32.gmra.mxu1 %vm238_vm1, %v5452_v39  ;;  %4714 = vmatprep.mubr.msk.f32.mxu0 %vm238_vm1, %v5461_v2  ;;  %v5492_v2 = vld [vmem:[%s5103_s23 + $0xf8] sm:$0xff]  ;;  %6693 = vst [vmem:[#allocation22_spill] sm:$0xff] %v5495_v40 }
  0x55   : > { %4664 = vmatprep.mubr.msk.f32.mxu1 %vm238_vm1, %v5458_v5 }
  0x57   : > { %4715 = vmatmul.mubr.msk.f32.gmra.mxu0 %vm238_vm1, %v5475_v10  ;;  %v5515_v10 = vld [vmem:[%s5103_s23 + $0x112] sm:$0xff] }
  0x58   : > { %4665 = vmatmul.mubr.msk.f32.gmra.mxu1 %vm238_vm1, %v5472_v38  ;;  %4717 = vmatprep.mubr.msk.f32.mxu0 %vm238_vm1, %v5481_v62  ;;  %v5512_v62 = vld [vmem:[%s5103_s23 + $0x110] sm:$0xff]  ;;  %6695 = vst [vmem:[#allocation24_spill] sm:$0xff] %v5515_v10 }
  0x59   : > { %4667 = vmatprep.mubr.msk.f32.mxu1 %vm238_vm1, %v5478_v0 }
  0x5b   : > { %4718 = vmatmul.mubr.msk.f32.gmra.mxu0 %vm238_vm1, %v5495_v40  ;;  %v5535_v40 = vld [vmem:[%s5103_s23 + $0x12a] sm:$0xff] }
  0x5c   : > { %4668 = vmatmul.mubr.msk.f32.gmra.mxu1 %vm238_vm1, %v5492_v2  ;;  %4720 = vmatprep.mubr.msk.f32.mxu0 %vm238_vm1, %v5501_v58  ;;  %v5532_v58 = vld [vmem:[%s5103_s23 + $0x128] sm:$0xff]  ;;  %6697 = vst [vmem:[#allocation26_spill] sm:$0xff] %v5535_v40 }
  0x5d   : > { %4670 = vmatprep.mubr.msk.f32.mxu1 %vm238_vm1, %v5498_v60 }
  0x5f   : > { %4721 = vmatmul.mubr.msk.f32.gmra.mxu0 %vm238_vm1, %v5515_v10  ;;  %v5555_v10 = vld [vmem:[%s5103_s23 + $0x142] sm:$0xff] }
  0x60   : > { %4671 = vmatmul.mubr.msk.f32.gmra.mxu1 %vm238_vm1, %v5512_v62  ;;  %4723 = vmatprep.mubr.msk.f32.mxu0 %vm238_vm1, %v5521_v54  ;;  %v5552_v54 = vld [vmem:[%s5103_s23 + $0x140] sm:$0xff]  ;;  %6699 = vst [vmem:[#allocation28_spill] sm:$0xff] %v5555_v10 }
  0x61   : > { %4673 = vmatprep.mubr.msk.f32.mxu1 %vm238_vm1, %v5518_v56 }
  0x63   : > { %4724 = vmatmul.mubr.msk.f32.gmra.mxu0 %vm238_vm1, %v5535_v40  ;;  %v5575_v40 = vld [vmem:[%s5103_s23 + $0x15a] sm:$0xff] }
  0x64   : > { %4674 = vmatmul.mubr.msk.f32.gmra.mxu1 %vm238_vm1, %v5532_v58  ;;  %4726 = vmatprep.mubr.msk.f32.mxu0 %vm238_vm1, %v5541_v50  ;;  %v5572_v50 = vld [vmem:[%s5103_s23 + $0x158] sm:$0xff]  ;;  %6701 = vst [vmem:[#allocation30_spill] sm:$0xff] %v5575_v40 }
  0x65   : > { %4676 = vmatprep.mubr.msk.f32.mxu1 %vm238_vm1, %v5538_v52 }
  0x67   : > { %4727 = vmatmul.mubr.msk.f32.gmra.mxu0 %vm238_vm1, %v5555_v10  ;;  %v5595_v10 = vld [vmem:[%s5103_s23 + $0x172] sm:$0xff] }
  0x68   : > { %4677 = vmatmul.mubr.msk.f32.gmra.mxu1 %vm238_vm1, %v5552_v54  ;;  %4729 = vmatprep.mubr.msk.f32.mxu0 %vm238_vm1, %v5561_v46  ;;  %v5592_v46 = vld [vmem:[%s5103_s23 + $0x170] sm:$0xff]  ;;  %6703 = vst [vmem:[#allocation32_spill] sm:$0xff] %v5595_v10 }
  0x69   : > { %4679 = vmatprep.mubr.msk.f32.mxu1 %vm238_vm1, %v5558_v48 }
  0x6b   : > { %4730 = vmatmul.mubr.msk.f32.gmra.mxu0 %vm238_vm1, %v5575_v40 }
  0x6c   : > { %4680 = vmatmul.mubr.msk.f32.gmra.mxu1 %vm238_vm1, %v5572_v50  ;;  %4732 = vmatprep.mubr.msk.f32.mxu0 %vm238_vm1, %v5581_v36  ;;  %v5612_v36 = vld [vmem:[%s6610_s1 + $0x1c] sm:$0xf] }
  0x6d   : > { %4682 = vmatprep.mubr.msk.f32.mxu1 %vm238_vm1, %v5578_v42 }
  0x6f   : > { %4733 = vmatmul.mubr.msk.f32.gmra.mxu0 %vm238_vm1, %v5595_v10  ;;  %v5617_v10 = vld [vmem:[%s6610_s1 + $0x20] sm:$0xf] }
  0x70   : > { %4683 = vmatmul.mubr.msk.f32.gmra.mxu1 %vm238_vm1, %v5592_v46  ;;  %4787 = vmatprep.mubr.msk.f32.mxu0 %vm238_vm1, %v5117_v7  ;;  %v6705_v7 = vld [vmem:[#allocation2_spill] sm:$0xff] }
  0x71   : > { %4737 = vmatprep.mubr.msk.f32.mxu1 %vm238_vm1, %v5282_v41 }
  0x73   : > { %4788 = vmatmul.mubr.msk.f32.vlgmr.msra.gmra.mxu0 %vm238_vm1, %v5138_v11  ;;  %v5753_v11 = vld [vmem:[%s5103_s23 + $0x189] sm:$0xff] }
  0x74   : > { %4738 = vmatmul.mubr.msk.f32.vlgmr.msra.gmra.mxu1 %vm238_vm1, %v5304_v45  ;;  %4886 = vmatpush3.msk.msra.mxu0 %vm335_vm0, %v5297_v44  ;;  %6706 = vst [vmem:[#allocation2_spill] sm:$0xff] %v5753_v11  ;;  %v6724_v44 = vld [vmem:[#allocation20_spill] sm:$0xff]  ;;  %v6725_v45 = vld [vmem:[#allocation21_spill] sm:$0xff] }
  0x75   : > { %4836 = vmatpush3.msk.msra.mxu1 %vm335_vm0, %v5292_v43  ;;  %4740 = vmatprep.mubr.msk.f32.mxu1 %vm238_vm1, %v5314_v47 }
  0x76   : > { %4790 = vmatprep.mubr.msk.f32.mxu0 %vm238_vm1, %v5148_v13  ;;  %4935 = vmatprep.subr.msk.mxu1 %vm335_vm0, %v5612_v36 }
  0x77   : > { %4985 = vmatprep.subr.msk.mxu0 %vm335_vm0, %v5617_v10  ;;  %4791 = vmatmul.mubr.msk.f32.gmra.mxu0 %vm238_vm1, %v5166_v15 }
  0x78   : > { %4741 = vmatmul.mubr.msk.f32.gmra.mxu1 %vm238_vm1, %v5332_v49  ;;  %4793 = vmatprep.mubr.msk.f32.mxu0 %vm238_vm1, %v5172_v17 }
  0x79   : > { %4743 = vmatprep.mubr.msk.f32.mxu1 %vm238_vm1, %v5338_v51 }
  0x7b   : > { %4794 = vmatmul.mubr.msk.f32.gmra.mxu0 %vm238_vm1, %v5186_v19 }
  0x7c   : > { %4744 = vmatmul.mubr.msk.f32.gmra.mxu1 %vm238_vm1, %v5352_v53  ;;  %4796 = vmatprep.mubr.msk.f32.mxu0 %vm238_vm1, %v5192_v21 }
  0x7d   : > { %4746 = vmatprep.mubr.msk.f32.mxu1 %vm238_vm1, %v5358_v55 }
  0x7f   : > { %4797 = vmatmul.mubr.msk.f32.gmra.mxu0 %vm238_vm1, %v5206_v23 }
  0x80   : > { %4747 = vmatmul.mubr.msk.f32.gmra.mxu1 %vm238_vm1, %v5372_v57  ;;  %4799 = vmatprep.mubr.msk.f32.mxu0 %vm238_vm1, %v5212_v25 }
  0x81   : > { %4749 = vmatprep.mubr.msk.f32.mxu1 %vm238_vm1, %v5378_v59 }
  0x83   : > { %4800 = vmatmul.mubr.msk.f32.gmra.mxu0 %vm238_vm1, %v5226_v27 }
  0x84   : > { %4750 = vmatmul.mubr.msk.f32.gmra.mxu1 %vm238_vm1, %v5392_v61  ;;  %4802 = vmatprep.mubr.msk.f32.mxu0 %vm238_vm1, %v5232_v29  ;;  %v6716_v29 = vld [vmem:[#allocation12_spill] sm:$0xff] }
  0x85   : > { %4752 = vmatprep.mubr.msk.f32.mxu1 %vm238_vm1, %v5398_v63 }
  0x87   : > { %4803 = vmatmul.mubr.msk.f32.gmra.mxu0 %vm238_vm1, %v5246_v31  ;;  %v6718_v31 = vld [vmem:[#allocation14_spill] sm:$0xff] }
  0x88   : > { %4753 = vmatmul.mubr.msk.f32.gmra.mxu1 %vm238_vm1, %v5412_v1  ;;  %4805 = vmatprep.mubr.msk.f32.mxu0 %vm238_vm1, %v5252_v33  ;;  %v6720_v33 = vld [vmem:[#allocation16_spill] sm:$0xff] }
  0x89   : > { %4755 = vmatprep.mubr.msk.f32.mxu1 %vm238_vm1, %v5418_v3 }
  0x8b   : > { %4806 = vmatmul.mubr.msk.f32.gmra.mxu0 %vm238_vm1, %v5266_v35  ;;  %v6722_v35 = vld [vmem:[#allocation18_spill] sm:$0xff] }
  0x8c   : > { %4756 = vmatmul.mubr.msk.f32.gmra.mxu1 %vm238_vm1, %v5432_v9  ;;  %4808 = vmatprep.mubr.msk.f32.mxu0 %vm238_vm1, %v5107_v4  ;;  %v5736_v4 = vld [vmem:[%s5103_s23 + $0x180] sm:$0xff] }
  0x8d   : > { %4758 = vmatprep.mubr.msk.f32.mxu1 %vm238_vm1, %v5438_v37 }
  0x8f   : > { %4809 = vmatmul.mubr.msk.f32.gmra.mxu0 %vm238_vm1, %v5114_v6  ;;  %v5739_v6 = vld [vmem:[%s5103_s23 + $0x181] sm:$0xff] }
  0x90   : > { %4759 = vmatmul.mubr.msk.f32.gmra.mxu1 %vm238_vm1, %v5452_v39  ;;  %4811 = vmatprep.mubr.msk.f32.mxu0 %vm238_vm1, %v5120_v8  ;;  %6704 = vst [vmem:[#allocation33_spill] sm:$0xff] %v5739_v6  ;;  %v5750_v8 = vld [vmem:[%s5103_s23 + $0x188] sm:$0xff] }
  0x91   : > { %4761 = vmatprep.mubr.msk.f32.mxu1 %vm238_vm1, %v5458_v5 }
  0x93   : > { %4812 = vmatmul.mubr.msk.f32.gmra.mxu0 %vm238_vm1, %v5141_v12  ;;  %v6707_v12 = vld [vmem:[#allocation3_spill] sm:$0xff] }
  0x94   : > { %4762 = vmatmul.mubr.msk.f32.gmra.mxu1 %vm238_vm1, %v5472_v38  ;;  %4814 = vmatprep.mubr.msk.f32.mxu0 %vm238_vm1, %v5151_v14  ;;  %v6708_v14 = vld [vmem:[#allocation4_spill] sm:$0xff] }
  0x95   : > { %4764 = vmatprep.mubr.msk.f32.mxu1 %vm238_vm1, %v5478_v0 }
  0x97   : > { %4815 = vmatmul.mubr.msk.f32.gmra.mxu0 %vm238_vm1, %v5169_v16  ;;  %v6709_v16 = vld [vmem:[#allocation5_spill] sm:$0xff] }
  0x98   : > { %4765 = vmatmul.mubr.msk.f32.gmra.mxu1 %vm238_vm1, %v5492_v2  ;;  %4817 = vmatprep.mubr.msk.f32.mxu0 %vm238_vm1, %v5175_v18  ;;  %v6710_v18 = vld [vmem:[#allocation6_spill] sm:$0xff] }
  0x99   : > { %4767 = vmatprep.mubr.msk.f32.mxu1 %vm238_vm1, %v5498_v60 }
  0x9b   : > { %4818 = vmatmul.mubr.msk.f32.gmra.mxu0 %vm238_vm1, %v5189_v20  ;;  %v6711_v20 = vld [vmem:[#allocation7_spill] sm:$0xff] }
  0x9c   : > { %4768 = vmatmul.mubr.msk.f32.gmra.mxu1 %vm238_vm1, %v5512_v62  ;;  %4820 = vmatprep.mubr.msk.f32.mxu0 %vm238_vm1, %v5195_v22  ;;  %v6712_v22 = vld [vmem:[#allocation8_spill] sm:$0xff] }
  0x9d   : > { %4770 = vmatprep.mubr.msk.f32.mxu1 %vm238_vm1, %v5518_v56 }
  0x9f   : > { %4821 = vmatmul.mubr.msk.f32.gmra.mxu0 %vm238_vm1, %v5209_v24  ;;  %v6713_v24 = vld [vmem:[#allocation9_spill] sm:$0xff] }
  0xa0   : > { %4771 = vmatmul.mubr.msk.f32.gmra.mxu1 %vm238_vm1, %v5532_v58  ;;  %4823 = vmatprep.mubr.msk.f32.mxu0 %vm238_vm1, %v5215_v26  ;;  %v6714_v26 = vld [vmem:[#allocation10_spill] sm:$0xff] }
  0xa1   : > { %4773 = vmatprep.mubr.msk.f32.mxu1 %vm238_vm1, %v5538_v52 }
  0xa3   : > { %4824 = vmatmul.mubr.msk.f32.gmra.mxu0 %vm238_vm1, %v5229_v28  ;;  %v6715_v28 = vld [vmem:[#allocation11_spill] sm:$0xff] }
  0xa4   : > { %4774 = vmatmul.mubr.msk.f32.gmra.mxu1 %vm238_vm1, %v5552_v54  ;;  %4826 = vmatprep.mubr.msk.f32.mxu0 %vm238_vm1, %v5235_v30  ;;  %v6717_v30 = vld [vmem:[#allocation13_spill] sm:$0xff] }
  0xa5   : > { %4776 = vmatprep.mubr.msk.f32.mxu1 %vm238_vm1, %v5558_v48 }
  0xa7   : > { %4827 = vmatmul.mubr.msk.f32.gmra.mxu0 %vm238_vm1, %v5249_v32  ;;  %v6719_v32 = vld [vmem:[#allocation15_spill] sm:$0xff] }
  0xa8   : > { %4777 = vmatmul.mubr.msk.f32.gmra.mxu1 %vm238_vm1, %v5572_v50  ;;  %4829 = vmatprep.mubr.msk.f32.mxu0 %vm238_vm1, %v5255_v34  ;;  %v6721_v34 = vld [vmem:[#allocation17_spill] sm:$0xff] }
  0xa9   : > { %4779 = vmatprep.mubr.msk.f32.mxu1 %vm238_vm1, %v5578_v42 }
  0xab   : > { %4830 = vmatmul.mubr.msk.f32.gmra.mxu0 %vm238_vm1, %v6705_v7 }
  0xac   : > { %4780 = vmatmul.mubr.msk.f32.gmra.mxu1 %vm238_vm1, %v5592_v46  ;;  %4832 = vmatprep.mubr.msk.f32.mxu0 %vm238_vm1, %v5739_v6  ;;  %v4116_v6 = vld [vmem:[%s5103_s23 + $0x198] sm:$0xff] }
  0xad   : > { %4782 = vmatprep.mubr.msk.f32.mxu1 %vm238_vm1, %v5736_v4 }
  0xaf   : > { %4833 = vmatmul.mubr.msk.f32.gmra.mxu0 %vm238_vm1, %v5753_v11  ;;  %v5928_v11 = vld [vmem:[%s5103_s23 + $0x182] sm:$0xff] }
  0xb0   : > { %4783 = vmatmul.mubr.msk.f32.gmra.mxu1 %vm238_vm1, %v5750_v8  ;;  %4887 = vmatprep.mubr.msk.f32.mxu0 %vm238_vm1, %v5314_v47  ;;  %6739 = vst [vmem:[#allocation7_spill] sm:$0xff] %v5928_v11 }
  0xb1   : > { %4837 = vmatprep.mubr.msk.f32.mxu1 %vm238_vm1, %v6707_v12 }
  0xb3   : > { %4888 = vmatmul.mubr.msk.f32.vlgmr.msra.gmra.mxu0 %vm238_vm1, %v5332_v49 }
  0xb4   : > { %4838 = vmatmul.mubr.msk.f32.vlgmr.msra.gmra.mxu1 %vm238_vm1, %v6708_v14  ;;  %4986 = vmatpush3.msk.msra.mxu0 %vm335_vm0, %v5617_v10 }
  0xb5   : > { %4936 = vmatpush3.msk.msra.mxu1 %vm335_vm0, %v5612_v36  ;;  %4840 = vmatprep.mubr.msk.f32.mxu1 %vm238_vm1, %v6709_v16  ;;  %v6723_v36 = vld [vmem:[#allocation19_spill] sm:$0xff] }
  0xb6   : > { %4890 = vmatprep.mubr.msk.f32.mxu0 %vm238_vm1, %v5338_v51 }
  0xb7   : > { %4891 = vmatmul.mubr.msk.f32.gmra.mxu0 %vm238_vm1, %v5352_v53 }
  0xb8   : > { %4841 = vmatmul.mubr.msk.f32.gmra.mxu1 %vm238_vm1, %v6710_v18  ;;  %4893 = vmatprep.mubr.msk.f32.mxu0 %vm238_vm1, %v5358_v55  ;;  %v6726_v55 = vld [vmem:[#allocation22_spill] sm:$0xff] }
  0xb9   : > { %4843 = vmatprep.mubr.msk.f32.mxu1 %vm238_vm1, %v6711_v20 }
  0xbb   : > { %4894 = vmatmul.mubr.msk.f32.gmra.mxu0 %vm238_vm1, %v5372_v57  ;;  %v6727_v57 = vld [vmem:[#allocation23_spill] sm:$0xff] }
  0xbc   : > { %4844 = vmatmul.mubr.msk.f32.gmra.mxu1 %vm238_vm1, %v6712_v22  ;;  %4896 = vmatprep.mubr.msk.f32.mxu0 %vm238_vm1, %v5378_v59 }
  0xbd   : > { %4846 = vmatprep.mubr.msk.f32.mxu1 %vm238_vm1, %v6713_v24 }
  0xbf   : > { %4897 = vmatmul.mubr.msk.f32.gmra.mxu0 %vm238_vm1, %v5392_v61 }
  0xc0   : > { %4847 = vmatmul.mubr.msk.f32.gmra.mxu1 %vm238_vm1, %v6714_v26  ;;  %4899 = vmatprep.mubr.msk.f32.mxu0 %vm238_vm1, %v5398_v63 }
  0xc1   : > { %4849 = vmatprep.mubr.msk.f32.mxu1 %vm238_vm1, %v6715_v28 }
  0xc3   : > { %4900 = vmatmul.mubr.msk.f32.gmra.mxu0 %vm238_vm1, %v5412_v1 }
  0xc4   : > { %4850 = vmatmul.mubr.msk.f32.gmra.mxu1 %vm238_vm1, %v6716_v29  ;;  %4902 = vmatprep.mubr.msk.f32.mxu0 %vm238_vm1, %v5418_v3 }
  0xc5   : > { %4852 = vmatprep.mubr.msk.f32.mxu1 %vm238_vm1, %v6717_v30 }
  0xc7   : > { %4903 = vmatmul.mubr.msk.f32.gmra.mxu0 %vm238_vm1, %v5432_v9 }
  0xc8   : > { %4853 = vmatmul.mubr.msk.f32.gmra.mxu1 %vm238_vm1, %v6718_v31  ;;  %4905 = vmatprep.mubr.msk.f32.mxu0 %vm238_vm1, %v5438_v37 }
  0xc9   : > { %4855 = vmatprep.mubr.msk.f32.mxu1 %vm238_vm1, %v6719_v32 }
  0xcb   : > { %4906 = vmatmul.mubr.msk.f32.gmra.mxu0 %vm238_vm1, %v5452_v39 }
  0xcc   : > { %4856 = vmatmul.mubr.msk.f32.gmra.mxu1 %vm238_vm1, %v6720_v33  ;;  %4908 = vmatprep.mubr.msk.f32.mxu0 %vm238_vm1, %v5458_v5  ;;  %v6730_v5 = vld [vmem:[#allocation26_spill] sm:$0xff] }
  0xcd   : > { %4858 = vmatprep.mubr.msk.f32.mxu1 %vm238_vm1, %v6721_v34 }
  0xcf   : > { %4909 = vmatmul.mubr.msk.f32.gmra.mxu0 %vm238_vm1, %v5472_v38  ;;  %v6733_v38 = vld [vmem:[#allocation28_spill] sm:$0xff] }
  0xd0   : > { %4859 = vmatmul.mubr.msk.f32.gmra.mxu1 %vm238_vm1, %v6722_v35  ;;  %4911 = vmatprep.mubr.msk.f32.mxu0 %vm238_vm1, %v5478_v0  ;;  %v6728_v0 = vld [vmem:[#allocation24_spill] sm:$0xff] }
  0xd1   : > { %4861 = vmatprep.mubr.msk.f32.mxu1 %vm238_vm1, %v6723_v36 }
  0xd3   : > { %v5831_v41 = vpop.f32.mrf.mxu0  ;;  %4912 = vmatmul.mubr.msk.f32.gmra.mxu0 %vm238_vm1, %v5492_v2 }
  0xd4   : > { %v5833_v43 = vpop.f32.mrf.mxu1  ;;  %4862 = vmatmul.mubr.msk.f32.gmra.mxu1 %vm238_vm1, %v6724_v44  ;;  %4914 = vmatprep.mubr.msk.f32.mxu0 %vm238_vm1, %v5498_v60 }
  0xd5   : > { %4864 = vmatprep.mubr.msk.f32.mxu1 %vm238_vm1, %v6725_v45  ;;  %v5843_v47 = vpop.f32.mrf.mxu0 }
  0xd6   : > { %v5845_v49 = vpop.f32.mrf.mxu1 }
  0xd7   : > { %v5847_v51 = vpop.f32.mrf.mxu0  ;;  %4915 = vmatmul.mubr.msk.f32.gmra.mxu0 %vm238_vm1, %v5512_v62  ;;  %v6729_v62 = vld [vmem:[#allocation25_spill] sm:$0xff] }
  0xd8   : > { %v5849_v53 = vpop.f32.mrf.mxu1  ;;  %4865 = vmatmul.mubr.msk.f32.gmra.mxu1 %vm238_vm1, %v6726_v55  ;;  %4917 = vmatprep.mubr.msk.f32.mxu0 %vm238_vm1, %v5518_v56 }
  0xd9   : > { %4867 = vmatprep.mubr.msk.f32.mxu1 %vm238_vm1, %v6727_v57  ;;  %v5859_v59 = vpop.f32.mrf.mxu0 }
  0xda   : > { %v5861_v60 = vpop.f32.mrf.mxu1 }
  0xdb   : > { %v5863_v61 = vpop.f32.mrf.mxu0  ;;  %4918 = vmatmul.mubr.msk.f32.gmra.mxu0 %vm238_vm1, %v5532_v58  ;;  %v6731_v58 = vld [vmem:[#allocation27_spill] sm:$0xff] }
  0xdc   : > { %v5865_v63 = vpop.f32.mrf.mxu1  ;;  %4868 = vmatmul.mubr.msk.f32.gmra.mxu1 %vm238_vm1, %v6728_v0  ;;  %4920 = vmatprep.mubr.msk.f32.mxu0 %vm238_vm1, %v5538_v52 }
  0xdd   : > { %4870 = vmatprep.mubr.msk.f32.mxu1 %vm238_vm1, %v6729_v62  ;;  %v5875_v56 = vpop.f32.mrf.mxu0 }
  0xde   : > { %v5877_v1 = vpop.f32.mrf.mxu1 }
  0xdf   : > { %v5879_v2 = vpop.f32.mrf.mxu0  ;;  %4921 = vmatmul.mubr.msk.f32.gmra.mxu0 %vm238_vm1, %v5552_v54  ;;  %v6734_v54 = vld [vmem:[#allocation29_spill] sm:$0xff] }
  0xe0   : > { %v5881_v3 = vpop.f32.mrf.mxu1  ;;  %4871 = vmatmul.mubr.msk.f32.gmra.mxu1 %vm238_vm1, %v6730_v5  ;;  %4923 = vmatprep.mubr.msk.f32.mxu0 %vm238_vm1, %v5558_v48 }
  0xe1   : > { %4873 = vmatprep.mubr.msk.f32.mxu1 %vm238_vm1, %v6731_v58  ;;  %v5891_v52 = vpop.f32.mrf.mxu0 }
  0xe2   : > { %v5893_v9 = vpop.f32.mrf.mxu1 }
  0xe3   : > { %v5895_v10 = vpop.f32.mrf.mxu0  ;;  %4924 = vmatmul.mubr.msk.f32.gmra.mxu0 %vm238_vm1, %v5572_v50  ;;  %v6737_v50 = vld [vmem:[#allocation31_spill] sm:$0xff] }
  0xe4   : > { %v5897_v37 = vpop.f32.mrf.mxu1  ;;  %4874 = vmatmul.mubr.msk.f32.gmra.mxu1 %vm238_vm1, %v6733_v38  ;;  %4926 = vmatprep.mubr.msk.f32.mxu0 %vm238_vm1, %v5578_v42 }
  0xe5   : > { %6732 = vst [vmem:[#allocation3_spill] sm:$0xff] %v5897_v37  ;;  %4876 = vmatprep.mubr.msk.f32.mxu1 %vm238_vm1, %v6734_v54  ;;  %v5907_v48 = vpop.f32.mrf.mxu0  ;;  %v6741_v37 = vld [vmem:[#allocation32_spill] sm:$0xff] }
  0xe6   : > { %v5909_v39 = vpop.f32.mrf.mxu1 }
  0xe7   : > { %6735 = vst [vmem:[#allocation4_spill] sm:$0xff] %v5909_v39  ;;  %v5911_v7 = vpop.f32.mrf.mxu0  ;;  %4927 = vmatmul.mubr.msk.f32.gmra.mxu0 %vm238_vm1, %v5592_v46  ;;  %v5943_v46 = vld [vmem:[%s5103_s23 + $0x18a] sm:$0xff] }
  0xe8   : > { %v5913_v12 = vpop.f32.mrf.mxu1  ;;  %4877 = vmatmul.mubr.msk.f32.gmra.mxu1 %vm238_vm1, %v5575_v40  ;;  %4929 = vmatprep.mubr.msk.f32.mxu0 %vm238_vm1, %v5736_v4  ;;  %6742 = vst [vmem:[#allocation9_spill] sm:$0xff] %v5943_v46  ;;  %v4117_v4 = vld [vmem:[%s5103_s23 + $0x1a0] sm:$0xff] }
  0xe9   : > { %6736 = vst [vmem:[#allocation5_spill] sm:$0xff] %v5913_v12  ;;  %4879 = vmatprep.mubr.msk.f32.mxu1 %vm238_vm1, %v6737_v50  ;;  %v5923_v42 = vpop.f32.mrf.mxu0 }
  0xea   : > { %v5925_v14 = vpop.f32.mrf.mxu1 }
  0xeb   : > { %6738 = vst [vmem:[#allocation6_spill] sm:$0xff] %v5925_v14  ;;  %v5931_v12 = vpop.f32.mrf.mxu0  ;;  %4930 = vmatmul.mubr.msk.f32.gmra.mxu0 %vm238_vm1, %v5750_v8 }
  0xec   : > { %v5933_v39 = vpop.f32.mrf.mxu1  ;;  %4880 = vmatmul.mubr.msk.f32.gmra.mxu1 %vm238_vm1, %v6741_v37  ;;  %4932 = vmatprep.mubr.msk.f32.mxu0 %vm238_vm1, %v4116_v6 }
  0xed   : > { %6740 = vst [vmem:[#allocation8_spill] sm:$0xff] %v5933_v39  ;;  %4882 = vmatprep.mubr.msk.f32.mxu1 %vm238_vm1, %v5928_v11  ;;  %v5946_v50 = vpop.f32.mrf.mxu0 }
  0xee   : > { %v5948_v14 = vpop.f32.mrf.mxu1 }
  0xef   : > { %6743 = vst [vmem:[#allocation10_spill] sm:$0xff] %v5948_v14  ;;  %v5950_v40 = vpop.f32.mrf.mxu0  ;;  %4933 = vmatmul.mubr.msk.f32.gmra.mxu0 %vm238_vm1, %v4117_v4 }
  0xf0   : > { %v5952_v39 = vpop.f32.mrf.mxu1  ;;  %4883 = vmatmul.mubr.msk.f32.gmra.mxu1 %vm238_vm1, %v5943_v46  ;;  %4987 = vmatprep.mubr.msk.f32.mxu0 %vm238_vm1, %v6709_v16 }
  0xf1   : > { %6744 = vst [vmem:[#allocation11_spill] sm:$0xff] %v5952_v39  ;;  %4937 = vmatprep.mubr.msk.f32.mxu1 %vm238_vm1, %v5148_v13  ;;  %v5961_v6 = vpop.f32.mrf.mxu0 }
  0xf2   : > { %v5963_v8 = vpop.f32.mrf.mxu1 }
  0xf3   : > { %6745 = vst [vmem:[#allocation12_spill] sm:$0xff] %v5963_v8  ;;  %v4689_v14 = vpop.f32.mrf.mxu0  ;;  %4988 = vmatmul.mubr.msk.f32.vlgmr.msra.gmra.mxu0 %vm238_vm1, %v6710_v18 }
  0xf4   : > { %v4639_v37 = vpop.f32.mrf.mxu1  ;;  %4938 = vmatmul.mubr.msk.f32.vlgmr.msra.gmra.mxu1 %vm238_vm1, %v5166_v15  ;;  %4990 = vmatprep.mubr.msk.f32.mxu0 %vm238_vm1, %v6711_v20 }
  0xf5   : > { %v735_v4 = vadd.f32 %v4639_v37, %v5831_v41  ;;  %4940 = vmatprep.mubr.msk.f32.mxu1 %vm238_vm1, %v5172_v17  ;;  %v1087_v16 = vpop.f32.mrf.mxu0  ;;  %v4162_v37 = vld [vmem:[%s5103_s23 + $0xa9] sm:$0xff] }
  0xf6   : > { %v729_v13 = vpop.f32.mrf.mxu1 }
  0xf7   : > { %v5974_v39 = vadd.f32 %v4689_v14, %v735_v4  ;;  %v730_v8 = vadd.f32 %v729_v13, %v5843_v47  ;;  %v4692_v11 = vpop.f32.mrf.mxu0  ;;  %4991 = vmatmul.mubr.msk.f32.gmra.mxu0 %vm238_vm1, %v6712_v22 }
  0xf8   : > { %v4642_v46 = vpop.f32.mrf.mxu1  ;;  %4941 = vmatmul.mubr.msk.f32.gmra.mxu1 %vm238_vm1, %v5186_v19  ;;  %4993 = vmatprep.mubr.msk.f32.mxu0 %vm238_vm1, %v6713_v24 }
  0xf9   : > { %v5981_v15 = vadd.f32 %v1087_v16, %v730_v8  ;;  %v745_v17 = vadd.f32 %v4642_v46, %v5847_v51  ;;  %4943 = vmatprep.mubr.msk.f32.mxu1 %vm238_vm1, %v5192_v21  ;;  %v1097_v20 = vpop.f32.mrf.mxu0  ;;  %v4160_v51 = vld [vmem:[%s5103_s23 + $0x91] sm:$0xff] }
  0xfa   : > { %v739_v18 = vpop.f32.mrf.mxu1  ;;  %v4163_v16 = vld [vmem:[%s5103_s23 + $0xb1] sm:$0xff] }
  0xfb   : > { %v5988_v41 = vadd.f32 %v4692_v11, %v745_v17  ;;  %v740_v19 = vadd.f32 %v739_v18, %v5859_v59  ;;  %v4695_v14 = vpop.f32.mrf.mxu0  ;;  %4994 = vmatmul.mubr.msk.f32.gmra.mxu0 %vm238_vm1, %v6714_v26  ;;  %v4164_v18 = vld [vmem:[%s5103_s23 + $0xc1] sm:$0xff] }
  0xfc   : > { %v4645_v47 = vpop.f32.mrf.mxu1  ;;  %4944 = vmatmul.mubr.msk.f32.gmra.mxu1 %vm238_vm1, %v5206_v23  ;;  %4996 = vmatprep.mubr.msk.f32.mxu0 %vm238_vm1, %v6715_v28 }
  0xfd   : > { %v5995_v22 = vadd.f32 %v1097_v20, %v740_v19  ;;  %v755_v21 = vadd.f32 %v4645_v47, %v5863_v61  ;;  %4946 = vmatprep.mubr.msk.f32.mxu1 %vm238_vm1, %v5212_v25  ;;  %v1107_v24 = vpop.f32.mrf.mxu0  ;;  %v4161_v61 = vld [vmem:[%s5103_s23 + $0x99] sm:$0xff] }
  0xfe   : > { %v749_v11 = vpop.f32.mrf.mxu1 }
  0xff   : > { %v6003_v59 = vadd.f32 %v4695_v14, %v755_v21  ;;  %v750_v23 = vadd.f32 %v749_v11, %v5875_v56  ;;  %v4698_v46 = vpop.f32.mrf.mxu0  ;;  %4997 = vmatmul.mubr.msk.f32.gmra.mxu0 %vm238_vm1, %v6716_v29  ;;  %v4165_v14 = vld [vmem:[%s5103_s23 + $0xc9] sm:$0xff]  ;;  %v4166_v11 = vld [vmem:[%s5103_s23 + $0xd9] sm:$0xff] }
 0x100   : > { %v4648_v26 = vpop.f32.mrf.mxu1  ;;  %4947 = vmatmul.mubr.msk.f32.gmra.mxu1 %vm238_vm1, %v5226_v27  ;;  %4999 = vmatprep.mubr.msk.f32.mxu0 %vm238_vm1, %v6717_v30 }
 0x101   : > { %v6010_v25 = vadd.f32 %v1107_v24, %v750_v23  ;;  %v765_v28 = vadd.f32 %v4648_v26, %v5879_v2  ;;  %4949 = vmatprep.mubr.msk.f32.mxu1 %vm238_vm1, %v4160_v51  ;;  %v1117_v8 = vpop.f32.mrf.mxu0  ;;  %v4167_v26 = vld [vmem:[%s5103_s23 + $0xe1] sm:$0xff] }
 0x102   : > { %v759_v56 = vpop.f32.mrf.mxu1 }
 0x103   : > { %v6018_v4 = vadd.f32 %v4698_v46, %v765_v28  ;;  %v760_v27 = vadd.f32 %v759_v56, %v5891_v52  ;;  %v4701_v13 = vpop.f32.mrf.mxu0  ;;  %5000 = vmatmul.mubr.msk.f32.gmra.mxu0 %vm238_vm1, %v6718_v31  ;;  %v4168_v28 = vld [vmem:[%s5103_s23 + $0xf1] sm:$0xff] }
 0x104   : > { %v4651_v29 = vpop.f32.mrf.mxu1  ;;  %4950 = vmatmul.mubr.msk.f32.gmra.mxu1 %vm238_vm1, %v4161_v61  ;;  %5002 = vmatprep.mubr.msk.f32.mxu0 %vm238_vm1, %v6719_v32 }
 0x105   : > { %v6024_v2 = vadd.f32 %v1117_v8, %v760_v27  ;;  %v775_v30 = vadd.f32 %v4651_v29, %v5895_v10  ;;  %4952 = vmatprep.mubr.msk.f32.mxu1 %vm238_vm1, %v4162_v37  ;;  %v1127_v52 = vpop.f32.mrf.mxu0  ;;  %v4169_v37 = vld [vmem:[%s5103_s23 + $0xf9] sm:$0xff]  ;;  %v4170_v29 = vld [vmem:[%s5103_s23 + $0x109] sm:$0xff] }
 0x106   : > { %v769_v17 = vpop.f32.mrf.mxu1 }
 0x107   : > { %v6032_v20 = vadd.f32 %v4701_v13, %v775_v30  ;;  %v770_v19 = vadd.f32 %v769_v17, %v5907_v48  ;;  %v4704_v47 = vpop.f32.mrf.mxu0  ;;  %5003 = vmatmul.mubr.msk.f32.gmra.mxu0 %vm238_vm1, %v6720_v33  ;;  %v4171_v17 = vld [vmem:[%s5103_s23 + $0x111] sm:$0xff] }
 0x108   : > { %v4654_v31 = vpop.f32.mrf.mxu1  ;;  %4953 = vmatmul.mubr.msk.f32.gmra.mxu1 %vm238_vm1, %v4163_v16  ;;  %5005 = vmatprep.mubr.msk.f32.mxu0 %vm238_vm1, %v6721_v34 }
 0x109   : > { %v6038_v10 = vadd.f32 %v1127_v52, %v770_v19  ;;  %v785_v32 = vadd.f32 %v4654_v31, %v5911_v7  ;;  %4955 = vmatprep.mubr.msk.f32.mxu1 %vm238_vm1, %v4164_v18  ;;  %v1137_v48 = vpop.f32.mrf.mxu0  ;;  %v4172_v18 = vld [vmem:[%s5103_s23 + $0x121] sm:$0xff] }
 0x10a   : > { %v779_v21 = vpop.f32.mrf.mxu1 }
 0x10b   : > { %v6046_v24 = vadd.f32 %v4704_v47, %v785_v32  ;;  %v780_v51 = vadd.f32 %v779_v21, %v5923_v42  ;;  %v4707_v23 = vpop.f32.mrf.mxu0  ;;  %5006 = vmatmul.mubr.msk.f32.gmra.mxu0 %vm238_vm1, %v6722_v35  ;;  %v4173_v32 = vld [vmem:[%s5103_s23 + $0x129] sm:$0xff]  ;;  %v4174_v21 = vld [vmem:[%s5103_s23 + $0x139] sm:$0xff] }
 0x10c   : > { %v4657_v33 = vpop.f32.mrf.mxu1  ;;  %4956 = vmatmul.mubr.msk.f32.gmra.mxu1 %vm238_vm1, %v4165_v14  ;;  %5008 = vmatprep.mubr.msk.f32.mxu0 %vm238_vm1, %v6723_v36 }
 0x10d   : > { %v6052_v7 = vadd.f32 %v1137_v48, %v780_v51  ;;  %v795_v34 = vadd.f32 %v4657_v33, %v5931_v12  ;;  %4958 = vmatprep.mubr.msk.f32.mxu1 %vm238_vm1, %v4166_v11  ;;  %v1147_v42 = vpop.f32.mrf.mxu0  ;;  %v4175_v33 = vld [vmem:[%s5103_s23 + $0x141] sm:$0xff] }
 0x10e   : > { %v789_v46 = vpop.f32.mrf.mxu1 }
 0x10f   : > { %v6060_v61 = vadd.f32 %v4707_v23, %v795_v34  ;;  %v790_v56 = vadd.f32 %v789_v46, %v5946_v50  ;;  %v4710_v8 = vpop.f32.mrf.mxu0  ;;  %5009 = vmatmul.mubr.msk.f32.gmra.mxu0 %vm238_vm1, %v6724_v44  ;;  %v4176_v34 = vld [vmem:[%s5103_s23 + $0x151] sm:$0xff] }
 0x110   : > { %v4660_v35 = vpop.f32.mrf.mxu1  ;;  %4959 = vmatmul.mubr.msk.f32.gmra.mxu1 %vm238_vm1, %v4167_v26  ;;  %5011 = vmatprep.mubr.msk.f32.mxu0 %vm238_vm1, %v6725_v45 }
 0x111   : > { %v6066_v12 = vadd.f32 %v1147_v42, %v790_v56  ;;  %v805_v36 = vadd.f32 %v4660_v35, %v5950_v40  ;;  %4961 = vmatprep.mubr.msk.f32.mxu1 %vm238_vm1, %v4168_v28  ;;  %v1157_v50 = vpop.f32.mrf.mxu0  ;;  %v4177_v28 = vld [vmem:[%s5103_s23 + $0x159] sm:$0xff]  ;;  %v4178_v35 = vld [vmem:[%s5103_s23 + $0x169] sm:$0xff] }
 0x112   : > { %v799_v27 = vpop.f32.mrf.mxu1 }
 0x113   : > { %v6074_v13 = vadd.f32 %v4710_v8, %v805_v36  ;;  %v800_v30 = vadd.f32 %v799_v27, %v5961_v6  ;;  %v4713_v16 = vpop.f32.mrf.mxu0  ;;  %5012 = vmatmul.mubr.msk.f32.gmra.mxu0 %vm238_vm1, %v6726_v55  ;;  %v4244_v8 = vld [vmem:[%s5103_s23 + $0x16a] sm:$0xff] }
 0x114   : > { %v4663_v44 = vpop.f32.mrf.mxu1  ;;  %4962 = vmatmul.mubr.msk.f32.gmra.mxu1 %vm238_vm1, %v4169_v37  ;;  %5014 = vmatprep.mubr.msk.f32.mxu0 %vm238_vm1, %v6727_v57 }
 0x115   : > { %v6080_v40 = vadd.f32 %v1157_v50, %v800_v30  ;;  %v815_v45 = vadd.f32 %v4663_v44, %v5833_v43  ;;  %4964 = vmatprep.mubr.msk.f32.mxu1 %vm238_vm1, %v4170_v29  ;;  %v1167_v6 = vpop.f32.mrf.mxu0  ;;  %v4179_v30 = vld [vmem:[%s5103_s23 + $0x171] sm:$0xff] }
 0x116   : > { %v809_v52 = vpop.f32.mrf.mxu1  ;;  %v4245_v44 = vld [vmem:[%s5103_s23 + $0x172] sm:$0xff] }
 0x117   : > { %v6088_v19 = vadd.f32 %v4713_v16, %v815_v45  ;;  %v810_v31 = vadd.f32 %v809_v52, %v5845_v49  ;;  %v4716_v47 = vpop.f32.mrf.mxu0  ;;  %5015 = vmatmul.mubr.msk.f32.gmra.mxu0 %vm238_vm1, %v6728_v0 }
 0x118   : > { %v4666_v55 = vpop.f32.mrf.mxu1  ;;  %4965 = vmatmul.mubr.msk.f32.gmra.mxu1 %vm238_vm1, %v4171_v17  ;;  %5017 = vmatprep.mubr.msk.f32.mxu0 %vm238_vm1, %v6729_v62  ;;  %v6748_v17 = vld [vmem:[#allocation4_spill] sm:$0xff] }
 0x119   : > { %v6094_v43 = vadd.f32 %v1167_v6, %v810_v31  ;;  %v825_v57 = vadd.f32 %v4666_v55, %v5849_v53  ;;  %4967 = vmatprep.mubr.msk.f32.mxu1 %vm238_vm1, %v4172_v18  ;;  %v1177_v49 = vpop.f32.mrf.mxu0  ;;  %v6749_v55 = vld [vmem:[#allocation5_spill] sm:$0xff] }
 0x11a   : > { %v819_v14 = vpop.f32.mrf.mxu1 }
 0x11b   : > { %v6102_v48 = vadd.f32 %v4716_v47, %v825_v57  ;;  %v820_v11 = vadd.f32 %v819_v14, %v5861_v60  ;;  %v4719_v51 = vpop.f32.mrf.mxu0  ;;  %5018 = vmatmul.mubr.msk.f32.gmra.mxu0 %vm238_vm1, %v6730_v5  ;;  %v6750_v57 = vld [vmem:[#allocation33_spill] sm:$0xff] }
 0x11c   : > { %v4669_v0 = vpop.f32.mrf.mxu1  ;;  %4968 = vmatmul.mubr.msk.f32.gmra.mxu1 %vm238_vm1, %v4173_v32  ;;  %5020 = vmatprep.mubr.msk.f32.mxu0 %vm238_vm1, %v6731_v58  ;;  %v6751_v32 = vld [vmem:[#allocation7_spill] sm:$0xff] }
 0x11d   : > { %v6108_v53 = vadd.f32 %v1177_v49, %v820_v11  ;;  %v835_v62 = vadd.f32 %v4669_v0, %v5865_v63  ;;  %4970 = vmatprep.mubr.msk.f32.mxu1 %vm238_vm1, %v4174_v21  ;;  %v1187_v60 = vpop.f32.mrf.mxu0  ;;  %v4182_v21 = vld [vmem:[%s5103_s23 + $0x199] sm:$0xff] }
 0x11e   : > { %v829_v23 = vpop.f32.mrf.mxu1  ;;  %v4248_v11 = vld [vmem:[%s5103_s23 + $0x19a] sm:$0xff] }
 0x11f   : > { %v6116_v26 = vadd.f32 %v4719_v51, %v835_v62  ;;  %v830_v5 = vadd.f32 %v829_v23, %v5877_v1  ;;  %v4722_v42 = vpop.f32.mrf.mxu0  ;;  %5021 = vmatmul.mubr.msk.f32.gmra.mxu0 %vm238_vm1, %v6733_v38  ;;  %v6752_v51 = vld [vmem:[#allocation6_spill] sm:$0xff] }
 0x120   : > { %v4672_v46 = vpop.f32.mrf.mxu1  ;;  %4971 = vmatmul.mubr.msk.f32.gmra.mxu1 %vm238_vm1, %v4175_v33  ;;  %5023 = vmatprep.mubr.msk.f32.mxu0 %vm238_vm1, %v6734_v54  ;;  %v6747_v54 = vld [vmem:[#allocation3_spill] sm:$0xff] }
 0x121   : > { %v6122_v63 = vadd.f32 %v1187_v60, %v830_v5  ;;  %v845_v58 = vadd.f32 %v4672_v46, %v5881_v3  ;;  %4973 = vmatprep.mubr.msk.f32.mxu1 %vm238_vm1, %v4176_v34  ;;  %v1197_v56 = vpop.f32.mrf.mxu0  ;;  %v6746_v3 = vld [vmem:[#allocation30_spill] sm:$0xff]  ;;  %v6754_v34 = vld [vmem:[#allocation9_spill] sm:$0xff]  ;;  %v6755_v46 = vld [vmem:[#allocation8_spill] sm:$0xff] }
 0x122   : > { %v839_v1 = vpop.f32.mrf.mxu1  ;;  %v6753_v60 = vld [vmem:[#allocation2_spill] sm:$0xff] }
 0x123   : > { %v6131_v36 = vadd.f32 %v4722_v42, %v845_v58  ;;  %v840_v38 = vadd.f32 %v839_v1, %v5893_v9  ;;  %v4725_v27 = vpop.f32.mrf.mxu0  ;;  %5024 = vmatmul.mubr.msk.f32.gmra.mxu0 %vm238_vm1, %v6746_v3  ;;  %v4183_v58 = vld [vmem:[%s5103_s23 + $0x1a1] sm:$0xff] }
 0x124   : > { %v4675_v37 = vpop.f32.mrf.mxu1  ;;  %4974 = vmatmul.mubr.msk.f32.gmra.mxu1 %vm238_vm1, %v4177_v28  ;;  %5026 = vmatprep.mubr.msk.f32.mxu0 %vm238_vm1, %v4244_v8  ;;  %v4249_v28 = vld [vmem:[%s5103_s23 + $0x1a2] sm:$0xff] }
 0x125   : > { %v6137_v50 = vadd.f32 %v1197_v56, %v840_v38  ;;  %v855_v29 = vadd.f32 %v4675_v37, %v6747_v54  ;;  %4976 = vmatprep.mubr.msk.f32.mxu1 %vm238_vm1, %v4178_v35  ;;  %v1207_v16 = vpop.f32.mrf.mxu0  ;;  %v6756_v8 = vld [vmem:[#allocation10_spill] sm:$0xff]  ;;  %v6757_v54 = vld [vmem:[#allocation11_spill] sm:$0xff] }
 0x126   : > { %v849_v9 = vpop.f32.mrf.mxu1 }
 0x127   : > { %v6144_v45 = vadd.f32 %v4725_v27, %v855_v29  ;;  %v850_v52 = vadd.f32 %v849_v9, %v6748_v17  ;;  %v4728_v18 = vpop.f32.mrf.mxu0  ;;  %5027 = vmatmul.mubr.msk.f32.gmra.mxu0 %vm238_vm1, %v4245_v44 }
 0x128   : > { %v4678_v6 = vpop.f32.mrf.mxu1  ;;  %4977 = vmatmul.mubr.msk.f32.gmra.mxu1 %vm238_vm1, %v4179_v30  ;;  %5029 = vmatprep.mubr.msk.f32.mxu0 %vm238_vm1, %v6751_v32 }
 0x129   : > { %v6149_v31 = vadd.f32 %v1207_v16, %v850_v52  ;;  %v865_v47 = vadd.f32 %v4678_v6, %v6749_v55  ;;  %4979 = vmatprep.mubr.msk.f32.mxu1 %vm238_vm1, %v6750_v57  ;;  %v1217_v49 = vpop.f32.mrf.mxu0  ;;  %v6758_v16 = vld [vmem:[#allocation12_spill] sm:$0xff] }
 0x12a   : > { %v859_v14 = vpop.f32.mrf.mxu1 }
 0x12b   : > { %v6158_v0 = vadd.f32 %v4728_v18, %v865_v47  ;;  %v860_v62 = vadd.f32 %v859_v14, %v6752_v51  ;;  %v4731_v23 = vpop.f32.mrf.mxu0  ;;  %5030 = vmatmul.mubr.msk.f32.gmra.mxu0 %vm238_vm1, %v6754_v34 }
 0x12c   : > { %v4681_v33 = vpop.f32.mrf.mxu1  ;;  %4980 = vmatmul.mubr.msk.f32.gmra.mxu1 %vm238_vm1, %v6753_v60  ;;  %5032 = vmatprep.mubr.msk.f32.mxu0 %vm238_vm1, %v4248_v11 }
 0x12d   : > { %v6165_v5 = vadd.f32 %v1217_v49, %v860_v62  ;;  %v875_v42 = vadd.f32 %v4681_v33, %v6755_v46  ;;  %4982 = vmatprep.mubr.msk.f32.mxu1 %vm238_vm1, %v4182_v21  ;;  %v1227_v56 = vpop.f32.mrf.mxu0 }
 0x12e   : > { %v869_v1 = vpop.f32.mrf.mxu1 }
 0x12f   : > { %v6172_v35 = vadd.f32 %v4731_v23, %v875_v42  ;;  %v870_v38 = vadd.f32 %v869_v1, %v6756_v8  ;;  %v4734_v27 = vpop.f32.mrf.mxu0  ;;  %5033 = vmatmul.mubr.msk.f32.gmra.mxu0 %vm238_vm1, %v4249_v28 }
 0x130   : > { %v4684_v37 = vpop.f32.mrf.mxu1  ;;  %4983 = vmatmul.mubr.msk.f32.gmra.mxu1 %vm238_vm1, %v4183_v58 }
 0x131   : > { %v6177_v3 = vadd.f32 %v1227_v56, %v870_v38  ;;  %v885_v29 = vadd.f32 %v4684_v37, %v6757_v54  ;;  %v1237_v44 = vpop.f32.mrf.mxu0 }
 0x132   : > { %v879_v30 = vpop.f32.mrf.mxu1 }
 0x133   : > { %v6180_v9 = vadd.f32 %v4734_v27, %v885_v29  ;;  %v880_v17 = vadd.f32 %v879_v30, %v6758_v16  ;;  %v4789_v6 = vpop.f32.mrf.mxu0 }
 0x134   : > { %v4739_v52 = vpop.f32.mrf.mxu1 }
 0x135   : > { %v6183_v18 = vadd.f32 %v1237_v44, %v880_v17  ;;  %v1638_v55 = vadd.f32 %v4739_v52, %v5974_v39  ;;  %v1868_v57 = vpop.f32.mrf.mxu0 }
 0x136   : > { %v1478_v47 = vpop.f32.mrf.mxu1 }
 0x137   : > { %v6186_v32 = vadd.f32 %v4789_v6, %v1638_v55  ;;  %v1637_v14 = vadd.f32 %v1478_v47, %v5981_v15  ;;  %v4792_v21 = vpop.f32.mrf.mxu0 }
 0x138   : > { %v4742_v49 = vpop.f32.mrf.mxu1 }
 0x139   : > { %v6189_v11 = vadd.f32 %v1868_v57, %v1637_v14  ;;  %v1640_v51 = vadd.f32 %v4742_v49, %v5988_v41  ;;  %v1878_v33 = vpop.f32.mrf.mxu0 }
 0x13a   : > { %v1488_v62 = vpop.f32.mrf.mxu1 }
 0x13b   : > { %v6192_v23 = vadd.f32 %v4792_v21, %v1640_v51  ;;  %v1639_v60 = vadd.f32 %v1488_v62, %v5995_v22  ;;  %v4795_v39 = vpop.f32.mrf.mxu0 }
 0x13c   : > { %v4745_v34 = vpop.f32.mrf.mxu1 }
 0x13d   : > { %v6195_v46 = vadd.f32 %v1878_v33, %v1639_v60  ;;  %v1642_v42 = vadd.f32 %v4745_v34, %v6003_v59  ;;  %v1888_v15 = vpop.f32.mrf.mxu0 }
 0x13e   : > { %v1498_v58 = vpop.f32.mrf.mxu1 }
 0x13f   : > { %v6198_v28 = vadd.f32 %v4795_v39, %v1642_v42  ;;  %v1641_v1 = vadd.f32 %v1498_v58, %v6010_v25  ;;  %v4798_v41 = vpop.f32.mrf.mxu0 }
 0x140   : > { %v4748_v56 = vpop.f32.mrf.mxu1 }
 0x141   : > { %v6201_v8 = vadd.f32 %v1888_v15, %v1641_v1  ;;  %v1644_v38 = vadd.f32 %v4748_v56, %v6018_v4  ;;  %v1898_v22 = vpop.f32.mrf.mxu0 }
 0x142   : > { %v1508_v37 = vpop.f32.mrf.mxu1 }
 0x143   : > { %v6204_v27 = vadd.f32 %v4798_v41, %v1644_v38  ;;  %v1643_v54 = vadd.f32 %v1508_v37, %v6024_v2  ;;  %v4801_v59 = vpop.f32.mrf.mxu0 }
 0x144   : > { %v4751_v29 = vpop.f32.mrf.mxu1 }
 0x145   : > { %v6207_v30 = vadd.f32 %v1898_v22, %v1643_v54  ;;  %v1646_v44 = vadd.f32 %v4751_v29, %v6032_v20  ;;  %v1908_v25 = vpop.f32.mrf.mxu0 }
 0x146   : > { %v1518_v16 = vpop.f32.mrf.mxu1 }
 0x147   : > { %v6210_v17 = vadd.f32 %v4801_v59, %v1646_v44  ;;  %v1645_v52 = vadd.f32 %v1518_v16, %v6038_v10  ;;  %v4804_v4 = vpop.f32.mrf.mxu0 }
 0x148   : > { %v4754_v6 = vpop.f32.mrf.mxu1 }
 0x149   : > { %v6213_v55 = vadd.f32 %v1908_v25, %v1645_v52  ;;  %v1648_v47 = vadd.f32 %v4754_v6, %v6046_v24  ;;  %v1918_v2 = vpop.f32.mrf.mxu0 }
 0x14a   : > { %v1528_v57 = vpop.f32.mrf.mxu1 }
 0x14b   : > { %v6216_v14 = vadd.f32 %v4804_v4, %v1648_v47  ;;  %v1647_v49 = vadd.f32 %v1528_v57, %v6052_v7  ;;  %v4807_v20 = vpop.f32.mrf.mxu0 }
 0x14c   : > { %v4757_v21 = vpop.f32.mrf.mxu1 }
 0x14d   : > { %v6219_v51 = vadd.f32 %v1918_v2, %v1647_v49  ;;  %v1650_v62 = vadd.f32 %v4757_v21, %v6060_v61  ;;  %v1928_v10 = vpop.f32.mrf.mxu0 }
 0x14e   : > { %v1538_v33 = vpop.f32.mrf.mxu1 }
 0x14f   : > { %v6222_v60 = vadd.f32 %v4807_v20, %v1650_v62  ;;  %v1649_v34 = vadd.f32 %v1538_v33, %v6066_v12  ;;  %v4810_v24 = vpop.f32.mrf.mxu0 }
 0x150   : > { %v4760_v39 = vpop.f32.mrf.mxu1 }
 0x151   : > { %v6225_v42 = vadd.f32 %v1928_v10, %v1649_v34  ;;  %v1652_v58 = vadd.f32 %v4760_v39, %v6074_v13  ;;  %v1938_v7 = vpop.f32.mrf.mxu0 }
 0x152   : > { %v1548_v15 = vpop.f32.mrf.mxu1 }
 0x153   : > { %v6228_v1 = vadd.f32 %v4810_v24, %v1652_v58  ;;  %v1651_v56 = vadd.f32 %v1548_v15, %v6080_v40  ;;  %v4813_v61 = vpop.f32.mrf.mxu0 }
 0x154   : > { %v4763_v41 = vpop.f32.mrf.mxu1 }
 0x155   : > { %v6231_v38 = vadd.f32 %v1938_v7, %v1651_v56  ;;  %v1654_v37 = vadd.f32 %v4763_v41, %v6088_v19  ;;  %v1948_v12 = vpop.f32.mrf.mxu0 }
 0x156   : > { %v1558_v22 = vpop.f32.mrf.mxu1 }
 0x157   : > { %v6234_v54 = vadd.f32 %v4813_v61, %v1654_v37  ;;  %v1653_v29 = vadd.f32 %v1558_v22, %v6094_v43  ;;  %v4816_v13 = vpop.f32.mrf.mxu0 }
 0x158   : > { %v4766_v59 = vpop.f32.mrf.mxu1 }
 0x159   : > { %v6237_v44 = vadd.f32 %v1948_v12, %v1653_v29  ;;  %v1656_v16 = vadd.f32 %v4766_v59, %v6102_v48  ;;  %v1958_v40 = vpop.f32.mrf.mxu0 }
 0x15a   : > { %v1568_v25 = vpop.f32.mrf.mxu1 }
 0x15b   : > { %v6240_v52 = vadd.f32 %v4816_v13, %v1656_v16  ;;  %v1655_v6 = vadd.f32 %v1568_v25, %v6108_v53  ;;  %v4819_v19 = vpop.f32.mrf.mxu0 }
 0x15c   : > { %v4769_v4 = vpop.f32.mrf.mxu1 }
 0x15d   : > { %6759 = vst [vmem:[#allocation13_spill] sm:$0xff] %v6240_v52  ;;  %v6243_v47 = vadd.f32 %v1958_v40, %v1655_v6  ;;  %v1658_v57 = vadd.f32 %v4769_v4, %v6116_v26  ;;  %v1968_v43 = vpop.f32.mrf.mxu0 }
 0x15e   : > { %v1578_v2 = vpop.f32.mrf.mxu1 }
 0x15f   : > { %6760 = vst [vmem:[#allocation14_spill] sm:$0xff] %v6243_v47  ;;  %v6246_v49 = vadd.f32 %v4819_v19, %v1658_v57  ;;  %v1657_v21 = vadd.f32 %v1578_v2, %v6122_v63  ;;  %v4822_v48 = vpop.f32.mrf.mxu0 }
 0x160   : > { %v4772_v20 = vpop.f32.mrf.mxu1 }
 0x161   : > { %6761 = vst [vmem:[#allocation15_spill] sm:$0xff] %v6246_v49  ;;  %v6249_v62 = vadd.f32 %v1968_v43, %v1657_v21  ;;  %v1660_v33 = vadd.f32 %v4772_v20, %v6131_v36  ;;  %v1978_v53 = vpop.f32.mrf.mxu0 }
 0x162   : > { %v1588_v10 = vpop.f32.mrf.mxu1 }
 0x163   : > { %6762 = vst [vmem:[#allocation16_spill] sm:$0xff] %v6249_v62  ;;  %v6252_v34 = vadd.f32 %v4822_v48, %v1660_v33  ;;  %v1659_v39 = vadd.f32 %v1588_v10, %v6137_v50  ;;  %v4825_v26 = vpop.f32.mrf.mxu0 }
 0x164   : > { %v4775_v24 = vpop.f32.mrf.mxu1 }
 0x165   : > { %6763 = vst [vmem:[#allocation17_spill] sm:$0xff] %v6252_v34  ;;  %v6255_v58 = vadd.f32 %v1978_v53, %v1659_v39  ;;  %v1662_v15 = vadd.f32 %v4775_v24, %v6144_v45  ;;  %v1988_v63 = vpop.f32.mrf.mxu0 }
 0x166   : > { %v1598_v7 = vpop.f32.mrf.mxu1 }
 0x167   : > { %6764 = vst [vmem:[#allocation18_spill] sm:$0xff] %v6255_v58  ;;  %v6258_v56 = vadd.f32 %v4825_v26, %v1662_v15  ;;  %v1661_v41 = vadd.f32 %v1598_v7, %v6149_v31  ;;  %v4828_v36 = vpop.f32.mrf.mxu0 }
 0x168   : > { %v4778_v61 = vpop.f32.mrf.mxu1 }
 0x169   : > { %6765 = vst [vmem:[#allocation19_spill] sm:$0xff] %v6258_v56  ;;  %v6261_v37 = vadd.f32 %v1988_v63, %v1661_v41  ;;  %v1664_v22 = vadd.f32 %v4778_v61, %v6158_v0  ;;  %v1998_v50 = vpop.f32.mrf.mxu0 }
 0x16a   : > { %v1608_v12 = vpop.f32.mrf.mxu1 }
 0x16b   : > { %6766 = vst [vmem:[#allocation20_spill] sm:$0xff] %v6261_v37  ;;  %v6264_v29 = vadd.f32 %v4828_v36, %v1664_v22  ;;  %v1663_v59 = vadd.f32 %v1608_v12, %v6165_v5  ;;  %v4831_v45 = vpop.f32.mrf.mxu0 }
 0x16c   : > { %v4781_v13 = vpop.f32.mrf.mxu1 }
 0x16d   : > { %6767 = vst [vmem:[#allocation21_spill] sm:$0xff] %v6264_v29  ;;  %v6267_v16 = vadd.f32 %v1998_v50, %v1663_v59  ;;  %v1666_v25 = vadd.f32 %v4781_v13, %v6172_v35  ;;  %v2008_v31 = vpop.f32.mrf.mxu0 }
 0x16e   : > { %v1618_v40 = vpop.f32.mrf.mxu1 }
 0x16f   : > { %6768 = vst [vmem:[#allocation22_spill] sm:$0xff] %v6267_v16  ;;  %v6270_v6 = vadd.f32 %v4831_v45, %v1666_v25  ;;  %v1665_v4 = vadd.f32 %v1618_v40, %v6177_v3  ;;  %v4834_v0 = vpop.f32.mrf.mxu0 }
 0x170   : > { %v4784_v19 = vpop.f32.mrf.mxu1 }
 0x171   : > { %6769 = vst [vmem:[#allocation23_spill] sm:$0xff] %v6270_v6  ;;  %v6273_v57 = vadd.f32 %v2008_v31, %v1665_v4  ;;  %v1668_v2 = vadd.f32 %v4784_v19, %v6180_v9  ;;  %v2018_v5 = vpop.f32.mrf.mxu0 }
 0x172   : > { %v1628_v43 = vpop.f32.mrf.mxu1 }
 0x173   : > { %6770 = vst [vmem:[#allocation24_spill] sm:$0xff] %v6273_v57  ;;  %v6276_v21 = vadd.f32 %v4834_v0, %v1668_v2  ;;  %v1667_v20 = vadd.f32 %v1628_v43, %v6183_v18  ;;  %v6279_v35 = vpop.f32.mrf.mxu0 }
 0x174   : > { %v4839_v48 = vpop.f32.mrf.mxu1 }
 0x175   : > { %6771 = vst [vmem:[#allocation25_spill] sm:$0xff] %v6276_v21  ;;  %v6281_v33 = vadd.f32 %v2018_v5, %v1667_v20  ;;  %v6283_v53 = vpop.f32.mrf.mxu0 }
 0x176   : > { %v2258_v10 = vpop.f32.mrf.mxu1 }
 0x177   : > { %6772 = vst [vmem:[#allocation26_spill] sm:$0xff] %v6281_v33  ;;  %v6287_v39 = vpop.f32.mrf.mxu0 }
 0x178   : > { %v6285_v3 = vpop.f32.mrf.mxu1 }
 0x179   : > { %v6291_v9 = vpop.f32.mrf.mxu0 }
 0x17a   : > { %v6289_v24 = vpop.f32.mrf.mxu1 }
 0x17b   : > { %v6295_v15 = vpop.f32.mrf.mxu0 }
 0x17c   : > { %v6293_v26 = vpop.f32.mrf.mxu1 }
 0x17d   : > { %v6299_v7 = vpop.f32.mrf.mxu0 }
 0x17e   : > { %v6297_v18 = vpop.f32.mrf.mxu1 }
 0x17f   : > { %v6303_v41 = vpop.f32.mrf.mxu0 }
 0x180   : > { %v6301_v63 = vpop.f32.mrf.mxu1 }
 0x181   : > { %v6307_v36 = vpop.f32.mrf.mxu0 }
 0x182   : > { %v6305_v61 = vpop.f32.mrf.mxu1 }
 0x183   : > { %v6311_v12 = vpop.f32.mrf.mxu0 }
 0x184   : > { %v6309_v22 = vpop.f32.mrf.mxu1 }
 0x185   : > { %v6315_v59 = vpop.f32.mrf.mxu0 }
 0x186   : > { %v6313_v50 = vpop.f32.mrf.mxu1 }
 0x187   : > { %v6319_v45 = vpop.f32.mrf.mxu0 }
 0x188   : > { %v6317_v13 = vpop.f32.mrf.mxu1 }
 0x189   : > { %v6323_v40 = vpop.f32.mrf.mxu0 }
 0x18a   : > { %v6321_v25 = vpop.f32.mrf.mxu1 }
 0x18b   : > { %v6327_v4 = vpop.f32.mrf.mxu0 }
 0x18c   : > { %v6325_v31 = vpop.f32.mrf.mxu1 }
 0x18d   : > { %v6331_v0 = vpop.f32.mrf.mxu0 }
 0x18e   : > { %v6329_v19 = vpop.f32.mrf.mxu1 }
 0x18f   : > { %v6335_v43 = vpop.f32.mrf.mxu0 }
 0x190   : > { %v6333_v2 = vpop.f32.mrf.mxu1 }
 0x191   : > { %v6339_v20 = vpop.f32.mrf.mxu0 }
 0x192   : > { %v6337_v5 = vpop.f32.mrf.mxu1 }
 0x193   : > { %v6343_v21 = vpop.f32.mrf.mxu0 }
 0x194   : > { %v6341_v33 = vpop.f32.mrf.mxu1 }
 0x195   : > { %v6347_v6 = vpop.f32.mrf.mxu0 }
 0x196   : > { %v6345_v57 = vpop.f32.mrf.mxu1  ;;  %6773 = vst [vmem:[#allocation27_spill] sm:$0xff] %v6347_v6 }
 0x197   : > { %v6351_v29 = vpop.f32.mrf.mxu0 }
 0x198   : > { %v6349_v16 = vpop.f32.mrf.mxu1  ;;  %6775 = vst [vmem:[#allocation29_spill] sm:$0xff] %v6351_v29 }
 0x199   : > { %6774 = vst [vmem:[#allocation28_spill] sm:$0xff] %v6349_v16  ;;  %v6355_v56 = vpop.f32.mrf.mxu0 }
 0x19a   : > { %v6353_v37 = vpop.f32.mrf.mxu1  ;;  %6777 = vst [vmem:[#allocation32_spill] sm:$0xff] %v6355_v56 }
 0x19b   : > { %6776 = vst [vmem:[#allocation31_spill] sm:$0xff] %v6353_v37  ;;  %v6359_v34 = vpop.f32.mrf.mxu0 }
 0x19c   : > { %v6357_v58 = vpop.f32.mrf.mxu1  ;;  %6779 = vst [vmem:[#allocation3_spill] sm:$0xff] %v6359_v34 }
 0x19d   : > { %6778 = vst [vmem:[#allocation30_spill] sm:$0xff] %v6357_v58  ;;  %v6363_v49 = vpop.f32.mrf.mxu0 }
 0x19e   : > { %v6361_v62 = vpop.f32.mrf.mxu1  ;;  %6781 = vst [vmem:[#allocation5_spill] sm:$0xff] %v6363_v49 }
 0x19f   : > { %6780 = vst [vmem:[#allocation4_spill] sm:$0xff] %v6361_v62  ;;  %v6367_v52 = vpop.f32.mrf.mxu0 }
 0x1a0   : > { %v6365_v47 = vpop.f32.mrf.mxu1  ;;  %6783 = vst [vmem:[#allocation7_spill] sm:$0xff] %v6367_v52 }
 0x1a1   : > { %6782 = vst [vmem:[#allocation33_spill] sm:$0xff] %v6365_v47  ;;  %v6371_v16 = vpop.f32.mrf.mxu0 }
 0x1a2   : > { %v6369_v6 = vpop.f32.mrf.mxu1  ;;  %6785 = vst [vmem:[#allocation2_spill] sm:$0xff] %v6371_v16 }
 0x1a3   : > { %6784 = vst [vmem:[#allocation6_spill] sm:$0xff] %v6369_v6  ;;  %v6375_v37 = vpop.f32.mrf.mxu0 }
 0x1a4   : > { %v6373_v29 = vpop.f32.mrf.mxu1  ;;  %6787 = vst [vmem:[#allocation8_spill] sm:$0xff] %v6375_v37  ;;  %v2418_v37 = vadd.f32 %v4839_v48, %v6186_v32  ;;  %v2419_v48 = vadd.f32 %v6289_v24, %v6195_v46 }
 0x1a5   : > { %6786 = vst [vmem:[#allocation9_spill] sm:$0xff] %v6373_v29  ;;  %v6379_v58 = vpop.f32.mrf.mxu0 }
 0x1a6   : > { %v6377_v56 = vpop.f32.mrf.mxu1  ;;  %6789 = vst [vmem:[#allocation11_spill] sm:$0xff] %v6379_v58 }
 0x1a7   : > { %6788 = vst [vmem:[#allocation10_spill] sm:$0xff] %v6377_v56  ;;  %v6383_v62 = vpop.f32.mrf.mxu0 }
 0x1a8   : > { %v6381_v34 = vpop.f32.mrf.mxu1  ;;  %6790 = vst [vmem:[#allocation12_spill] sm:$0xff] %v6383_v62  ;;  %v2417_v62 = vadd.f32 %v2258_v10, %v6189_v11  ;;  %v2422_v11 = vadd.f32 %v6293_v26, %v6198_v28  ;;  %v6418_v10 = vld [vmem:[%s6611_s2] ss:$0 sm:$0xff] }
 0x1a9   : > { %v6387_v47 = vpop.f32.mrf.mxu0 }
 0x1aa   : > { %v6385_v49 = vpop.f32.mrf.mxu1  ;;  %6792 = vst [vmem:[#allocation35_spill] sm:$0xff] %v6387_v47  ;;  %v2808_v32 = vadd.f32 %v6283_v53, %v2417_v62  ;;  %v2421_v62 = vadd.f32 %v6297_v18, %v6201_v8  ;;  %v2813_v26 = vadd.f32 %v6295_v15, %v2422_v11 }
 0x1ab   : > { %6791 = vst [vmem:[#allocation34_spill] sm:$0xff] %v6385_v49  ;;  %v6391_v6 = vpop.f32.mrf.mxu0 }
 0x1ac   : > { %v6389_v52 = vpop.f32.mrf.mxu1  ;;  %6794 = vst [vmem:[#allocation37_spill] sm:$0xff] %v6391_v6  ;;  %v2420_v6 = vadd.f32 %v6285_v3, %v6192_v23 }
 0x1ad   : > { %6793 = vst [vmem:[#allocation36_spill] sm:$0xff] %v6389_v52  ;;  %v6395_v29 = vpop.f32.mrf.mxu0  ;;  %v2809_v52 = vadd.f32 %v6279_v35, %v2418_v37 }
 0x1ae   : > { %v6393_v16 = vpop.f32.mrf.mxu1  ;;  %6796 = vst [vmem:[#allocation39_spill] sm:$0xff] %v6395_v29  ;;  %v2811_v23 = vadd.f32 %v6287_v39, %v2420_v6 }
 0x1af   : > { %6795 = vst [vmem:[#allocation38_spill] sm:$0xff] %v6393_v16  ;;  %v6400_v58 = vpop.f32.mrf.mxu0 }
 0x1b0   : > { %v6398_v56 = vpop.f32.mrf.mxu1  ;;  %6797 = vst [vmem:[#allocation40_spill] sm:$0xff] %v6400_v58 }
 0x1b1   : > { %v6405_v47 = vpop.f32.mrf.mxu0 }
 0x1b2   : > { %v6403_v49 = vpop.f32.mrf.mxu1  ;;  %6799 = vst [vmem:[#allocation42_spill] sm:$0xff] %v6405_v47 }
 0x1b3   : > { %6798 = vst [vmem:[#allocation41_spill] sm:$0xff] %v6403_v49  ;;  %v4989_v29 = vpop.f32.mrf.mxu0  ;;  %v2424_v49 = vadd.f32 %v6301_v63, %v6204_v27  ;;  %v2423_v27 = vadd.f32 %v6305_v61, %v6207_v30 }
 0x1b4   : > { %v4939_v16 = vpop.f32.mrf.mxu1 }
 0x1b5   : > { %v3199_v58 = vadd.f32 %v4939_v16, %v2809_v52  ;;  %v3429_v35 = vpop.f32.mrf.mxu0  ;;  %v2810_v16 = vadd.f32 %v6291_v9, %v2419_v48  ;;  %v2812_v9 = vadd.f32 %v6299_v7, %v2421_v62 }
 0x1b6   : > { %v3039_v37 = vpop.f32.mrf.mxu1 }
 0x1b7   : > { %v3589_v3 = vadd.f32 %v4989_v29, %v3199_v58  ;;  %v3198_v47 = vadd.f32 %v3039_v37, %v2808_v32  ;;  %v4992_v52 = vpop.f32.mrf.mxu0  ;;  %v2815_v37 = vadd.f32 %v6303_v41, %v2424_v49 }
 0x1b8   : > { %v4942_v46 = vpop.f32.mrf.mxu1 }
 0x1b9   : > { %v3628_v28 = vadd.f32 %v6418_v10, %v3589_v3  ;;  %v3588_v53 = vadd.f32 %v3429_v35, %v3198_v47  ;;  %v3201_v24 = vadd.f32 %v4942_v46, %v2811_v23  ;;  %v3439_v58 = vpop.f32.mrf.mxu0  ;;  %v2426_v35 = vadd.f32 %v6309_v22, %v6210_v17 }
 0x1ba   : > { %v3049_v8 = vpop.f32.mrf.mxu1  ;;  %v2814_v46 = vadd.f32 %v6307_v36, %v2423_v27 }
 0x1bb   : > { %v3660_v29 = vmax.f32 %v3628_v28, 0.0  ;;  %v3627_v6 = vadd.f32 %v6418_v10, %v3588_v53  ;;  %v3591_v47 = vadd.f32 %v4992_v52, %v3201_v24  ;;  %v3200_v39 = vadd.f32 %v3049_v8, %v2810_v16  ;;  %v4995_v18 = vpop.f32.mrf.mxu0 }
 0x1bc   : > { %v4945_v15 = vpop.f32.mrf.mxu1  ;;  %v2425_v52 = vadd.f32 %v6313_v50, %v6213_v55  ;;  %v2817_v53 = vadd.f32 %v6311_v12, %v2426_v35  ;;  %v2428_v24 = vadd.f32 %v6317_v13, %v6216_v14 }
 0x1bd   : > { %3693 = vst.msk [vmem:[%s6432_s15 + $0x8] sm:$0xff] %vm3691_vm2, %v3660_v29  ;;  %v3659_v63 = vmax.f32 %v3627_v6, 0.0  ;;  %v3630_v32 = vadd.f32 %v6418_v10, %v3591_v47  ;;  %v3590_v48 = vadd.f32 %v3439_v58, %v3200_v39  ;;  %v3203_v11 = vadd.f32 %v4945_v15, %v2813_v26  ;;  %v3449_v7 = vpop.f32.mrf.mxu0 }
 0x1be   : > { %v3059_v23 = vpop.f32.mrf.mxu1  ;;  %v2816_v29 = vadd.f32 %v6315_v59, %v2425_v52  ;;  %v2427_v6 = vadd.f32 %v6321_v25, %v6219_v51  ;;  %v2819_v27 = vadd.f32 %v6319_v45, %v2428_v24  ;;  %v2430_v15 = vadd.f32 %v6325_v31, %v6222_v60 }
 0x1bf   : > { %3692 = vst.msk [vmem:[%s6432_s15] sm:$0xff] %vm3691_vm2, %v3659_v63  ;;  %v3662_v30 = vmax.f32 %v3630_v32, 0.0  ;;  %v3629_v61 = vadd.f32 %v6418_v10, %v3590_v48  ;;  %v3593_v3 = vadd.f32 %v4995_v18, %v3203_v11  ;;  %v3202_v62 = vadd.f32 %v3059_v23, %v2812_v9  ;;  %v4998_v49 = vpop.f32.mrf.mxu0 }
 0x1c0   : > { %v4948_v16 = vpop.f32.mrf.mxu1  ;;  %v2818_v48 = vadd.f32 %v6323_v40, %v2427_v6  ;;  %v2429_v11 = vadd.f32 %v6329_v19, %v6225_v42  ;;  %v2431_v52 = vadd.f32 %v6337_v5, %v6231_v38  ;;  %v6801_v6 = vld [vmem:[#allocation28_spill] sm:$0xff] }
 0x1c1   : > { %3695 = vst.msk [vmem:[%s6432_s15 + $0x18] sm:$0xff] %vm3691_vm2, %v3662_v30  ;;  %v3661_v17 = vmax.f32 %v3629_v61, 0.0  ;;  %v3632_v41 = vadd.f32 %v6418_v10, %v3593_v3  ;;  %v3592_v22 = vadd.f32 %v3449_v7, %v3202_v62  ;;  %v3205_v28 = vadd.f32 %v4948_v16, %v2815_v37  ;;  %v3459_v36 = vpop.f32.mrf.mxu0 }
 0x1c2   : > { %v3069_v26 = vpop.f32.mrf.mxu1  ;;  %v2821_v7 = vadd.f32 %v6327_v4, %v2430_v15  ;;  %v2432_v30 = vadd.f32 %v6333_v2, %v6228_v1  ;;  %v6804_v15 = vld [vmem:[#allocation31_spill] sm:$0xff] }
 0x1c3   : > { %3694 = vst.msk [vmem:[%s6432_s15 + $0x10] sm:$0xff] %vm3691_vm2, %v3661_v17  ;;  %v3664_v55 = vmax.f32 %v3632_v41, 0.0  ;;  %v3631_v50 = vadd.f32 %v6418_v10, %v3592_v22  ;;  %v3595_v8 = vadd.f32 %v4998_v49, %v3205_v28  ;;  %v3204_v58 = vadd.f32 %v3069_v26, %v2814_v46  ;;  %v5001_v12 = vpop.f32.mrf.mxu0 }
 0x1c4   : > { %v4951_v47 = vpop.f32.mrf.mxu1  ;;  %v2820_v46 = vadd.f32 %v6331_v0, %v2429_v11  ;;  %v2823_v41 = vadd.f32 %v6335_v43, %v2432_v30  ;;  %v2434_v22 = vadd.f32 %v6341_v33, %v6234_v54  ;;  %v2822_v26 = vadd.f32 %v6339_v20, %v2431_v52 }
 0x1c5   : > { %3697 = vst.msk [vmem:[%s6432_s15 + $0x28] sm:$0xff] %vm3691_vm2, %v3664_v55  ;;  %v3663_v14 = vmax.f32 %v3631_v50, 0.0  ;;  %v3634_v13 = vadd.f32 %v6418_v10, %v3595_v8  ;;  %v3594_v39 = vadd.f32 %v3459_v36, %v3204_v58  ;;  %v3207_v9 = vadd.f32 %v4951_v47, %v2817_v53  ;;  %v3469_v59 = vpop.f32.mrf.mxu0 }
 0x1c6   : > { %v3079_v18 = vpop.f32.mrf.mxu1  ;;  %v2433_v36 = vadd.f32 %v6345_v57, %v6237_v44  ;;  %v2825_v58 = vadd.f32 %v6343_v21, %v2434_v22  ;;  %v6813_v22 = vld [vmem:[#allocation33_spill] sm:$0xff] }
 0x1c7   : > { %3696 = vst.msk [vmem:[%s6432_s15 + $0x20] sm:$0xff] %vm3691_vm2, %v3663_v14  ;;  %v3666_v51 = vmax.f32 %v3634_v13, 0.0  ;;  %v3633_v25 = vadd.f32 %v6418_v10, %v3594_v39  ;;  %v3597_v63 = vadd.f32 %v5001_v12, %v3207_v9  ;;  %v3206_v32 = vadd.f32 %v3079_v18, %v2816_v29  ;;  %v5004_v45 = vpop.f32.mrf.mxu0  ;;  %v6800_v29 = vld [vmem:[#allocation13_spill] sm:$0xff]  ;;  %v6802_v39 = vld [vmem:[#allocation27_spill] sm:$0xff] }
 0x1c8   : > { %v4954_v37 = vpop.f32.mrf.mxu1  ;;  %v2436_v47 = vadd.f32 %v6801_v6, %v6800_v29  ;;  %v2824_v9 = vadd.f32 %v6802_v39, %v2433_v36  ;;  %v6814_v36 = vld [vmem:[#allocation5_spill] sm:$0xff] }
 0x1c9   : > { %3699 = vst.msk [vmem:[%s6432_s15 + $0x38] sm:$0xff] %vm3691_vm2, %v3666_v51  ;;  %v3665_v60 = vmax.f32 %v3633_v25, 0.0  ;;  %v3636_v31 = vadd.f32 %v6418_v10, %v3597_v63  ;;  %v3596_v35 = vadd.f32 %v3469_v59, %v3206_v32  ;;  %v3209_v23 = vadd.f32 %v4954_v37, %v2819_v27  ;;  %v3479_v40 = vpop.f32.mrf.mxu0  ;;  %v6803_v27 = vld [vmem:[#allocation14_spill] sm:$0xff]  ;;  %v6806_v37 = vld [vmem:[#allocation15_spill] sm:$0xff] }
 0x1ca   : > { %v3089_v61 = vpop.f32.mrf.mxu1  ;;  %v2435_v18 = vadd.f32 %v6804_v15, %v6803_v27 }
 0x1cb   : > { %3698 = vst.msk [vmem:[%s6432_s15 + $0x30] sm:$0xff] %vm3691_vm2, %v3665_v60  ;;  %v3668_v42 = vmax.f32 %v3636_v31, 0.0  ;;  %v3635_v19 = vadd.f32 %v6418_v10, %v3596_v35  ;;  %v3599_v3 = vadd.f32 %v5004_v45, %v3209_v23  ;;  %v3208_v62 = vadd.f32 %v3089_v61, %v2818_v48  ;;  %v5007_v4 = vpop.f32.mrf.mxu0  ;;  %v6805_v48 = vld [vmem:[#allocation29_spill] sm:$0xff]  ;;  %v6807_v45 = vld [vmem:[#allocation30_spill] sm:$0xff] }
 0x1cc   : > { %v4957_v16 = vpop.f32.mrf.mxu1  ;;  %v2827_v11 = vadd.f32 %v6805_v48, %v2436_v47  ;;  %v2438_v60 = vadd.f32 %v6807_v45, %v6806_v37 }
 0x1cd   : > { %3701 = vst.msk [vmem:[%s6432_s15 + $0x48] sm:$0xff] %vm3691_vm2, %v3668_v42  ;;  %v3667_v1 = vmax.f32 %v3635_v19, 0.0  ;;  %v3638_v2 = vadd.f32 %v6418_v10, %v3599_v3  ;;  %v3598_v49 = vadd.f32 %v3479_v40, %v3208_v62  ;;  %v3211_v17 = vadd.f32 %v4957_v16, %v2821_v7  ;;  %v3489_v0 = vpop.f32.mrf.mxu0  ;;  %v6808_v40 = vld [vmem:[#allocation32_spill] sm:$0xff] }
 0x1ce   : > { %v3099_v28 = vpop.f32.mrf.mxu1  ;;  %v2826_v42 = vadd.f32 %v6808_v40, %v2435_v18  ;;  %v6809_v19 = vld [vmem:[#allocation16_spill] sm:$0xff] }
 0x1cf   : > { %3700 = vst.msk [vmem:[%s6432_s15 + $0x40] sm:$0xff] %vm3691_vm2, %v3667_v1  ;;  %v3670_v38 = vmax.f32 %v3638_v2, 0.0  ;;  %v3637_v5 = vadd.f32 %v6418_v10, %v3598_v49  ;;  %v3601_v53 = vadd.f32 %v5007_v4, %v3211_v17  ;;  %v3210_v24 = vadd.f32 %v3099_v28, %v2820_v46  ;;  %v5010_v43 = vpop.f32.mrf.mxu0  ;;  %v6810_v3 = vld [vmem:[#allocation4_spill] sm:$0xff]  ;;  %v6811_v49 = vld [vmem:[#allocation3_spill] sm:$0xff] }
 0x1d0   : > { %v4960_v55 = vpop.f32.mrf.mxu1  ;;  %v2437_v62 = vadd.f32 %v6810_v3, %v6809_v19  ;;  %v2829_v17 = vadd.f32 %v6811_v49, %v2438_v60 }
 0x1d1   : > { %3703 = vst.msk [vmem:[%s6432_s15 + $0x58] sm:$0xff] %vm3691_vm2, %v3670_v38  ;;  %v3669_v54 = vmax.f32 %v3637_v5, 0.0  ;;  %v3640_v33 = vadd.f32 %v6418_v10, %v3601_v53  ;;  %v3600_v50 = vadd.f32 %v3489_v0, %v3210_v24  ;;  %v3213_v8 = vadd.f32 %v4960_v55, %v2823_v41  ;;  %v3499_v20 = vpop.f32.mrf.mxu0  ;;  %v6812_v41 = vld [vmem:[#allocation17_spill] sm:$0xff] }
 0x1d2   : > { %v3109_v12 = vpop.f32.mrf.mxu1  ;;  %v2440_v28 = vadd.f32 %v6813_v22, %v6812_v41  ;;  %v2828_v55 = vadd.f32 %v6814_v36, %v2437_v62  ;;  %v6825_v62 = vld [vmem:[#allocation11_spill] sm:$0xff]  ;;  %v6828_v22 = vld [vmem:[#allocation12_spill] sm:$0xff] }
 0x1d3   : > { %3702 = vst.msk [vmem:[%s6432_s15 + $0x50] sm:$0xff] %vm3691_vm2, %v3669_v54  ;;  %v3672_v44 = vmax.f32 %v3640_v33, 0.0  ;;  %v3639_v57 = vadd.f32 %v6418_v10, %v3600_v50  ;;  %v3603_v14 = vadd.f32 %v5010_v43, %v3213_v8  ;;  %v3212_v13 = vadd.f32 %v3109_v12, %v2822_v26  ;;  %v5013_v21 = vpop.f32.mrf.mxu0  ;;  %v6815_v43 = vld [vmem:[#allocation18_spill] sm:$0xff]  ;;  %v6817_v12 = vld [vmem:[#allocation7_spill] sm:$0xff] }
 0x1d4   : > { %v4963_v59 = vpop.f32.mrf.mxu1  ;;  %v6816_v54 = vld [vmem:[#allocation6_spill] sm:$0xff] }
 0x1d5   : > { %3705 = vst.msk [vmem:[%s6432_s15 + $0x68] sm:$0xff] %vm3691_vm2, %v3672_v44  ;;  %v3671_v51 = vmax.f32 %v3639_v57, 0.0  ;;  %v3642_v25 = vadd.f32 %v6418_v10, %v3603_v14  ;;  %v3602_v63 = vadd.f32 %v3499_v20, %v3212_v13  ;;  %v3215_v32 = vadd.f32 %v4963_v59, %v2825_v58  ;;  %v3509_v35 = vpop.f32.mrf.mxu0  ;;  %v6818_v44 = vld [vmem:[#allocation19_spill] sm:$0xff]  ;;  %v6819_v57 = vld [vmem:[#allocation9_spill] sm:$0xff]  ;;  %v6820_v59 = vld [vmem:[#allocation2_spill] sm:$0xff] }
 0x1d6   : > { %v3119_v31 = vpop.f32.mrf.mxu1  ;;  %v2439_v33 = vadd.f32 %v6816_v54, %v6815_v43  ;;  %v2831_v20 = vadd.f32 %v6817_v12, %v2440_v28  ;;  %v2442_v14 = vadd.f32 %v6819_v57, %v6818_v44  ;;  %v6831_v54 = vld [vmem:[#allocation35_spill] sm:$0xff]  ;;  %v6834_v57 = vld [vmem:[#allocation37_spill] sm:$0xff] }
 0x1d7   : > { %3704 = vst.msk [vmem:[%s6432_s15 + $0x60] sm:$0xff] %vm3691_vm2, %v3671_v51  ;;  %v3674_v23 = vmax.f32 %v3642_v25, 0.0  ;;  %v3641_v7 = vadd.f32 %v6418_v10, %v3602_v63  ;;  %v3605_v30 = vadd.f32 %v5013_v21, %v3215_v32  ;;  %v3214_v61 = vadd.f32 %v3119_v31, %v2824_v9  ;;  %v5016_v52 = vpop.f32.mrf.mxu0  ;;  %v6821_v51 = vld [vmem:[#allocation20_spill] sm:$0xff]  ;;  %v6822_v25 = vld [vmem:[#allocation10_spill] sm:$0xff] }
 0x1d8   : > { %v4966_v46 = vpop.f32.mrf.mxu1  ;;  %v2830_v21 = vadd.f32 %v6820_v59, %v2439_v33  ;;  %v2441_v63 = vadd.f32 %v6822_v25, %v6821_v51  ;;  %v6823_v31 = vld [vmem:[#allocation8_spill] sm:$0xff]  ;;  %v6836_v51 = vld [vmem:[#allocation39_spill] sm:$0xff] }
 0x1d9   : > { %3707 = vst.msk [vmem:[%s6432_s15 + $0x78] sm:$0xff] %vm3691_vm2, %v3674_v23  ;;  %v3673_v16 = vmax.f32 %v3641_v7, 0.0  ;;  %v3644_v4 = vadd.f32 %v6418_v10, %v3605_v30  ;;  %v3604_v1 = vadd.f32 %v3509_v35, %v3214_v61  ;;  %v3217_v2 = vadd.f32 %v4966_v46, %v2827_v11  ;;  %v3519_v38 = vpop.f32.mrf.mxu0  ;;  %v6824_v23 = vld [vmem:[#allocation21_spill] sm:$0xff] }
 0x1da   : > { %v3129_v0 = vpop.f32.mrf.mxu1  ;;  %v2833_v35 = vadd.f32 %v6823_v31, %v2442_v14  ;;  %v2444_v7 = vadd.f32 %v6381_v34, %v6824_v23  ;;  %v2832_v46 = vadd.f32 %v6825_v62, %v2441_v63  ;;  %v6837_v63 = vld [vmem:[#allocation26_spill] sm:$0xff] }
 0x1db   : > { %3706 = vst.msk [vmem:[%s6432_s15 + $0x70] sm:$0xff] %vm3691_vm2, %v3673_v16  ;;  %v3676_v5 = vmax.f32 %v3644_v4, 0.0  ;;  %v3643_v53 = vadd.f32 %v6418_v10, %v3604_v1  ;;  %v3607_v24 = vadd.f32 %v5016_v52, %v3217_v2  ;;  %v3216_v26 = vadd.f32 %v3129_v0, %v2826_v42  ;;  %v5019_v8 = vpop.f32.mrf.mxu0  ;;  %v6826_v52 = vld [vmem:[#allocation22_spill] sm:$0xff]  ;;  %v6829_v0 = vld [vmem:[#allocation23_spill] sm:$0xff] }
 0x1dc   : > { %v4969_v50 = vpop.f32.mrf.mxu1  ;;  %v6827_v16 = vld [vmem:[#allocation34_spill] sm:$0xff]  ;;  %v2835_v28 = vadd.f32 %v6828_v22, %v2444_v7 }
 0x1dd   : > { %3709 = vst.msk [vmem:[%s6432_s15 + $0x88] sm:$0xff] %vm3691_vm2, %v3676_v5  ;;  %v3675_v58 = vmax.f32 %v3643_v53, 0.0  ;;  %v3646_v29 = vadd.f32 %v6418_v10, %v3607_v24  ;;  %v3606_v6 = vadd.f32 %v3519_v38, %v3216_v26  ;;  %v3219_v47 = vadd.f32 %v4969_v50, %v2829_v17  ;;  %v3529_v39 = vpop.f32.mrf.mxu0  ;;  %v6830_v38 = vld [vmem:[#allocation36_spill] sm:$0xff] }
 0x1de   : > { %v3139_v13 = vpop.f32.mrf.mxu1  ;;  %v2443_v4 = vadd.f32 %v6827_v16, %v6826_v52  ;;  %v2446_v5 = vadd.f32 %v6830_v38, %v6829_v0  ;;  %v6832_v50 = vld [vmem:[#allocation24_spill] sm:$0xff] }
 0x1df   : > { %3708 = vst.msk [vmem:[%s6432_s15 + $0x80] sm:$0xff] %vm3691_vm2, %v3675_v58  ;;  %v3678_v9 = vmax.f32 %v3646_v29, 0.0  ;;  %v3645_v27 = vadd.f32 %v6418_v10, %v3606_v6  ;;  %v3609_v15 = vadd.f32 %v5019_v8, %v3219_v47  ;;  %v3218_v18 = vadd.f32 %v3139_v13, %v2828_v55  ;;  %v5022_v48 = vpop.f32.mrf.mxu0  ;;  %v6833_v8 = vld [vmem:[#allocation38_spill] sm:$0xff]  ;;  %v6835_v13 = vld [vmem:[#allocation25_spill] sm:$0xff] }
 0x1e0   : > { %v4972_v32 = vpop.f32.mrf.mxu1  ;;  %v2834_v33 = vadd.f32 %v6831_v54, %v2443_v4  ;;  %v2445_v58 = vadd.f32 %v6833_v8, %v6832_v50  ;;  %v2837_v14 = vadd.f32 %v6834_v57, %v2446_v5 }
 0x1e1   : > { %3711 = vst.msk [vmem:[%s6432_s15 + $0x98] sm:$0xff] %vm3691_vm2, %v3678_v9  ;;  %v3677_v11 = vmax.f32 %v3645_v27, 0.0  ;;  %v3648_v37 = vadd.f32 %v6418_v10, %v3609_v15  ;;  %v3608_v45 = vadd.f32 %v3529_v39, %v3218_v18  ;;  %v3221_v60 = vadd.f32 %v4972_v32, %v2831_v20  ;;  %v3539_v61 = vpop.f32.mrf.mxu0  ;;  %v6838_v32 = vld [vmem:[#allocation41_spill] sm:$0xff] }
 0x1e2   : > { %v3149_v30 = vpop.f32.mrf.mxu1  ;;  %v2448_v39 = vadd.f32 %v6398_v56, %v6835_v13  ;;  %v2836_v25 = vadd.f32 %v6836_v51, %v2445_v58 }
 0x1e3   : > { %3710 = vst.msk [vmem:[%s6432_s15 + $0x90] sm:$0xff] %vm3691_vm2, %v3677_v11  ;;  %v3680_v40 = vmax.f32 %v3648_v37, 0.0  ;;  %v3647_v42 = vadd.f32 %v6418_v10, %v3608_v45  ;;  %v3611_v19 = vadd.f32 %v5022_v48, %v3221_v60  ;;  %v3220_v3 = vadd.f32 %v3149_v30, %v2830_v21  ;;  %v5025_v2 = vpop.f32.mrf.mxu0 }
 0x1e4   : > { %v4975_v1 = vpop.f32.mrf.mxu1  ;;  %v2447_v48 = vadd.f32 %v6838_v32, %v6837_v63 }
 0x1e5   : > { %3713 = vst.msk [vmem:[%s6432_s15 + $0xa8] sm:$0xff] %vm3691_vm2, %v3680_v40  ;;  %v3679_v34 = vmax.f32 %v3647_v42, 0.0  ;;  %v3650_v49 = vadd.f32 %v6418_v10, %v3611_v19  ;;  %v3610_v17 = vadd.f32 %v3539_v61, %v3220_v3  ;;  %v3223_v41 = vadd.f32 %v4975_v1, %v2833_v35  ;;  %v3549_v24 = vpop.f32.mrf.mxu0  ;;  %v6839_v35 = vld [vmem:[#allocation40_spill] sm:$0xff]  ;;  %v6840_v3 = vld [vmem:[#allocation42_spill] sm:$0xff] }
 0x1e6   : > { %v3159_v53 = vpop.f32.mrf.mxu1  ;;  %v2839_v23 = vadd.f32 %v6839_v35, %v2448_v39  ;;  %v2838_v62 = vadd.f32 %v6840_v3, %v2447_v48 }
 0x1e7   : > { %3712 = vst.msk [vmem:[%s6432_s15 + $0xa0] sm:$0xff] %vm3691_vm2, %v3679_v34  ;;  %v3682_v26 = vmax.f32 %v3650_v49, 0.0  ;;  %v3649_v36 = vadd.f32 %v6418_v10, %v3610_v17  ;;  %v3613_v55 = vadd.f32 %v5025_v2, %v3223_v41  ;;  %v3222_v43 = vadd.f32 %v3159_v53, %v2832_v46  ;;  %v5028_v6 = vpop.f32.mrf.mxu0 }
 0x1e8   : > { %v4978_v29 = vpop.f32.mrf.mxu1 }
 0x1e9   : > { %3715 = vst.msk [vmem:[%s6432_s15 + $0xb8] sm:$0xff] %vm3691_vm2, %v3682_v26  ;;  %v3681_v47 = vmax.f32 %v3649_v36, 0.0  ;;  %v3652_v12 = vadd.f32 %v6418_v10, %v3613_v55  ;;  %v3612_v20 = vadd.f32 %v3549_v24, %v3222_v43  ;;  %v3225_v44 = vadd.f32 %v4978_v29, %v2835_v28  ;;  %v3559_v27 = vpop.f32.mrf.mxu0 }
 0x1ea   : > { %v3169_v9 = vpop.f32.mrf.mxu1 }
 0x1eb   : > { %3714 = vst.msk [vmem:[%s6432_s15 + $0xb0] sm:$0xff] %vm3691_vm2, %v3681_v47  ;;  %v3684_v15 = vmax.f32 %v3652_v12, 0.0  ;;  %v3651_v18 = vadd.f32 %v6418_v10, %v3612_v20  ;;  %v3615_v59 = vadd.f32 %v5028_v6, %v3225_v44  ;;  %v3224_v21 = vadd.f32 %v3169_v9, %v2834_v33  ;;  %v5031_v37 = vpop.f32.mrf.mxu0 }
 0x1ec   : > { %v4981_v11 = vpop.f32.mrf.mxu1 }
 0x1ed   : > { %3717 = vst.msk [vmem:[%s6432_s15 + $0xc8] sm:$0xff] %vm3691_vm2, %v3684_v15  ;;  %v3683_v56 = vmax.f32 %v3651_v18, 0.0  ;;  %v3654_v45 = vadd.f32 %v6418_v10, %v3615_v59  ;;  %v3614_v60 = vadd.f32 %v3559_v27, %v3224_v21  ;;  %v3227_v31 = vadd.f32 %v4981_v11, %v2837_v14  ;;  %v3569_v30 = vpop.f32.mrf.mxu0 }
 0x1ee   : > { %v3179_v7 = vpop.f32.mrf.mxu1 }
 0x1ef   : > { %3716 = vst.msk [vmem:[%s6432_s15 + $0xc0] sm:$0xff] %vm3691_vm2, %v3683_v56  ;;  %v3686_v61 = vmax.f32 %v3654_v45, 0.0  ;;  %v3653_v40 = vadd.f32 %v6418_v10, %v3614_v60  ;;  %v3617_v42 = vadd.f32 %v5031_v37, %v3227_v31  ;;  %v3226_v19 = vadd.f32 %v3179_v7, %v2836_v25  ;;  %v5034_v52 = vpop.f32.mrf.mxu0 }
 0x1f0   : > { %v4984_v46 = vpop.f32.mrf.mxu1 }
 0x1f1   : > { %3719 = vst.msk [vmem:[%s6432_s15 + $0xd8] sm:$0xff] %vm3691_vm2, %v3686_v61  ;;  %v3685_v16 = vmax.f32 %v3653_v40, 0.0  ;;  %v3656_v4 = vadd.f32 %v6418_v10, %v3617_v42  ;;  %v3616_v1 = vadd.f32 %v3569_v30, %v3226_v19  ;;  %v3229_v2 = vadd.f32 %v4984_v46, %v2839_v23  ;;  %v3579_v28 = vpop.f32.mrf.mxu0 }
 0x1f2   : > { %v3189_v34 = vpop.f32.mrf.mxu1 }
 0x1f3   : > { %3718 = vst.msk [vmem:[%s6432_s15 + $0xd0] sm:$0xff] %vm3691_vm2, %v3685_v16  ;;  %v3688_v49 = vmax.f32 %v3656_v4, 0.0  ;;  %v3655_v17 = vadd.f32 %v6418_v10, %v3616_v1  ;;  %v3619_v41 = vadd.f32 %v5034_v52, %v3229_v2  ;;  %v3228_v22 = vadd.f32 %v3189_v34, %v2838_v62 }
 0x1f5   : > { %3721 = vst.msk [vmem:[%s6432_s15 + $0xe8] sm:$0xff] %vm3691_vm2, %v3688_v49  ;;  %v3687_v0 = vmax.f32 %v3655_v17, 0.0  ;;  %v3658_v38 = vadd.f32 %v6418_v10, %v3619_v41  ;;  %v3618_v5 = vadd.f32 %v3579_v28, %v3228_v22 }
 0x1f7   : > { %3720 = vst.msk [vmem:[%s6432_s15 + $0xe0] sm:$0xff] %vm3691_vm2, %v3687_v0  ;;  %v3690_v53 = vmax.f32 %v3658_v38, 0.0  ;;  %v3657_v24 = vadd.f32 %v6418_v10, %v3618_v5 }
 0x1f9   : > { %3723 = vst.msk [vmem:[%s6432_s15 + $0xf8] sm:$0xff] %vm3691_vm2, %v3690_v53  ;;  %v3689_v26 = vmax.f32 %v3657_v24, 0.0 }
 0x1fb   : > { %3722 = vst.msk [vmem:[%s6432_s15 + $0xf0] sm:$0xff] %vm3691_vm2, %v3689_v26 }
 0x1fc PF: > { %s13_s12 = sadd.s32 1, %s5052_s12  }
 0x1fd   : > { %p10_p4 = scmp.ge.s32.totalorder %s13_s12, 4  }
 0x1ff   :  { %12 = sbr.rel (!%p10_p4) target bundleno = 1 (0x1), region = 72 }

// kernel: conv_classifier_forward.6
= control target key start
LH: loop header
LB: loop body
LE: loop exit
PB: predicated region body
PF: predicated region fallthrough
CT: control target
= control target key end

     0   :  { %s5036_s12 = smov 0   ;;  %s6551_s0 = inlined_call_operand.vmem [shape: f32[2,18,18,8], index: 0, kind: input, shape index: {}]   ;;  %s6552_s1 = inlined_call_operand.vmem [shape: f32[9,8,8], index: 1, kind: input, shape index: {}]   ;;  %s6553_s2 = inlined_call_operand.vmem [shape: f32[1,8], index: 2, kind: input, shape index: {}]   ;;  %s6554_s3 = inlined_call_operand.vmem [shape: f32[2,256,8], index: 3, kind: output, shape index: {}]  }
   0x1 LB: > { %s3750_s13 = sadd.s32 4294967295, %s5014_s12   ;;  %p3754_p0 = scmp.ge.s32.totalorder %s5014_s12, 1  ;;  %s5014_s12 = sphi %s5036_s12, %s13_s12  }
   0x2   : > { %p137_p1 = scmp.lt.s32.totalorder %s5014_s12, 3 }
   0x4   : > { %p138_p2 = pnand %p3754_p0, %p137_p1 }
   0x6   : > { %141 = sbr.rel (%p138_p2) target bundleno = 508 (0x1fc), region = 32 }
   0xb   : > { %v3758_v0 = vld [vmem:[%s6552_s1 + $0x8] sm:$0xff]  ;;  %p161_p3 = scmp.lt.s32.totalorder %s3750_s13, 1  ;;  %v203_v1 = vld [vmem:[%s6552_s1] sm:$0xff]  ;;  %v3823_v2 = vld [vmem:[%s6552_s1 + $0x10] sm:$0xff]  ;;  %vm238_vm0 = vcmask 64512  }
   0xc   : > { %4997 = vmatprep.subr.mxu1 %v3758_v0  ;;  %4547 = vmatprep.subr.mxu0 %v3758_v0  ;;  %v5084_v9 = vld [vmem:[%s6552_s1 + $0x18] sm:$0xff]  ;;  %v5089_v10 = vld [vmem:[%s6552_s1 + $0x20] sm:$0xff]  ;;  %v5244_v43 = vld [vmem:[%s6552_s1 + $0x28] sm:$0xff] }
   0xd   : > { %4998 = vmatpush3.msra.mxu1 %v3758_v0  ;;  %4548 = vmatpush3.msra.mxu0 %v3758_v0  ;;  %s6784_s13 = smov (!%p161_p3, %s3750_s13), 1  ;;  %v5249_v44 = vld [vmem:[%s6552_s1 + $0x30] sm:$0xff] }
   0xe   : > { %4597 = vmatprep.subr.mxu1 %v203_v1  ;;  %4647 = vmatprep.subr.mxu0 %v3823_v2  ;;  %s4999_s20 = smul.u32 432, %s6784_s13  ;;  %s4249_s11 = sshll.u32 %s6784_s13, 8 }
   0xf   : > { %s6374_s15 = scalar_lea.vmem %s6554_s3, %s4249_s11 }
  0x10   : > { %s5059_s23 = scalar_lea.vmem %s6551_s0, %s4999_s20 }
  0x11   : > { %v204_v3 = vld [vmem:[%s5059_s23 + $0x1] sm:$0xff]  ;;  %v205_v5 = vld [vmem:[%s5059_s23 + $0x9] sm:$0xff]  ;;  %v5073_v7 = vld [vmem:[%s5059_s23 + $0x19] sm:$0xff] }
  0x12   : > { %v5063_v4 = vld [vmem:[%s5059_s23 + $0xc1] sm:$0xff]  ;;  %4549 = vmatprep.mubr.msk.f32.mxu0 %vm238_vm0, %v204_v3  ;;  %v5070_v6 = vld [vmem:[%s5059_s23 + $0xc9] sm:$0xff]  ;;  %v5076_v8 = vld [vmem:[%s5059_s23 + $0xd9] sm:$0xff] }
  0x13   : > { %4573 = vmatprep.mubr.msk.f32.mxu1 %vm238_vm0, %v5063_v4  ;;  %4550 = vmatmul.mubr.msk.f32.vlgmr.msra.gmra.mxu0 %vm238_vm0, %v205_v5  ;;  %v5092_v11 = vld [vmem:[%s5059_s23 + $0x21] sm:$0xff]  ;;  %v5102_v13 = vld [vmem:[%s5059_s23 + $0x31] sm:$0xff]  ;;  %v5118_v15 = vld [vmem:[%s5059_s23 + $0x39] sm:$0xff] }
  0x14   : > { %4574 = vmatmul.mubr.msk.f32.vlgmr.msra.gmra.mxu1 %vm238_vm0, %v5070_v6  ;;  %4648 = vmatpush3.msra.mxu0 %v3823_v2  ;;  %v5095_v12 = vld [vmem:[%s5059_s23 + $0xe1] sm:$0xff]  ;;  %v5105_v14 = vld [vmem:[%s5059_s23 + $0xf1] sm:$0xff]  ;;  %v5121_v16 = vld [vmem:[%s5059_s23 + $0xf9] sm:$0xff] }
  0x15   : > { %4598 = vmatpush3.msra.mxu1 %v203_v1  ;;  %4552 = vmatprep.mubr.msk.f32.mxu0 %vm238_vm0, %v5073_v7  ;;  %v5124_v17 = vld [vmem:[%s5059_s23 + $0x49] sm:$0xff]  ;;  %v5138_v19 = vld [vmem:[%s5059_s23 + $0x51] sm:$0xff]  ;;  %v5144_v21 = vld [vmem:[%s5059_s23 + $0x61] sm:$0xff] }
  0x16   : > { %4576 = vmatprep.mubr.msk.f32.mxu1 %vm238_vm0, %v5076_v8  ;;  %4697 = vmatprep.subr.mxu1 %v5084_v9  ;;  %v5127_v18 = vld [vmem:[%s5059_s23 + $0x109] sm:$0xff]  ;;  %v5141_v20 = vld [vmem:[%s5059_s23 + $0x111] sm:$0xff]  ;;  %v5147_v22 = vld [vmem:[%s5059_s23 + $0x121] sm:$0xff] }
  0x17   : > { %4747 = vmatprep.subr.mxu0 %v5089_v10  ;;  %4553 = vmatmul.mubr.msk.f32.gmra.mxu0 %vm238_vm0, %v5092_v11  ;;  %v5158_v23 = vld [vmem:[%s5059_s23 + $0x69] sm:$0xff]  ;;  %v5164_v25 = vld [vmem:[%s5059_s23 + $0x79] sm:$0xff]  ;;  %v5178_v27 = vld [vmem:[%s5059_s23 + $0x81] sm:$0xff] }
  0x18   : > { %4577 = vmatmul.mubr.msk.f32.gmra.mxu1 %vm238_vm0, %v5095_v12  ;;  %4555 = vmatprep.mubr.msk.f32.mxu0 %vm238_vm0, %v5102_v13  ;;  %v5161_v24 = vld [vmem:[%s5059_s23 + $0x129] sm:$0xff]  ;;  %v5167_v26 = vld [vmem:[%s5059_s23 + $0x139] sm:$0xff]  ;;  %v5181_v28 = vld [vmem:[%s5059_s23 + $0x141] sm:$0xff] }
  0x19   : > { %4579 = vmatprep.mubr.msk.f32.mxu1 %vm238_vm0, %v5105_v14  ;;  %v5184_v29 = vld [vmem:[%s5059_s23 + $0x91] sm:$0xff]  ;;  %v5198_v31 = vld [vmem:[%s5059_s23 + $0x99] sm:$0xff]  ;;  %v5204_v33 = vld [vmem:[%s5059_s23 + $0xa9] sm:$0xff] }
  0x1a   : > { %v5187_v30 = vld [vmem:[%s5059_s23 + $0x151] sm:$0xff]  ;;  %v5201_v32 = vld [vmem:[%s5059_s23 + $0x159] sm:$0xff]  ;;  %v5207_v34 = vld [vmem:[%s5059_s23 + $0x169] sm:$0xff] }
  0x1b   : > { %4556 = vmatmul.mubr.msk.f32.gmra.mxu0 %vm238_vm0, %v5118_v15  ;;  %v5218_v35 = vld [vmem:[%s5059_s23 + $0xb1] sm:$0xff]  ;;  %v171_v37 = vld [vmem:[%s5059_s23] sm:$0xff]  ;;  %v172_v39 = vld [vmem:[%s5059_s23 + $0x8] sm:$0xff] }
  0x1c   : > { %4580 = vmatmul.mubr.msk.f32.gmra.mxu1 %vm238_vm0, %v5121_v16  ;;  %4558 = vmatprep.mubr.msk.f32.mxu0 %vm238_vm0, %v5124_v17  ;;  %v5221_v36 = vld [vmem:[%s5059_s23 + $0x171] sm:$0xff]  ;;  %v881_v38 = vld [vmem:[%s5059_s23 + $0x2] sm:$0xff]  ;;  %v5237_v42 = vld [vmem:[%s5059_s23 + $0x1a] sm:$0xff] }
  0x1d   : > { %4582 = vmatprep.mubr.msk.f32.mxu1 %vm238_vm0, %v5127_v18  ;;  %6615 = vst [vmem:[#allocation2_spill] sm:$0xff] %v5221_v36  ;;  %v882_v40 = vld [vmem:[%s5059_s23 + $0xa] sm:$0xff]  ;;  %v5234_v41 = vld [vmem:[%s5059_s23 + $0x18] sm:$0xff]  ;;  %6616 = vst [vmem:[#allocation3_spill] sm:$0xff] %v5237_v42 }
  0x1e   : > { %v5254_v45 = vld [vmem:[%s5059_s23 + $0x20] sm:$0xff]  ;;  %v5264_v47 = vld [vmem:[%s5059_s23 + $0x30] sm:$0xff]  ;;  %v5280_v49 = vld [vmem:[%s5059_s23 + $0x38] sm:$0xff] }
  0x1f   : > { %4559 = vmatmul.mubr.msk.f32.gmra.mxu0 %vm238_vm0, %v5138_v19  ;;  %v5257_v46 = vld [vmem:[%s5059_s23 + $0x22] sm:$0xff]  ;;  %v5267_v48 = vld [vmem:[%s5059_s23 + $0x32] sm:$0xff]  ;;  %v5283_v50 = vld [vmem:[%s5059_s23 + $0x3a] sm:$0xff] }
  0x20   : > { %4583 = vmatmul.mubr.msk.f32.gmra.mxu1 %vm238_vm0, %v5141_v20  ;;  %4561 = vmatprep.mubr.msk.f32.mxu0 %vm238_vm0, %v5144_v21  ;;  %6617 = vst [vmem:[#allocation4_spill] sm:$0xff] %v5257_v46  ;;  %6618 = vst [vmem:[#allocation5_spill] sm:$0xff] %v5267_v48  ;;  %v5286_v51 = vld [vmem:[%s5059_s23 + $0x48] sm:$0xff]  ;;  %v5300_v53 = vld [vmem:[%s5059_s23 + $0x50] sm:$0xff] }
  0x21   : > { %4585 = vmatprep.mubr.msk.f32.mxu1 %vm238_vm0, %v5147_v22  ;;  %6619 = vst [vmem:[#allocation6_spill] sm:$0xff] %v5283_v50  ;;  %v5289_v52 = vld [vmem:[%s5059_s23 + $0x4a] sm:$0xff]  ;;  %v5303_v54 = vld [vmem:[%s5059_s23 + $0x52] sm:$0xff]  ;;  %v5306_v55 = vld [vmem:[%s5059_s23 + $0x60] sm:$0xff] }
  0x22   : > { %6620 = vst [vmem:[#allocation7_spill] sm:$0xff] %v5289_v52  ;;  %6621 = vst [vmem:[#allocation8_spill] sm:$0xff] %v5303_v54  ;;  %v5309_v56 = vld [vmem:[%s5059_s23 + $0x62] sm:$0xff]  ;;  %v5323_v58 = vld [vmem:[%s5059_s23 + $0x6a] sm:$0xff] }
  0x23   : > { %4562 = vmatmul.mubr.msk.f32.gmra.mxu0 %vm238_vm0, %v5158_v23  ;;  %6622 = vst [vmem:[#allocation9_spill] sm:$0xff] %v5309_v56  ;;  %v5320_v57 = vld [vmem:[%s5059_s23 + $0x68] sm:$0xff]  ;;  %6623 = vst [vmem:[#allocation10_spill] sm:$0xff] %v5323_v58  ;;  %v5326_v59 = vld [vmem:[%s5059_s23 + $0x78] sm:$0xff] }
  0x24   : > { %4586 = vmatmul.mubr.msk.f32.gmra.mxu1 %vm238_vm0, %v5161_v24  ;;  %4564 = vmatprep.mubr.msk.f32.mxu0 %vm238_vm0, %v5164_v25  ;;  %v5329_v60 = vld [vmem:[%s5059_s23 + $0x7a] sm:$0xff]  ;;  %v5343_v62 = vld [vmem:[%s5059_s23 + $0x82] sm:$0xff]  ;;  %v5346_v63 = vld [vmem:[%s5059_s23 + $0x90] sm:$0xff] }
  0x25   : > { %4588 = vmatprep.mubr.msk.f32.mxu1 %vm238_vm0, %v5167_v26  ;;  %6624 = vst [vmem:[#allocation11_spill] sm:$0xff] %v5329_v60  ;;  %v5340_v61 = vld [vmem:[%s5059_s23 + $0x80] sm:$0xff]  ;;  %6625 = vst [vmem:[#allocation12_spill] sm:$0xff] %v5343_v62  ;;  %v5349_v0 = vld [vmem:[%s5059_s23 + $0x92] sm:$0xff] }
  0x26   : > { %6626 = vst [vmem:[#allocation13_spill] sm:$0xff] %v5349_v0  ;;  %v5360_v1 = vld [vmem:[%s5059_s23 + $0x98] sm:$0xff]  ;;  %v5366_v3 = vld [vmem:[%s5059_s23 + $0xa8] sm:$0xff] }
  0x27   : > { %4565 = vmatmul.mubr.msk.f32.gmra.mxu0 %vm238_vm0, %v5178_v27  ;;  %v5363_v2 = vld [vmem:[%s5059_s23 + $0x9a] sm:$0xff]  ;;  %v5369_v5 = vld [vmem:[%s5059_s23 + $0xaa] sm:$0xff] }
  0x28   : > { %4589 = vmatmul.mubr.msk.f32.gmra.mxu1 %vm238_vm0, %v5181_v28  ;;  %4567 = vmatprep.mubr.msk.f32.mxu0 %vm238_vm0, %v5184_v29  ;;  %6627 = vst [vmem:[#allocation14_spill] sm:$0xff] %v5363_v2  ;;  %6628 = vst [vmem:[#allocation15_spill] sm:$0xff] %v5369_v5 }
  0x29   : > { %4591 = vmatprep.mubr.msk.f32.mxu1 %vm238_vm0, %v5187_v30 }
  0x2b   : > { %4568 = vmatmul.mubr.msk.f32.gmra.mxu0 %vm238_vm0, %v5198_v31 }
  0x2c   : > { %4592 = vmatmul.mubr.msk.f32.gmra.mxu1 %vm238_vm0, %v5201_v32  ;;  %4570 = vmatprep.mubr.msk.f32.mxu0 %vm238_vm0, %v5204_v33 }
  0x2d   : > { %4594 = vmatprep.mubr.msk.f32.mxu1 %vm238_vm0, %v5207_v34 }
  0x2f   : > { %4571 = vmatmul.mubr.msk.f32.gmra.mxu0 %vm238_vm0, %v5218_v35 }
  0x30   : > { %4595 = vmatmul.mubr.msk.f32.gmra.mxu1 %vm238_vm0, %v5221_v36  ;;  %4649 = vmatprep.mubr.msk.f32.mxu0 %vm238_vm0, %v881_v38  ;;  %v5389_v38 = vld [vmem:[%s5059_s23 + $0xc2] sm:$0xff]  ;;  %v5529_v36 = vld [vmem:[%s5059_s23 + $0x16a] sm:$0xff] }
  0x31   : > { %4599 = vmatprep.mubr.msk.f32.mxu1 %vm238_vm0, %v171_v37  ;;  %v5386_v37 = vld [vmem:[%s5059_s23 + $0xc0] sm:$0xff]  ;;  %6630 = vst [vmem:[#allocation17_spill] sm:$0xff] %v5389_v38  ;;  %6644 = vst [vmem:[#allocation31_spill] sm:$0xff] %v5529_v36 }
  0x33   : > { %4650 = vmatmul.mubr.msk.f32.vlgmr.msra.gmra.mxu0 %vm238_vm0, %v882_v40  ;;  %v5403_v40 = vld [vmem:[%s5059_s23 + $0xca] sm:$0xff] }
  0x34   : > { %4600 = vmatmul.mubr.msk.f32.vlgmr.msra.gmra.mxu1 %vm238_vm0, %v172_v39  ;;  %4748 = vmatpush3.msra.mxu0 %v5089_v10  ;;  %v5383_v10 = vld [vmem:[%s5059_s23 + $0xb2] sm:$0xff]  ;;  %v5400_v39 = vld [vmem:[%s5059_s23 + $0xc8] sm:$0xff]  ;;  %6631 = vst [vmem:[#allocation18_spill] sm:$0xff] %v5403_v40 }
  0x35   : > { %4698 = vmatpush3.msra.mxu1 %v5084_v9  ;;  %4602 = vmatprep.mubr.msk.f32.mxu1 %vm238_vm0, %v5234_v41  ;;  %v5380_v9 = vld [vmem:[%s5059_s23 + $0xb0] sm:$0xff]  ;;  %6629 = vst [vmem:[#allocation16_spill] sm:$0xff] %v5383_v10 }
  0x36   : > { %4652 = vmatprep.mubr.msk.f32.mxu0 %vm238_vm0, %v5237_v42  ;;  %4797 = vmatprep.subr.mxu1 %v5244_v43  ;;  %v5526_v42 = vld [vmem:[%s5059_s23 + $0x168] sm:$0xff] }
  0x37   : > { %4847 = vmatprep.subr.mxu0 %v5249_v44  ;;  %4653 = vmatmul.mubr.msk.f32.gmra.mxu0 %vm238_vm0, %v5257_v46  ;;  %v5509_v46 = vld [vmem:[%s5059_s23 + $0x152] sm:$0xff] }
  0x38   : > { %4603 = vmatmul.mubr.msk.f32.gmra.mxu1 %vm238_vm0, %v5254_v45  ;;  %4655 = vmatprep.mubr.msk.f32.mxu0 %vm238_vm0, %v5267_v48  ;;  %v5506_v48 = vld [vmem:[%s5059_s23 + $0x150] sm:$0xff]  ;;  %6642 = vst [vmem:[#allocation29_spill] sm:$0xff] %v5509_v46 }
  0x39   : > { %4605 = vmatprep.mubr.msk.f32.mxu1 %vm238_vm0, %v5264_v47 }
  0x3b   : > { %4656 = vmatmul.mubr.msk.f32.gmra.mxu0 %vm238_vm0, %v5283_v50  ;;  %v5489_v50 = vld [vmem:[%s5059_s23 + $0x13a] sm:$0xff] }
  0x3c   : > { %4606 = vmatmul.mubr.msk.f32.gmra.mxu1 %vm238_vm0, %v5280_v49  ;;  %4658 = vmatprep.mubr.msk.f32.mxu0 %vm238_vm0, %v5289_v52  ;;  %v5486_v52 = vld [vmem:[%s5059_s23 + $0x138] sm:$0xff]  ;;  %6640 = vst [vmem:[#allocation27_spill] sm:$0xff] %v5489_v50 }
  0x3d   : > { %4608 = vmatprep.mubr.msk.f32.mxu1 %vm238_vm0, %v5286_v51 }
  0x3f   : > { %4659 = vmatmul.mubr.msk.f32.gmra.mxu0 %vm238_vm0, %v5303_v54  ;;  %v5469_v54 = vld [vmem:[%s5059_s23 + $0x122] sm:$0xff] }
  0x40   : > { %4609 = vmatmul.mubr.msk.f32.gmra.mxu1 %vm238_vm0, %v5300_v53  ;;  %4661 = vmatprep.mubr.msk.f32.mxu0 %vm238_vm0, %v5309_v56  ;;  %v5466_v56 = vld [vmem:[%s5059_s23 + $0x120] sm:$0xff]  ;;  %6638 = vst [vmem:[#allocation25_spill] sm:$0xff] %v5469_v54 }
  0x41   : > { %4611 = vmatprep.mubr.msk.f32.mxu1 %vm238_vm0, %v5306_v55 }
  0x43   : > { %4662 = vmatmul.mubr.msk.f32.gmra.mxu0 %vm238_vm0, %v5323_v58  ;;  %v5449_v58 = vld [vmem:[%s5059_s23 + $0x10a] sm:$0xff] }
  0x44   : > { %4612 = vmatmul.mubr.msk.f32.gmra.mxu1 %vm238_vm0, %v5320_v57  ;;  %4664 = vmatprep.mubr.msk.f32.mxu0 %vm238_vm0, %v5329_v60  ;;  %v5446_v60 = vld [vmem:[%s5059_s23 + $0x108] sm:$0xff]  ;;  %6636 = vst [vmem:[#allocation23_spill] sm:$0xff] %v5449_v58 }
  0x45   : > { %4614 = vmatprep.mubr.msk.f32.mxu1 %vm238_vm0, %v5326_v59 }
  0x47   : > { %4665 = vmatmul.mubr.msk.f32.gmra.mxu0 %vm238_vm0, %v5343_v62  ;;  %v5429_v62 = vld [vmem:[%s5059_s23 + $0xf2] sm:$0xff] }
  0x48   : > { %4615 = vmatmul.mubr.msk.f32.gmra.mxu1 %vm238_vm0, %v5340_v61  ;;  %4667 = vmatprep.mubr.msk.f32.mxu0 %vm238_vm0, %v5349_v0  ;;  %v5426_v0 = vld [vmem:[%s5059_s23 + $0xf0] sm:$0xff]  ;;  %6634 = vst [vmem:[#allocation21_spill] sm:$0xff] %v5429_v62 }
  0x49   : > { %4617 = vmatprep.mubr.msk.f32.mxu1 %vm238_vm0, %v5346_v63 }
  0x4b   : > { %4668 = vmatmul.mubr.msk.f32.gmra.mxu0 %vm238_vm0, %v5363_v2  ;;  %v5409_v2 = vld [vmem:[%s5059_s23 + $0xda] sm:$0xff] }
  0x4c   : > { %4618 = vmatmul.mubr.msk.f32.gmra.mxu1 %vm238_vm0, %v5360_v1  ;;  %4670 = vmatprep.mubr.msk.f32.mxu0 %vm238_vm0, %v5369_v5  ;;  %v5406_v5 = vld [vmem:[%s5059_s23 + $0xd8] sm:$0xff]  ;;  %6632 = vst [vmem:[#allocation19_spill] sm:$0xff] %v5409_v2 }
  0x4d   : > { %4620 = vmatprep.mubr.msk.f32.mxu1 %vm238_vm0, %v5366_v3 }
  0x4f   : > { %4671 = vmatmul.mubr.msk.f32.gmra.mxu0 %vm238_vm0, %v5383_v10  ;;  %v5423_v10 = vld [vmem:[%s5059_s23 + $0xe2] sm:$0xff] }
  0x50   : > { %4621 = vmatmul.mubr.msk.f32.gmra.mxu1 %vm238_vm0, %v5380_v9  ;;  %4673 = vmatprep.mubr.msk.f32.mxu0 %vm238_vm0, %v5389_v38  ;;  %v5420_v38 = vld [vmem:[%s5059_s23 + $0xe0] sm:$0xff]  ;;  %6633 = vst [vmem:[#allocation20_spill] sm:$0xff] %v5423_v10 }
  0x51   : > { %4623 = vmatprep.mubr.msk.f32.mxu1 %vm238_vm0, %v5386_v37 }
  0x53   : > { %4674 = vmatmul.mubr.msk.f32.gmra.mxu0 %vm238_vm0, %v5403_v40  ;;  %v5443_v40 = vld [vmem:[%s5059_s23 + $0xfa] sm:$0xff] }
  0x54   : > { %4624 = vmatmul.mubr.msk.f32.gmra.mxu1 %vm238_vm0, %v5400_v39  ;;  %4676 = vmatprep.mubr.msk.f32.mxu0 %vm238_vm0, %v5409_v2  ;;  %v5440_v2 = vld [vmem:[%s5059_s23 + $0xf8] sm:$0xff]  ;;  %6635 = vst [vmem:[#allocation22_spill] sm:$0xff] %v5443_v40 }
  0x55   : > { %4626 = vmatprep.mubr.msk.f32.mxu1 %vm238_vm0, %v5406_v5 }
  0x57   : > { %4677 = vmatmul.mubr.msk.f32.gmra.mxu0 %vm238_vm0, %v5423_v10  ;;  %v5463_v10 = vld [vmem:[%s5059_s23 + $0x112] sm:$0xff] }
  0x58   : > { %4627 = vmatmul.mubr.msk.f32.gmra.mxu1 %vm238_vm0, %v5420_v38  ;;  %4679 = vmatprep.mubr.msk.f32.mxu0 %vm238_vm0, %v5429_v62  ;;  %v5460_v62 = vld [vmem:[%s5059_s23 + $0x110] sm:$0xff]  ;;  %6637 = vst [vmem:[#allocation24_spill] sm:$0xff] %v5463_v10 }
  0x59   : > { %4629 = vmatprep.mubr.msk.f32.mxu1 %vm238_vm0, %v5426_v0 }
  0x5b   : > { %4680 = vmatmul.mubr.msk.f32.gmra.mxu0 %vm238_vm0, %v5443_v40  ;;  %v5483_v40 = vld [vmem:[%s5059_s23 + $0x12a] sm:$0xff] }
  0x5c   : > { %4630 = vmatmul.mubr.msk.f32.gmra.mxu1 %vm238_vm0, %v5440_v2  ;;  %4682 = vmatprep.mubr.msk.f32.mxu0 %vm238_vm0, %v5449_v58  ;;  %v5480_v58 = vld [vmem:[%s5059_s23 + $0x128] sm:$0xff]  ;;  %6639 = vst [vmem:[#allocation26_spill] sm:$0xff] %v5483_v40 }
  0x5d   : > { %4632 = vmatprep.mubr.msk.f32.mxu1 %vm238_vm0, %v5446_v60 }
  0x5f   : > { %4683 = vmatmul.mubr.msk.f32.gmra.mxu0 %vm238_vm0, %v5463_v10  ;;  %v5503_v10 = vld [vmem:[%s5059_s23 + $0x142] sm:$0xff] }
  0x60   : > { %4633 = vmatmul.mubr.msk.f32.gmra.mxu1 %vm238_vm0, %v5460_v62  ;;  %4685 = vmatprep.mubr.msk.f32.mxu0 %vm238_vm0, %v5469_v54  ;;  %v5500_v54 = vld [vmem:[%s5059_s23 + $0x140] sm:$0xff]  ;;  %6641 = vst [vmem:[#allocation28_spill] sm:$0xff] %v5503_v10 }
  0x61   : > { %4635 = vmatprep.mubr.msk.f32.mxu1 %vm238_vm0, %v5466_v56 }
  0x63   : > { %4686 = vmatmul.mubr.msk.f32.gmra.mxu0 %vm238_vm0, %v5483_v40  ;;  %v5523_v40 = vld [vmem:[%s5059_s23 + $0x15a] sm:$0xff] }
  0x64   : > { %4636 = vmatmul.mubr.msk.f32.gmra.mxu1 %vm238_vm0, %v5480_v58  ;;  %4688 = vmatprep.mubr.msk.f32.mxu0 %vm238_vm0, %v5489_v50  ;;  %v5520_v50 = vld [vmem:[%s5059_s23 + $0x158] sm:$0xff]  ;;  %6643 = vst [vmem:[#allocation30_spill] sm:$0xff] %v5523_v40 }
  0x65   : > { %4638 = vmatprep.mubr.msk.f32.mxu1 %vm238_vm0, %v5486_v52 }
  0x67   : > { %4689 = vmatmul.mubr.msk.f32.gmra.mxu0 %vm238_vm0, %v5503_v10  ;;  %v5543_v10 = vld [vmem:[%s5059_s23 + $0x172] sm:$0xff] }
  0x68   : > { %4639 = vmatmul.mubr.msk.f32.gmra.mxu1 %vm238_vm0, %v5500_v54  ;;  %4691 = vmatprep.mubr.msk.f32.mxu0 %vm238_vm0, %v5509_v46  ;;  %v5540_v46 = vld [vmem:[%s5059_s23 + $0x170] sm:$0xff]  ;;  %6645 = vst [vmem:[#allocation32_spill] sm:$0xff] %v5543_v10 }
  0x69   : > { %4641 = vmatprep.mubr.msk.f32.mxu1 %vm238_vm0, %v5506_v48 }
  0x6b   : > { %4692 = vmatmul.mubr.msk.f32.gmra.mxu0 %vm238_vm0, %v5523_v40 }
  0x6c   : > { %4642 = vmatmul.mubr.msk.f32.gmra.mxu1 %vm238_vm0, %v5520_v50  ;;  %4694 = vmatprep.mubr.msk.f32.mxu0 %vm238_vm0, %v5529_v36  ;;  %v5560_v36 = vld [vmem:[%s6552_s1 + $0x38] sm:$0xff] }
  0x6d   : > { %4644 = vmatprep.mubr.msk.f32.mxu1 %vm238_vm0, %v5526_v42 }
  0x6f   : > { %4695 = vmatmul.mubr.msk.f32.gmra.mxu0 %vm238_vm0, %v5543_v10  ;;  %v5565_v10 = vld [vmem:[%s6552_s1 + $0x40] sm:$0xff] }
  0x70   : > { %4645 = vmatmul.mubr.msk.f32.gmra.mxu1 %vm238_vm0, %v5540_v46  ;;  %4749 = vmatprep.mubr.msk.f32.mxu0 %vm238_vm0, %v5073_v7  ;;  %v6647_v7 = vld [vmem:[#allocation2_spill] sm:$0xff] }
  0x71   : > { %4699 = vmatprep.mubr.msk.f32.mxu1 %vm238_vm0, %v5234_v41 }
  0x73   : > { %4750 = vmatmul.mubr.msk.f32.vlgmr.msra.gmra.mxu0 %vm238_vm0, %v5092_v11  ;;  %v5697_v11 = vld [vmem:[%s5059_s23 + $0x189] sm:$0xff] }
  0x74   : > { %4700 = vmatmul.mubr.msk.f32.vlgmr.msra.gmra.mxu1 %vm238_vm0, %v5254_v45  ;;  %4848 = vmatpush3.msra.mxu0 %v5249_v44  ;;  %6648 = vst [vmem:[#allocation2_spill] sm:$0xff] %v5697_v11  ;;  %v6666_v44 = vld [vmem:[#allocation20_spill] sm:$0xff]  ;;  %v6667_v45 = vld [vmem:[#allocation21_spill] sm:$0xff] }
  0x75   : > { %4798 = vmatpush3.msra.mxu1 %v5244_v43  ;;  %4702 = vmatprep.mubr.msk.f32.mxu1 %vm238_vm0, %v5264_v47 }
  0x76   : > { %4752 = vmatprep.mubr.msk.f32.mxu0 %vm238_vm0, %v5102_v13  ;;  %4897 = vmatprep.subr.mxu1 %v5560_v36 }
  0x77   : > { %4947 = vmatprep.subr.mxu0 %v5565_v10  ;;  %4753 = vmatmul.mubr.msk.f32.gmra.mxu0 %vm238_vm0, %v5118_v15 }
  0x78   : > { %4703 = vmatmul.mubr.msk.f32.gmra.mxu1 %vm238_vm0, %v5280_v49  ;;  %4755 = vmatprep.mubr.msk.f32.mxu0 %vm238_vm0, %v5124_v17 }
  0x79   : > { %4705 = vmatprep.mubr.msk.f32.mxu1 %vm238_vm0, %v5286_v51 }
  0x7b   : > { %4756 = vmatmul.mubr.msk.f32.gmra.mxu0 %vm238_vm0, %v5138_v19 }
  0x7c   : > { %4706 = vmatmul.mubr.msk.f32.gmra.mxu1 %vm238_vm0, %v5300_v53  ;;  %4758 = vmatprep.mubr.msk.f32.mxu0 %vm238_vm0, %v5144_v21 }
  0x7d   : > { %4708 = vmatprep.mubr.msk.f32.mxu1 %vm238_vm0, %v5306_v55 }
  0x7f   : > { %4759 = vmatmul.mubr.msk.f32.gmra.mxu0 %vm238_vm0, %v5158_v23 }
  0x80   : > { %4709 = vmatmul.mubr.msk.f32.gmra.mxu1 %vm238_vm0, %v5320_v57  ;;  %4761 = vmatprep.mubr.msk.f32.mxu0 %vm238_vm0, %v5164_v25 }
  0x81   : > { %4711 = vmatprep.mubr.msk.f32.mxu1 %vm238_vm0, %v5326_v59 }
  0x83   : > { %4762 = vmatmul.mubr.msk.f32.gmra.mxu0 %vm238_vm0, %v5178_v27 }
  0x84   : > { %4712 = vmatmul.mubr.msk.f32.gmra.mxu1 %vm238_vm0, %v5340_v61  ;;  %4764 = vmatprep.mubr.msk.f32.mxu0 %vm238_vm0, %v5184_v29  ;;  %v6658_v29 = vld [vmem:[#allocation12_spill] sm:$0xff] }
  0x85   : > { %4714 = vmatprep.mubr.msk.f32.mxu1 %vm238_vm0, %v5346_v63 }
  0x87   : > { %4765 = vmatmul.mubr.msk.f32.gmra.mxu0 %vm238_vm0, %v5198_v31  ;;  %v6660_v31 = vld [vmem:[#allocation14_spill] sm:$0xff] }
  0x88   : > { %4715 = vmatmul.mubr.msk.f32.gmra.mxu1 %vm238_vm0, %v5360_v1  ;;  %4767 = vmatprep.mubr.msk.f32.mxu0 %vm238_vm0, %v5204_v33  ;;  %v6662_v33 = vld [vmem:[#allocation16_spill] sm:$0xff] }
  0x89   : > { %4717 = vmatprep.mubr.msk.f32.mxu1 %vm238_vm0, %v5366_v3 }
  0x8b   : > { %4768 = vmatmul.mubr.msk.f32.gmra.mxu0 %vm238_vm0, %v5218_v35  ;;  %v6664_v35 = vld [vmem:[#allocation18_spill] sm:$0xff] }
  0x8c   : > { %4718 = vmatmul.mubr.msk.f32.gmra.mxu1 %vm238_vm0, %v5380_v9  ;;  %4770 = vmatprep.mubr.msk.f32.mxu0 %vm238_vm0, %v5063_v4  ;;  %v5680_v4 = vld [vmem:[%s5059_s23 + $0x180] sm:$0xff] }
  0x8d   : > { %4720 = vmatprep.mubr.msk.f32.mxu1 %vm238_vm0, %v5386_v37 }
  0x8f   : > { %4771 = vmatmul.mubr.msk.f32.gmra.mxu0 %vm238_vm0, %v5070_v6  ;;  %v5683_v6 = vld [vmem:[%s5059_s23 + $0x181] sm:$0xff] }
  0x90   : > { %4721 = vmatmul.mubr.msk.f32.gmra.mxu1 %vm238_vm0, %v5400_v39  ;;  %4773 = vmatprep.mubr.msk.f32.mxu0 %vm238_vm0, %v5076_v8  ;;  %6646 = vst [vmem:[#allocation33_spill] sm:$0xff] %v5683_v6  ;;  %v5694_v8 = vld [vmem:[%s5059_s23 + $0x188] sm:$0xff] }
  0x91   : > { %4723 = vmatprep.mubr.msk.f32.mxu1 %vm238_vm0, %v5406_v5 }
  0x93   : > { %4774 = vmatmul.mubr.msk.f32.gmra.mxu0 %vm238_vm0, %v5095_v12  ;;  %v6649_v12 = vld [vmem:[#allocation3_spill] sm:$0xff] }
  0x94   : > { %4724 = vmatmul.mubr.msk.f32.gmra.mxu1 %vm238_vm0, %v5420_v38  ;;  %4776 = vmatprep.mubr.msk.f32.mxu0 %vm238_vm0, %v5105_v14  ;;  %v6650_v14 = vld [vmem:[#allocation4_spill] sm:$0xff] }
  0x95   : > { %4726 = vmatprep.mubr.msk.f32.mxu1 %vm238_vm0, %v5426_v0 }
  0x97   : > { %4777 = vmatmul.mubr.msk.f32.gmra.mxu0 %vm238_vm0, %v5121_v16  ;;  %v6651_v16 = vld [vmem:[#allocation5_spill] sm:$0xff] }
  0x98   : > { %4727 = vmatmul.mubr.msk.f32.gmra.mxu1 %vm238_vm0, %v5440_v2  ;;  %4779 = vmatprep.mubr.msk.f32.mxu0 %vm238_vm0, %v5127_v18  ;;  %v6652_v18 = vld [vmem:[#allocation6_spill] sm:$0xff] }
  0x99   : > { %4729 = vmatprep.mubr.msk.f32.mxu1 %vm238_vm0, %v5446_v60 }
  0x9b   : > { %4780 = vmatmul.mubr.msk.f32.gmra.mxu0 %vm238_vm0, %v5141_v20  ;;  %v6653_v20 = vld [vmem:[#allocation7_spill] sm:$0xff] }
  0x9c   : > { %4730 = vmatmul.mubr.msk.f32.gmra.mxu1 %vm238_vm0, %v5460_v62  ;;  %4782 = vmatprep.mubr.msk.f32.mxu0 %vm238_vm0, %v5147_v22  ;;  %v6654_v22 = vld [vmem:[#allocation8_spill] sm:$0xff] }
  0x9d   : > { %4732 = vmatprep.mubr.msk.f32.mxu1 %vm238_vm0, %v5466_v56 }
  0x9f   : > { %4783 = vmatmul.mubr.msk.f32.gmra.mxu0 %vm238_vm0, %v5161_v24  ;;  %v6655_v24 = vld [vmem:[#allocation9_spill] sm:$0xff] }
  0xa0   : > { %4733 = vmatmul.mubr.msk.f32.gmra.mxu1 %vm238_vm0, %v5480_v58  ;;  %4785 = vmatprep.mubr.msk.f32.mxu0 %vm238_vm0, %v5167_v26  ;;  %v6656_v26 = vld [vmem:[#allocation10_spill] sm:$0xff] }
  0xa1   : > { %4735 = vmatprep.mubr.msk.f32.mxu1 %vm238_vm0, %v5486_v52 }
  0xa3   : > { %4786 = vmatmul.mubr.msk.f32.gmra.mxu0 %vm238_vm0, %v5181_v28  ;;  %v6657_v28 = vld [vmem:[#allocation11_spill] sm:$0xff] }
  0xa4   : > { %4736 = vmatmul.mubr.msk.f32.gmra.mxu1 %vm238_vm0, %v5500_v54  ;;  %4788 = vmatprep.mubr.msk.f32.mxu0 %vm238_vm0, %v5187_v30  ;;  %v6659_v30 = vld [vmem:[#allocation13_spill] sm:$0xff] }
  0xa5   : > { %4738 = vmatprep.mubr.msk.f32.mxu1 %vm238_vm0, %v5506_v48 }
  0xa7   : > { %4789 = vmatmul.mubr.msk.f32.gmra.mxu0 %vm238_vm0, %v5201_v32  ;;  %v6661_v32 = vld [vmem:[#allocation15_spill] sm:$0xff] }
  0xa8   : > { %4739 = vmatmul.mubr.msk.f32.gmra.mxu1 %vm238_vm0, %v5520_v50  ;;  %4791 = vmatprep.mubr.msk.f32.mxu0 %vm238_vm0, %v5207_v34  ;;  %v6663_v34 = vld [vmem:[#allocation17_spill] sm:$0xff] }
  0xa9   : > { %4741 = vmatprep.mubr.msk.f32.mxu1 %vm238_vm0, %v5526_v42 }
  0xab   : > { %4792 = vmatmul.mubr.msk.f32.gmra.mxu0 %vm238_vm0, %v6647_v7 }
  0xac   : > { %4742 = vmatmul.mubr.msk.f32.gmra.mxu1 %vm238_vm0, %v5540_v46  ;;  %4794 = vmatprep.mubr.msk.f32.mxu0 %vm238_vm0, %v5683_v6  ;;  %v4081_v6 = vld [vmem:[%s5059_s23 + $0x198] sm:$0xff] }
  0xad   : > { %4744 = vmatprep.mubr.msk.f32.mxu1 %vm238_vm0, %v5680_v4 }
  0xaf   : > { %4795 = vmatmul.mubr.msk.f32.gmra.mxu0 %vm238_vm0, %v5697_v11  ;;  %v5870_v11 = vld [vmem:[%s5059_s23 + $0x182] sm:$0xff] }
  0xb0   : > { %4745 = vmatmul.mubr.msk.f32.gmra.mxu1 %vm238_vm0, %v5694_v8  ;;  %4849 = vmatprep.mubr.msk.f32.mxu0 %vm238_vm0, %v5264_v47  ;;  %6681 = vst [vmem:[#allocation7_spill] sm:$0xff] %v5870_v11 }
  0xb1   : > { %4799 = vmatprep.mubr.msk.f32.mxu1 %vm238_vm0, %v6649_v12 }
  0xb3   : > { %4850 = vmatmul.mubr.msk.f32.vlgmr.msra.gmra.mxu0 %vm238_vm0, %v5280_v49 }
  0xb4   : > { %4800 = vmatmul.mubr.msk.f32.vlgmr.msra.gmra.mxu1 %vm238_vm0, %v6650_v14  ;;  %4948 = vmatpush3.msra.mxu0 %v5565_v10 }
  0xb5   : > { %4898 = vmatpush3.msra.mxu1 %v5560_v36  ;;  %4802 = vmatprep.mubr.msk.f32.mxu1 %vm238_vm0, %v6651_v16  ;;  %v6665_v36 = vld [vmem:[#allocation19_spill] sm:$0xff] }
  0xb6   : > { %4852 = vmatprep.mubr.msk.f32.mxu0 %vm238_vm0, %v5286_v51 }
  0xb7   : > { %4853 = vmatmul.mubr.msk.f32.gmra.mxu0 %vm238_vm0, %v5300_v53 }
  0xb8   : > { %4803 = vmatmul.mubr.msk.f32.gmra.mxu1 %vm238_vm0, %v6652_v18  ;;  %4855 = vmatprep.mubr.msk.f32.mxu0 %vm238_vm0, %v5306_v55  ;;  %v6668_v55 = vld [vmem:[#allocation22_spill] sm:$0xff] }
  0xb9   : > { %4805 = vmatprep.mubr.msk.f32.mxu1 %vm238_vm0, %v6653_v20 }
  0xbb   : > { %4856 = vmatmul.mubr.msk.f32.gmra.mxu0 %vm238_vm0, %v5320_v57  ;;  %v6669_v57 = vld [vmem:[#allocation23_spill] sm:$0xff] }
  0xbc   : > { %4806 = vmatmul.mubr.msk.f32.gmra.mxu1 %vm238_vm0, %v6654_v22  ;;  %4858 = vmatprep.mubr.msk.f32.mxu0 %vm238_vm0, %v5326_v59 }
  0xbd   : > { %4808 = vmatprep.mubr.msk.f32.mxu1 %vm238_vm0, %v6655_v24 }
  0xbf   : > { %4859 = vmatmul.mubr.msk.f32.gmra.mxu0 %vm238_vm0, %v5340_v61 }
  0xc0   : > { %4809 = vmatmul.mubr.msk.f32.gmra.mxu1 %vm238_vm0, %v6656_v26  ;;  %4861 = vmatprep.mubr.msk.f32.mxu0 %vm238_vm0, %v5346_v63 }
  0xc1   : > { %4811 = vmatprep.mubr.msk.f32.mxu1 %vm238_vm0, %v6657_v28 }
  0xc3   : > { %4862 = vmatmul.mubr.msk.f32.gmra.mxu0 %vm238_vm0, %v5360_v1 }
  0xc4   : > { %4812 = vmatmul.mubr.msk.f32.gmra.mxu1 %vm238_vm0, %v6658_v29  ;;  %4864 = vmatprep.mubr.msk.f32.mxu0 %vm238_vm0, %v5366_v3 }
  0xc5   : > { %4814 = vmatprep.mubr.msk.f32.mxu1 %vm238_vm0, %v6659_v30 }
  0xc7   : > { %4865 = vmatmul.mubr.msk.f32.gmra.mxu0 %vm238_vm0, %v5380_v9 }
  0xc8   : > { %4815 = vmatmul.mubr.msk.f32.gmra.mxu1 %vm238_vm0, %v6660_v31  ;;  %4867 = vmatprep.mubr.msk.f32.mxu0 %vm238_vm0, %v5386_v37 }
  0xc9   : > { %4817 = vmatprep.mubr.msk.f32.mxu1 %vm238_vm0, %v6661_v32 }
  0xcb   : > { %4868 = vmatmul.mubr.msk.f32.gmra.mxu0 %vm238_vm0, %v5400_v39 }
  0xcc   : > { %4818 = vmatmul.mubr.msk.f32.gmra.mxu1 %vm238_vm0, %v6662_v33  ;;  %4870 = vmatprep.mubr.msk.f32.mxu0 %vm238_vm0, %v5406_v5  ;;  %v6672_v5 = vld [vmem:[#allocation26_spill] sm:$0xff] }
  0xcd   : > { %4820 = vmatprep.mubr.msk.f32.mxu1 %vm238_vm0, %v6663_v34 }
  0xcf   : > { %4871 = vmatmul.mubr.msk.f32.gmra.mxu0 %vm238_vm0, %v5420_v38  ;;  %v6675_v38 = vld [vmem:[#allocation28_spill] sm:$0xff] }
  0xd0   : > { %4821 = vmatmul.mubr.msk.f32.gmra.mxu1 %vm238_vm0, %v6664_v35  ;;  %4873 = vmatprep.mubr.msk.f32.mxu0 %vm238_vm0, %v5426_v0  ;;  %v6670_v0 = vld [vmem:[#allocation24_spill] sm:$0xff] }
  0xd1   : > { %4823 = vmatprep.mubr.msk.f32.mxu1 %vm238_vm0, %v6665_v36 }
  0xd3   : > { %v5773_v41 = vpop.f32.mrf.mxu0  ;;  %4874 = vmatmul.mubr.msk.f32.gmra.mxu0 %vm238_vm0, %v5440_v2 }
  0xd4   : > { %v5775_v43 = vpop.f32.mrf.mxu1  ;;  %4824 = vmatmul.mubr.msk.f32.gmra.mxu1 %vm238_vm0, %v6666_v44  ;;  %4876 = vmatprep.mubr.msk.f32.mxu0 %vm238_vm0, %v5446_v60 }
  0xd5   : > { %4826 = vmatprep.mubr.msk.f32.mxu1 %vm238_vm0, %v6667_v45  ;;  %v5785_v47 = vpop.f32.mrf.mxu0 }
  0xd6   : > { %v5787_v49 = vpop.f32.mrf.mxu1 }
  0xd7   : > { %v5789_v51 = vpop.f32.mrf.mxu0  ;;  %4877 = vmatmul.mubr.msk.f32.gmra.mxu0 %vm238_vm0, %v5460_v62  ;;  %v6671_v62 = vld [vmem:[#allocation25_spill] sm:$0xff] }
  0xd8   : > { %v5791_v53 = vpop.f32.mrf.mxu1  ;;  %4827 = vmatmul.mubr.msk.f32.gmra.mxu1 %vm238_vm0, %v6668_v55  ;;  %4879 = vmatprep.mubr.msk.f32.mxu0 %vm238_vm0, %v5466_v56 }
  0xd9   : > { %4829 = vmatprep.mubr.msk.f32.mxu1 %vm238_vm0, %v6669_v57  ;;  %v5801_v59 = vpop.f32.mrf.mxu0 }
  0xda   : > { %v5803_v60 = vpop.f32.mrf.mxu1 }
  0xdb   : > { %v5805_v61 = vpop.f32.mrf.mxu0  ;;  %4880 = vmatmul.mubr.msk.f32.gmra.mxu0 %vm238_vm0, %v5480_v58  ;;  %v6673_v58 = vld [vmem:[#allocation27_spill] sm:$0xff] }
  0xdc   : > { %v5807_v63 = vpop.f32.mrf.mxu1  ;;  %4830 = vmatmul.mubr.msk.f32.gmra.mxu1 %vm238_vm0, %v6670_v0  ;;  %4882 = vmatprep.mubr.msk.f32.mxu0 %vm238_vm0, %v5486_v52 }
  0xdd   : > { %4832 = vmatprep.mubr.msk.f32.mxu1 %vm238_vm0, %v6671_v62  ;;  %v5817_v56 = vpop.f32.mrf.mxu0 }
  0xde   : > { %v5819_v1 = vpop.f32.mrf.mxu1 }
  0xdf   : > { %v5821_v2 = vpop.f32.mrf.mxu0  ;;  %4883 = vmatmul.mubr.msk.f32.gmra.mxu0 %vm238_vm0, %v5500_v54  ;;  %v6676_v54 = vld [vmem:[#allocation29_spill] sm:$0xff] }
  0xe0   : > { %v5823_v3 = vpop.f32.mrf.mxu1  ;;  %4833 = vmatmul.mubr.msk.f32.gmra.mxu1 %vm238_vm0, %v6672_v5  ;;  %4885 = vmatprep.mubr.msk.f32.mxu0 %vm238_vm0, %v5506_v48 }
  0xe1   : > { %4835 = vmatprep.mubr.msk.f32.mxu1 %vm238_vm0, %v6673_v58  ;;  %v5833_v52 = vpop.f32.mrf.mxu0 }
  0xe2   : > { %v5835_v9 = vpop.f32.mrf.mxu1 }
  0xe3   : > { %v5837_v10 = vpop.f32.mrf.mxu0  ;;  %4886 = vmatmul.mubr.msk.f32.gmra.mxu0 %vm238_vm0, %v5520_v50  ;;  %v6679_v50 = vld [vmem:[#allocation31_spill] sm:$0xff] }
  0xe4   : > { %v5839_v37 = vpop.f32.mrf.mxu1  ;;  %4836 = vmatmul.mubr.msk.f32.gmra.mxu1 %vm238_vm0, %v6675_v38  ;;  %4888 = vmatprep.mubr.msk.f32.mxu0 %vm238_vm0, %v5526_v42 }
  0xe5   : > { %6674 = vst [vmem:[#allocation3_spill] sm:$0xff] %v5839_v37  ;;  %4838 = vmatprep.mubr.msk.f32.mxu1 %vm238_vm0, %v6676_v54  ;;  %v5849_v48 = vpop.f32.mrf.mxu0  ;;  %v6683_v37 = vld [vmem:[#allocation32_spill] sm:$0xff] }
  0xe6   : > { %v5851_v39 = vpop.f32.mrf.mxu1 }
  0xe7   : > { %6677 = vst [vmem:[#allocation4_spill] sm:$0xff] %v5851_v39  ;;  %v5853_v7 = vpop.f32.mrf.mxu0  ;;  %4889 = vmatmul.mubr.msk.f32.gmra.mxu0 %vm238_vm0, %v5540_v46  ;;  %v5885_v46 = vld [vmem:[%s5059_s23 + $0x18a] sm:$0xff] }
  0xe8   : > { %v5855_v12 = vpop.f32.mrf.mxu1  ;;  %4839 = vmatmul.mubr.msk.f32.gmra.mxu1 %vm238_vm0, %v5523_v40  ;;  %4891 = vmatprep.mubr.msk.f32.mxu0 %vm238_vm0, %v5680_v4  ;;  %6684 = vst [vmem:[#allocation9_spill] sm:$0xff] %v5885_v46  ;;  %v4082_v4 = vld [vmem:[%s5059_s23 + $0x1a0] sm:$0xff] }
  0xe9   : > { %6678 = vst [vmem:[#allocation5_spill] sm:$0xff] %v5855_v12  ;;  %4841 = vmatprep.mubr.msk.f32.mxu1 %vm238_vm0, %v6679_v50  ;;  %v5865_v42 = vpop.f32.mrf.mxu0 }
  0xea   : > { %v5867_v14 = vpop.f32.mrf.mxu1 }
  0xeb   : > { %6680 = vst [vmem:[#allocation6_spill] sm:$0xff] %v5867_v14  ;;  %v5873_v12 = vpop.f32.mrf.mxu0  ;;  %4892 = vmatmul.mubr.msk.f32.gmra.mxu0 %vm238_vm0, %v5694_v8 }
  0xec   : > { %v5875_v39 = vpop.f32.mrf.mxu1  ;;  %4842 = vmatmul.mubr.msk.f32.gmra.mxu1 %vm238_vm0, %v6683_v37  ;;  %4894 = vmatprep.mubr.msk.f32.mxu0 %vm238_vm0, %v4081_v6 }
  0xed   : > { %6682 = vst [vmem:[#allocation8_spill] sm:$0xff] %v5875_v39  ;;  %4844 = vmatprep.mubr.msk.f32.mxu1 %vm238_vm0, %v5870_v11  ;;  %v5888_v50 = vpop.f32.mrf.mxu0 }
  0xee   : > { %v5890_v14 = vpop.f32.mrf.mxu1 }
  0xef   : > { %6685 = vst [vmem:[#allocation10_spill] sm:$0xff] %v5890_v14  ;;  %v5892_v40 = vpop.f32.mrf.mxu0  ;;  %4895 = vmatmul.mubr.msk.f32.gmra.mxu0 %vm238_vm0, %v4082_v4 }
  0xf0   : > { %v5894_v39 = vpop.f32.mrf.mxu1  ;;  %4845 = vmatmul.mubr.msk.f32.gmra.mxu1 %vm238_vm0, %v5885_v46  ;;  %4949 = vmatprep.mubr.msk.f32.mxu0 %vm238_vm0, %v6651_v16 }
  0xf1   : > { %6686 = vst [vmem:[#allocation11_spill] sm:$0xff] %v5894_v39  ;;  %4899 = vmatprep.mubr.msk.f32.mxu1 %vm238_vm0, %v5102_v13  ;;  %v5903_v6 = vpop.f32.mrf.mxu0 }
  0xf2   : > { %v5905_v8 = vpop.f32.mrf.mxu1 }
  0xf3   : > { %6687 = vst [vmem:[#allocation12_spill] sm:$0xff] %v5905_v8  ;;  %v4651_v14 = vpop.f32.mrf.mxu0  ;;  %4950 = vmatmul.mubr.msk.f32.vlgmr.msra.gmra.mxu0 %vm238_vm0, %v6652_v18 }
  0xf4   : > { %v4601_v37 = vpop.f32.mrf.mxu1  ;;  %4900 = vmatmul.mubr.msk.f32.vlgmr.msra.gmra.mxu1 %vm238_vm0, %v5118_v15  ;;  %4952 = vmatprep.mubr.msk.f32.mxu0 %vm238_vm0, %v6653_v20 }
  0xf5   : > { %v728_v4 = vadd.f32 %v4601_v37, %v5773_v41  ;;  %4902 = vmatprep.mubr.msk.f32.mxu1 %vm238_vm0, %v5124_v17  ;;  %v1077_v16 = vpop.f32.mrf.mxu0  ;;  %v4126_v37 = vld [vmem:[%s5059_s23 + $0xa9] sm:$0xff] }
  0xf6   : > { %v722_v13 = vpop.f32.mrf.mxu1 }
  0xf7   : > { %v5916_v39 = vadd.f32 %v4651_v14, %v728_v4  ;;  %v723_v8 = vadd.f32 %v722_v13, %v5785_v47  ;;  %v4654_v11 = vpop.f32.mrf.mxu0  ;;  %4953 = vmatmul.mubr.msk.f32.gmra.mxu0 %vm238_vm0, %v6654_v22 }
  0xf8   : > { %v4604_v46 = vpop.f32.mrf.mxu1  ;;  %4903 = vmatmul.mubr.msk.f32.gmra.mxu1 %vm238_vm0, %v5138_v19  ;;  %4955 = vmatprep.mubr.msk.f32.mxu0 %vm238_vm0, %v6655_v24 }
  0xf9   : > { %v5923_v15 = vadd.f32 %v1077_v16, %v723_v8  ;;  %v738_v17 = vadd.f32 %v4604_v46, %v5789_v51  ;;  %4905 = vmatprep.mubr.msk.f32.mxu1 %vm238_vm0, %v5144_v21  ;;  %v1087_v20 = vpop.f32.mrf.mxu0  ;;  %v4124_v51 = vld [vmem:[%s5059_s23 + $0x91] sm:$0xff] }
  0xfa   : > { %v732_v18 = vpop.f32.mrf.mxu1  ;;  %v4127_v16 = vld [vmem:[%s5059_s23 + $0xb1] sm:$0xff] }
  0xfb   : > { %v5930_v41 = vadd.f32 %v4654_v11, %v738_v17  ;;  %v733_v19 = vadd.f32 %v732_v18, %v5801_v59  ;;  %v4657_v14 = vpop.f32.mrf.mxu0  ;;  %4956 = vmatmul.mubr.msk.f32.gmra.mxu0 %vm238_vm0, %v6656_v26  ;;  %v4128_v18 = vld [vmem:[%s5059_s23 + $0xc1] sm:$0xff] }
  0xfc   : > { %v4607_v47 = vpop.f32.mrf.mxu1  ;;  %4906 = vmatmul.mubr.msk.f32.gmra.mxu1 %vm238_vm0, %v5158_v23  ;;  %4958 = vmatprep.mubr.msk.f32.mxu0 %vm238_vm0, %v6657_v28 }
  0xfd   : > { %v5937_v22 = vadd.f32 %v1087_v20, %v733_v19  ;;  %v748_v21 = vadd.f32 %v4607_v47, %v5805_v61  ;;  %4908 = vmatprep.mubr.msk.f32.mxu1 %vm238_vm0, %v5164_v25  ;;  %v1097_v24 = vpop.f32.mrf.mxu0  ;;  %v4125_v61 = vld [vmem:[%s5059_s23 + $0x99] sm:$0xff] }
  0xfe   : > { %v742_v11 = vpop.f32.mrf.mxu1 }
  0xff   : > { %v5945_v59 = vadd.f32 %v4657_v14, %v748_v21  ;;  %v743_v23 = vadd.f32 %v742_v11, %v5817_v56  ;;  %v4660_v46 = vpop.f32.mrf.mxu0  ;;  %4959 = vmatmul.mubr.msk.f32.gmra.mxu0 %vm238_vm0, %v6658_v29  ;;  %v4129_v14 = vld [vmem:[%s5059_s23 + $0xc9] sm:$0xff]  ;;  %v4130_v11 = vld [vmem:[%s5059_s23 + $0xd9] sm:$0xff] }
 0x100   : > { %v4610_v26 = vpop.f32.mrf.mxu1  ;;  %4909 = vmatmul.mubr.msk.f32.gmra.mxu1 %vm238_vm0, %v5178_v27  ;;  %4961 = vmatprep.mubr.msk.f32.mxu0 %vm238_vm0, %v6659_v30 }
 0x101   : > { %v5952_v25 = vadd.f32 %v1097_v24, %v743_v23  ;;  %v758_v28 = vadd.f32 %v4610_v26, %v5821_v2  ;;  %4911 = vmatprep.mubr.msk.f32.mxu1 %vm238_vm0, %v4124_v51  ;;  %v1107_v8 = vpop.f32.mrf.mxu0  ;;  %v4131_v26 = vld [vmem:[%s5059_s23 + $0xe1] sm:$0xff] }
 0x102   : > { %v752_v56 = vpop.f32.mrf.mxu1 }
 0x103   : > { %v5960_v4 = vadd.f32 %v4660_v46, %v758_v28  ;;  %v753_v27 = vadd.f32 %v752_v56, %v5833_v52  ;;  %v4663_v13 = vpop.f32.mrf.mxu0  ;;  %4962 = vmatmul.mubr.msk.f32.gmra.mxu0 %vm238_vm0, %v6660_v31  ;;  %v4132_v28 = vld [vmem:[%s5059_s23 + $0xf1] sm:$0xff] }
 0x104   : > { %v4613_v29 = vpop.f32.mrf.mxu1  ;;  %4912 = vmatmul.mubr.msk.f32.gmra.mxu1 %vm238_vm0, %v4125_v61  ;;  %4964 = vmatprep.mubr.msk.f32.mxu0 %vm238_vm0, %v6661_v32 }
 0x105   : > { %v5966_v2 = vadd.f32 %v1107_v8, %v753_v27  ;;  %v768_v30 = vadd.f32 %v4613_v29, %v5837_v10  ;;  %4914 = vmatprep.mubr.msk.f32.mxu1 %vm238_vm0, %v4126_v37  ;;  %v1117_v52 = vpop.f32.mrf.mxu0  ;;  %v4133_v37 = vld [vmem:[%s5059_s23 + $0xf9] sm:$0xff]  ;;  %v4134_v29 = vld [vmem:[%s5059_s23 + $0x109] sm:$0xff] }
 0x106   : > { %v762_v17 = vpop.f32.mrf.mxu1 }
 0x107   : > { %v5974_v20 = vadd.f32 %v4663_v13, %v768_v30  ;;  %v763_v19 = vadd.f32 %v762_v17, %v5849_v48  ;;  %v4666_v47 = vpop.f32.mrf.mxu0  ;;  %4965 = vmatmul.mubr.msk.f32.gmra.mxu0 %vm238_vm0, %v6662_v33  ;;  %v4135_v17 = vld [vmem:[%s5059_s23 + $0x111] sm:$0xff] }
 0x108   : > { %v4616_v31 = vpop.f32.mrf.mxu1  ;;  %4915 = vmatmul.mubr.msk.f32.gmra.mxu1 %vm238_vm0, %v4127_v16  ;;  %4967 = vmatprep.mubr.msk.f32.mxu0 %vm238_vm0, %v6663_v34 }
 0x109   : > { %v5980_v10 = vadd.f32 %v1117_v52, %v763_v19  ;;  %v778_v32 = vadd.f32 %v4616_v31, %v5853_v7  ;;  %4917 = vmatprep.mubr.msk.f32.mxu1 %vm238_vm0, %v4128_v18  ;;  %v1127_v48 = vpop.f32.mrf.mxu0  ;;  %v4136_v18 = vld [vmem:[%s5059_s23 + $0x121] sm:$0xff] }
 0x10a   : > { %v772_v21 = vpop.f32.mrf.mxu1 }
 0x10b   : > { %v5988_v24 = vadd.f32 %v4666_v47, %v778_v32  ;;  %v773_v51 = vadd.f32 %v772_v21, %v5865_v42  ;;  %v4669_v23 = vpop.f32.mrf.mxu0  ;;  %4968 = vmatmul.mubr.msk.f32.gmra.mxu0 %vm238_vm0, %v6664_v35  ;;  %v4137_v32 = vld [vmem:[%s5059_s23 + $0x129] sm:$0xff]  ;;  %v4138_v21 = vld [vmem:[%s5059_s23 + $0x139] sm:$0xff] }
 0x10c   : > { %v4619_v33 = vpop.f32.mrf.mxu1  ;;  %4918 = vmatmul.mubr.msk.f32.gmra.mxu1 %vm238_vm0, %v4129_v14  ;;  %4970 = vmatprep.mubr.msk.f32.mxu0 %vm238_vm0, %v6665_v36 }
 0x10d   : > { %v5994_v7 = vadd.f32 %v1127_v48, %v773_v51  ;;  %v788_v34 = vadd.f32 %v4619_v33, %v5873_v12  ;;  %4920 = vmatprep.mubr.msk.f32.mxu1 %vm238_vm0, %v4130_v11  ;;  %v1137_v42 = vpop.f32.mrf.mxu0  ;;  %v4139_v33 = vld [vmem:[%s5059_s23 + $0x141] sm:$0xff] }
 0x10e   : > { %v782_v46 = vpop.f32.mrf.mxu1 }
 0x10f   : > { %v6002_v61 = vadd.f32 %v4669_v23, %v788_v34  ;;  %v783_v56 = vadd.f32 %v782_v46, %v5888_v50  ;;  %v4672_v8 = vpop.f32.mrf.mxu0  ;;  %4971 = vmatmul.mubr.msk.f32.gmra.mxu0 %vm238_vm0, %v6666_v44  ;;  %v4140_v34 = vld [vmem:[%s5059_s23 + $0x151] sm:$0xff] }
 0x110   : > { %v4622_v35 = vpop.f32.mrf.mxu1  ;;  %4921 = vmatmul.mubr.msk.f32.gmra.mxu1 %vm238_vm0, %v4131_v26  ;;  %4973 = vmatprep.mubr.msk.f32.mxu0 %vm238_vm0, %v6667_v45 }
 0x111   : > { %v6008_v12 = vadd.f32 %v1137_v42, %v783_v56  ;;  %v798_v36 = vadd.f32 %v4622_v35, %v5892_v40  ;;  %4923 = vmatprep.mubr.msk.f32.mxu1 %vm238_vm0, %v4132_v28  ;;  %v1147_v50 = vpop.f32.mrf.mxu0  ;;  %v4141_v28 = vld [vmem:[%s5059_s23 + $0x159] sm:$0xff]  ;;  %v4142_v35 = vld [vmem:[%s5059_s23 + $0x169] sm:$0xff] }
 0x112   : > { %v792_v27 = vpop.f32.mrf.mxu1 }
 0x113   : > { %v6016_v13 = vadd.f32 %v4672_v8, %v798_v36  ;;  %v793_v30 = vadd.f32 %v792_v27, %v5903_v6  ;;  %v4675_v16 = vpop.f32.mrf.mxu0  ;;  %4974 = vmatmul.mubr.msk.f32.gmra.mxu0 %vm238_vm0, %v6668_v55  ;;  %v4207_v8 = vld [vmem:[%s5059_s23 + $0x16a] sm:$0xff] }
 0x114   : > { %v4625_v44 = vpop.f32.mrf.mxu1  ;;  %4924 = vmatmul.mubr.msk.f32.gmra.mxu1 %vm238_vm0, %v4133_v37  ;;  %4976 = vmatprep.mubr.msk.f32.mxu0 %vm238_vm0, %v6669_v57 }
 0x115   : > { %v6022_v40 = vadd.f32 %v1147_v50, %v793_v30  ;;  %v808_v45 = vadd.f32 %v4625_v44, %v5775_v43  ;;  %4926 = vmatprep.mubr.msk.f32.mxu1 %vm238_vm0, %v4134_v29  ;;  %v1157_v6 = vpop.f32.mrf.mxu0  ;;  %v4143_v30 = vld [vmem:[%s5059_s23 + $0x171] sm:$0xff] }
 0x116   : > { %v802_v52 = vpop.f32.mrf.mxu1  ;;  %v4208_v44 = vld [vmem:[%s5059_s23 + $0x172] sm:$0xff] }
 0x117   : > { %v6030_v19 = vadd.f32 %v4675_v16, %v808_v45  ;;  %v803_v31 = vadd.f32 %v802_v52, %v5787_v49  ;;  %v4678_v47 = vpop.f32.mrf.mxu0  ;;  %4977 = vmatmul.mubr.msk.f32.gmra.mxu0 %vm238_vm0, %v6670_v0 }
 0x118   : > { %v4628_v55 = vpop.f32.mrf.mxu1  ;;  %4927 = vmatmul.mubr.msk.f32.gmra.mxu1 %vm238_vm0, %v4135_v17  ;;  %4979 = vmatprep.mubr.msk.f32.mxu0 %vm238_vm0, %v6671_v62  ;;  %v6690_v17 = vld [vmem:[#allocation4_spill] sm:$0xff] }
 0x119   : > { %v6036_v43 = vadd.f32 %v1157_v6, %v803_v31  ;;  %v818_v57 = vadd.f32 %v4628_v55, %v5791_v53  ;;  %4929 = vmatprep.mubr.msk.f32.mxu1 %vm238_vm0, %v4136_v18  ;;  %v1167_v49 = vpop.f32.mrf.mxu0  ;;  %v6691_v55 = vld [vmem:[#allocation5_spill] sm:$0xff] }
 0x11a   : > { %v812_v14 = vpop.f32.mrf.mxu1 }
 0x11b   : > { %v6044_v48 = vadd.f32 %v4678_v47, %v818_v57  ;;  %v813_v11 = vadd.f32 %v812_v14, %v5803_v60  ;;  %v4681_v51 = vpop.f32.mrf.mxu0  ;;  %4980 = vmatmul.mubr.msk.f32.gmra.mxu0 %vm238_vm0, %v6672_v5  ;;  %v6692_v57 = vld [vmem:[#allocation33_spill] sm:$0xff] }
 0x11c   : > { %v4631_v0 = vpop.f32.mrf.mxu1  ;;  %4930 = vmatmul.mubr.msk.f32.gmra.mxu1 %vm238_vm0, %v4137_v32  ;;  %4982 = vmatprep.mubr.msk.f32.mxu0 %vm238_vm0, %v6673_v58  ;;  %v6693_v32 = vld [vmem:[#allocation7_spill] sm:$0xff] }
 0x11d   : > { %v6050_v53 = vadd.f32 %v1167_v49, %v813_v11  ;;  %v828_v62 = vadd.f32 %v4631_v0, %v5807_v63  ;;  %4932 = vmatprep.mubr.msk.f32.mxu1 %vm238_vm0, %v4138_v21  ;;  %v1177_v60 = vpop.f32.mrf.mxu0  ;;  %v4146_v21 = vld [vmem:[%s5059_s23 + $0x199] sm:$0xff] }
 0x11e   : > { %v822_v23 = vpop.f32.mrf.mxu1  ;;  %v4211_v11 = vld [vmem:[%s5059_s23 + $0x19a] sm:$0xff] }
 0x11f   : > { %v6058_v26 = vadd.f32 %v4681_v51, %v828_v62  ;;  %v823_v5 = vadd.f32 %v822_v23, %v5819_v1  ;;  %v4684_v42 = vpop.f32.mrf.mxu0  ;;  %4983 = vmatmul.mubr.msk.f32.gmra.mxu0 %vm238_vm0, %v6675_v38  ;;  %v6694_v51 = vld [vmem:[#allocation6_spill] sm:$0xff] }
 0x120   : > { %v4634_v46 = vpop.f32.mrf.mxu1  ;;  %4933 = vmatmul.mubr.msk.f32.gmra.mxu1 %vm238_vm0, %v4139_v33  ;;  %4985 = vmatprep.mubr.msk.f32.mxu0 %vm238_vm0, %v6676_v54  ;;  %v6689_v54 = vld [vmem:[#allocation3_spill] sm:$0xff] }
 0x121   : > { %v6064_v63 = vadd.f32 %v1177_v60, %v823_v5  ;;  %v838_v58 = vadd.f32 %v4634_v46, %v5823_v3  ;;  %4935 = vmatprep.mubr.msk.f32.mxu1 %vm238_vm0, %v4140_v34  ;;  %v1187_v56 = vpop.f32.mrf.mxu0  ;;  %v6688_v3 = vld [vmem:[#allocation30_spill] sm:$0xff]  ;;  %v6696_v34 = vld [vmem:[#allocation9_spill] sm:$0xff]  ;;  %v6697_v46 = vld [vmem:[#allocation8_spill] sm:$0xff] }
 0x122   : > { %v832_v1 = vpop.f32.mrf.mxu1  ;;  %v6695_v60 = vld [vmem:[#allocation2_spill] sm:$0xff] }
 0x123   : > { %v6073_v36 = vadd.f32 %v4684_v42, %v838_v58  ;;  %v833_v38 = vadd.f32 %v832_v1, %v5835_v9  ;;  %v4687_v27 = vpop.f32.mrf.mxu0  ;;  %4986 = vmatmul.mubr.msk.f32.gmra.mxu0 %vm238_vm0, %v6688_v3  ;;  %v4147_v58 = vld [vmem:[%s5059_s23 + $0x1a1] sm:$0xff] }
 0x124   : > { %v4637_v37 = vpop.f32.mrf.mxu1  ;;  %4936 = vmatmul.mubr.msk.f32.gmra.mxu1 %vm238_vm0, %v4141_v28  ;;  %4988 = vmatprep.mubr.msk.f32.mxu0 %vm238_vm0, %v4207_v8  ;;  %v4212_v28 = vld [vmem:[%s5059_s23 + $0x1a2] sm:$0xff] }
 0x125   : > { %v6079_v50 = vadd.f32 %v1187_v56, %v833_v38  ;;  %v848_v29 = vadd.f32 %v4637_v37, %v6689_v54  ;;  %4938 = vmatprep.mubr.msk.f32.mxu1 %vm238_vm0, %v4142_v35  ;;  %v1197_v16 = vpop.f32.mrf.mxu0  ;;  %v6698_v8 = vld [vmem:[#allocation10_spill] sm:$0xff]  ;;  %v6699_v54 = vld [vmem:[#allocation11_spill] sm:$0xff] }
 0x126   : > { %v842_v9 = vpop.f32.mrf.mxu1 }
 0x127   : > { %v6086_v45 = vadd.f32 %v4687_v27, %v848_v29  ;;  %v843_v52 = vadd.f32 %v842_v9, %v6690_v17  ;;  %v4690_v18 = vpop.f32.mrf.mxu0  ;;  %4989 = vmatmul.mubr.msk.f32.gmra.mxu0 %vm238_vm0, %v4208_v44 }
 0x128   : > { %v4640_v6 = vpop.f32.mrf.mxu1  ;;  %4939 = vmatmul.mubr.msk.f32.gmra.mxu1 %vm238_vm0, %v4143_v30  ;;  %4991 = vmatprep.mubr.msk.f32.mxu0 %vm238_vm0, %v6693_v32 }
 0x129   : > { %v6091_v31 = vadd.f32 %v1197_v16, %v843_v52  ;;  %v858_v47 = vadd.f32 %v4640_v6, %v6691_v55  ;;  %4941 = vmatprep.mubr.msk.f32.mxu1 %vm238_vm0, %v6692_v57  ;;  %v1207_v49 = vpop.f32.mrf.mxu0  ;;  %v6700_v16 = vld [vmem:[#allocation12_spill] sm:$0xff] }
 0x12a   : > { %v852_v14 = vpop.f32.mrf.mxu1 }
 0x12b   : > { %v6100_v0 = vadd.f32 %v4690_v18, %v858_v47  ;;  %v853_v62 = vadd.f32 %v852_v14, %v6694_v51  ;;  %v4693_v23 = vpop.f32.mrf.mxu0  ;;  %4992 = vmatmul.mubr.msk.f32.gmra.mxu0 %vm238_vm0, %v6696_v34 }
 0x12c   : > { %v4643_v33 = vpop.f32.mrf.mxu1  ;;  %4942 = vmatmul.mubr.msk.f32.gmra.mxu1 %vm238_vm0, %v6695_v60  ;;  %4994 = vmatprep.mubr.msk.f32.mxu0 %vm238_vm0, %v4211_v11 }
 0x12d   : > { %v6107_v5 = vadd.f32 %v1207_v49, %v853_v62  ;;  %v868_v42 = vadd.f32 %v4643_v33, %v6697_v46  ;;  %4944 = vmatprep.mubr.msk.f32.mxu1 %vm238_vm0, %v4146_v21  ;;  %v1217_v56 = vpop.f32.mrf.mxu0 }
 0x12e   : > { %v862_v1 = vpop.f32.mrf.mxu1 }
 0x12f   : > { %v6114_v35 = vadd.f32 %v4693_v23, %v868_v42  ;;  %v863_v38 = vadd.f32 %v862_v1, %v6698_v8  ;;  %v4696_v27 = vpop.f32.mrf.mxu0  ;;  %4995 = vmatmul.mubr.msk.f32.gmra.mxu0 %vm238_vm0, %v4212_v28 }
 0x130   : > { %v4646_v37 = vpop.f32.mrf.mxu1  ;;  %4945 = vmatmul.mubr.msk.f32.gmra.mxu1 %vm238_vm0, %v4147_v58 }
 0x131   : > { %v6119_v3 = vadd.f32 %v1217_v56, %v863_v38  ;;  %v878_v29 = vadd.f32 %v4646_v37, %v6699_v54  ;;  %v1227_v44 = vpop.f32.mrf.mxu0 }
 0x132   : > { %v872_v30 = vpop.f32.mrf.mxu1 }
 0x133   : > { %v6122_v9 = vadd.f32 %v4696_v27, %v878_v29  ;;  %v873_v17 = vadd.f32 %v872_v30, %v6700_v16  ;;  %v4751_v6 = vpop.f32.mrf.mxu0 }
 0x134   : > { %v4701_v52 = vpop.f32.mrf.mxu1 }
 0x135   : > { %v6125_v18 = vadd.f32 %v1227_v44, %v873_v17  ;;  %v1625_v55 = vadd.f32 %v4701_v52, %v5916_v39  ;;  %v1852_v57 = vpop.f32.mrf.mxu0 }
 0x136   : > { %v1465_v47 = vpop.f32.mrf.mxu1 }
 0x137   : > { %v6128_v32 = vadd.f32 %v4751_v6, %v1625_v55  ;;  %v1624_v14 = vadd.f32 %v1465_v47, %v5923_v15  ;;  %v4754_v21 = vpop.f32.mrf.mxu0 }
 0x138   : > { %v4704_v49 = vpop.f32.mrf.mxu1 }
 0x139   : > { %v6131_v11 = vadd.f32 %v1852_v57, %v1624_v14  ;;  %v1627_v51 = vadd.f32 %v4704_v49, %v5930_v41  ;;  %v1862_v33 = vpop.f32.mrf.mxu0 }
 0x13a   : > { %v1475_v62 = vpop.f32.mrf.mxu1 }
 0x13b   : > { %v6134_v23 = vadd.f32 %v4754_v21, %v1627_v51  ;;  %v1626_v60 = vadd.f32 %v1475_v62, %v5937_v22  ;;  %v4757_v39 = vpop.f32.mrf.mxu0 }
 0x13c   : > { %v4707_v34 = vpop.f32.mrf.mxu1 }
 0x13d   : > { %v6137_v46 = vadd.f32 %v1862_v33, %v1626_v60  ;;  %v1629_v42 = vadd.f32 %v4707_v34, %v5945_v59  ;;  %v1872_v15 = vpop.f32.mrf.mxu0 }
 0x13e   : > { %v1485_v58 = vpop.f32.mrf.mxu1 }
 0x13f   : > { %v6140_v28 = vadd.f32 %v4757_v39, %v1629_v42  ;;  %v1628_v1 = vadd.f32 %v1485_v58, %v5952_v25  ;;  %v4760_v41 = vpop.f32.mrf.mxu0 }
 0x140   : > { %v4710_v56 = vpop.f32.mrf.mxu1 }
 0x141   : > { %v6143_v8 = vadd.f32 %v1872_v15, %v1628_v1  ;;  %v1631_v38 = vadd.f32 %v4710_v56, %v5960_v4  ;;  %v1882_v22 = vpop.f32.mrf.mxu0 }
 0x142   : > { %v1495_v37 = vpop.f32.mrf.mxu1 }
 0x143   : > { %v6146_v27 = vadd.f32 %v4760_v41, %v1631_v38  ;;  %v1630_v54 = vadd.f32 %v1495_v37, %v5966_v2  ;;  %v4763_v59 = vpop.f32.mrf.mxu0 }
 0x144   : > { %v4713_v29 = vpop.f32.mrf.mxu1 }
 0x145   : > { %v6149_v30 = vadd.f32 %v1882_v22, %v1630_v54  ;;  %v1633_v44 = vadd.f32 %v4713_v29, %v5974_v20  ;;  %v1892_v25 = vpop.f32.mrf.mxu0 }
 0x146   : > { %v1505_v16 = vpop.f32.mrf.mxu1 }
 0x147   : > { %v6152_v17 = vadd.f32 %v4763_v59, %v1633_v44  ;;  %v1632_v52 = vadd.f32 %v1505_v16, %v5980_v10  ;;  %v4766_v4 = vpop.f32.mrf.mxu0 }
 0x148   : > { %v4716_v6 = vpop.f32.mrf.mxu1 }
 0x149   : > { %v6155_v55 = vadd.f32 %v1892_v25, %v1632_v52  ;;  %v1635_v47 = vadd.f32 %v4716_v6, %v5988_v24  ;;  %v1902_v2 = vpop.f32.mrf.mxu0 }
 0x14a   : > { %v1515_v57 = vpop.f32.mrf.mxu1 }
 0x14b   : > { %v6158_v14 = vadd.f32 %v4766_v4, %v1635_v47  ;;  %v1634_v49 = vadd.f32 %v1515_v57, %v5994_v7  ;;  %v4769_v20 = vpop.f32.mrf.mxu0 }
 0x14c   : > { %v4719_v21 = vpop.f32.mrf.mxu1 }
 0x14d   : > { %v6161_v51 = vadd.f32 %v1902_v2, %v1634_v49  ;;  %v1637_v62 = vadd.f32 %v4719_v21, %v6002_v61  ;;  %v1912_v10 = vpop.f32.mrf.mxu0 }
 0x14e   : > { %v1525_v33 = vpop.f32.mrf.mxu1 }
 0x14f   : > { %v6164_v60 = vadd.f32 %v4769_v20, %v1637_v62  ;;  %v1636_v34 = vadd.f32 %v1525_v33, %v6008_v12  ;;  %v4772_v24 = vpop.f32.mrf.mxu0 }
 0x150   : > { %v4722_v39 = vpop.f32.mrf.mxu1 }
 0x151   : > { %v6167_v42 = vadd.f32 %v1912_v10, %v1636_v34  ;;  %v1639_v58 = vadd.f32 %v4722_v39, %v6016_v13  ;;  %v1922_v7 = vpop.f32.mrf.mxu0 }
 0x152   : > { %v1535_v15 = vpop.f32.mrf.mxu1 }
 0x153   : > { %v6170_v1 = vadd.f32 %v4772_v24, %v1639_v58  ;;  %v1638_v56 = vadd.f32 %v1535_v15, %v6022_v40  ;;  %v4775_v61 = vpop.f32.mrf.mxu0 }
 0x154   : > { %v4725_v41 = vpop.f32.mrf.mxu1 }
 0x155   : > { %v6173_v38 = vadd.f32 %v1922_v7, %v1638_v56  ;;  %v1641_v37 = vadd.f32 %v4725_v41, %v6030_v19  ;;  %v1932_v12 = vpop.f32.mrf.mxu0 }
 0x156   : > { %v1545_v22 = vpop.f32.mrf.mxu1 }
 0x157   : > { %v6176_v54 = vadd.f32 %v4775_v61, %v1641_v37  ;;  %v1640_v29 = vadd.f32 %v1545_v22, %v6036_v43  ;;  %v4778_v13 = vpop.f32.mrf.mxu0 }
 0x158   : > { %v4728_v59 = vpop.f32.mrf.mxu1 }
 0x159   : > { %v6179_v44 = vadd.f32 %v1932_v12, %v1640_v29  ;;  %v1643_v16 = vadd.f32 %v4728_v59, %v6044_v48  ;;  %v1942_v40 = vpop.f32.mrf.mxu0 }
 0x15a   : > { %v1555_v25 = vpop.f32.mrf.mxu1 }
 0x15b   : > { %v6182_v52 = vadd.f32 %v4778_v13, %v1643_v16  ;;  %v1642_v6 = vadd.f32 %v1555_v25, %v6050_v53  ;;  %v4781_v19 = vpop.f32.mrf.mxu0 }
 0x15c   : > { %v4731_v4 = vpop.f32.mrf.mxu1 }
 0x15d   : > { %6701 = vst [vmem:[#allocation13_spill] sm:$0xff] %v6182_v52  ;;  %v6185_v47 = vadd.f32 %v1942_v40, %v1642_v6  ;;  %v1645_v57 = vadd.f32 %v4731_v4, %v6058_v26  ;;  %v1952_v43 = vpop.f32.mrf.mxu0 }
 0x15e   : > { %v1565_v2 = vpop.f32.mrf.mxu1 }
 0x15f   : > { %6702 = vst [vmem:[#allocation14_spill] sm:$0xff] %v6185_v47  ;;  %v6188_v49 = vadd.f32 %v4781_v19, %v1645_v57  ;;  %v1644_v21 = vadd.f32 %v1565_v2, %v6064_v63  ;;  %v4784_v48 = vpop.f32.mrf.mxu0 }
 0x160   : > { %v4734_v20 = vpop.f32.mrf.mxu1 }
 0x161   : > { %6703 = vst [vmem:[#allocation15_spill] sm:$0xff] %v6188_v49  ;;  %v6191_v62 = vadd.f32 %v1952_v43, %v1644_v21  ;;  %v1647_v33 = vadd.f32 %v4734_v20, %v6073_v36  ;;  %v1962_v53 = vpop.f32.mrf.mxu0 }
 0x162   : > { %v1575_v10 = vpop.f32.mrf.mxu1 }
 0x163   : > { %6704 = vst [vmem:[#allocation16_spill] sm:$0xff] %v6191_v62  ;;  %v6194_v34 = vadd.f32 %v4784_v48, %v1647_v33  ;;  %v1646_v39 = vadd.f32 %v1575_v10, %v6079_v50  ;;  %v4787_v26 = vpop.f32.mrf.mxu0 }
 0x164   : > { %v4737_v24 = vpop.f32.mrf.mxu1 }
 0x165   : > { %6705 = vst [vmem:[#allocation17_spill] sm:$0xff] %v6194_v34  ;;  %v6197_v58 = vadd.f32 %v1962_v53, %v1646_v39  ;;  %v1649_v15 = vadd.f32 %v4737_v24, %v6086_v45  ;;  %v1972_v63 = vpop.f32.mrf.mxu0 }
 0x166   : > { %v1585_v7 = vpop.f32.mrf.mxu1 }
 0x167   : > { %6706 = vst [vmem:[#allocation18_spill] sm:$0xff] %v6197_v58  ;;  %v6200_v56 = vadd.f32 %v4787_v26, %v1649_v15  ;;  %v1648_v41 = vadd.f32 %v1585_v7, %v6091_v31  ;;  %v4790_v36 = vpop.f32.mrf.mxu0 }
 0x168   : > { %v4740_v61 = vpop.f32.mrf.mxu1 }
 0x169   : > { %6707 = vst [vmem:[#allocation19_spill] sm:$0xff] %v6200_v56  ;;  %v6203_v37 = vadd.f32 %v1972_v63, %v1648_v41  ;;  %v1651_v22 = vadd.f32 %v4740_v61, %v6100_v0  ;;  %v1982_v50 = vpop.f32.mrf.mxu0 }
 0x16a   : > { %v1595_v12 = vpop.f32.mrf.mxu1 }
 0x16b   : > { %6708 = vst [vmem:[#allocation20_spill] sm:$0xff] %v6203_v37  ;;  %v6206_v29 = vadd.f32 %v4790_v36, %v1651_v22  ;;  %v1650_v59 = vadd.f32 %v1595_v12, %v6107_v5  ;;  %v4793_v45 = vpop.f32.mrf.mxu0 }
 0x16c   : > { %v4743_v13 = vpop.f32.mrf.mxu1 }
 0x16d   : > { %6709 = vst [vmem:[#allocation21_spill] sm:$0xff] %v6206_v29  ;;  %v6209_v16 = vadd.f32 %v1982_v50, %v1650_v59  ;;  %v1653_v25 = vadd.f32 %v4743_v13, %v6114_v35  ;;  %v1992_v31 = vpop.f32.mrf.mxu0 }
 0x16e   : > { %v1605_v40 = vpop.f32.mrf.mxu1 }
 0x16f   : > { %6710 = vst [vmem:[#allocation22_spill] sm:$0xff] %v6209_v16  ;;  %v6212_v6 = vadd.f32 %v4793_v45, %v1653_v25  ;;  %v1652_v4 = vadd.f32 %v1605_v40, %v6119_v3  ;;  %v4796_v0 = vpop.f32.mrf.mxu0 }
 0x170   : > { %v4746_v19 = vpop.f32.mrf.mxu1 }
 0x171   : > { %6711 = vst [vmem:[#allocation23_spill] sm:$0xff] %v6212_v6  ;;  %v6215_v57 = vadd.f32 %v1992_v31, %v1652_v4  ;;  %v1655_v2 = vadd.f32 %v4746_v19, %v6122_v9  ;;  %v2002_v5 = vpop.f32.mrf.mxu0 }
 0x172   : > { %v1615_v43 = vpop.f32.mrf.mxu1 }
 0x173   : > { %6712 = vst [vmem:[#allocation24_spill] sm:$0xff] %v6215_v57  ;;  %v6218_v21 = vadd.f32 %v4796_v0, %v1655_v2  ;;  %v1654_v20 = vadd.f32 %v1615_v43, %v6125_v18  ;;  %v6221_v35 = vpop.f32.mrf.mxu0 }
 0x174   : > { %v4801_v48 = vpop.f32.mrf.mxu1 }
 0x175   : > { %6713 = vst [vmem:[#allocation25_spill] sm:$0xff] %v6218_v21  ;;  %v6223_v33 = vadd.f32 %v2002_v5, %v1654_v20  ;;  %v6225_v53 = vpop.f32.mrf.mxu0 }
 0x176   : > { %v2239_v10 = vpop.f32.mrf.mxu1 }
 0x177   : > { %6714 = vst [vmem:[#allocation26_spill] sm:$0xff] %v6223_v33  ;;  %v6229_v39 = vpop.f32.mrf.mxu0 }
 0x178   : > { %v6227_v3 = vpop.f32.mrf.mxu1 }
 0x179   : > { %v6233_v9 = vpop.f32.mrf.mxu0 }
 0x17a   : > { %v6231_v24 = vpop.f32.mrf.mxu1 }
 0x17b   : > { %v6237_v15 = vpop.f32.mrf.mxu0 }
 0x17c   : > { %v6235_v26 = vpop.f32.mrf.mxu1 }
 0x17d   : > { %v6241_v7 = vpop.f32.mrf.mxu0 }
 0x17e   : > { %v6239_v18 = vpop.f32.mrf.mxu1 }
 0x17f   : > { %v6245_v41 = vpop.f32.mrf.mxu0 }
 0x180   : > { %v6243_v63 = vpop.f32.mrf.mxu1 }
 0x181   : > { %v6249_v36 = vpop.f32.mrf.mxu0 }
 0x182   : > { %v6247_v61 = vpop.f32.mrf.mxu1 }
 0x183   : > { %v6253_v12 = vpop.f32.mrf.mxu0 }
 0x184   : > { %v6251_v22 = vpop.f32.mrf.mxu1 }
 0x185   : > { %v6257_v59 = vpop.f32.mrf.mxu0 }
 0x186   : > { %v6255_v50 = vpop.f32.mrf.mxu1 }
 0x187   : > { %v6261_v45 = vpop.f32.mrf.mxu0 }
 0x188   : > { %v6259_v13 = vpop.f32.mrf.mxu1 }
 0x189   : > { %v6265_v40 = vpop.f32.mrf.mxu0 }
 0x18a   : > { %v6263_v25 = vpop.f32.mrf.mxu1 }
 0x18b   : > { %v6269_v4 = vpop.f32.mrf.mxu0 }
 0x18c   : > { %v6267_v31 = vpop.f32.mrf.mxu1 }
 0x18d   : > { %v6273_v0 = vpop.f32.mrf.mxu0 }
 0x18e   : > { %v6271_v19 = vpop.f32.mrf.mxu1 }
 0x18f   : > { %v6277_v43 = vpop.f32.mrf.mxu0 }
 0x190   : > { %v6275_v2 = vpop.f32.mrf.mxu1 }
 0x191   : > { %v6281_v20 = vpop.f32.mrf.mxu0 }
 0x192   : > { %v6279_v5 = vpop.f32.mrf.mxu1 }
 0x193   : > { %v6285_v21 = vpop.f32.mrf.mxu0 }
 0x194   : > { %v6283_v33 = vpop.f32.mrf.mxu1 }
 0x195   : > { %v6289_v6 = vpop.f32.mrf.mxu0 }
 0x196   : > { %v6287_v57 = vpop.f32.mrf.mxu1  ;;  %6715 = vst [vmem:[#allocation27_spill] sm:$0xff] %v6289_v6 }
 0x197   : > { %v6293_v29 = vpop.f32.mrf.mxu0 }
 0x198   : > { %v6291_v16 = vpop.f32.mrf.mxu1  ;;  %6717 = vst [vmem:[#allocation29_spill] sm:$0xff] %v6293_v29 }
 0x199   : > { %6716 = vst [vmem:[#allocation28_spill] sm:$0xff] %v6291_v16  ;;  %v6297_v56 = vpop.f32.mrf.mxu0 }
 0x19a   : > { %v6295_v37 = vpop.f32.mrf.mxu1  ;;  %6719 = vst [vmem:[#allocation32_spill] sm:$0xff] %v6297_v56 }
 0x19b   : > { %6718 = vst [vmem:[#allocation31_spill] sm:$0xff] %v6295_v37  ;;  %v6301_v34 = vpop.f32.mrf.mxu0 }
 0x19c   : > { %v6299_v58 = vpop.f32.mrf.mxu1  ;;  %6721 = vst [vmem:[#allocation3_spill] sm:$0xff] %v6301_v34 }
 0x19d   : > { %6720 = vst [vmem:[#allocation30_spill] sm:$0xff] %v6299_v58  ;;  %v6305_v49 = vpop.f32.mrf.mxu0 }
 0x19e   : > { %v6303_v62 = vpop.f32.mrf.mxu1  ;;  %6723 = vst [vmem:[#allocation5_spill] sm:$0xff] %v6305_v49 }
 0x19f   : > { %6722 = vst [vmem:[#allocation4_spill] sm:$0xff] %v6303_v62  ;;  %v6309_v52 = vpop.f32.mrf.mxu0 }
 0x1a0   : > { %v6307_v47 = vpop.f32.mrf.mxu1  ;;  %6725 = vst [vmem:[#allocation7_spill] sm:$0xff] %v6309_v52 }
 0x1a1   : > { %6724 = vst [vmem:[#allocation33_spill] sm:$0xff] %v6307_v47  ;;  %v6313_v16 = vpop.f32.mrf.mxu0 }
 0x1a2   : > { %v6311_v6 = vpop.f32.mrf.mxu1  ;;  %6727 = vst [vmem:[#allocation2_spill] sm:$0xff] %v6313_v16 }
 0x1a3   : > { %6726 = vst [vmem:[#allocation6_spill] sm:$0xff] %v6311_v6  ;;  %v6317_v37 = vpop.f32.mrf.mxu0 }
 0x1a4   : > { %v6315_v29 = vpop.f32.mrf.mxu1  ;;  %6729 = vst [vmem:[#allocation8_spill] sm:$0xff] %v6317_v37  ;;  %v2399_v37 = vadd.f32 %v4801_v48, %v6128_v32  ;;  %v2400_v48 = vadd.f32 %v6231_v24, %v6137_v46 }
 0x1a5   : > { %6728 = vst [vmem:[#allocation9_spill] sm:$0xff] %v6315_v29  ;;  %v6321_v58 = vpop.f32.mrf.mxu0 }
 0x1a6   : > { %v6319_v56 = vpop.f32.mrf.mxu1  ;;  %6731 = vst [vmem:[#allocation11_spill] sm:$0xff] %v6321_v58 }
 0x1a7   : > { %6730 = vst [vmem:[#allocation10_spill] sm:$0xff] %v6319_v56  ;;  %v6325_v62 = vpop.f32.mrf.mxu0 }
 0x1a8   : > { %v6323_v34 = vpop.f32.mrf.mxu1  ;;  %6732 = vst [vmem:[#allocation12_spill] sm:$0xff] %v6325_v62  ;;  %v2398_v62 = vadd.f32 %v2239_v10, %v6131_v11  ;;  %v2403_v11 = vadd.f32 %v6235_v26, %v6140_v28  ;;  %v6360_v10 = vld [vmem:[%s6553_s2] ss:$0 sm:$0xff] }
 0x1a9   : > { %v6329_v47 = vpop.f32.mrf.mxu0 }
 0x1aa   : > { %v6327_v49 = vpop.f32.mrf.mxu1  ;;  %6734 = vst [vmem:[#allocation35_spill] sm:$0xff] %v6329_v47  ;;  %v2786_v32 = vadd.f32 %v6225_v53, %v2398_v62  ;;  %v2402_v62 = vadd.f32 %v6239_v18, %v6143_v8  ;;  %v2791_v26 = vadd.f32 %v6237_v15, %v2403_v11  ;;  %v2404_v15 = vadd.f32 %v6247_v61, %v6149_v30 }
 0x1ab   : > { %6733 = vst [vmem:[#allocation34_spill] sm:$0xff] %v6327_v49  ;;  %v6333_v6 = vpop.f32.mrf.mxu0 }
 0x1ac   : > { %v6331_v52 = vpop.f32.mrf.mxu1  ;;  %6736 = vst [vmem:[#allocation37_spill] sm:$0xff] %v6333_v6  ;;  %v2401_v6 = vadd.f32 %v6227_v3, %v6134_v23 }
 0x1ad   : > { %6735 = vst [vmem:[#allocation36_spill] sm:$0xff] %v6331_v52  ;;  %v6337_v29 = vpop.f32.mrf.mxu0  ;;  %v2787_v52 = vadd.f32 %v6221_v35, %v2399_v37 }
 0x1ae   : > { %v6335_v16 = vpop.f32.mrf.mxu1  ;;  %6738 = vst [vmem:[#allocation39_spill] sm:$0xff] %v6337_v29  ;;  %v2789_v23 = vadd.f32 %v6229_v39, %v2401_v6 }
 0x1af   : > { %6737 = vst [vmem:[#allocation38_spill] sm:$0xff] %v6335_v16  ;;  %v6342_v58 = vpop.f32.mrf.mxu0 }
 0x1b0   : > { %v6340_v56 = vpop.f32.mrf.mxu1  ;;  %6739 = vst [vmem:[#allocation40_spill] sm:$0xff] %v6342_v58 }
 0x1b1   : > { %v6347_v47 = vpop.f32.mrf.mxu0 }
 0x1b2   : > { %v6345_v49 = vpop.f32.mrf.mxu1  ;;  %6741 = vst [vmem:[#allocation42_spill] sm:$0xff] %v6347_v47 }
 0x1b3   : > { %6740 = vst [vmem:[#allocation41_spill] sm:$0xff] %v6345_v49  ;;  %v4951_v29 = vpop.f32.mrf.mxu0  ;;  %v2405_v49 = vadd.f32 %v6243_v63, %v6146_v27 }
 0x1b4   : > { %v4901_v16 = vpop.f32.mrf.mxu1 }
 0x1b5   : > { %v3174_v58 = vadd.f32 %v4901_v16, %v2787_v52  ;;  %v3401_v35 = vpop.f32.mrf.mxu0  ;;  %v2788_v16 = vadd.f32 %v6233_v9, %v2400_v48  ;;  %v2790_v9 = vadd.f32 %v6241_v7, %v2402_v62 }
 0x1b6   : > { %v3014_v37 = vpop.f32.mrf.mxu1 }
 0x1b7   : > { %v3561_v3 = vadd.f32 %v4951_v29, %v3174_v58  ;;  %v3173_v47 = vadd.f32 %v3014_v37, %v2786_v32  ;;  %v4954_v52 = vpop.f32.mrf.mxu0  ;;  %v2793_v37 = vadd.f32 %v6245_v41, %v2405_v49 }
 0x1b8   : > { %v4904_v46 = vpop.f32.mrf.mxu1 }
 0x1b9   : > { %v3600_v28 = vadd.f32 %v6360_v10, %v3561_v3  ;;  %v3560_v53 = vadd.f32 %v3401_v35, %v3173_v47  ;;  %v3176_v24 = vadd.f32 %v4904_v46, %v2789_v23  ;;  %v3411_v58 = vpop.f32.mrf.mxu0  ;;  %v2407_v35 = vadd.f32 %v6251_v22, %v6152_v17 }
 0x1ba   : > { %v3024_v8 = vpop.f32.mrf.mxu1  ;;  %v2792_v46 = vadd.f32 %v6249_v36, %v2404_v15 }
 0x1bb   : > { %v3632_v29 = vmax.f32 %v3600_v28, 0.0  ;;  %v3599_v6 = vadd.f32 %v6360_v10, %v3560_v53  ;;  %v3563_v39 = vadd.f32 %v4954_v52, %v3176_v24  ;;  %v3175_v47 = vadd.f32 %v3024_v8, %v2788_v16  ;;  %v4957_v18 = vpop.f32.mrf.mxu0 }
 0x1bc   : > { %v4907_v27 = vpop.f32.mrf.mxu1  ;;  %v2406_v52 = vadd.f32 %v6255_v50, %v6155_v55  ;;  %v2795_v53 = vadd.f32 %v6253_v12, %v2407_v35  ;;  %v2409_v24 = vadd.f32 %v6259_v13, %v6158_v14 }
 0x1bd   : > { %3664 = vst.msk [vmem:[%s6374_s15 + $0x8] sm:$0xff] %vm238_vm0, %v3632_v29  ;;  %v3631_v63 = vmax.f32 %v3599_v6, 0.0  ;;  %v3602_v32 = vadd.f32 %v6360_v10, %v3563_v39  ;;  %v3562_v48 = vadd.f32 %v3411_v58, %v3175_v47  ;;  %v3178_v11 = vadd.f32 %v4907_v27, %v2791_v26  ;;  %v3421_v7 = vpop.f32.mrf.mxu0 }
 0x1be   : > { %v3034_v23 = vpop.f32.mrf.mxu1  ;;  %v2794_v29 = vadd.f32 %v6257_v59, %v2406_v52  ;;  %v2408_v6 = vadd.f32 %v6263_v25, %v6161_v51  ;;  %v2797_v15 = vadd.f32 %v6261_v45, %v2409_v24  ;;  %v2411_v27 = vadd.f32 %v6267_v31, %v6164_v60 }
 0x1bf   : > { %3663 = vst.msk [vmem:[%s6374_s15] sm:$0xff] %vm238_vm0, %v3631_v63  ;;  %v3634_v30 = vmax.f32 %v3602_v32, 0.0  ;;  %v3601_v61 = vadd.f32 %v6360_v10, %v3562_v48  ;;  %v3565_v3 = vadd.f32 %v4957_v18, %v3178_v11  ;;  %v3177_v62 = vadd.f32 %v3034_v23, %v2790_v9  ;;  %v4960_v49 = vpop.f32.mrf.mxu0 }
 0x1c0   : > { %v4910_v16 = vpop.f32.mrf.mxu1  ;;  %v2796_v48 = vadd.f32 %v6265_v40, %v2408_v6  ;;  %v2410_v11 = vadd.f32 %v6271_v19, %v6167_v42  ;;  %v2412_v52 = vadd.f32 %v6279_v5, %v6173_v38  ;;  %v6743_v6 = vld [vmem:[#allocation28_spill] sm:$0xff] }
 0x1c1   : > { %3666 = vst.msk [vmem:[%s6374_s15 + $0x18] sm:$0xff] %vm238_vm0, %v3634_v30  ;;  %v3633_v17 = vmax.f32 %v3601_v61, 0.0  ;;  %v3604_v41 = vadd.f32 %v6360_v10, %v3565_v3  ;;  %v3564_v22 = vadd.f32 %v3421_v7, %v3177_v62  ;;  %v3180_v28 = vadd.f32 %v4910_v16, %v2793_v37  ;;  %v3431_v36 = vpop.f32.mrf.mxu0 }
 0x1c2   : > { %v3044_v26 = vpop.f32.mrf.mxu1  ;;  %v2799_v7 = vadd.f32 %v6269_v4, %v2411_v27  ;;  %v2413_v30 = vadd.f32 %v6275_v2, %v6170_v1  ;;  %v6746_v27 = vld [vmem:[#allocation31_spill] sm:$0xff] }
 0x1c3   : > { %3665 = vst.msk [vmem:[%s6374_s15 + $0x10] sm:$0xff] %vm238_vm0, %v3633_v17  ;;  %v3636_v55 = vmax.f32 %v3604_v41, 0.0  ;;  %v3603_v50 = vadd.f32 %v6360_v10, %v3564_v22  ;;  %v3567_v8 = vadd.f32 %v4960_v49, %v3180_v28  ;;  %v3179_v58 = vadd.f32 %v3044_v26, %v2792_v46  ;;  %v4963_v12 = vpop.f32.mrf.mxu0 }
 0x1c4   : > { %v4913_v39 = vpop.f32.mrf.mxu1  ;;  %v2798_v46 = vadd.f32 %v6273_v0, %v2410_v11  ;;  %v2801_v41 = vadd.f32 %v6277_v43, %v2413_v30  ;;  %v2415_v22 = vadd.f32 %v6283_v33, %v6176_v54  ;;  %v2800_v26 = vadd.f32 %v6281_v20, %v2412_v52 }
 0x1c5   : > { %3668 = vst.msk [vmem:[%s6374_s15 + $0x28] sm:$0xff] %vm238_vm0, %v3636_v55  ;;  %v3635_v14 = vmax.f32 %v3603_v50, 0.0  ;;  %v3606_v13 = vadd.f32 %v6360_v10, %v3567_v8  ;;  %v3566_v47 = vadd.f32 %v3431_v36, %v3179_v58  ;;  %v3182_v9 = vadd.f32 %v4913_v39, %v2795_v53  ;;  %v3441_v59 = vpop.f32.mrf.mxu0 }
 0x1c6   : > { %v3054_v18 = vpop.f32.mrf.mxu1  ;;  %v2414_v36 = vadd.f32 %v6287_v57, %v6179_v44  ;;  %v2803_v58 = vadd.f32 %v6285_v21, %v2415_v22  ;;  %v6755_v22 = vld [vmem:[#allocation33_spill] sm:$0xff] }
 0x1c7   : > { %3667 = vst.msk [vmem:[%s6374_s15 + $0x20] sm:$0xff] %vm238_vm0, %v3635_v14  ;;  %v3638_v51 = vmax.f32 %v3606_v13, 0.0  ;;  %v3605_v25 = vadd.f32 %v6360_v10, %v3566_v47  ;;  %v3569_v63 = vadd.f32 %v4963_v12, %v3182_v9  ;;  %v3181_v32 = vadd.f32 %v3054_v18, %v2794_v29  ;;  %v4966_v45 = vpop.f32.mrf.mxu0  ;;  %v6742_v29 = vld [vmem:[#allocation13_spill] sm:$0xff]  ;;  %v6744_v47 = vld [vmem:[#allocation27_spill] sm:$0xff] }
 0x1c8   : > { %v4916_v37 = vpop.f32.mrf.mxu1  ;;  %v2417_v39 = vadd.f32 %v6743_v6, %v6742_v29  ;;  %v2802_v9 = vadd.f32 %v6744_v47, %v2414_v36  ;;  %v6756_v36 = vld [vmem:[#allocation5_spill] sm:$0xff] }
 0x1c9   : > { %3670 = vst.msk [vmem:[%s6374_s15 + $0x38] sm:$0xff] %vm238_vm0, %v3638_v51  ;;  %v3637_v60 = vmax.f32 %v3605_v25, 0.0  ;;  %v3608_v31 = vadd.f32 %v6360_v10, %v3569_v63  ;;  %v3568_v35 = vadd.f32 %v3441_v59, %v3181_v32  ;;  %v3184_v23 = vadd.f32 %v4916_v37, %v2797_v15  ;;  %v3451_v40 = vpop.f32.mrf.mxu0  ;;  %v6745_v15 = vld [vmem:[#allocation14_spill] sm:$0xff]  ;;  %v6748_v37 = vld [vmem:[#allocation15_spill] sm:$0xff] }
 0x1ca   : > { %v3064_v61 = vpop.f32.mrf.mxu1  ;;  %v2416_v18 = vadd.f32 %v6746_v27, %v6745_v15 }
 0x1cb   : > { %3669 = vst.msk [vmem:[%s6374_s15 + $0x30] sm:$0xff] %vm238_vm0, %v3637_v60  ;;  %v3640_v42 = vmax.f32 %v3608_v31, 0.0  ;;  %v3607_v19 = vadd.f32 %v6360_v10, %v3568_v35  ;;  %v3571_v3 = vadd.f32 %v4966_v45, %v3184_v23  ;;  %v3183_v62 = vadd.f32 %v3064_v61, %v2796_v48  ;;  %v4969_v4 = vpop.f32.mrf.mxu0  ;;  %v6747_v48 = vld [vmem:[#allocation29_spill] sm:$0xff]  ;;  %v6749_v45 = vld [vmem:[#allocation30_spill] sm:$0xff] }
 0x1cc   : > { %v4919_v16 = vpop.f32.mrf.mxu1  ;;  %v2805_v11 = vadd.f32 %v6747_v48, %v2417_v39  ;;  %v2419_v60 = vadd.f32 %v6749_v45, %v6748_v37 }
 0x1cd   : > { %3672 = vst.msk [vmem:[%s6374_s15 + $0x48] sm:$0xff] %vm238_vm0, %v3640_v42  ;;  %v3639_v1 = vmax.f32 %v3607_v19, 0.0  ;;  %v3610_v2 = vadd.f32 %v6360_v10, %v3571_v3  ;;  %v3570_v49 = vadd.f32 %v3451_v40, %v3183_v62  ;;  %v3186_v17 = vadd.f32 %v4919_v16, %v2799_v7  ;;  %v3461_v0 = vpop.f32.mrf.mxu0  ;;  %v6750_v40 = vld [vmem:[#allocation32_spill] sm:$0xff] }
 0x1ce   : > { %v3074_v28 = vpop.f32.mrf.mxu1  ;;  %v2804_v42 = vadd.f32 %v6750_v40, %v2416_v18  ;;  %v6751_v19 = vld [vmem:[#allocation16_spill] sm:$0xff] }
 0x1cf   : > { %3671 = vst.msk [vmem:[%s6374_s15 + $0x40] sm:$0xff] %vm238_vm0, %v3639_v1  ;;  %v3642_v38 = vmax.f32 %v3610_v2, 0.0  ;;  %v3609_v5 = vadd.f32 %v6360_v10, %v3570_v49  ;;  %v3573_v53 = vadd.f32 %v4969_v4, %v3186_v17  ;;  %v3185_v24 = vadd.f32 %v3074_v28, %v2798_v46  ;;  %v4972_v43 = vpop.f32.mrf.mxu0  ;;  %v6752_v3 = vld [vmem:[#allocation4_spill] sm:$0xff]  ;;  %v6753_v49 = vld [vmem:[#allocation3_spill] sm:$0xff] }
 0x1d0   : > { %v4922_v55 = vpop.f32.mrf.mxu1  ;;  %v2418_v62 = vadd.f32 %v6752_v3, %v6751_v19  ;;  %v2807_v17 = vadd.f32 %v6753_v49, %v2419_v60 }
 0x1d1   : > { %3674 = vst.msk [vmem:[%s6374_s15 + $0x58] sm:$0xff] %vm238_vm0, %v3642_v38  ;;  %v3641_v54 = vmax.f32 %v3609_v5, 0.0  ;;  %v3612_v33 = vadd.f32 %v6360_v10, %v3573_v53  ;;  %v3572_v50 = vadd.f32 %v3461_v0, %v3185_v24  ;;  %v3188_v8 = vadd.f32 %v4922_v55, %v2801_v41  ;;  %v3471_v20 = vpop.f32.mrf.mxu0  ;;  %v6754_v41 = vld [vmem:[#allocation17_spill] sm:$0xff] }
 0x1d2   : > { %v3084_v12 = vpop.f32.mrf.mxu1  ;;  %v2421_v28 = vadd.f32 %v6755_v22, %v6754_v41  ;;  %v2806_v55 = vadd.f32 %v6756_v36, %v2418_v62  ;;  %v6767_v62 = vld [vmem:[#allocation11_spill] sm:$0xff]  ;;  %v6770_v22 = vld [vmem:[#allocation12_spill] sm:$0xff] }
 0x1d3   : > { %3673 = vst.msk [vmem:[%s6374_s15 + $0x50] sm:$0xff] %vm238_vm0, %v3641_v54  ;;  %v3644_v44 = vmax.f32 %v3612_v33, 0.0  ;;  %v3611_v57 = vadd.f32 %v6360_v10, %v3572_v50  ;;  %v3575_v14 = vadd.f32 %v4972_v43, %v3188_v8  ;;  %v3187_v13 = vadd.f32 %v3084_v12, %v2800_v26  ;;  %v4975_v21 = vpop.f32.mrf.mxu0  ;;  %v6757_v43 = vld [vmem:[#allocation18_spill] sm:$0xff]  ;;  %v6759_v12 = vld [vmem:[#allocation7_spill] sm:$0xff] }
 0x1d4   : > { %v4925_v59 = vpop.f32.mrf.mxu1  ;;  %v6758_v54 = vld [vmem:[#allocation6_spill] sm:$0xff] }
 0x1d5   : > { %3676 = vst.msk [vmem:[%s6374_s15 + $0x68] sm:$0xff] %vm238_vm0, %v3644_v44  ;;  %v3643_v51 = vmax.f32 %v3611_v57, 0.0  ;;  %v3614_v25 = vadd.f32 %v6360_v10, %v3575_v14  ;;  %v3574_v63 = vadd.f32 %v3471_v20, %v3187_v13  ;;  %v3190_v32 = vadd.f32 %v4925_v59, %v2803_v58  ;;  %v3481_v35 = vpop.f32.mrf.mxu0  ;;  %v6760_v44 = vld [vmem:[#allocation19_spill] sm:$0xff]  ;;  %v6761_v57 = vld [vmem:[#allocation9_spill] sm:$0xff]  ;;  %v6762_v59 = vld [vmem:[#allocation2_spill] sm:$0xff] }
 0x1d6   : > { %v3094_v31 = vpop.f32.mrf.mxu1  ;;  %v2420_v33 = vadd.f32 %v6758_v54, %v6757_v43  ;;  %v2809_v20 = vadd.f32 %v6759_v12, %v2421_v28  ;;  %v2423_v14 = vadd.f32 %v6761_v57, %v6760_v44  ;;  %v6773_v54 = vld [vmem:[#allocation35_spill] sm:$0xff]  ;;  %v6776_v57 = vld [vmem:[#allocation37_spill] sm:$0xff] }
 0x1d7   : > { %3675 = vst.msk [vmem:[%s6374_s15 + $0x60] sm:$0xff] %vm238_vm0, %v3643_v51  ;;  %v3646_v23 = vmax.f32 %v3614_v25, 0.0  ;;  %v3613_v7 = vadd.f32 %v6360_v10, %v3574_v63  ;;  %v3577_v30 = vadd.f32 %v4975_v21, %v3190_v32  ;;  %v3189_v61 = vadd.f32 %v3094_v31, %v2802_v9  ;;  %v4978_v52 = vpop.f32.mrf.mxu0  ;;  %v6763_v51 = vld [vmem:[#allocation20_spill] sm:$0xff]  ;;  %v6764_v25 = vld [vmem:[#allocation10_spill] sm:$0xff] }
 0x1d8   : > { %v4928_v46 = vpop.f32.mrf.mxu1  ;;  %v2808_v21 = vadd.f32 %v6762_v59, %v2420_v33  ;;  %v2422_v63 = vadd.f32 %v6764_v25, %v6763_v51  ;;  %v6765_v31 = vld [vmem:[#allocation8_spill] sm:$0xff]  ;;  %v6778_v51 = vld [vmem:[#allocation39_spill] sm:$0xff] }
 0x1d9   : > { %3678 = vst.msk [vmem:[%s6374_s15 + $0x78] sm:$0xff] %vm238_vm0, %v3646_v23  ;;  %v3645_v16 = vmax.f32 %v3613_v7, 0.0  ;;  %v3616_v4 = vadd.f32 %v6360_v10, %v3577_v30  ;;  %v3576_v1 = vadd.f32 %v3481_v35, %v3189_v61  ;;  %v3192_v2 = vadd.f32 %v4928_v46, %v2805_v11  ;;  %v3491_v38 = vpop.f32.mrf.mxu0  ;;  %v6766_v23 = vld [vmem:[#allocation21_spill] sm:$0xff] }
 0x1da   : > { %v3104_v0 = vpop.f32.mrf.mxu1  ;;  %v2811_v35 = vadd.f32 %v6765_v31, %v2423_v14  ;;  %v2425_v7 = vadd.f32 %v6323_v34, %v6766_v23  ;;  %v2810_v46 = vadd.f32 %v6767_v62, %v2422_v63  ;;  %v6779_v63 = vld [vmem:[#allocation26_spill] sm:$0xff] }
 0x1db   : > { %3677 = vst.msk [vmem:[%s6374_s15 + $0x70] sm:$0xff] %vm238_vm0, %v3645_v16  ;;  %v3648_v5 = vmax.f32 %v3616_v4, 0.0  ;;  %v3615_v53 = vadd.f32 %v6360_v10, %v3576_v1  ;;  %v3579_v24 = vadd.f32 %v4978_v52, %v3192_v2  ;;  %v3191_v26 = vadd.f32 %v3104_v0, %v2804_v42  ;;  %v4981_v8 = vpop.f32.mrf.mxu0  ;;  %v6768_v52 = vld [vmem:[#allocation22_spill] sm:$0xff]  ;;  %v6771_v0 = vld [vmem:[#allocation23_spill] sm:$0xff] }
 0x1dc   : > { %v4931_v50 = vpop.f32.mrf.mxu1  ;;  %v6769_v16 = vld [vmem:[#allocation34_spill] sm:$0xff]  ;;  %v2813_v28 = vadd.f32 %v6770_v22, %v2425_v7 }
 0x1dd   : > { %3680 = vst.msk [vmem:[%s6374_s15 + $0x88] sm:$0xff] %vm238_vm0, %v3648_v5  ;;  %v3647_v58 = vmax.f32 %v3615_v53, 0.0  ;;  %v3618_v29 = vadd.f32 %v6360_v10, %v3579_v24  ;;  %v3578_v6 = vadd.f32 %v3491_v38, %v3191_v26  ;;  %v3194_v39 = vadd.f32 %v4931_v50, %v2807_v17  ;;  %v3501_v47 = vpop.f32.mrf.mxu0  ;;  %v6772_v38 = vld [vmem:[#allocation36_spill] sm:$0xff] }
 0x1de   : > { %v3114_v13 = vpop.f32.mrf.mxu1  ;;  %v2424_v4 = vadd.f32 %v6769_v16, %v6768_v52  ;;  %v2427_v5 = vadd.f32 %v6772_v38, %v6771_v0  ;;  %v6774_v50 = vld [vmem:[#allocation24_spill] sm:$0xff] }
 0x1df   : > { %3679 = vst.msk [vmem:[%s6374_s15 + $0x80] sm:$0xff] %vm238_vm0, %v3647_v58  ;;  %v3650_v9 = vmax.f32 %v3618_v29, 0.0  ;;  %v3617_v15 = vadd.f32 %v6360_v10, %v3578_v6  ;;  %v3581_v27 = vadd.f32 %v4981_v8, %v3194_v39  ;;  %v3193_v18 = vadd.f32 %v3114_v13, %v2806_v55  ;;  %v4984_v48 = vpop.f32.mrf.mxu0  ;;  %v6775_v8 = vld [vmem:[#allocation38_spill] sm:$0xff]  ;;  %v6777_v13 = vld [vmem:[#allocation25_spill] sm:$0xff] }
 0x1e0   : > { %v4934_v32 = vpop.f32.mrf.mxu1  ;;  %v2812_v33 = vadd.f32 %v6773_v54, %v2424_v4  ;;  %v2426_v58 = vadd.f32 %v6775_v8, %v6774_v50  ;;  %v2815_v14 = vadd.f32 %v6776_v57, %v2427_v5 }
 0x1e1   : > { %3682 = vst.msk [vmem:[%s6374_s15 + $0x98] sm:$0xff] %vm238_vm0, %v3650_v9  ;;  %v3649_v11 = vmax.f32 %v3617_v15, 0.0  ;;  %v3620_v37 = vadd.f32 %v6360_v10, %v3581_v27  ;;  %v3580_v45 = vadd.f32 %v3501_v47, %v3193_v18  ;;  %v3196_v60 = vadd.f32 %v4934_v32, %v2809_v20  ;;  %v3511_v61 = vpop.f32.mrf.mxu0  ;;  %v6780_v32 = vld [vmem:[#allocation41_spill] sm:$0xff] }
 0x1e2   : > { %v3124_v30 = vpop.f32.mrf.mxu1  ;;  %v2429_v47 = vadd.f32 %v6340_v56, %v6777_v13  ;;  %v2814_v25 = vadd.f32 %v6778_v51, %v2426_v58 }
 0x1e3   : > { %3681 = vst.msk [vmem:[%s6374_s15 + $0x90] sm:$0xff] %vm238_vm0, %v3649_v11  ;;  %v3652_v40 = vmax.f32 %v3620_v37, 0.0  ;;  %v3619_v42 = vadd.f32 %v6360_v10, %v3580_v45  ;;  %v3583_v19 = vadd.f32 %v4984_v48, %v3196_v60  ;;  %v3195_v3 = vadd.f32 %v3124_v30, %v2808_v21  ;;  %v4987_v2 = vpop.f32.mrf.mxu0 }
 0x1e4   : > { %v4937_v1 = vpop.f32.mrf.mxu1  ;;  %v2428_v48 = vadd.f32 %v6780_v32, %v6779_v63 }
 0x1e5   : > { %3684 = vst.msk [vmem:[%s6374_s15 + $0xa8] sm:$0xff] %vm238_vm0, %v3652_v40  ;;  %v3651_v34 = vmax.f32 %v3619_v42, 0.0  ;;  %v3622_v49 = vadd.f32 %v6360_v10, %v3583_v19  ;;  %v3582_v17 = vadd.f32 %v3511_v61, %v3195_v3  ;;  %v3198_v41 = vadd.f32 %v4937_v1, %v2811_v35  ;;  %v3521_v24 = vpop.f32.mrf.mxu0  ;;  %v6781_v35 = vld [vmem:[#allocation40_spill] sm:$0xff]  ;;  %v6782_v3 = vld [vmem:[#allocation42_spill] sm:$0xff] }
 0x1e6   : > { %v3134_v53 = vpop.f32.mrf.mxu1  ;;  %v2817_v23 = vadd.f32 %v6781_v35, %v2429_v47  ;;  %v2816_v62 = vadd.f32 %v6782_v3, %v2428_v48 }
 0x1e7   : > { %3683 = vst.msk [vmem:[%s6374_s15 + $0xa0] sm:$0xff] %vm238_vm0, %v3651_v34  ;;  %v3654_v26 = vmax.f32 %v3622_v49, 0.0  ;;  %v3621_v36 = vadd.f32 %v6360_v10, %v3582_v17  ;;  %v3585_v55 = vadd.f32 %v4987_v2, %v3198_v41  ;;  %v3197_v43 = vadd.f32 %v3134_v53, %v2810_v46  ;;  %v4990_v6 = vpop.f32.mrf.mxu0 }
 0x1e8   : > { %v4940_v29 = vpop.f32.mrf.mxu1 }
 0x1e9   : > { %3686 = vst.msk [vmem:[%s6374_s15 + $0xb8] sm:$0xff] %vm238_vm0, %v3654_v26  ;;  %v3653_v39 = vmax.f32 %v3621_v36, 0.0  ;;  %v3624_v12 = vadd.f32 %v6360_v10, %v3585_v55  ;;  %v3584_v20 = vadd.f32 %v3521_v24, %v3197_v43  ;;  %v3200_v44 = vadd.f32 %v4940_v29, %v2813_v28  ;;  %v3531_v15 = vpop.f32.mrf.mxu0 }
 0x1ea   : > { %v3144_v9 = vpop.f32.mrf.mxu1 }
 0x1eb   : > { %3685 = vst.msk [vmem:[%s6374_s15 + $0xb0] sm:$0xff] %vm238_vm0, %v3653_v39  ;;  %v3656_v27 = vmax.f32 %v3624_v12, 0.0  ;;  %v3623_v18 = vadd.f32 %v6360_v10, %v3584_v20  ;;  %v3587_v59 = vadd.f32 %v4990_v6, %v3200_v44  ;;  %v3199_v21 = vadd.f32 %v3144_v9, %v2812_v33  ;;  %v4993_v37 = vpop.f32.mrf.mxu0 }
 0x1ec   : > { %v4943_v11 = vpop.f32.mrf.mxu1 }
 0x1ed   : > { %3688 = vst.msk [vmem:[%s6374_s15 + $0xc8] sm:$0xff] %vm238_vm0, %v3656_v27  ;;  %v3655_v56 = vmax.f32 %v3623_v18, 0.0  ;;  %v3626_v45 = vadd.f32 %v6360_v10, %v3587_v59  ;;  %v3586_v60 = vadd.f32 %v3531_v15, %v3199_v21  ;;  %v3202_v31 = vadd.f32 %v4943_v11, %v2815_v14  ;;  %v3541_v30 = vpop.f32.mrf.mxu0 }
 0x1ee   : > { %v3154_v7 = vpop.f32.mrf.mxu1 }
 0x1ef   : > { %3687 = vst.msk [vmem:[%s6374_s15 + $0xc0] sm:$0xff] %vm238_vm0, %v3655_v56  ;;  %v3658_v61 = vmax.f32 %v3626_v45, 0.0  ;;  %v3625_v40 = vadd.f32 %v6360_v10, %v3586_v60  ;;  %v3589_v42 = vadd.f32 %v4993_v37, %v3202_v31  ;;  %v3201_v19 = vadd.f32 %v3154_v7, %v2814_v25  ;;  %v4996_v52 = vpop.f32.mrf.mxu0 }
 0x1f0   : > { %v4946_v46 = vpop.f32.mrf.mxu1 }
 0x1f1   : > { %3690 = vst.msk [vmem:[%s6374_s15 + $0xd8] sm:$0xff] %vm238_vm0, %v3658_v61  ;;  %v3657_v16 = vmax.f32 %v3625_v40, 0.0  ;;  %v3628_v4 = vadd.f32 %v6360_v10, %v3589_v42  ;;  %v3588_v1 = vadd.f32 %v3541_v30, %v3201_v19  ;;  %v3204_v2 = vadd.f32 %v4946_v46, %v2817_v23  ;;  %v3551_v28 = vpop.f32.mrf.mxu0 }
 0x1f2   : > { %v3164_v34 = vpop.f32.mrf.mxu1 }
 0x1f3   : > { %3689 = vst.msk [vmem:[%s6374_s15 + $0xd0] sm:$0xff] %vm238_vm0, %v3657_v16  ;;  %v3660_v49 = vmax.f32 %v3628_v4, 0.0  ;;  %v3627_v17 = vadd.f32 %v6360_v10, %v3588_v1  ;;  %v3591_v41 = vadd.f32 %v4996_v52, %v3204_v2  ;;  %v3203_v22 = vadd.f32 %v3164_v34, %v2816_v62 }
 0x1f5   : > { %3692 = vst.msk [vmem:[%s6374_s15 + $0xe8] sm:$0xff] %vm238_vm0, %v3660_v49  ;;  %v3659_v0 = vmax.f32 %v3627_v17, 0.0  ;;  %v3630_v38 = vadd.f32 %v6360_v10, %v3591_v41  ;;  %v3590_v5 = vadd.f32 %v3551_v28, %v3203_v22 }
 0x1f7   : > { %3691 = vst.msk [vmem:[%s6374_s15 + $0xe0] sm:$0xff] %vm238_vm0, %v3659_v0  ;;  %v3662_v53 = vmax.f32 %v3630_v38, 0.0  ;;  %v3629_v24 = vadd.f32 %v6360_v10, %v3590_v5 }
 0x1f9   : > { %3694 = vst.msk [vmem:[%s6374_s15 + $0xf8] sm:$0xff] %vm238_vm0, %v3662_v53  ;;  %v3661_v26 = vmax.f32 %v3629_v24, 0.0 }
 0x1fb   : > { %3693 = vst.msk [vmem:[%s6374_s15 + $0xf0] sm:$0xff] %vm238_vm0, %v3661_v26 }
 0x1fc PF: > { %s13_s12 = sadd.s32 1, %s5014_s12  }
 0x1fd   : > { %p10_p4 = scmp.ge.s32.totalorder %s13_s12, 4  }
 0x1ff   :  { %12 = sbr.rel (!%p10_p4) target bundleno = 1 (0x1), region = 72 }

// kernel: conv_classifier_forward.9
= control target key start
LH: loop header
LB: loop body
LE: loop exit
PB: predicated region body
PF: predicated region fallthrough
CT: control target
= control target key end

     0   :  { %v181_v0 = vmov 0.0   ;;  %vm182_vm0 = vmmov 0   ;;  %s260_s1 = inlined_call_operand.vmem [shape: f32[128,128], index: 1, kind: input, shape index: {}]   ;;  %s261_s0 = inlined_call_operand.vmem [shape: f32[8,128], index: 0, kind: input, shape index: {}]   ;;  %s262_s2 = inlined_call_operand.vmem [shape: f32[1,128], index: 2, kind: input, shape index: {}]   ;;  %s263_s3 = inlined_call_operand.vmem [shape: f32[8,128], index: 3, kind: output, shape index: {}]  }
   0x1   :  { %144 = vmatprep.subr.mxu0 %v181_v0  ;;  %v36_v1 = vld [vmem:[%s260_s1 + $0x78] sm:$0xff]  ;;  %v35_v2 = vld [vmem:[%s260_s1 + $0x70] sm:$0xff]  ;;  %176 = vmatprep.mubr.msk.f32.mxu0 %vm182_vm0, %v181_v0  ;;  %v34_v3 = vld [vmem:[%s260_s1 + $0x68] sm:$0xff] }
   0x2   :  { %145 = vmatpush3.msra.mxu0 %v36_v1  ;;  %v33_v4 = vld [vmem:[%s260_s1 + $0x60] sm:$0xff]  ;;  %v32_v5 = vld [vmem:[%s260_s1 + $0x58] sm:$0xff]  ;;  %v31_v6 = vld [vmem:[%s260_s1 + $0x50] sm:$0xff] }
   0x3   :  { %146 = vmatprep.subr.mxu0 %v181_v0  ;;  %v30_v7 = vld [vmem:[%s260_s1 + $0x48] sm:$0xff]  ;;  %v29_v8 = vld [vmem:[%s260_s1 + $0x40] sm:$0xff]  ;;  %v28_v9 = vld [vmem:[%s260_s1 + $0x38] sm:$0xff] }
   0x4   :  { %147 = vmatpush3.msra.mxu0 %v35_v2  ;;  %v27_v10 = vld [vmem:[%s260_s1 + $0x30] sm:$0xff]  ;;  %v26_v11 = vld [vmem:[%s260_s1 + $0x28] sm:$0xff]  ;;  %v25_v12 = vld [vmem:[%s260_s1 + $0x20] sm:$0xff] }
   0x5   :  { %148 = vmatprep.subr.mxu0 %v181_v0  ;;  %v24_v13 = vld [vmem:[%s260_s1 + $0x18] sm:$0xff]  ;;  %v23_v14 = vld [vmem:[%s260_s1 + $0x10] sm:$0xff]  ;;  %v22_v15 = vld [vmem:[%s260_s1 + $0x8] sm:$0xff] }
   0x6   :  { %149 = vmatpush3.msra.mxu0 %v34_v3  ;;  %v21_v16 = vld [vmem:[%s260_s1] sm:$0xff] }
   0x7   :  { %150 = vmatprep.subr.mxu0 %v181_v0  ;;  %v20_v17 = vld [vmem:[%s261_s0] sm:$0xff] }
   0x8   :  { %151 = vmatpush3.msra.mxu0 %v33_v4  ;;  %v126_v18 = vld [vmem:[%s262_s2] ss:$0 sm:$0xff] }
   0x9   :  { %152 = vmatprep.subr.mxu0 %v181_v0 }
   0xa   :  { %153 = vmatpush3.msra.mxu0 %v32_v5 }
   0xb   :  { %154 = vmatprep.subr.mxu0 %v181_v0 }
   0xc   :  { %155 = vmatpush3.msra.mxu0 %v31_v6 }
   0xd   :  { %156 = vmatprep.subr.mxu0 %v181_v0 }
   0xe   :  { %157 = vmatpush3.msra.mxu0 %v30_v7 }
   0xf   :  { %158 = vmatprep.subr.mxu0 %v181_v0 }
  0x10   :  { %159 = vmatpush3.msra.mxu0 %v29_v8 }
  0x11   :  { %160 = vmatprep.subr.mxu0 %v181_v0 }
  0x12   :  { %161 = vmatpush3.msra.mxu0 %v28_v9 }
  0x13   :  { %162 = vmatprep.subr.mxu0 %v181_v0 }
  0x14   :  { %163 = vmatpush3.msra.mxu0 %v27_v10 }
  0x15   :  { %164 = vmatprep.subr.mxu0 %v181_v0 }
  0x16   :  { %165 = vmatpush3.msra.mxu0 %v26_v11 }
  0x17   :  { %166 = vmatprep.subr.mxu0 %v181_v0 }
  0x18   :  { %167 = vmatpush3.msra.mxu0 %v25_v12 }
  0x19   :  { %168 = vmatprep.subr.mxu0 %v181_v0 }
  0x1a   :  { %169 = vmatpush3.msra.mxu0 %v24_v13 }
  0x1b   :  { %170 = vmatprep.subr.mxu0 %v181_v0 }
  0x1c   :  { %171 = vmatpush3.msra.mxu0 %v23_v14 }
  0x1d   :  { %172 = vmatprep.subr.mxu0 %v181_v0 }
  0x1e   :  { %173 = vmatpush3.msra.mxu0 %v22_v15 }
  0x1f   :  { %174 = vmatprep.subr.mxu0 %v181_v0 }
  0x20   :  { %175 = vmatpush3.msra.mxu0 %v21_v16 }
  0x21   :  { %177 = vmatmul.mubr.f32.vlgmr.msra.gmra.mxu0 %v20_v17 }
  0xe1   :  { %v103_v19 = vpop.f32.mrf.mxu0 }
  0xe2   :  { %v120_v20 = vadd.f32 %v126_v18, %v103_v19 }
  0xe3   :  { %v178_v21 = vpop.f32.mrf.mxu0 }
  0xe4   :  { %121 = vst [vmem:[%s263_s3] sm:$0xff] %v120_v20 }

</bundles_post_ra>
